<compile_context>
chip_gen: v7x
topology: tpu7x:2x2x1
jax: 0.10.0
libtpu: 0.0.40
codegen_flags: <defaults>
</compile_context>

<pallas_src>
import functools

import jax
import jax.numpy as jnp
from jax.experimental import pallas as pl
from jax.experimental.pallas import tpu as pltpu

HIDDEN = 256
NUM_BLOCKS = 10
LANE = 128


def _round_up(x, m):
  return ((x + m - 1) // m) * m


def _pick_batch_tile(b):
  # Big enough to feed MXU rows (>=128 when possible), small enough to leave
  # VMEM headroom with double-buffered activation tiles even on v7x (64 MiB/TC).
  if b >= 1024:
    return 512
  if b >= 128:
    return 128
  return _round_up(b, 8)


def _make_kernel(collect_inner):
  """Whole forward pass for one batch tile, fully VMEM-resident."""

  def kernel(x_ref, win_ref, bin_ref, w1_ref, b1_ref, w2_ref, b2_ref,
             wout_ref, bout_ref, out_ref, *inner_refs):
    inner_ref = inner_refs[0] if collect_inner else None

    # Input layer: bf16 MXU matmul, f32 accumulate, f32 bias + ReLU.
    x = x_ref[...].astype(jnp.bfloat16)
    h = jnp.dot(x, win_ref[...], preferred_element_type=jnp.float32)
    h = jnp.maximum(h + bin_ref[...], 0.0)
    if collect_inner:
      inner_ref[0] = h

    # Residual blocks (static unroll; NUM_BLOCKS is a compile-time constant).
    for i in range(NUM_BLOCKS):
      identity = h
      o = jnp.dot(h.astype(jnp.bfloat16), w1_ref[i],
                  preferred_element_type=jnp.float32)
      o = jnp.maximum(o + b1_ref[i], 0.0)
      # Dropout(0.2) in eval mode: identity.
      o = jnp.dot(o.astype(jnp.bfloat16), w2_ref[i],
                  preferred_element_type=jnp.float32) + b2_ref[i]
      h = jnp.maximum(o + identity, 0.0)
      if collect_inner:
        inner_ref[i + 1] = h

    # Output layer (no activation); lane-dense padded slab.
    y = jnp.dot(h.astype(jnp.bfloat16), wout_ref[...],
                preferred_element_type=jnp.float32)
    out_ref[...] = y + bout_ref[...]

  return kernel


@functools.partial(jax.jit, static_argnames=("output_size", "return_inner"))
def residual_network_forward(x, params, *, output_size, return_inner=True):
  """x: [B, input_size] float32 -> (y [B, output_size], inner [11, B, 256])."""
  win, bin_, w1s, b1s, w2s, b2s, wout, bout = params
  b, d_in = x.shape

  bt = _pick_batch_tile(b)
  b_pad = _round_up(b, bt)
  out_pad = _round_up(max(output_size, LANE), LANE)

  # Pad batch rows and output lanes (sliced off below).
  x_p = jnp.zeros((b_pad, d_in), jnp.float32).at[:b].set(x.astype(jnp.float32))
  wout_p = jnp.zeros((HIDDEN, out_pad), jnp.bfloat16)
  wout_p = wout_p.at[:, :output_size].set(wout.astype(jnp.bfloat16))
  bout_p = jnp.zeros((1, out_pad), jnp.float32)
  bout_p = bout_p.at[:, :output_size].set(bout.astype(jnp.float32))

  # Matmul operands in bf16; biases stay f32 (f32 VPU path on all generations).
  win_b = win.astype(jnp.bfloat16)
  w1s_b = w1s.astype(jnp.bfloat16)
  w2s_b = w2s.astype(jnp.bfloat16)
  bin_f = bin_.astype(jnp.float32)
  b1s_f = b1s.astype(jnp.float32)
  b2s_f = b2s.astype(jnp.float32)

  grid = (b_pad // bt,)
  const2 = lambda i: (0, 0)
  const3 = lambda i: (0, 0, 0)

  in_specs = [
      pl.BlockSpec((bt, d_in), lambda i: (i, 0)),                 # x (tiled)
      pl.BlockSpec((d_in, HIDDEN), const2),                       # W_in (resident)
      pl.BlockSpec((1, HIDDEN), const2),                          # b_in
      pl.BlockSpec((NUM_BLOCKS, HIDDEN, HIDDEN), const3),         # W1 stack
      pl.BlockSpec((NUM_BLOCKS, 1, HIDDEN), const3),              # b1 stack
      pl.BlockSpec((NUM_BLOCKS, HIDDEN, HIDDEN), const3),         # W2 stack
      pl.BlockSpec((NUM_BLOCKS, 1, HIDDEN), const3),              # b2 stack
      pl.BlockSpec((HIDDEN, out_pad), const2),                    # W_out (padded)
      pl.BlockSpec((1, out_pad), const2),                         # b_out (padded)
  ]

  out_shape = [jax.ShapeDtypeStruct((b_pad, out_pad), jnp.float32)]
  out_specs = [pl.BlockSpec((bt, out_pad), lambda i: (i, 0))]
  if return_inner:
    out_shape.append(
        jax.ShapeDtypeStruct((NUM_BLOCKS + 1, b_pad, HIDDEN), jnp.float32))
    out_specs.append(
        pl.BlockSpec((NUM_BLOCKS + 1, bt, HIDDEN), lambda i: (0, i, 0)))

  results = pl.pallas_call(
      _make_kernel(return_inner),
      out_shape=tuple(out_shape),
      grid=grid,
      in_specs=in_specs,
      out_specs=tuple(out_specs),
      compiler_params=pltpu.CompilerParams(
          dimension_semantics=("parallel",),
          vmem_limit_bytes=32 << 20,
      ),
  )(x_p, win_b, bin_f, w1s_b, b1s_f, w2s_b, b2s_f, wout_p, bout_p)

  y = results[0][:b, :output_size]
  if return_inner:
    inner = results[1][:, :b, :]
    return y, inner
  return y


def init_params(key, input_size, output_size):
  """Deterministic parameter init (uniform +/- 1/sqrt(fan_in), like PyTorch).

  Weights are stored [in_features, out_features] (transpose of nn.Linear).
  """
  keys = jax.random.split(key, 8)

  def u(k, shape, fan_in):
    bound = 1.0 / (fan_in ** 0.5)
    return jax.random.uniform(k, shape, jnp.float32, -bound, bound)

  win = u(keys[0], (input_size, HIDDEN), input_size)
  bin_ = u(keys[1], (1, HIDDEN), input_size)
  w1s = u(keys[2], (NUM_BLOCKS, HIDDEN, HIDDEN), HIDDEN)
  b1s = u(keys[3], (NUM_BLOCKS, 1, HIDDEN), HIDDEN)
  w2s = u(keys[4], (NUM_BLOCKS, HIDDEN, HIDDEN), HIDDEN)
  b2s = u(keys[5], (NUM_BLOCKS, 1, HIDDEN), HIDDEN)
  wout = u(keys[6], (HIDDEN, output_size), HIDDEN)
  bout = u(keys[7], (1, output_size), HIDDEN)
  return (win, bin_, w1s, b1s, w2s, b2s, wout, bout)


def reference_forward_matched(x, params):
  """Pure-JAX reference mirroring the kernel's bf16-matmul / f32-accumulate math."""
  win, bin_, w1s, b1s, w2s, b2s, wout, bout = params

  def mm(a, w):
    return jnp.dot(a.astype(jnp.bfloat16), w.astype(jnp.bfloat16),
                   preferred_element_type=jnp.float32)

  h = jnp.maximum(mm(x, win) + bin_, 0.0)
  inner = [h]
  for i in range(NUM_BLOCKS):
    o = jnp.maximum(mm(h, w1s[i]) + b1s[i], 0.0)
    o = mm(o, w2s[i]) + b2s[i]
    h = jnp.maximum(o + h, 0.0)
    inner.append(h)
  return mm(h, wout) + bout, jnp.stack(inner, axis=0)


def reference_forward_f32(x, params):
  """Full-f32 reference of the module's math (loose sanity check for bf16 path)."""
  win, bin_, w1s, b1s, w2s, b2s, wout, bout = [
      jnp.asarray(p, jnp.float32) for p in params]
  h = jnp.maximum(x @ win + bin_, 0.0)
  inner = [h]
  for i in range(NUM_BLOCKS):
    o = jnp.maximum(h @ w1s[i] + b1s[i], 0.0)
    o = o @ w2s[i] + b2s[i]
    h = jnp.maximum(o + h, 0.0)
    inner.append(h)
  return h @ wout + bout, jnp.stack(inner, axis=0)


if __name__ == "__main__":
  B, INPUT_SIZE, OUTPUT_SIZE = 256, 32, 16   # B=256 -> batch tile 128, grid=(2,)

  key = jax.random.PRNGKey(0)
  kx, kp = jax.random.split(key)
  x = jax.random.normal(kx, (B, INPUT_SIZE), jnp.float32)
  params = init_params(kp, INPUT_SIZE, OUTPUT_SIZE)

  out, inner = residual_network_forward(x, params, output_size=OUTPUT_SIZE)
  out = jax.block_until_ready(out)
  inner = jax.block_until_ready(inner)

  # mimic the PyTorch return type: (output, list of inner representations)
  inner_representations = [inner[i] for i in range(NUM_BLOCKS + 1)]

  # fast path without inner-representation writeback
  out_only = residual_network_forward(
      x, params, output_size=OUTPUT_SIZE, return_inner=False)
  out_only = jax.block_until_ready(out_only)

  ref_out, ref_inner = reference_forward_matched(x, params)
  f32_out, _ = reference_forward_f32(x, params)

  assert out.shape == (B, OUTPUT_SIZE)
  assert len(inner_representations) == NUM_BLOCKS + 1
  assert inner.shape == (NUM_BLOCKS + 1, B, HIDDEN)
  assert jnp.allclose(out, ref_out, atol=1e-2, rtol=1e-2)
  assert jnp.allclose(inner, ref_inner, atol=1e-2, rtol=1e-2)
  assert jnp.allclose(out, out_only, atol=1e-6, rtol=1e-6)
  # loose sanity check of the bf16 kernel against the pure-f32 module math
  assert jnp.allclose(out, f32_out, atol=0.25, rtol=0.25)

  print("KERNEL_OK")
</pallas_src>

<mosaic_0001>
module attributes {stable_mosaic.version = 11 : i64} {
  func.func @kernel(%arg0: i32, %arg1: memref<128x32xf32, #tpu.memory_space<vmem>>, %arg2: memref<32x256xbf16, #tpu.memory_space<vmem>>, %arg3: memref<1x256xf32, #tpu.memory_space<vmem>>, %arg4: memref<10x256x256xbf16, #tpu.memory_space<vmem>>, %arg5: memref<10x1x256xf32, #tpu.memory_space<vmem>>, %arg6: memref<10x256x256xbf16, #tpu.memory_space<vmem>>, %arg7: memref<10x1x256xf32, #tpu.memory_space<vmem>>, %arg8: memref<256x128xbf16, #tpu.memory_space<vmem>>, %arg9: memref<1x128xf32, #tpu.memory_space<vmem>>, %arg10: memref<128x128xf32, #tpu.memory_space<vmem>>, %arg11: memref<11x128x256xf32, #tpu.memory_space<vmem>>) attributes {dimension_semantics = [#tpu.dimension_semantics<parallel>], iteration_bounds = array<i64: 2>, scalar_prefetch = 0 : i64, scratch_operands = 0 : i64, tpu.core_type = #tpu.core_type<tc>, window_params = [{transform_indices = @transform_0, window_bounds = array<i64: 128, 32>}, {pipeline_mode = #tpu.pipeline_mode<synchronous>, transform_indices = @transform_1, window_bounds = array<i64: 32, 256>}, {pipeline_mode = #tpu.pipeline_mode<synchronous>, transform_indices = @transform_2, window_bounds = array<i64: 1, 256>}, {pipeline_mode = #tpu.pipeline_mode<synchronous>, transform_indices = @transform_3, window_bounds = array<i64: 10, 256, 256>}, {pipeline_mode = #tpu.pipeline_mode<synchronous>, transform_indices = @transform_4, window_bounds = array<i64: 10, 1, 256>}, {pipeline_mode = #tpu.pipeline_mode<synchronous>, transform_indices = @transform_5, window_bounds = array<i64: 10, 256, 256>}, {pipeline_mode = #tpu.pipeline_mode<synchronous>, transform_indices = @transform_6, window_bounds = array<i64: 10, 1, 256>}, {pipeline_mode = #tpu.pipeline_mode<synchronous>, transform_indices = @transform_7, window_bounds = array<i64: 256, 128>}, {pipeline_mode = #tpu.pipeline_mode<synchronous>, transform_indices = @transform_8, window_bounds = array<i64: 1, 128>}, {transform_indices = @transform_9, window_bounds = array<i64: 128, 128>}, {transform_indices = @transform_10, window_bounds = array<i64: 11, 128, 256>}]} {
    %c0 = arith.constant 0 : index
    %c0_0 = arith.constant 0 : index
    %0 = vector.load %arg1[%c0, %c0_0] : memref<128x32xf32, #tpu.memory_space<vmem>>, vector<128x32xf32>
    %1 = arith.truncf %0 : vector<128x32xf32> to vector<128x32xbf16>
    %c0_1 = arith.constant 0 : index
    %c0_2 = arith.constant 0 : index
    %2 = vector.load %arg2[%c0_1, %c0_2] : memref<32x256xbf16, #tpu.memory_space<vmem>>, vector<32x256xbf16>
    %cst = arith.constant dense<0.000000e+00> : vector<128x256xf32>
    %3 = tpu.matmul %1, %2, %cst {dimension_numbers = #tpu.dot_dimension_numbers<[1], [0], [0], [1], [0, 0, 1, 1], [], []>} : vector<128x32xbf16>, vector<32x256xbf16>, vector<128x256xf32> -> vector<128x256xf32>
    %c0_3 = arith.constant 0 : index
    %c0_4 = arith.constant 0 : index
    %4 = vector.load %arg3[%c0_3, %c0_4] : memref<1x256xf32, #tpu.memory_space<vmem>>, vector<1x256xf32>
    %5 = vector.broadcast %4 : vector<1x256xf32> to vector<128x256xf32>
    %6 = arith.addf %3, %5 : vector<128x256xf32>
    %cst_5 = arith.constant 0.000000e+00 : f32
    %7 = vector.broadcast %cst_5 : f32 to vector<128x256xf32>
    %8 = arith.maximumf %6, %7 : vector<128x256xf32>
    %c0_6 = arith.constant 0 : index
    %c0_7 = arith.constant 0 : index
    %c0_8 = arith.constant 0 : index
    %9 = vector.load %arg11[%c0_6, %c0_7, %c0_8] : memref<11x128x256xf32, #tpu.memory_space<vmem>>, vector<1x128x256xf32>
    %10 = vector.shape_cast %9 : vector<1x128x256xf32> to vector<128x256xf32>
    %11 = vector.shape_cast %8 : vector<128x256xf32> to vector<1x128x256xf32>
    tpu.vector_store %arg11[%c0_6, %c0_7, %c0_8], %11 {strides = array<i32>} : memref<11x128x256xf32, #tpu.memory_space<vmem>>, vector<1x128x256xf32>,
    %12 = arith.truncf %8 : vector<128x256xf32> to vector<128x256xbf16>
    %c0_9 = arith.constant 0 : index
    %c0_10 = arith.constant 0 : index
    %c0_11 = arith.constant 0 : index
    %13 = vector.load %arg4[%c0_9, %c0_10, %c0_11] : memref<10x256x256xbf16, #tpu.memory_space<vmem>>, vector<1x256x256xbf16>
    %14 = vector.shape_cast %13 : vector<1x256x256xbf16> to vector<256x256xbf16>
    %cst_12 = arith.constant dense<0.000000e+00> : vector<128x256xf32>
    %15 = tpu.matmul %12, %14, %cst_12 {dimension_numbers = #tpu.dot_dimension_numbers<[1], [0], [0], [1], [0, 0, 1, 1], [], []>} : vector<128x256xbf16>, vector<256x256xbf16>, vector<128x256xf32> -> vector<128x256xf32>
    %c0_13 = arith.constant 0 : index
    %c0_14 = arith.constant 0 : index
    %c0_15 = arith.constant 0 : index
    %16 = vector.load %arg5[%c0_13, %c0_14, %c0_15] : memref<10x1x256xf32, #tpu.memory_space<vmem>>, vector<1x1x256xf32>
    %17 = vector.shape_cast %16 : vector<1x1x256xf32> to vector<1x256xf32>
    %18 = vector.broadcast %17 : vector<1x256xf32> to vector<128x256xf32>
    %19 = arith.addf %15, %18 : vector<128x256xf32>
    %cst_16 = arith.constant 0.000000e+00 : f32
    %20 = vector.broadcast %cst_16 : f32 to vector<128x256xf32>
    %21 = arith.maximumf %19, %20 : vector<128x256xf32>
    %22 = arith.truncf %21 : vector<128x256xf32> to vector<128x256xbf16>
    %c0_17 = arith.constant 0 : index
    %c0_18 = arith.constant 0 : index
    %c0_19 = arith.constant 0 : index
    %23 = vector.load %arg6[%c0_17, %c0_18, %c0_19] : memref<10x256x256xbf16, #tpu.memory_space<vmem>>, vector<1x256x256xbf16>
    %24 = vector.shape_cast %23 : vector<1x256x256xbf16> to vector<256x256xbf16>
    %cst_20 = arith.constant dense<0.000000e+00> : vector<128x256xf32>
    %25 = tpu.matmul %22, %24, %cst_20 {dimension_numbers = #tpu.dot_dimension_numbers<[1], [0], [0], [1], [0, 0, 1, 1], [], []>} : vector<128x256xbf16>, vector<256x256xbf16>, vector<128x256xf32> -> vector<128x256xf32>
    %c0_21 = arith.constant 0 : index
    %c0_22 = arith.constant 0 : index
    %c0_23 = arith.constant 0 : index
    %26 = vector.load %arg7[%c0_21, %c0_22, %c0_23] : memref<10x1x256xf32, #tpu.memory_space<vmem>>, vector<1x1x256xf32>
    %27 = vector.shape_cast %26 : vector<1x1x256xf32> to vector<1x256xf32>
    %28 = vector.broadcast %27 : vector<1x256xf32> to vector<128x256xf32>
    %29 = arith.addf %25, %28 : vector<128x256xf32>
    %30 = arith.addf %29, %8 : vector<128x256xf32>
    %cst_24 = arith.constant 0.000000e+00 : f32
    %31 = vector.broadcast %cst_24 : f32 to vector<128x256xf32>
    %32 = arith.maximumf %30, %31 : vector<128x256xf32>
    %c1 = arith.constant 1 : index
    %c0_25 = arith.constant 0 : index
    %c0_26 = arith.constant 0 : index
    %33 = vector.load %arg11[%c1, %c0_25, %c0_26] : memref<11x128x256xf32, #tpu.memory_space<vmem>>, vector<1x128x256xf32>
    %34 = vector.shape_cast %33 : vector<1x128x256xf32> to vector<128x256xf32>
    %35 = vector.shape_cast %32 : vector<128x256xf32> to vector<1x128x256xf32>
    tpu.vector_store %arg11[%c1, %c0_25, %c0_26], %35 {strides = array<i32>} : memref<11x128x256xf32, #tpu.memory_space<vmem>>, vector<1x128x256xf32>,
    %36 = arith.truncf %32 : vector<128x256xf32> to vector<128x256xbf16>
    %c1_27 = arith.constant 1 : index
    %c0_28 = arith.constant 0 : index
    %c0_29 = arith.constant 0 : index
    %37 = vector.load %arg4[%c1_27, %c0_28, %c0_29] : memref<10x256x256xbf16, #tpu.memory_space<vmem>>, vector<1x256x256xbf16>
    %38 = vector.shape_cast %37 : vector<1x256x256xbf16> to vector<256x256xbf16>
    %cst_30 = arith.constant dense<0.000000e+00> : vector<128x256xf32>
    %39 = tpu.matmul %36, %38, %cst_30 {dimension_numbers = #tpu.dot_dimension_numbers<[1], [0], [0], [1], [0, 0, 1, 1], [], []>} : vector<128x256xbf16>, vector<256x256xbf16>, vector<128x256xf32> -> vector<128x256xf32>
    %c1_31 = arith.constant 1 : index
    %c0_32 = arith.constant 0 : index
    %c0_33 = arith.constant 0 : index
    %40 = vector.load %arg5[%c1_31, %c0_32, %c0_33] : memref<10x1x256xf32, #tpu.memory_space<vmem>>, vector<1x1x256xf32>
    %41 = vector.shape_cast %40 : vector<1x1x256xf32> to vector<1x256xf32>
    %42 = vector.broadcast %41 : vector<1x256xf32> to vector<128x256xf32>
    %43 = arith.addf %39, %42 : vector<128x256xf32>
    %cst_34 = arith.constant 0.000000e+00 : f32
    %44 = vector.broadcast %cst_34 : f32 to vector<128x256xf32>
    %45 = arith.maximumf %43, %44 : vector<128x256xf32>
    %46 = arith.truncf %45 : vector<128x256xf32> to vector<128x256xbf16>
    %c1_35 = arith.constant 1 : index
    %c0_36 = arith.constant 0 : index
    %c0_37 = arith.constant 0 : index
    %47 = vector.load %arg6[%c1_35, %c0_36, %c0_37] : memref<10x256x256xbf16, #tpu.memory_space<vmem>>, vector<1x256x256xbf16>
    %48 = vector.shape_cast %47 : vector<1x256x256xbf16> to vector<256x256xbf16>
    %cst_38 = arith.constant dense<0.000000e+00> : vector<128x256xf32>
    %49 = tpu.matmul %46, %48, %cst_38 {dimension_numbers = #tpu.dot_dimension_numbers<[1], [0], [0], [1], [0, 0, 1, 1], [], []>} : vector<128x256xbf16>, vector<256x256xbf16>, vector<128x256xf32> -> vector<128x256xf32>
    %c1_39 = arith.constant 1 : index
    %c0_40 = arith.constant 0 : index
    %c0_41 = arith.constant 0 : index
    %50 = vector.load %arg7[%c1_39, %c0_40, %c0_41] : memref<10x1x256xf32, #tpu.memory_space<vmem>>, vector<1x1x256xf32>
    %51 = vector.shape_cast %50 : vector<1x1x256xf32> to vector<1x256xf32>
    %52 = vector.broadcast %51 : vector<1x256xf32> to vector<128x256xf32>
    %53 = arith.addf %49, %52 : vector<128x256xf32>
    %54 = arith.addf %53, %32 : vector<128x256xf32>
    %cst_42 = arith.constant 0.000000e+00 : f32
    %55 = vector.broadcast %cst_42 : f32 to vector<128x256xf32>
    %56 = arith.maximumf %54, %55 : vector<128x256xf32>
    %c2 = arith.constant 2 : index
    %c0_43 = arith.constant 0 : index
    %c0_44 = arith.constant 0 : index
    %57 = vector.load %arg11[%c2, %c0_43, %c0_44] : memref<11x128x256xf32, #tpu.memory_space<vmem>>, vector<1x128x256xf32>
    %58 = vector.shape_cast %57 : vector<1x128x256xf32> to vector<128x256xf32>
    %59 = vector.shape_cast %56 : vector<128x256xf32> to vector<1x128x256xf32>
    tpu.vector_store %arg11[%c2, %c0_43, %c0_44], %59 {strides = array<i32>} : memref<11x128x256xf32, #tpu.memory_space<vmem>>, vector<1x128x256xf32>,
    %60 = arith.truncf %56 : vector<128x256xf32> to vector<128x256xbf16>
    %c2_45 = arith.constant 2 : index
    %c0_46 = arith.constant 0 : index
    %c0_47 = arith.constant 0 : index
    %61 = vector.load %arg4[%c2_45, %c0_46, %c0_47] : memref<10x256x256xbf16, #tpu.memory_space<vmem>>, vector<1x256x256xbf16>
    %62 = vector.shape_cast %61 : vector<1x256x256xbf16> to vector<256x256xbf16>
    %cst_48 = arith.constant dense<0.000000e+00> : vector<128x256xf32>
    %63 = tpu.matmul %60, %62, %cst_48 {dimension_numbers = #tpu.dot_dimension_numbers<[1], [0], [0], [1], [0, 0, 1, 1], [], []>} : vector<128x256xbf16>, vector<256x256xbf16>, vector<128x256xf32> -> vector<128x256xf32>
    %c2_49 = arith.constant 2 : index
    %c0_50 = arith.constant 0 : index
    %c0_51 = arith.constant 0 : index
    %64 = vector.load %arg5[%c2_49, %c0_50, %c0_51] : memref<10x1x256xf32, #tpu.memory_space<vmem>>, vector<1x1x256xf32>
    %65 = vector.shape_cast %64 : vector<1x1x256xf32> to vector<1x256xf32>
    %66 = vector.broadcast %65 : vector<1x256xf32> to vector<128x256xf32>
    %67 = arith.addf %63, %66 : vector<128x256xf32>
    %cst_52 = arith.constant 0.000000e+00 : f32
    %68 = vector.broadcast %cst_52 : f32 to vector<128x256xf32>
    %69 = arith.maximumf %67, %68 : vector<128x256xf32>
    %70 = arith.truncf %69 : vector<128x256xf32> to vector<128x256xbf16>
    %c2_53 = arith.constant 2 : index
    %c0_54 = arith.constant 0 : index
    %c0_55 = arith.constant 0 : index
    %71 = vector.load %arg6[%c2_53, %c0_54, %c0_55] : memref<10x256x256xbf16, #tpu.memory_space<vmem>>, vector<1x256x256xbf16>
    %72 = vector.shape_cast %71 : vector<1x256x256xbf16> to vector<256x256xbf16>
    %cst_56 = arith.constant dense<0.000000e+00> : vector<128x256xf32>
    %73 = tpu.matmul %70, %72, %cst_56 {dimension_numbers = #tpu.dot_dimension_numbers<[1], [0], [0], [1], [0, 0, 1, 1], [], []>} : vector<128x256xbf16>, vector<256x256xbf16>, vector<128x256xf32> -> vector<128x256xf32>
    %c2_57 = arith.constant 2 : index
    %c0_58 = arith.constant 0 : index
    %c0_59 = arith.constant 0 : index
    %74 = vector.load %arg7[%c2_57, %c0_58, %c0_59] : memref<10x1x256xf32, #tpu.memory_space<vmem>>, vector<1x1x256xf32>
    %75 = vector.shape_cast %74 : vector<1x1x256xf32> to vector<1x256xf32>
    %76 = vector.broadcast %75 : vector<1x256xf32> to vector<128x256xf32>
    %77 = arith.addf %73, %76 : vector<128x256xf32>
    %78 = arith.addf %77, %56 : vector<128x256xf32>
    %cst_60 = arith.constant 0.000000e+00 : f32
    %79 = vector.broadcast %cst_60 : f32 to vector<128x256xf32>
    %80 = arith.maximumf %78, %79 : vector<128x256xf32>
    %c3 = arith.constant 3 : index
    %c0_61 = arith.constant 0 : index
    %c0_62 = arith.constant 0 : index
    %81 = vector.load %arg11[%c3, %c0_61, %c0_62] : memref<11x128x256xf32, #tpu.memory_space<vmem>>, vector<1x128x256xf32>
    %82 = vector.shape_cast %81 : vector<1x128x256xf32> to vector<128x256xf32>
    %83 = vector.shape_cast %80 : vector<128x256xf32> to vector<1x128x256xf32>
    tpu.vector_store %arg11[%c3, %c0_61, %c0_62], %83 {strides = array<i32>} : memref<11x128x256xf32, #tpu.memory_space<vmem>>, vector<1x128x256xf32>,
    %84 = arith.truncf %80 : vector<128x256xf32> to vector<128x256xbf16>
    %c3_63 = arith.constant 3 : index
    %c0_64 = arith.constant 0 : index
    %c0_65 = arith.constant 0 : index
    %85 = vector.load %arg4[%c3_63, %c0_64, %c0_65] : memref<10x256x256xbf16, #tpu.memory_space<vmem>>, vector<1x256x256xbf16>
    %86 = vector.shape_cast %85 : vector<1x256x256xbf16> to vector<256x256xbf16>
    %cst_66 = arith.constant dense<0.000000e+00> : vector<128x256xf32>
    %87 = tpu.matmul %84, %86, %cst_66 {dimension_numbers = #tpu.dot_dimension_numbers<[1], [0], [0], [1], [0, 0, 1, 1], [], []>} : vector<128x256xbf16>, vector<256x256xbf16>, vector<128x256xf32> -> vector<128x256xf32>
    %c3_67 = arith.constant 3 : index
    %c0_68 = arith.constant 0 : index
    %c0_69 = arith.constant 0 : index
    %88 = vector.load %arg5[%c3_67, %c0_68, %c0_69] : memref<10x1x256xf32, #tpu.memory_space<vmem>>, vector<1x1x256xf32>
    %89 = vector.shape_cast %88 : vector<1x1x256xf32> to vector<1x256xf32>
    %90 = vector.broadcast %89 : vector<1x256xf32> to vector<128x256xf32>
    %91 = arith.addf %87, %90 : vector<128x256xf32>
    %cst_70 = arith.constant 0.000000e+00 : f32
    %92 = vector.broadcast %cst_70 : f32 to vector<128x256xf32>
    %93 = arith.maximumf %91, %92 : vector<128x256xf32>
    %94 = arith.truncf %93 : vector<128x256xf32> to vector<128x256xbf16>
    %c3_71 = arith.constant 3 : index
    %c0_72 = arith.constant 0 : index
    %c0_73 = arith.constant 0 : index
    %95 = vector.load %arg6[%c3_71, %c0_72, %c0_73] : memref<10x256x256xbf16, #tpu.memory_space<vmem>>, vector<1x256x256xbf16>
    %96 = vector.shape_cast %95 : vector<1x256x256xbf16> to vector<256x256xbf16>
    %cst_74 = arith.constant dense<0.000000e+00> : vector<128x256xf32>
    %97 = tpu.matmul %94, %96, %cst_74 {dimension_numbers = #tpu.dot_dimension_numbers<[1], [0], [0], [1], [0, 0, 1, 1], [], []>} : vector<128x256xbf16>, vector<256x256xbf16>, vector<128x256xf32> -> vector<128x256xf32>
    %c3_75 = arith.constant 3 : index
    %c0_76 = arith.constant 0 : index
    %c0_77 = arith.constant 0 : index
    %98 = vector.load %arg7[%c3_75, %c0_76, %c0_77] : memref<10x1x256xf32, #tpu.memory_space<vmem>>, vector<1x1x256xf32>
    %99 = vector.shape_cast %98 : vector<1x1x256xf32> to vector<1x256xf32>
    %100 = vector.broadcast %99 : vector<1x256xf32> to vector<128x256xf32>
    %101 = arith.addf %97, %100 : vector<128x256xf32>
    %102 = arith.addf %101, %80 : vector<128x256xf32>
    %cst_78 = arith.constant 0.000000e+00 : f32
    %103 = vector.broadcast %cst_78 : f32 to vector<128x256xf32>
    %104 = arith.maximumf %102, %103 : vector<128x256xf32>
    %c4 = arith.constant 4 : index
    %c0_79 = arith.constant 0 : index
    %c0_80 = arith.constant 0 : index
    %105 = vector.load %arg11[%c4, %c0_79, %c0_80] : memref<11x128x256xf32, #tpu.memory_space<vmem>>, vector<1x128x256xf32>
    %106 = vector.shape_cast %105 : vector<1x128x256xf32> to vector<128x256xf32>
    %107 = vector.shape_cast %104 : vector<128x256xf32> to vector<1x128x256xf32>
    tpu.vector_store %arg11[%c4, %c0_79, %c0_80], %107 {strides = array<i32>} : memref<11x128x256xf32, #tpu.memory_space<vmem>>, vector<1x128x256xf32>,
    %108 = arith.truncf %104 : vector<128x256xf32> to vector<128x256xbf16>
    %c4_81 = arith.constant 4 : index
    %c0_82 = arith.constant 0 : index
    %c0_83 = arith.constant 0 : index
    %109 = vector.load %arg4[%c4_81, %c0_82, %c0_83] : memref<10x256x256xbf16, #tpu.memory_space<vmem>>, vector<1x256x256xbf16>
    %110 = vector.shape_cast %109 : vector<1x256x256xbf16> to vector<256x256xbf16>
    %cst_84 = arith.constant dense<0.000000e+00> : vector<128x256xf32>
    %111 = tpu.matmul %108, %110, %cst_84 {dimension_numbers = #tpu.dot_dimension_numbers<[1], [0], [0], [1], [0, 0, 1, 1], [], []>} : vector<128x256xbf16>, vector<256x256xbf16>, vector<128x256xf32> -> vector<128x256xf32>
    %c4_85 = arith.constant 4 : index
    %c0_86 = arith.constant 0 : index
    %c0_87 = arith.constant 0 : index
    %112 = vector.load %arg5[%c4_85, %c0_86, %c0_87] : memref<10x1x256xf32, #tpu.memory_space<vmem>>, vector<1x1x256xf32>
    %113 = vector.shape_cast %112 : vector<1x1x256xf32> to vector<1x256xf32>
    %114 = vector.broadcast %113 : vector<1x256xf32> to vector<128x256xf32>
    %115 = arith.addf %111, %114 : vector<128x256xf32>
    %cst_88 = arith.constant 0.000000e+00 : f32
    %116 = vector.broadcast %cst_88 : f32 to vector<128x256xf32>
    %117 = arith.maximumf %115, %116 : vector<128x256xf32>
    %118 = arith.truncf %117 : vector<128x256xf32> to vector<128x256xbf16>
    %c4_89 = arith.constant 4 : index
    %c0_90 = arith.constant 0 : index
    %c0_91 = arith.constant 0 : index
    %119 = vector.load %arg6[%c4_89, %c0_90, %c0_91] : memref<10x256x256xbf16, #tpu.memory_space<vmem>>, vector<1x256x256xbf16>
    %120 = vector.shape_cast %119 : vector<1x256x256xbf16> to vector<256x256xbf16>
    %cst_92 = arith.constant dense<0.000000e+00> : vector<128x256xf32>
    %121 = tpu.matmul %118, %120, %cst_92 {dimension_numbers = #tpu.dot_dimension_numbers<[1], [0], [0], [1], [0, 0, 1, 1], [], []>} : vector<128x256xbf16>, vector<256x256xbf16>, vector<128x256xf32> -> vector<128x256xf32>
    %c4_93 = arith.constant 4 : index
    %c0_94 = arith.constant 0 : index
    %c0_95 = arith.constant 0 : index
    %122 = vector.load %arg7[%c4_93, %c0_94, %c0_95] : memref<10x1x256xf32, #tpu.memory_space<vmem>>, vector<1x1x256xf32>
    %123 = vector.shape_cast %122 : vector<1x1x256xf32> to vector<1x256xf32>
    %124 = vector.broadcast %123 : vector<1x256xf32> to vector<128x256xf32>
    %125 = arith.addf %121, %124 : vector<128x256xf32>
    %126 = arith.addf %125, %104 : vector<128x256xf32>
    %cst_96 = arith.constant 0.000000e+00 : f32
    %127 = vector.broadcast %cst_96 : f32 to vector<128x256xf32>
    %128 = arith.maximumf %126, %127 : vector<128x256xf32>
    %c5 = arith.constant 5 : index
    %c0_97 = arith.constant 0 : index
    %c0_98 = arith.constant 0 : index
    %129 = vector.load %arg11[%c5, %c0_97, %c0_98] : memref<11x128x256xf32, #tpu.memory_space<vmem>>, vector<1x128x256xf32>
    %130 = vector.shape_cast %129 : vector<1x128x256xf32> to vector<128x256xf32>
    %131 = vector.shape_cast %128 : vector<128x256xf32> to vector<1x128x256xf32>
    tpu.vector_store %arg11[%c5, %c0_97, %c0_98], %131 {strides = array<i32>} : memref<11x128x256xf32, #tpu.memory_space<vmem>>, vector<1x128x256xf32>,
    %132 = arith.truncf %128 : vector<128x256xf32> to vector<128x256xbf16>
    %c5_99 = arith.constant 5 : index
    %c0_100 = arith.constant 0 : index
    %c0_101 = arith.constant 0 : index
    %133 = vector.load %arg4[%c5_99, %c0_100, %c0_101] : memref<10x256x256xbf16, #tpu.memory_space<vmem>>, vector<1x256x256xbf16>
    %134 = vector.shape_cast %133 : vector<1x256x256xbf16> to vector<256x256xbf16>
    %cst_102 = arith.constant dense<0.000000e+00> : vector<128x256xf32>
    %135 = tpu.matmul %132, %134, %cst_102 {dimension_numbers = #tpu.dot_dimension_numbers<[1], [0], [0], [1], [0, 0, 1, 1], [], []>} : vector<128x256xbf16>, vector<256x256xbf16>, vector<128x256xf32> -> vector<128x256xf32>
    %c5_103 = arith.constant 5 : index
    %c0_104 = arith.constant 0 : index
    %c0_105 = arith.constant 0 : index
    %136 = vector.load %arg5[%c5_103, %c0_104, %c0_105] : memref<10x1x256xf32, #tpu.memory_space<vmem>>, vector<1x1x256xf32>
    %137 = vector.shape_cast %136 : vector<1x1x256xf32> to vector<1x256xf32>
    %138 = vector.broadcast %137 : vector<1x256xf32> to vector<128x256xf32>
    %139 = arith.addf %135, %138 : vector<128x256xf32>
    %cst_106 = arith.constant 0.000000e+00 : f32
    %140 = vector.broadcast %cst_106 : f32 to vector<128x256xf32>
    %141 = arith.maximumf %139, %140 : vector<128x256xf32>
    %142 = arith.truncf %141 : vector<128x256xf32> to vector<128x256xbf16>
    %c5_107 = arith.constant 5 : index
    %c0_108 = arith.constant 0 : index
    %c0_109 = arith.constant 0 : index
    %143 = vector.load %arg6[%c5_107, %c0_108, %c0_109] : memref<10x256x256xbf16, #tpu.memory_space<vmem>>, vector<1x256x256xbf16>
    %144 = vector.shape_cast %143 : vector<1x256x256xbf16> to vector<256x256xbf16>
    %cst_110 = arith.constant dense<0.000000e+00> : vector<128x256xf32>
    %145 = tpu.matmul %142, %144, %cst_110 {dimension_numbers = #tpu.dot_dimension_numbers<[1], [0], [0], [1], [0, 0, 1, 1], [], []>} : vector<128x256xbf16>, vector<256x256xbf16>, vector<128x256xf32> -> vector<128x256xf32>
    %c5_111 = arith.constant 5 : index
    %c0_112 = arith.constant 0 : index
    %c0_113 = arith.constant 0 : index
    %146 = vector.load %arg7[%c5_111, %c0_112, %c0_113] : memref<10x1x256xf32, #tpu.memory_space<vmem>>, vector<1x1x256xf32>
    %147 = vector.shape_cast %146 : vector<1x1x256xf32> to vector<1x256xf32>
    %148 = vector.broadcast %147 : vector<1x256xf32> to vector<128x256xf32>
    %149 = arith.addf %145, %148 : vector<128x256xf32>
    %150 = arith.addf %149, %128 : vector<128x256xf32>
    %cst_114 = arith.constant 0.000000e+00 : f32
    %151 = vector.broadcast %cst_114 : f32 to vector<128x256xf32>
    %152 = arith.maximumf %150, %151 : vector<128x256xf32>
    %c6 = arith.constant 6 : index
    %c0_115 = arith.constant 0 : index
    %c0_116 = arith.constant 0 : index
    %153 = vector.load %arg11[%c6, %c0_115, %c0_116] : memref<11x128x256xf32, #tpu.memory_space<vmem>>, vector<1x128x256xf32>
    %154 = vector.shape_cast %153 : vector<1x128x256xf32> to vector<128x256xf32>
    %155 = vector.shape_cast %152 : vector<128x256xf32> to vector<1x128x256xf32>
    tpu.vector_store %arg11[%c6, %c0_115, %c0_116], %155 {strides = array<i32>} : memref<11x128x256xf32, #tpu.memory_space<vmem>>, vector<1x128x256xf32>,
    %156 = arith.truncf %152 : vector<128x256xf32> to vector<128x256xbf16>
    %c6_117 = arith.constant 6 : index
    %c0_118 = arith.constant 0 : index
    %c0_119 = arith.constant 0 : index
    %157 = vector.load %arg4[%c6_117, %c0_118, %c0_119] : memref<10x256x256xbf16, #tpu.memory_space<vmem>>, vector<1x256x256xbf16>
    %158 = vector.shape_cast %157 : vector<1x256x256xbf16> to vector<256x256xbf16>
    %cst_120 = arith.constant dense<0.000000e+00> : vector<128x256xf32>
    %159 = tpu.matmul %156, %158, %cst_120 {dimension_numbers = #tpu.dot_dimension_numbers<[1], [0], [0], [1], [0, 0, 1, 1], [], []>} : vector<128x256xbf16>, vector<256x256xbf16>, vector<128x256xf32> -> vector<128x256xf32>
    %c6_121 = arith.constant 6 : index
    %c0_122 = arith.constant 0 : index
    %c0_123 = arith.constant 0 : index
    %160 = vector.load %arg5[%c6_121, %c0_122, %c0_123] : memref<10x1x256xf32, #tpu.memory_space<vmem>>, vector<1x1x256xf32>
    %161 = vector.shape_cast %160 : vector<1x1x256xf32> to vector<1x256xf32>
    %162 = vector.broadcast %161 : vector<1x256xf32> to vector<128x256xf32>
    %163 = arith.addf %159, %162 : vector<128x256xf32>
    %cst_124 = arith.constant 0.000000e+00 : f32
    %164 = vector.broadcast %cst_124 : f32 to vector<128x256xf32>
    %165 = arith.maximumf %163, %164 : vector<128x256xf32>
    %166 = arith.truncf %165 : vector<128x256xf32> to vector<128x256xbf16>
    %c6_125 = arith.constant 6 : index
    %c0_126 = arith.constant 0 : index
    %c0_127 = arith.constant 0 : index
    %167 = vector.load %arg6[%c6_125, %c0_126, %c0_127] : memref<10x256x256xbf16, #tpu.memory_space<vmem>>, vector<1x256x256xbf16>
    %168 = vector.shape_cast %167 : vector<1x256x256xbf16> to vector<256x256xbf16>
    %cst_128 = arith.constant dense<0.000000e+00> : vector<128x256xf32>
    %169 = tpu.matmul %166, %168, %cst_128 {dimension_numbers = #tpu.dot_dimension_numbers<[1], [0], [0], [1], [0, 0, 1, 1], [], []>} : vector<128x256xbf16>, vector<256x256xbf16>, vector<128x256xf32> -> vector<128x256xf32>
    %c6_129 = arith.constant 6 : index
    %c0_130 = arith.constant 0 : index
    %c0_131 = arith.constant 0 : index
    %170 = vector.load %arg7[%c6_129, %c0_130, %c0_131] : memref<10x1x256xf32, #tpu.memory_space<vmem>>, vector<1x1x256xf32>
    %171 = vector.shape_cast %170 : vector<1x1x256xf32> to vector<1x256xf32>
    %172 = vector.broadcast %171 : vector<1x256xf32> to vector<128x256xf32>
    %173 = arith.addf %169, %172 : vector<128x256xf32>
    %174 = arith.addf %173, %152 : vector<128x256xf32>
    %cst_132 = arith.constant 0.000000e+00 : f32
    %175 = vector.broadcast %cst_132 : f32 to vector<128x256xf32>
    %176 = arith.maximumf %174, %175 : vector<128x256xf32>
    %c7 = arith.constant 7 : index
    %c0_133 = arith.constant 0 : index
    %c0_134 = arith.constant 0 : index
    %177 = vector.load %arg11[%c7, %c0_133, %c0_134] : memref<11x128x256xf32, #tpu.memory_space<vmem>>, vector<1x128x256xf32>
    %178 = vector.shape_cast %177 : vector<1x128x256xf32> to vector<128x256xf32>
    %179 = vector.shape_cast %176 : vector<128x256xf32> to vector<1x128x256xf32>
    tpu.vector_store %arg11[%c7, %c0_133, %c0_134], %179 {strides = array<i32>} : memref<11x128x256xf32, #tpu.memory_space<vmem>>, vector<1x128x256xf32>,
    %180 = arith.truncf %176 : vector<128x256xf32> to vector<128x256xbf16>
    %c7_135 = arith.constant 7 : index
    %c0_136 = arith.constant 0 : index
    %c0_137 = arith.constant 0 : index
    %181 = vector.load %arg4[%c7_135, %c0_136, %c0_137] : memref<10x256x256xbf16, #tpu.memory_space<vmem>>, vector<1x256x256xbf16>
    %182 = vector.shape_cast %181 : vector<1x256x256xbf16> to vector<256x256xbf16>
    %cst_138 = arith.constant dense<0.000000e+00> : vector<128x256xf32>
    %183 = tpu.matmul %180, %182, %cst_138 {dimension_numbers = #tpu.dot_dimension_numbers<[1], [0], [0], [1], [0, 0, 1, 1], [], []>} : vector<128x256xbf16>, vector<256x256xbf16>, vector<128x256xf32> -> vector<128x256xf32>
    %c7_139 = arith.constant 7 : index
    %c0_140 = arith.constant 0 : index
    %c0_141 = arith.constant 0 : index
    %184 = vector.load %arg5[%c7_139, %c0_140, %c0_141] : memref<10x1x256xf32, #tpu.memory_space<vmem>>, vector<1x1x256xf32>
    %185 = vector.shape_cast %184 : vector<1x1x256xf32> to vector<1x256xf32>
    %186 = vector.broadcast %185 : vector<1x256xf32> to vector<128x256xf32>
    %187 = arith.addf %183, %186 : vector<128x256xf32>
    %cst_142 = arith.constant 0.000000e+00 : f32
    %188 = vector.broadcast %cst_142 : f32 to vector<128x256xf32>
    %189 = arith.maximumf %187, %188 : vector<128x256xf32>
    %190 = arith.truncf %189 : vector<128x256xf32> to vector<128x256xbf16>
    %c7_143 = arith.constant 7 : index
    %c0_144 = arith.constant 0 : index
    %c0_145 = arith.constant 0 : index
    %191 = vector.load %arg6[%c7_143, %c0_144, %c0_145] : memref<10x256x256xbf16, #tpu.memory_space<vmem>>, vector<1x256x256xbf16>
    %192 = vector.shape_cast %191 : vector<1x256x256xbf16> to vector<256x256xbf16>
    %cst_146 = arith.constant dense<0.000000e+00> : vector<128x256xf32>
    %193 = tpu.matmul %190, %192, %cst_146 {dimension_numbers = #tpu.dot_dimension_numbers<[1], [0], [0], [1], [0, 0, 1, 1], [], []>} : vector<128x256xbf16>, vector<256x256xbf16>, vector<128x256xf32> -> vector<128x256xf32>
    %c7_147 = arith.constant 7 : index
    %c0_148 = arith.constant 0 : index
    %c0_149 = arith.constant 0 : index
    %194 = vector.load %arg7[%c7_147, %c0_148, %c0_149] : memref<10x1x256xf32, #tpu.memory_space<vmem>>, vector<1x1x256xf32>
    %195 = vector.shape_cast %194 : vector<1x1x256xf32> to vector<1x256xf32>
    %196 = vector.broadcast %195 : vector<1x256xf32> to vector<128x256xf32>
    %197 = arith.addf %193, %196 : vector<128x256xf32>
    %198 = arith.addf %197, %176 : vector<128x256xf32>
    %cst_150 = arith.constant 0.000000e+00 : f32
    %199 = vector.broadcast %cst_150 : f32 to vector<128x256xf32>
    %200 = arith.maximumf %198, %199 : vector<128x256xf32>
    %c8 = arith.constant 8 : index
    %c0_151 = arith.constant 0 : index
    %c0_152 = arith.constant 0 : index
    %201 = vector.load %arg11[%c8, %c0_151, %c0_152] : memref<11x128x256xf32, #tpu.memory_space<vmem>>, vector<1x128x256xf32>
    %202 = vector.shape_cast %201 : vector<1x128x256xf32> to vector<128x256xf32>
    %203 = vector.shape_cast %200 : vector<128x256xf32> to vector<1x128x256xf32>
    tpu.vector_store %arg11[%c8, %c0_151, %c0_152], %203 {strides = array<i32>} : memref<11x128x256xf32, #tpu.memory_space<vmem>>, vector<1x128x256xf32>,
    %204 = arith.truncf %200 : vector<128x256xf32> to vector<128x256xbf16>
    %c8_153 = arith.constant 8 : index
    %c0_154 = arith.constant 0 : index
    %c0_155 = arith.constant 0 : index
    %205 = vector.load %arg4[%c8_153, %c0_154, %c0_155] : memref<10x256x256xbf16, #tpu.memory_space<vmem>>, vector<1x256x256xbf16>
    %206 = vector.shape_cast %205 : vector<1x256x256xbf16> to vector<256x256xbf16>
    %cst_156 = arith.constant dense<0.000000e+00> : vector<128x256xf32>
    %207 = tpu.matmul %204, %206, %cst_156 {dimension_numbers = #tpu.dot_dimension_numbers<[1], [0], [0], [1], [0, 0, 1, 1], [], []>} : vector<128x256xbf16>, vector<256x256xbf16>, vector<128x256xf32> -> vector<128x256xf32>
    %c8_157 = arith.constant 8 : index
    %c0_158 = arith.constant 0 : index
    %c0_159 = arith.constant 0 : index
    %208 = vector.load %arg5[%c8_157, %c0_158, %c0_159] : memref<10x1x256xf32, #tpu.memory_space<vmem>>, vector<1x1x256xf32>
    %209 = vector.shape_cast %208 : vector<1x1x256xf32> to vector<1x256xf32>
    %210 = vector.broadcast %209 : vector<1x256xf32> to vector<128x256xf32>
    %211 = arith.addf %207, %210 : vector<128x256xf32>
    %cst_160 = arith.constant 0.000000e+00 : f32
    %212 = vector.broadcast %cst_160 : f32 to vector<128x256xf32>
    %213 = arith.maximumf %211, %212 : vector<128x256xf32>
    %214 = arith.truncf %213 : vector<128x256xf32> to vector<128x256xbf16>
    %c8_161 = arith.constant 8 : index
    %c0_162 = arith.constant 0 : index
    %c0_163 = arith.constant 0 : index
    %215 = vector.load %arg6[%c8_161, %c0_162, %c0_163] : memref<10x256x256xbf16, #tpu.memory_space<vmem>>, vector<1x256x256xbf16>
    %216 = vector.shape_cast %215 : vector<1x256x256xbf16> to vector<256x256xbf16>
    %cst_164 = arith.constant dense<0.000000e+00> : vector<128x256xf32>
    %217 = tpu.matmul %214, %216, %cst_164 {dimension_numbers = #tpu.dot_dimension_numbers<[1], [0], [0], [1], [0, 0, 1, 1], [], []>} : vector<128x256xbf16>, vector<256x256xbf16>, vector<128x256xf32> -> vector<128x256xf32>
    %c8_165 = arith.constant 8 : index
    %c0_166 = arith.constant 0 : index
    %c0_167 = arith.constant 0 : index
    %218 = vector.load %arg7[%c8_165, %c0_166, %c0_167] : memref<10x1x256xf32, #tpu.memory_space<vmem>>, vector<1x1x256xf32>
    %219 = vector.shape_cast %218 : vector<1x1x256xf32> to vector<1x256xf32>
    %220 = vector.broadcast %219 : vector<1x256xf32> to vector<128x256xf32>
    %221 = arith.addf %217, %220 : vector<128x256xf32>
    %222 = arith.addf %221, %200 : vector<128x256xf32>
    %cst_168 = arith.constant 0.000000e+00 : f32
    %223 = vector.broadcast %cst_168 : f32 to vector<128x256xf32>
    %224 = arith.maximumf %222, %223 : vector<128x256xf32>
    %c9 = arith.constant 9 : index
    %c0_169 = arith.constant 0 : index
    %c0_170 = arith.constant 0 : index
    %225 = vector.load %arg11[%c9, %c0_169, %c0_170] : memref<11x128x256xf32, #tpu.memory_space<vmem>>, vector<1x128x256xf32>
    %226 = vector.shape_cast %225 : vector<1x128x256xf32> to vector<128x256xf32>
    %227 = vector.shape_cast %224 : vector<128x256xf32> to vector<1x128x256xf32>
    tpu.vector_store %arg11[%c9, %c0_169, %c0_170], %227 {strides = array<i32>} : memref<11x128x256xf32, #tpu.memory_space<vmem>>, vector<1x128x256xf32>,
    %228 = arith.truncf %224 : vector<128x256xf32> to vector<128x256xbf16>
    %c9_171 = arith.constant 9 : index
    %c0_172 = arith.constant 0 : index
    %c0_173 = arith.constant 0 : index
    %229 = vector.load %arg4[%c9_171, %c0_172, %c0_173] : memref<10x256x256xbf16, #tpu.memory_space<vmem>>, vector<1x256x256xbf16>
    %230 = vector.shape_cast %229 : vector<1x256x256xbf16> to vector<256x256xbf16>
    %cst_174 = arith.constant dense<0.000000e+00> : vector<128x256xf32>
    %231 = tpu.matmul %228, %230, %cst_174 {dimension_numbers = #tpu.dot_dimension_numbers<[1], [0], [0], [1], [0, 0, 1, 1], [], []>} : vector<128x256xbf16>, vector<256x256xbf16>, vector<128x256xf32> -> vector<128x256xf32>
    %c9_175 = arith.constant 9 : index
    %c0_176 = arith.constant 0 : index
    %c0_177 = arith.constant 0 : index
    %232 = vector.load %arg5[%c9_175, %c0_176, %c0_177] : memref<10x1x256xf32, #tpu.memory_space<vmem>>, vector<1x1x256xf32>
    %233 = vector.shape_cast %232 : vector<1x1x256xf32> to vector<1x256xf32>
    %234 = vector.broadcast %233 : vector<1x256xf32> to vector<128x256xf32>
    %235 = arith.addf %231, %234 : vector<128x256xf32>
    %cst_178 = arith.constant 0.000000e+00 : f32
    %236 = vector.broadcast %cst_178 : f32 to vector<128x256xf32>
    %237 = arith.maximumf %235, %236 : vector<128x256xf32>
    %238 = arith.truncf %237 : vector<128x256xf32> to vector<128x256xbf16>
    %c9_179 = arith.constant 9 : index
    %c0_180 = arith.constant 0 : index
    %c0_181 = arith.constant 0 : index
    %239 = vector.load %arg6[%c9_179, %c0_180, %c0_181] : memref<10x256x256xbf16, #tpu.memory_space<vmem>>, vector<1x256x256xbf16>
    %240 = vector.shape_cast %239 : vector<1x256x256xbf16> to vector<256x256xbf16>
    %cst_182 = arith.constant dense<0.000000e+00> : vector<128x256xf32>
    %241 = tpu.matmul %238, %240, %cst_182 {dimension_numbers = #tpu.dot_dimension_numbers<[1], [0], [0], [1], [0, 0, 1, 1], [], []>} : vector<128x256xbf16>, vector<256x256xbf16>, vector<128x256xf32> -> vector<128x256xf32>
    %c9_183 = arith.constant 9 : index
    %c0_184 = arith.constant 0 : index
    %c0_185 = arith.constant 0 : index
    %242 = vector.load %arg7[%c9_183, %c0_184, %c0_185] : memref<10x1x256xf32, #tpu.memory_space<vmem>>, vector<1x1x256xf32>
    %243 = vector.shape_cast %242 : vector<1x1x256xf32> to vector<1x256xf32>
    %244 = vector.broadcast %243 : vector<1x256xf32> to vector<128x256xf32>
    %245 = arith.addf %241, %244 : vector<128x256xf32>
    %246 = arith.addf %245, %224 : vector<128x256xf32>
    %cst_186 = arith.constant 0.000000e+00 : f32
    %247 = vector.broadcast %cst_186 : f32 to vector<128x256xf32>
    %248 = arith.maximumf %246, %247 : vector<128x256xf32>
    %c10 = arith.constant 10 : index
    %c0_187 = arith.constant 0 : index
    %c0_188 = arith.constant 0 : index
    %249 = vector.load %arg11[%c10, %c0_187, %c0_188] : memref<11x128x256xf32, #tpu.memory_space<vmem>>, vector<1x128x256xf32>
    %250 = vector.shape_cast %249 : vector<1x128x256xf32> to vector<128x256xf32>
    %251 = vector.shape_cast %248 : vector<128x256xf32> to vector<1x128x256xf32>
    tpu.vector_store %arg11[%c10, %c0_187, %c0_188], %251 {strides = array<i32>} : memref<11x128x256xf32, #tpu.memory_space<vmem>>, vector<1x128x256xf32>,
    %252 = arith.truncf %248 : vector<128x256xf32> to vector<128x256xbf16>
    %c0_189 = arith.constant 0 : index
    %c0_190 = arith.constant 0 : index
    %253 = vector.load %arg8[%c0_189, %c0_190] : memref<256x128xbf16, #tpu.memory_space<vmem>>, vector<256x128xbf16>
    %cst_191 = arith.constant dense<0.000000e+00> : vector<128x128xf32>
    %254 = tpu.matmul %252, %253, %cst_191 {dimension_numbers = #tpu.dot_dimension_numbers<[1], [0], [0], [1], [0, 0, 1, 1], [], []>} : vector<128x256xbf16>, vector<256x128xbf16>, vector<128x128xf32> -> vector<128x128xf32>
    %c0_192 = arith.constant 0 : index
    %c0_193 = arith.constant 0 : index
    %255 = vector.load %arg9[%c0_192, %c0_193] : memref<1x128xf32, #tpu.memory_space<vmem>>, vector<1x128xf32>
    %256 = vector.broadcast %255 : vector<1x128xf32> to vector<128x128xf32>
    %257 = arith.addf %254, %256 : vector<128x128xf32>
    %c0_194 = arith.constant 0 : index
    %c0_195 = arith.constant 0 : index
    %258 = vector.load %arg10[%c0_194, %c0_195] : memref<128x128xf32, #tpu.memory_space<vmem>>, vector<128x128xf32>
    tpu.vector_store %arg10[%c0_194, %c0_195], %257 {strides = array<i32>} : memref<128x128xf32, #tpu.memory_space<vmem>>, vector<128x128xf32>,
    return
  }
  func.func @transform_0(%arg0: i32) -> (i32, i32) {
    %c0_i32 = arith.constant 0 : i32
    %c0_i32_0 = arith.constant 0 : i32
    return %arg0, %c0_i32 : i32, i32
  }
  func.func @transform_1(%arg0: i32) -> (i32, i32) {
    %c0_i32 = arith.constant 0 : i32
    %c0_i32_0 = arith.constant 0 : i32
    %c0_i32_1 = arith.constant 0 : i32
    return %c0_i32, %c0_i32_0 : i32, i32
  }
  func.func @transform_2(%arg0: i32) -> (i32, i32) {
    %c0_i32 = arith.constant 0 : i32
    %c0_i32_0 = arith.constant 0 : i32
    %c0_i32_1 = arith.constant 0 : i32
    return %c0_i32, %c0_i32_0 : i32, i32
  }
  func.func @transform_3(%arg0: i32) -> (i32, i32, i32) {
    %c0_i32 = arith.constant 0 : i32
    %c0_i32_0 = arith.constant 0 : i32
    %c0_i32_1 = arith.constant 0 : i32
    %c0_i32_2 = arith.constant 0 : i32
    return %c0_i32, %c0_i32_0, %c0_i32_1 : i32, i32, i32
  }
  func.func @transform_4(%arg0: i32) -> (i32, i32, i32) {
    %c0_i32 = arith.constant 0 : i32
    %c0_i32_0 = arith.constant 0 : i32
    %c0_i32_1 = arith.constant 0 : i32
    %c0_i32_2 = arith.constant 0 : i32
    return %c0_i32, %c0_i32_0, %c0_i32_1 : i32, i32, i32
  }
  func.func @transform_5(%arg0: i32) -> (i32, i32, i32) {
    %c0_i32 = arith.constant 0 : i32
    %c0_i32_0 = arith.constant 0 : i32
    %c0_i32_1 = arith.constant 0 : i32
    %c0_i32_2 = arith.constant 0 : i32
    return %c0_i32, %c0_i32_0, %c0_i32_1 : i32, i32, i32
  }
  func.func @transform_6(%arg0: i32) -> (i32, i32, i32) {
    %c0_i32 = arith.constant 0 : i32
    %c0_i32_0 = arith.constant 0 : i32
    %c0_i32_1 = arith.constant 0 : i32
    %c0_i32_2 = arith.constant 0 : i32
    return %c0_i32, %c0_i32_0, %c0_i32_1 : i32, i32, i32
  }
  func.func @transform_7(%arg0: i32) -> (i32, i32) {
    %c0_i32 = arith.constant 0 : i32
    %c0_i32_0 = arith.constant 0 : i32
    %c0_i32_1 = arith.constant 0 : i32
    return %c0_i32, %c0_i32_0 : i32, i32
  }
  func.func @transform_8(%arg0: i32) -> (i32, i32) {
    %c0_i32 = arith.constant 0 : i32
    %c0_i32_0 = arith.constant 0 : i32
    %c0_i32_1 = arith.constant 0 : i32
    return %c0_i32, %c0_i32_0 : i32, i32
  }
  func.func @transform_9(%arg0: i32) -> (i32, i32) {
    %c0_i32 = arith.constant 0 : i32
    %c0_i32_0 = arith.constant 0 : i32
    return %arg0, %c0_i32 : i32, i32
  }
  func.func @transform_10(%arg0: i32) -> (i32, i32, i32) {
    %c0_i32 = arith.constant 0 : i32
    %c0_i32_0 = arith.constant 0 : i32
    %c0_i32_1 = arith.constant 0 : i32
    return %c0_i32, %arg0, %c0_i32_0 : i32, i32, i32
  }
}

</mosaic_0001>

<bundles_post_ra>
// kernel: residual_network_forward.1
= control target key start
LH: loop header
LB: loop body
LE: loop exit
PB: predicated region body
PF: predicated region fallthrough
CT: control target
= control target key end

     0   :  { %s16822_s0 = inlined_call_operand.vmem [shape: f32[256,32], index: 0, kind: input, shape index: {}]   ;;  %s16823_s1 = inlined_call_operand.vmem [shape: bf16[32,256], index: 1, kind: input, shape index: {}]   ;;  %s16824_s2 = inlined_call_operand.vmem [shape: f32[1,256], index: 2, kind: input, shape index: {}]   ;;  %s16825_s3 = inlined_call_operand.vmem [shape: bf16[10,256,256], index: 3, kind: input, shape index: {}]   ;;  %s16826_s4 = inlined_call_operand.vmem [shape: f32[10,1,256], index: 4, kind: input, shape index: {}]   ;;  %s16827_s5 = inlined_call_operand.vmem [shape: bf16[10,256,256], index: 5, kind: input, shape index: {}]   ;;  %s16828_s6 = inlined_call_operand.vmem [shape: f32[10,1,256], index: 6, kind: input, shape index: {}]   ;;  %s16829_s7 = inlined_call_operand.vmem [shape: bf16[256,128], index: 7, kind: input, shape index: {}]   ;;  %s16830_s8 = inlined_call_operand.vmem [shape: f32[1,128], index: 8, kind: input, shape index: {}]   ;;  %s16831_s9 = inlined_call_operand.vmem [shape: f32[256,128], index: 9, kind: output, shape index: {0}]   ;;  %s16832_s10 = inlined_call_operand.hbm [shape: f32[11,256,256], index: 10, kind: output, shape index: {1}]  }
   0x1   :  { %16835 = sst [smem:[#allocation7_spill]] %s16822_s0 }
   0x2   :  { %16 = vsyncpa [#allocation3], 0 }
   0x3   :  { %18 = vsyncpa [#allocation3 + $0x1], 0  ;;  %s11839_s13 = smov 0   ;;  %s11841_s14 = smov 0  }
   0x4   :  { %s11843_s15 = smov 0   ;;  %s11845_s16 = smov 0  }
   0x5 LB: > { %s11860_s17 = sadd.s32 4294967295, %s11775_s16   ;;  %s9028_s18 = sadd.s32 4294967294, %s11775_s16   ;;  %s11775_s16 = sphi %s11845_s16, %s16844_s16   ;;  %s11771_s15 = sphi %s11843_s15, %s16843_s15   ;;  %s11767_s14 = sphi %s11841_s14, %s16842_s14   ;;  %s11763_s13 = sphi %s11839_s13, %s16841_s13  }
   0x6   : > { %s11864_s19 = sadd.s32 1, %s11775_s16   ;;  %s251_s20 = sadd.s32 1, %s11771_s15 }
   0x7   : > { %s248_s21 = ssub.s32 %s11775_s16, %s11864_s19  ;;  %p261_p0 = scmp.ne.s32.totalorder %s11771_s15, %s11767_s14 }
   0x8   : > { %p249_p1 = scmp.eq.s32.totalorder %s248_s21, 0  ;;  %p262_p2 = scmp.eq.s32.totalorder %s11860_s17, 1 }
   0x9   : > { %p267_p3 = scmp.ne.s32.totalorder %s11767_s14, %s11763_s13  ;;  %p268_p4 = scmp.eq.s32.totalorder %s9028_s18, 1 }
   0xa   : > { %s11875_s22 = scalar_select %p249_p1, %s11771_s15, %s251_s20  }
   0xb   : > { %p11877_p5 = por %p262_p2, %p261_p0  ;;  %p11881_p6 = por %p268_p4, %p267_p3 }
   0xc   : > { %p9031_p7 = scmp.ge.s32.totalorder %s11775_s16, 1  ;;  %p319_p8 = scmp.lt.s32.totalorder %s11775_s16, 3 }
   0xe   : > { %p320_p9 = pnand %p9031_p7, %p319_p8 }
   0xf   : > { %v10759_v0 = vld [vmem:[%s16823_s1 + $0x4] ss:$8 sps:$4 sm:$0xff] (!%p320_p9)   ;;  %s9032_s27 = sshll.u32 (!%p320_p9), %s11860_s17, 4  ;;  %v10761_v1 = vld [vmem:[%s16823_s1] ss:$8 sps:$4 sm:$0xff] (!%p320_p9)   ;;  %v11777_v2 = vmov (!%p320_p9), 0  }
  0x10   : > { %323 = sbr.rel (%p320_p9) target bundleno = 4996 (0x1384), region = 56  ;;  %493 = vmatprep.mubr.bf16.mxu0 (!%p320_p9), %v11777_v2  ;;  %p363_p10 = scmp.lt.s32.totalorder (!%p320_p9), %s9032_s27, 31  ;;  %461 = vmatprep.subr.bf16.mxu0 (!%p320_p9), %v10759_v0  ;;  %v10762_v3 = vld [vmem:[%s16823_s1 + $0x14] ss:$8 sps:$4 sm:$0xff] (!%p320_p9)   ;;  %v10764_v4 = vld [vmem:[%s16823_s1 + $0x10] ss:$8 sps:$4 sm:$0xff] (!%p320_p9)  }
  0x11   : > { %462 = vmatpush1.bf16.msra.mxu0 (!%p320_p9), %v10761_v1  ;;  %v10765_v5 = vld [vmem:[%s16825_s3 + $0x4] ss:$8 sps:$4 sm:$0xff] (!%p320_p9)   ;;  %v10767_v6 = vld [vmem:[%s16825_s3] ss:$8 sps:$4 sm:$0xff] (!%p320_p9)   ;;  %v10768_v7 = vld [vmem:[%s16825_s3 + $0x14] ss:$8 sps:$4 sm:$0xff] (!%p320_p9)  }
  0x12   : > { %463 = vmatprep.subr.bf16.mxu0 (!%p320_p9), %v10762_v3  ;;  %858 = vmatprep.subr.bf16.mxu1 (!%p320_p9), %v10765_v5  ;;  %s16838_s0 = sld [smem:[#allocation7_spill]] (!%p320_p9)  ;;  %v10770_v8 = vld [vmem:[%s16825_s3 + $0x10] ss:$8 sps:$4 sm:$0xff] (!%p320_p9)   ;;  %vm436_vm0 = vcmask (!%p320_p9), 261120   ;;  %v10771_v11 = vld [vmem:[%s16825_s3 + $0x24] ss:$8 sps:$4 sm:$0xff] (!%p320_p9)  }
  0x13   : > { %859 = vmatpush1.bf16.msra.mxu1 (!%p320_p9), %v10767_v6  ;;  %v10773_v13 = vld [vmem:[%s16825_s3 + $0x20] ss:$8 sps:$4 sm:$0xff] (!%p320_p9)   ;;  %v10774_v16 = vld [vmem:[%s16825_s3 + $0x34] ss:$8 sps:$4 sm:$0xff] (!%p320_p9)   ;;  %v10776_v18 = vld [vmem:[%s16825_s3 + $0x30] ss:$8 sps:$4 sm:$0xff] (!%p320_p9)  }
  0x14   : > { %860 = vmatprep.subr.bf16.mxu1 (!%p320_p9), %v10768_v7  ;;  %v10777_v19 = vld [vmem:[%s16825_s3 + $0x44] ss:$8 sps:$4 sm:$0xff] (!%p320_p9)   ;;  %v10779_v21 = vld [vmem:[%s16825_s3 + $0x40] ss:$8 sps:$4 sm:$0xff] (!%p320_p9)   ;;  %v10780_v23 = vld [vmem:[%s16825_s3 + $0x54] ss:$8 sps:$4 sm:$0xff] (!%p320_p9)  }
  0x15   : > { %464 = vmatpush1.bf16.msra.mxu0 (!%p320_p9), %v10764_v4  ;;  %v10782_v25 = vld [vmem:[%s16825_s3 + $0x50] ss:$8 sps:$4 sm:$0xff] (!%p320_p9)   ;;  %v10783_v26 = vld [vmem:[%s16825_s3 + $0x64] ss:$8 sps:$4 sm:$0xff] (!%p320_p9)   ;;  %v10785_v29 = vld [vmem:[%s16825_s3 + $0x60] ss:$8 sps:$4 sm:$0xff] (!%p320_p9)  }
  0x16   : > { %v10786_v30 = vld [vmem:[%s16825_s3 + $0x74] ss:$8 sps:$4 sm:$0xff] (!%p320_p9)   ;;  %v10788_v31 = vld [vmem:[%s16825_s3 + $0x70] ss:$8 sps:$4 sm:$0xff] (!%p320_p9)   ;;  %v10789_v32 = vld [vmem:[%s16825_s3 + $0x84] ss:$8 sps:$4 sm:$0xff] (!%p320_p9)  }
  0x17   : > { %s16846_s27 = smov (!%p363_p10, %s9032_s27), 31  ;;  %861 = vmatpush1.bf16.msra.mxu1 %v10770_v8  ;;  %v10791_v34 = vld [vmem:[%s16825_s3 + $0x80] ss:$8 sps:$4 sm:$0xff]   ;;  %v10792_v37 = vld [vmem:[%s16825_s3 + $0x94] ss:$8 sps:$4 sm:$0xff]  }
  0x18   : > { %s16833_s30 = sshll.u32 %s16846_s27, 3  ;;  %862 = vmatprep.subr.bf16.mxu1 %v10771_v11  ;;  %v10794_v38 = vld [vmem:[%s16825_s3 + $0x90] ss:$8 sps:$4 sm:$0xff]   ;;  %v10795_v39 = vld [vmem:[%s16825_s3 + $0xa4] ss:$8 sps:$4 sm:$0xff]   ;;  %s16839_s29 = sshll.u32 %s16846_s27, 3 }
  0x19   : > { %s11918_s18 = scalar_lea.vmem %s16838_s0, %s16833_s30  ;;  %v10797_v41 = vld [vmem:[%s16825_s3 + $0xa0] ss:$8 sps:$4 sm:$0xff]   ;;  %v10798_v44 = vld [vmem:[%s16825_s3 + $0xb4] ss:$8 sps:$4 sm:$0xff]   ;;  %v10800_v45 = vld [vmem:[%s16825_s3 + $0xb0] ss:$8 sps:$4 sm:$0xff]  }
  0x1a   : > { %v376_v9 = vld [vmem:[%s11918_s18] sm:$0xff]  ;;  %v377_v10 = vld [vmem:[%s11918_s18 + $0x8] sm:$0xff]  ;;  %v378_v14 = vld [vmem:[%s11918_s18 + $0x10] sm:$0xff]  ;;  %s16834_s30 = sand.u32 1, %s11767_s14   ;;  %s16840_s27 = sand.u32 1, %s11767_s14  }
  0x1b   : > { %v392_v12 = vpack.c.bf16 %v377_v10, %v376_v9  ;;  %v379_v15 = vld [vmem:[%s11918_s18 + $0x18] sm:$0xff]  ;;  %863 = vmatpush1.bf16.msra.mxu1 %v10773_v13  ;;  %v380_v20 = vld [vmem:[%s11918_s18 + $0x20] sm:$0xff]  ;;  %v381_v22 = vld [vmem:[%s11918_s18 + $0x28] sm:$0xff]  ;;  %s10706_s12 = smul.u32 2816, %s16834_s30  ;;  %s8894_s0 = scalar_lea.sflag [#allocation3], %s16840_s27 }
  0x1c   : > { %v393_v17 = vpack.c.bf16 %v379_v15, %v378_v14  ;;  %864 = vmatprep.subr.bf16.mxu1 %v10774_v16  ;;  %v394_v24 = vpack.c.bf16 %v381_v22, %v380_v20  ;;  %v382_v27 = vld [vmem:[%s11918_s18 + $0x30] sm:$0xff]  ;;  %v383_v28 = vld [vmem:[%s11918_s18 + $0x38] sm:$0xff]  ;;  %v384_v35 = vld [vmem:[%s11918_s18 + $0x40] sm:$0xff] }
  0x1d   : > { %9040 = vmatmul.mubr.msk.bf16.vlgmr.msra.gmra.mrb[0].mxu0 %vm436_vm0, %v392_v12  ;;  %v395_v33 = vpack.c.bf16 %v383_v28, %v382_v27  ;;  %v385_v36 = vld [vmem:[%s11918_s18 + $0x48] sm:$0xff]  ;;  %v386_v42 = vld [vmem:[%s11918_s18 + $0x50] sm:$0xff]  ;;  %v387_v43 = vld [vmem:[%s11918_s18 + $0x58] sm:$0xff]  ;;  %s12146_s20 = scalar_lea.vmem [#allocation2], %s10706_s12  ;;  %s16750_s12 = scalar_lea.vmem %s16831_s9, %s16839_s29 }
  0x1e   : > { %503 = vmatprep.mubr.bf16.mxu0 %v11777_v2  ;;  %v396_v40 = vpack.c.bf16 %v385_v36, %v384_v35  ;;  %v10801_v46 = vld [vmem:[%s16825_s3 + $0xc4] ss:$8 sps:$4 sm:$0xff]   ;;  %v397_v47 = vpack.c.bf16 %v387_v43, %v386_v42  ;;  %v10803_v48 = vld [vmem:[%s16825_s3 + $0xc0] ss:$8 sps:$4 sm:$0xff]   ;;  %v10804_v51 = vld [vmem:[%s16825_s3 + $0xd4] ss:$8 sps:$4 sm:$0xff]  }
  0x1f   : > { %865 = vmatpush1.bf16.msra.mxu1 %v10776_v18  ;;  %v388_v49 = vld [vmem:[%s11918_s18 + $0x60] sm:$0xff]  ;;  %v389_v50 = vld [vmem:[%s11918_s18 + $0x68] sm:$0xff]  ;;  %v390_v53 = vld [vmem:[%s11918_s18 + $0x70] sm:$0xff] }
  0x20   : > { %866 = vmatprep.subr.bf16.mxu1 %v10777_v19  ;;  %v398_v52 = vpack.c.bf16 %v389_v50, %v388_v49  ;;  %v391_v54 = vld [vmem:[%s11918_s18 + $0x78] sm:$0xff]  ;;  %v10807_v57 = vld [vmem:[%s16825_s3 + $0xe4] ss:$8 sps:$4 sm:$0xff]   ;;  %v10809_v58 = vld [vmem:[%s16825_s3 + $0xe0] ss:$8 sps:$4 sm:$0xff]  }
  0x21   : > { %v399_v55 = vpack.c.bf16 %v391_v54, %v390_v53  ;;  %v10806_v56 = vld [vmem:[%s16825_s3 + $0xd0] ss:$8 sps:$4 sm:$0xff]   ;;  %v10810_v59 = vld [vmem:[%s16825_s3 + $0xf4] ss:$8 sps:$4 sm:$0xff]   ;;  %v10813_v61 = vld [vmem:[%s16827_s5] ss:$8 sps:$4 sm:$0xff]  }
  0x22   : > { %v10812_v60 = vld [vmem:[%s16825_s3 + $0xf0] ss:$8 sps:$4 sm:$0xff]   ;;  %v10815_v62 = vld [vmem:[%s16827_s5 + $0x4] ss:$8 sps:$4 sm:$0xff]   ;;  %v10818_v63 = vld [vmem:[%s16827_s5 + $0x14] ss:$8 sps:$4 sm:$0xff]  }
  0x23   : > { %867 = vmatpush1.bf16.msra.mxu1 %v10779_v21  ;;  %1223 = vmatprep.subr.bf16.mxu0 %v10815_v62  ;;  %v10816_v0 = vld [vmem:[%s16827_s5 + $0x10] ss:$8 sps:$4 sm:$0xff]   ;;  %v10821_v1 = vld [vmem:[%s16827_s5 + $0x24] ss:$8 sps:$4 sm:$0xff]   ;;  %v10824_v3 = vld [vmem:[%s16827_s5 + $0x34] ss:$8 sps:$4 sm:$0xff]  }
  0x24   : > { %868 = vmatprep.subr.bf16.mxu1 %v10780_v23  ;;  %1224 = vmatpush1.bf16.msra.mxu0 %v10813_v61  ;;  %v10822_v4 = vld [vmem:[%s16827_s5 + $0x30] ss:$8 sps:$4 sm:$0xff]   ;;  %v10827_v5 = vld [vmem:[%s16827_s5 + $0x44] ss:$8 sps:$4 sm:$0xff]   ;;  %v10825_v6 = vld [vmem:[%s16827_s5 + $0x40] ss:$8 sps:$4 sm:$0xff]   ;;  %v406_v23 = vlaneseq }
  0x25   : > { %9041 = vmatmul.mubr.msk.bf16.gmra.mrb[4].mxu0 %vm436_vm0, %v393_v17  ;;  %1225 = vmatprep.subr.bf16.mxu0 %v10818_v63  ;;  %v10830_v7 = vld [vmem:[%s16827_s5 + $0x54] ss:$8 sps:$4 sm:$0xff]   ;;  %v10828_v8 = vld [vmem:[%s16827_s5 + $0x50] ss:$8 sps:$4 sm:$0xff]   ;;  %v10833_v9 = vld [vmem:[%s16827_s5 + $0x64] ss:$8 sps:$4 sm:$0xff]  }
  0x26   : > { %513 = vmatprep.mubr.bf16.mxu0 %v11777_v2  ;;  %v10831_v10 = vld [vmem:[%s16827_s5 + $0x60] ss:$8 sps:$4 sm:$0xff]   ;;  %v10836_v11 = vld [vmem:[%s16827_s5 + $0x74] ss:$8 sps:$4 sm:$0xff]   ;;  %v10834_v12 = vld [vmem:[%s16827_s5 + $0x70] ss:$8 sps:$4 sm:$0xff]  }
  0x27   : > { %869 = vmatpush1.bf16.msra.mxu1 %v10782_v25  ;;  %v10839_v13 = vld [vmem:[%s16827_s5 + $0x84] ss:$8 sps:$4 sm:$0xff]   ;;  %v10837_v14 = vld [vmem:[%s16827_s5 + $0x80] ss:$8 sps:$4 sm:$0xff]   ;;  %v10842_v15 = vld [vmem:[%s16827_s5 + $0x94] ss:$8 sps:$4 sm:$0xff]  }
  0x28   : > { %870 = vmatprep.subr.bf16.mxu1 %v10783_v26  ;;  %1226 = vmatpush1.bf16.msra.mxu0 %v10816_v0  ;;  %v10840_v16 = vld [vmem:[%s16827_s5 + $0x90] ss:$8 sps:$4 sm:$0xff]   ;;  %v10845_v17 = vld [vmem:[%s16827_s5 + $0xa4] ss:$8 sps:$4 sm:$0xff]   ;;  %v10843_v18 = vld [vmem:[%s16827_s5 + $0xa0] ss:$8 sps:$4 sm:$0xff]  }
  0x29   : > { %1227 = vmatprep.subr.bf16.mxu0 %v10821_v1  ;;  %v10848_v19 = vld [vmem:[%s16827_s5 + $0xb4] ss:$8 sps:$4 sm:$0xff]   ;;  %v10846_v20 = vld [vmem:[%s16827_s5 + $0xb0] ss:$8 sps:$4 sm:$0xff]   ;;  %v10851_v21 = vld [vmem:[%s16827_s5 + $0xc4] ss:$8 sps:$4 sm:$0xff]  }
  0x2a   : > { %v10849_v22 = vld [vmem:[%s16827_s5 + $0xc0] ss:$8 sps:$4 sm:$0xff]   ;;  %v10852_v25 = vld [vmem:[%s16827_s5 + $0xd0] ss:$8 sps:$4 sm:$0xff]   ;;  %v407_v26 = vshrl.u32 %v406_v23, 7 }
  0x2b   : > { %871 = vmatpush1.bf16.msra.mxu1 %v10785_v29  ;;  %v404_v27 = vld [vmem:[%s16824_s2] sm:$0x3] }
  0x2c   : > { %872 = vmatprep.subr.bf16.mxu1 %v10786_v30  ;;  %v12125_v28 = vsub.s32 0, %v407_v26  ;;  %v12127_v29 = vsub.s32 1, %v407_v26 }
  0x2d   : > { %9042 = vmatmul.mubr.msk.bf16.gmra.mrb[8].mxu0 %vm436_vm0, %v394_v24  ;;  %v10854_v24 = vld [vmem:[%s16827_s5 + $0xd4] ss:$8 sps:$4 sm:$0xff]  }
  0x2e   : > { %523 = vmatprep.mubr.bf16.mxu0 %v11777_v2  ;;  %v12131_v30 = vrot.slane %v404_v27, %v12125_v28 }
  0x2f   : > { %873 = vmatpush1.bf16.msra.mxu1 %v10788_v31  ;;  %v12136_v31 = vrot.slane %v404_v27, %v12127_v29 }
  0x30   : > { %874 = vmatprep.subr.bf16.mxu1 %v10789_v32 }
  0x33   : > { %875 = vmatpush1.bf16.msra.mxu1 %v10791_v34 }
  0x34   : > { %876 = vmatprep.subr.bf16.mxu1 %v10792_v37 }
  0x35   : > { %9043 = vmatmul.mubr.msk.bf16.gmra.mrb[12].mxu0 %vm436_vm0, %v395_v33 }
  0x36   : > { %533 = vmatprep.mubr.bf16.mxu0 %v11777_v2 }
  0x37   : > { %877 = vmatpush1.bf16.msra.mxu1 %v10794_v38 }
  0x38   : > { %878 = vmatprep.subr.bf16.mxu1 %v10795_v39 }
  0x3b   : > { %879 = vmatpush1.bf16.msra.mxu1 %v10797_v41 }
  0x3c   : > { %880 = vmatprep.subr.bf16.mxu1 %v10798_v44 }
  0x3d   : > { %9044 = vmatmul.mubr.msk.bf16.gmra.mrb[16].mxu0 %vm436_vm0, %v396_v40 }
  0x3e   : > { %543 = vmatprep.mubr.bf16.mxu0 %v11777_v2 }
  0x3f   : > { %881 = vmatpush1.bf16.msra.mxu1 %v10800_v45 }
  0x40   : > { %882 = vmatprep.subr.bf16.mxu1 %v10801_v46 }
  0x43   : > { %883 = vmatpush1.bf16.msra.mxu1 %v10803_v48 }
  0x44   : > { %884 = vmatprep.subr.bf16.mxu1 %v10804_v51 }
  0x45   : > { %9045 = vmatmul.mubr.msk.bf16.gmra.mrb[20].mxu0 %vm436_vm0, %v397_v47 }
  0x46   : > { %553 = vmatprep.mubr.bf16.mxu0 %v11777_v2 }
  0x47   : > { %885 = vmatpush1.bf16.msra.mxu1 %v10806_v56 }
  0x48   : > { %886 = vmatprep.subr.bf16.mxu1 %v10807_v57 }
  0x4b   : > { %887 = vmatpush1.bf16.msra.mxu1 %v10809_v58 }
  0x4c   : > { %888 = vmatprep.subr.bf16.mxu1 %v10810_v59 }
  0x4d   : > { %9046 = vmatmul.mubr.msk.bf16.gmra.mrb[24].mxu0 %vm436_vm0, %v398_v52 }
  0x4e   : > { %563 = vmatprep.mubr.bf16.mxu0 %v11777_v2  ;;  %v10819_v2 = vld [vmem:[%s16827_s5 + $0x20] ss:$8 sps:$4 sm:$0xff]  }
  0x4f   : > { %889 = vmatpush1.bf16.msra.mxu1 %v10812_v60  ;;  %1228 = vmatpush1.bf16.msra.mxu0 %v10819_v2 }
  0x50   : > { %1229 = vmatprep.subr.bf16.mxu0 %v10824_v3 }
  0x53   : > { %1230 = vmatpush1.bf16.msra.mxu0 %v10822_v4 }
  0x54   : > { %1231 = vmatprep.subr.bf16.mxu0 %v10827_v5 }
  0x55   : > { %9047 = vmatmul.mubr.msk.bf16.gmra.mrb[28].mxu0 %vm436_vm0, %v399_v55 }
  0x57   : > { %1232 = vmatpush1.bf16.msra.mxu0 %v10825_v6 }
  0x58   : > { %1233 = vmatprep.subr.bf16.mxu0 %v10830_v7 }
  0x5b   : > { %1234 = vmatpush1.bf16.msra.mxu0 %v10828_v8 }
  0x5c   : > { %1235 = vmatprep.subr.bf16.mxu0 %v10833_v9 }
  0x5f   : > { %1236 = vmatpush1.bf16.msra.mxu0 %v10831_v10 }
  0x60   : > { %1237 = vmatprep.subr.bf16.mxu0 %v10836_v11 }
  0x63   : > { %1238 = vmatpush1.bf16.msra.mxu0 %v10834_v12 }
  0x64   : > { %1239 = vmatprep.subr.bf16.mxu0 %v10839_v13 }
  0x67   : > { %1240 = vmatpush1.bf16.msra.mxu0 %v10837_v14 }
  0x68   : > { %1241 = vmatprep.subr.bf16.mxu0 %v10842_v15 }
  0x6b   : > { %1242 = vmatpush1.bf16.msra.mxu0 %v10840_v16 }
  0x6c   : > { %1243 = vmatprep.subr.bf16.mxu0 %v10845_v17 }
  0x6f   : > { %1244 = vmatpush1.bf16.msra.mxu0 %v10843_v18 }
  0x70   : > { %1245 = vmatprep.subr.bf16.mxu0 %v10848_v19 }
  0x73   : > { %1246 = vmatpush1.bf16.msra.mxu0 %v10846_v20 }
  0x74   : > { %1247 = vmatprep.subr.bf16.mxu0 %v10851_v21 }
  0x77   : > { %1248 = vmatpush1.bf16.msra.mxu0 %v10849_v22 }
  0x78   : > { %1249 = vmatprep.subr.bf16.mxu0 %v10854_v24 }
  0x7b   : > { %1250 = vmatpush1.bf16.msra.mxu0 %v10852_v25 }
  0xf0   : > { %v495_v32 = vpop.f32.mrb[0].mxu0 }
  0xf1   : > { %v496_v33 = vadd.f32 %v495_v32, %v12131_v30  ;;  %v497_v34 = vpop.f32.mrb[1].mxu0 }
  0xf2   : > { %v498_v35 = vadd.f32 %v497_v34, %v12136_v31  ;;  %v499_v36 = vpop.f32.mrb[2].mxu0 }
  0xf3   : > { %v12140_v37 = vmax.f32 %v496_v33, 0.0  ;;  %v500_v38 = vadd.f32 %v499_v36, %v12131_v30  ;;  %v501_v39 = vpop.f32.mrb[3].mxu0 }
  0xf4   : > { %v12143_v40 = vmax.f32 %v498_v35, 0.0  ;;  %v502_v41 = vadd.f32 %v501_v39, %v12136_v31 }
  0xf5   : > { %606 = vst [vmem:[%s12146_s20] sm:$0xff] %v12140_v37  ;;  %v12150_v42 = vmax.f32 %v500_v38, 0.0 }
  0xf6   : > { %607 = vst [vmem:[%s12146_s20 + $0x8] sm:$0xff] %v12143_v40  ;;  %v12154_v43 = vmax.f32 %v502_v41, 0.0 }
  0xf7   : > { %608 = vst [vmem:[%s12146_s20 + $0x10] sm:$0xff] %v12150_v42  ;;  %v638_v48 = vpack.c.bf16 %v12150_v42, %v12140_v37 }
  0xf8   : > { %609 = vst [vmem:[%s12146_s20 + $0x18] sm:$0xff] %v12154_v43  ;;  %v505_v44 = vpop.f32.mrb[4].mxu0  ;;  %v639_v45 = vpack.c.bf16 %v12154_v43, %v12143_v40 }
  0xf9   : > { %v506_v46 = vadd.f32 %v505_v44, %v12131_v30  ;;  %v507_v47 = vpop.f32.mrb[5].mxu0 }
  0xfa   : > { %v508_v49 = vadd.f32 %v507_v47, %v12136_v31  ;;  %v509_v50 = vpop.f32.mrb[6].mxu0  ;;  %890 = vmatprep.mubr.bf16.mxu1 %v639_v45 }
  0xfb   : > { %v12166_v51 = vmax.f32 %v506_v46, 0.0  ;;  %v510_v52 = vadd.f32 %v509_v50, %v12131_v30  ;;  %v511_v53 = vpop.f32.mrb[7].mxu0  ;;  %891 = vmatmul.mubr.bf16.vlgmr.msra.gmra.mrb[0].mxu1 %v638_v48 }
  0xfc   : > { %v12169_v54 = vmax.f32 %v508_v49, 0.0  ;;  %v512_v55 = vadd.f32 %v511_v53, %v12136_v31 }
  0xfd   : > { %610 = vst [vmem:[%s12146_s20 + $0x20] sm:$0xff] %v12166_v51  ;;  %v12174_v56 = vmax.f32 %v510_v52, 0.0 }
  0xfe   : > { %611 = vst [vmem:[%s12146_s20 + $0x28] sm:$0xff] %v12169_v54  ;;  %v12178_v57 = vmax.f32 %v512_v55, 0.0 }
  0xff   : > { %612 = vst [vmem:[%s12146_s20 + $0x30] sm:$0xff] %v12174_v56  ;;  %v640_v62 = vpack.c.bf16 %v12174_v56, %v12166_v51 }
 0x100   : > { %613 = vst [vmem:[%s12146_s20 + $0x38] sm:$0xff] %v12178_v57  ;;  %v515_v58 = vpop.f32.mrb[8].mxu0  ;;  %v641_v59 = vpack.c.bf16 %v12178_v57, %v12169_v54 }
 0x101   : > { %v516_v60 = vadd.f32 %v515_v58, %v12131_v30  ;;  %v517_v61 = vpop.f32.mrb[9].mxu0 }
 0x102   : > { %v518_v63 = vadd.f32 %v517_v61, %v12136_v31  ;;  %v519_v0 = vpop.f32.mrb[10].mxu0  ;;  %900 = vmatprep.mubr.bf16.mxu1 %v641_v59 }
 0x103   : > { %v12190_v1 = vmax.f32 %v516_v60, 0.0  ;;  %v520_v2 = vadd.f32 %v519_v0, %v12131_v30  ;;  %v521_v3 = vpop.f32.mrb[11].mxu0  ;;  %901 = vmatmul.mubr.bf16.gmra.mrb[4].mxu1 %v640_v62 }
 0x104   : > { %v12193_v4 = vmax.f32 %v518_v63, 0.0  ;;  %v522_v5 = vadd.f32 %v521_v3, %v12136_v31 }
 0x105   : > { %614 = vst [vmem:[%s12146_s20 + $0x40] sm:$0xff] %v12190_v1  ;;  %v12198_v6 = vmax.f32 %v520_v2, 0.0 }
 0x106   : > { %615 = vst [vmem:[%s12146_s20 + $0x48] sm:$0xff] %v12193_v4  ;;  %v12202_v7 = vmax.f32 %v522_v5, 0.0 }
 0x107   : > { %616 = vst [vmem:[%s12146_s20 + $0x50] sm:$0xff] %v12198_v6  ;;  %v642_v12 = vpack.c.bf16 %v12198_v6, %v12190_v1 }
 0x108   : > { %617 = vst [vmem:[%s12146_s20 + $0x58] sm:$0xff] %v12202_v7  ;;  %v525_v8 = vpop.f32.mrb[12].mxu0  ;;  %v643_v9 = vpack.c.bf16 %v12202_v7, %v12193_v4 }
 0x109   : > { %v526_v10 = vadd.f32 %v525_v8, %v12131_v30  ;;  %v527_v11 = vpop.f32.mrb[13].mxu0 }
 0x10a   : > { %v528_v13 = vadd.f32 %v527_v11, %v12136_v31  ;;  %v529_v14 = vpop.f32.mrb[14].mxu0  ;;  %910 = vmatprep.mubr.bf16.mxu1 %v643_v9 }
 0x10b   : > { %v12214_v15 = vmax.f32 %v526_v10, 0.0  ;;  %v530_v16 = vadd.f32 %v529_v14, %v12131_v30  ;;  %v531_v17 = vpop.f32.mrb[15].mxu0  ;;  %911 = vmatmul.mubr.bf16.gmra.mrb[8].mxu1 %v642_v12 }
 0x10c   : > { %v12217_v18 = vmax.f32 %v528_v13, 0.0  ;;  %v532_v19 = vadd.f32 %v531_v17, %v12136_v31 }
 0x10d   : > { %618 = vst [vmem:[%s12146_s20 + $0x60] sm:$0xff] %v12214_v15  ;;  %v12222_v20 = vmax.f32 %v530_v16, 0.0 }
 0x10e   : > { %619 = vst [vmem:[%s12146_s20 + $0x68] sm:$0xff] %v12217_v18  ;;  %v12226_v21 = vmax.f32 %v532_v19, 0.0 }
 0x10f   : > { %620 = vst [vmem:[%s12146_s20 + $0x70] sm:$0xff] %v12222_v20  ;;  %v644_v26 = vpack.c.bf16 %v12222_v20, %v12214_v15 }
 0x110   : > { %621 = vst [vmem:[%s12146_s20 + $0x78] sm:$0xff] %v12226_v21  ;;  %v535_v22 = vpop.f32.mrb[16].mxu0  ;;  %v645_v23 = vpack.c.bf16 %v12226_v21, %v12217_v18 }
 0x111   : > { %v536_v24 = vadd.f32 %v535_v22, %v12131_v30  ;;  %v537_v25 = vpop.f32.mrb[17].mxu0 }
 0x112   : > { %v538_v27 = vadd.f32 %v537_v25, %v12136_v31  ;;  %v539_v32 = vpop.f32.mrb[18].mxu0  ;;  %920 = vmatprep.mubr.bf16.mxu1 %v645_v23 }
 0x113   : > { %v12238_v33 = vmax.f32 %v536_v24, 0.0  ;;  %v540_v34 = vadd.f32 %v539_v32, %v12131_v30  ;;  %v541_v35 = vpop.f32.mrb[19].mxu0  ;;  %921 = vmatmul.mubr.bf16.gmra.mrb[12].mxu1 %v644_v26 }
 0x114   : > { %v12241_v36 = vmax.f32 %v538_v27, 0.0  ;;  %v542_v38 = vadd.f32 %v541_v35, %v12136_v31 }
 0x115   : > { %622 = vst [vmem:[%s12146_s20 + $0x80] sm:$0xff] %v12238_v33  ;;  %v12246_v39 = vmax.f32 %v540_v34, 0.0 }
 0x116   : > { %623 = vst [vmem:[%s12146_s20 + $0x88] sm:$0xff] %v12241_v36  ;;  %v12250_v41 = vmax.f32 %v542_v38, 0.0 }
 0x117   : > { %624 = vst [vmem:[%s12146_s20 + $0x90] sm:$0xff] %v12246_v39  ;;  %v646_v48 = vpack.c.bf16 %v12246_v39, %v12238_v33 }
 0x118   : > { %625 = vst [vmem:[%s12146_s20 + $0x98] sm:$0xff] %v12250_v41  ;;  %v545_v44 = vpop.f32.mrb[20].mxu0  ;;  %v647_v45 = vpack.c.bf16 %v12250_v41, %v12241_v36 }
 0x119   : > { %v546_v46 = vadd.f32 %v545_v44, %v12131_v30  ;;  %v547_v47 = vpop.f32.mrb[21].mxu0 }
 0x11a   : > { %v548_v49 = vadd.f32 %v547_v47, %v12136_v31  ;;  %v549_v50 = vpop.f32.mrb[22].mxu0  ;;  %930 = vmatprep.mubr.bf16.mxu1 %v647_v45  ;;  %v10855_v47 = vld [vmem:[%s16827_s5 + $0xe0] ss:$8 sps:$4 sm:$0xff]  }
 0x11b   : > { %v12262_v52 = vmax.f32 %v546_v46, 0.0  ;;  %v550_v53 = vadd.f32 %v549_v50, %v12131_v30  ;;  %v551_v55 = vpop.f32.mrb[23].mxu0  ;;  %931 = vmatmul.mubr.bf16.gmra.mrb[16].mxu1 %v646_v48  ;;  %v10860_v48 = vld [vmem:[%s16827_s5 + $0xf4] ss:$8 sps:$4 sm:$0xff]   ;;  %v10861_v50 = vld [vmem:[%s16825_s3 + $0x100] ss:$8 sps:$4 sm:$0xff]  }
 0x11c   : > { %v12265_v58 = vmax.f32 %v548_v49, 0.0  ;;  %v552_v59 = vadd.f32 %v551_v55, %v12136_v31  ;;  %v10858_v49 = vld [vmem:[%s16827_s5 + $0xf0] ss:$8 sps:$4 sm:$0xff]   ;;  %v10866_v55 = vld [vmem:[%s16825_s3 + $0x114] ss:$8 sps:$4 sm:$0xff]  }
 0x11d   : > { %626 = vst [vmem:[%s12146_s20 + $0xa0] sm:$0xff] %v12262_v52  ;;  %v12270_v60 = vmax.f32 %v550_v53, 0.0  ;;  %v10863_v53 = vld [vmem:[%s16825_s3 + $0x104] ss:$8 sps:$4 sm:$0xff]  }
 0x11e   : > { %627 = vst [vmem:[%s12146_s20 + $0xa8] sm:$0xff] %v12265_v58  ;;  %v12274_v61 = vmax.f32 %v552_v59, 0.0  ;;  %1655 = vmatprep.subr.bf16.mxu1 %v10863_v53  ;;  %v10864_v59 = vld [vmem:[%s16825_s3 + $0x110] ss:$8 sps:$4 sm:$0xff]  }
 0x11f   : > { %628 = vst [vmem:[%s12146_s20 + $0xb0] sm:$0xff] %v12270_v60  ;;  %v648_v3 = vpack.c.bf16 %v12270_v60, %v12262_v52  ;;  %1656 = vmatpush1.bf16.msra.mxu1 %v10861_v50 }
 0x120   : > { %629 = vst [vmem:[%s12146_s20 + $0xb8] sm:$0xff] %v12274_v61  ;;  %v555_v62 = vpop.f32.mrb[24].mxu0  ;;  %v649_v63 = vpack.c.bf16 %v12274_v61, %v12265_v58  ;;  %1657 = vmatprep.subr.bf16.mxu1 %v10866_v55 }
 0x121   : > { %v556_v0 = vadd.f32 %v555_v62, %v12131_v30  ;;  %v557_v2 = vpop.f32.mrb[25].mxu0  ;;  %v10869_v62 = vld [vmem:[%s16825_s3 + $0x124] ss:$8 sps:$4 sm:$0xff]  }
 0x122   : > { %v558_v5 = vadd.f32 %v557_v2, %v12136_v31  ;;  %v559_v8 = vpop.f32.mrb[26].mxu0  ;;  %940 = vmatprep.mubr.bf16.mxu1 %v649_v63  ;;  %v10867_v63 = vld [vmem:[%s16825_s3 + $0x120] ss:$8 sps:$4 sm:$0xff]   ;;  %v10870_v2 = vld [vmem:[%s16825_s3 + $0x130] ss:$8 sps:$4 sm:$0xff]  }
 0x123   : > { %v12286_v9 = vmax.f32 %v556_v0, 0.0  ;;  %v560_v10 = vadd.f32 %v559_v8, %v12131_v30  ;;  %v561_v11 = vpop.f32.mrb[27].mxu0  ;;  %941 = vmatmul.mubr.bf16.gmra.mrb[20].mxu1 %v648_v3  ;;  %v10872_v0 = vld [vmem:[%s16825_s3 + $0x134] ss:$8 sps:$4 sm:$0xff]   ;;  %v10875_v3 = vld [vmem:[%s16825_s3 + $0x144] ss:$8 sps:$4 sm:$0xff]  }
 0x124   : > { %v12289_v12 = vmax.f32 %v558_v5, 0.0  ;;  %v562_v13 = vadd.f32 %v561_v11, %v12136_v31  ;;  %1658 = vmatpush1.bf16.msra.mxu1 %v10864_v59  ;;  %v10873_v5 = vld [vmem:[%s16825_s3 + $0x140] ss:$8 sps:$4 sm:$0xff]   ;;  %v10878_v8 = vld [vmem:[%s16825_s3 + $0x154] ss:$8 sps:$4 sm:$0xff]  }
 0x125   : > { %630 = vst [vmem:[%s12146_s20 + $0xc0] sm:$0xff] %v12286_v9  ;;  %v12294_v14 = vmax.f32 %v560_v10, 0.0  ;;  %1659 = vmatprep.subr.bf16.mxu1 %v10869_v62  ;;  %v10876_v10 = vld [vmem:[%s16825_s3 + $0x150] ss:$8 sps:$4 sm:$0xff]   ;;  %v10881_v11 = vld [vmem:[%s16825_s3 + $0x164] ss:$8 sps:$4 sm:$0xff]  }
 0x126   : > { %631 = vst [vmem:[%s12146_s20 + $0xc8] sm:$0xff] %v12289_v12  ;;  %v12298_v16 = vmax.f32 %v562_v13, 0.0  ;;  %v10879_v13 = vld [vmem:[%s16825_s3 + $0x160] ss:$8 sps:$4 sm:$0xff]  }
 0x127   : > { %632 = vst [vmem:[%s12146_s20 + $0xd0] sm:$0xff] %v12294_v14  ;;  %v650_v24 = vpack.c.bf16 %v12294_v14, %v12286_v9 }
 0x128   : > { %633 = vst [vmem:[%s12146_s20 + $0xd8] sm:$0xff] %v12298_v16  ;;  %v565_v17 = vpop.f32.mrb[28].mxu0  ;;  %v651_v19 = vpack.c.bf16 %v12298_v16, %v12289_v12  ;;  %1660 = vmatpush1.bf16.msra.mxu1 %v10867_v63 }
 0x129   : > { %v566_v22 = vadd.f32 %v565_v17, %v12131_v30  ;;  %v567_v23 = vpop.f32.mrb[29].mxu0  ;;  %1661 = vmatprep.subr.bf16.mxu1 %v10872_v0  ;;  %v10884_v17 = vld [vmem:[%s16825_s3 + $0x174] ss:$8 sps:$4 sm:$0xff]  }
 0x12a   : > { %v568_v25 = vadd.f32 %v567_v23, %v12136_v31  ;;  %v569_v26 = vpop.f32.mrb[30].mxu0  ;;  %950 = vmatprep.mubr.bf16.mxu1 %v651_v19  ;;  %v10882_v19 = vld [vmem:[%s16825_s3 + $0x170] ss:$8 sps:$4 sm:$0xff]   ;;  %v10885_v23 = vld [vmem:[%s16825_s3 + $0x180] ss:$8 sps:$4 sm:$0xff]  }
 0x12b   : > { %v12310_v27 = vmax.f32 %v566_v22, 0.0  ;;  %v570_v32 = vadd.f32 %v569_v26, %v12131_v30  ;;  %v571_v34 = vpop.f32.mrb[31].mxu0  ;;  %951 = vmatmul.mubr.bf16.gmra.mrb[24].mxu1 %v650_v24  ;;  %v10887_v22 = vld [vmem:[%s16825_s3 + $0x184] ss:$8 sps:$4 sm:$0xff]   ;;  %v10890_v24 = vld [vmem:[%s16825_s3 + $0x194] ss:$8 sps:$4 sm:$0xff]  }
 0x12c   : > { %v12313_v35 = vmax.f32 %v568_v25, 0.0  ;;  %v572_v38 = vadd.f32 %v571_v34, %v12136_v31  ;;  %v10857_v31 = vld [vmem:[%s16827_s5 + $0xe4] ss:$8 sps:$4 sm:$0xff]   ;;  %1662 = vmatpush1.bf16.msra.mxu1 %v10870_v2  ;;  %v10888_v25 = vld [vmem:[%s16825_s3 + $0x190] ss:$8 sps:$4 sm:$0xff]  }
 0x12d   : > { %634 = vst [vmem:[%s12146_s20 + $0xe0] sm:$0xff] %v12310_v27  ;;  %v12318_v44 = vmax.f32 %v570_v32, 0.0  ;;  %1251 = vmatprep.subr.bf16.mxu0 %v10857_v31  ;;  %1663 = vmatprep.subr.bf16.mxu1 %v10875_v3  ;;  %v10893_v26 = vld [vmem:[%s16825_s3 + $0x1a4] ss:$8 sps:$4 sm:$0xff]   ;;  %v10891_v32 = vld [vmem:[%s16825_s3 + $0x1a0] ss:$8 sps:$4 sm:$0xff]  }
 0x12e   : > { %635 = vst [vmem:[%s12146_s20 + $0xe8] sm:$0xff] %v12313_v35  ;;  %v12322_v45 = vmax.f32 %v572_v38, 0.0  ;;  %1252 = vmatpush1.bf16.msra.mxu0 %v10855_v47  ;;  %v10896_v34 = vld [vmem:[%s16825_s3 + $0x1b4] ss:$8 sps:$4 sm:$0xff]   ;;  %v10894_v38 = vld [vmem:[%s16825_s3 + $0x1b0] ss:$8 sps:$4 sm:$0xff]  }
 0x12f   : > { %636 = vst [vmem:[%s12146_s20 + $0xf0] sm:$0xff] %v12318_v44  ;;  %v652_v46 = vpack.c.bf16 %v12318_v44, %v12310_v27  ;;  %1253 = vmatprep.subr.bf16.mxu0 %v10860_v48  ;;  %v686_v31 = vld [vmem:[%s16826_s4] sm:$0x3] }
 0x130   : > { %637 = vst [vmem:[%s12146_s20 + $0xf8] sm:$0xff] %v12322_v45  ;;  %v653_v30 = vpack.c.bf16 %v12322_v45, %v12313_v35  ;;  %1664 = vmatpush1.bf16.msra.mxu1 %v10873_v5  ;;  %v12426_v47 = vrot.slane %v686_v31, %v12125_v28  ;;  %v12429_v48 = vrot.slane %v686_v31, %v12127_v29 }
 0x131   : > { %1665 = vmatprep.subr.bf16.mxu1 %v10878_v8 }
 0x132   : > { %960 = vmatprep.mubr.bf16.mxu1 %v653_v30  ;;  %1254 = vmatpush1.bf16.msra.mxu0 %v10858_v49  ;;  %v10899_v30 = vld [vmem:[%s16825_s3 + $0x1c4] ss:$8 sps:$4 sm:$0xff]  }
 0x133   : > { %961 = vmatmul.mubr.bf16.gmra.mrb[28].mxu1 %v652_v46  ;;  %v10897_v46 = vld [vmem:[%s16825_s3 + $0x1c0] ss:$8 sps:$4 sm:$0xff]  }
 0x134   : > { %1666 = vmatpush1.bf16.msra.mxu1 %v10876_v10 }
 0x135   : > { %1667 = vmatprep.subr.bf16.mxu1 %v10881_v11 }
 0x138   : > { %1668 = vmatpush1.bf16.msra.mxu1 %v10879_v13 }
 0x139   : > { %1669 = vmatprep.subr.bf16.mxu1 %v10884_v17 }
 0x13c   : > { %1670 = vmatpush1.bf16.msra.mxu1 %v10882_v19 }
 0x13d   : > { %1671 = vmatprep.subr.bf16.mxu1 %v10887_v22 }
 0x140   : > { %1672 = vmatpush1.bf16.msra.mxu1 %v10885_v23 }
 0x141   : > { %1673 = vmatprep.subr.bf16.mxu1 %v10890_v24 }
 0x144   : > { %1674 = vmatpush1.bf16.msra.mxu1 %v10888_v25 }
 0x145   : > { %1675 = vmatprep.subr.bf16.mxu1 %v10893_v26 }
 0x148   : > { %1676 = vmatpush1.bf16.msra.mxu1 %v10891_v32 }
 0x149   : > { %1677 = vmatprep.subr.bf16.mxu1 %v10896_v34 }
 0x14c   : > { %1678 = vmatpush1.bf16.msra.mxu1 %v10894_v38 }
 0x14d   : > { %1679 = vmatprep.subr.bf16.mxu1 %v10899_v30 }
 0x150   : > { %1680 = vmatpush1.bf16.msra.mxu1 %v10897_v46 }
 0x1ce   : > { %v892_v49 = vpop.f32.mrb[0].mxu1 }
 0x1cf   : > { %v893_v50 = vadd.f32 %v892_v49, %v12426_v47  ;;  %v894_v53 = vpop.f32.mrb[1].mxu1 }
 0x1d0   : > { %v895_v55 = vadd.f32 %v894_v53, %v12429_v48  ;;  %v896_v59 = vpop.f32.mrb[2].mxu1 }
 0x1d1   : > { %v897_v62 = vadd.f32 %v896_v59, %v12426_v47  ;;  %v898_v63 = vpop.f32.mrb[3].mxu1  ;;  %v971_v2 = vmax.f32 %v893_v50, 0.0 }
 0x1d2   : > { %v899_v0 = vadd.f32 %v898_v63, %v12429_v48  ;;  %v972_v5 = vmax.f32 %v895_v55, 0.0 }
 0x1d3   : > { %v973_v3 = vmax.f32 %v897_v62, 0.0 }
 0x1d4   : > { %v974_v8 = vmax.f32 %v899_v0, 0.0 }
 0x1d5   : > { %v1003_v10 = vpack.c.bf16 %v973_v3, %v971_v2 }
 0x1d6   : > { %v902_v11 = vpop.f32.mrb[4].mxu1  ;;  %v1004_v13 = vpack.c.bf16 %v974_v8, %v972_v5 }
 0x1d7   : > { %v903_v17 = vadd.f32 %v902_v11, %v12426_v47  ;;  %v904_v19 = vpop.f32.mrb[5].mxu1 }
 0x1d8   : > { %v905_v22 = vadd.f32 %v904_v19, %v12429_v48  ;;  %v906_v23 = vpop.f32.mrb[6].mxu1  ;;  %1255 = vmatprep.mubr.bf16.mxu0 %v1004_v13 }
 0x1d9   : > { %v907_v24 = vadd.f32 %v906_v23, %v12426_v47  ;;  %v908_v25 = vpop.f32.mrb[7].mxu1  ;;  %1256 = vmatmul.mubr.bf16.vlgmr.msra.gmra.mrb[32].mxu0 %v1003_v10  ;;  %v975_v32 = vmax.f32 %v903_v17, 0.0 }
 0x1da   : > { %v909_v26 = vadd.f32 %v908_v25, %v12429_v48  ;;  %v976_v38 = vmax.f32 %v905_v22, 0.0 }
 0x1db   : > { %v977_v34 = vmax.f32 %v907_v24, 0.0 }
 0x1dc   : > { %v978_v30 = vmax.f32 %v909_v26, 0.0 }
 0x1dd   : > { %v1005_v46 = vpack.c.bf16 %v977_v34, %v975_v32 }
 0x1de   : > { %v912_v31 = vpop.f32.mrb[8].mxu1  ;;  %v1006_v49 = vpack.c.bf16 %v978_v30, %v976_v38 }
 0x1df   : > { %v913_v50 = vadd.f32 %v912_v31, %v12426_v47  ;;  %v914_v53 = vpop.f32.mrb[9].mxu1 }
 0x1e0   : > { %v915_v55 = vadd.f32 %v914_v53, %v12429_v48  ;;  %v916_v59 = vpop.f32.mrb[10].mxu1  ;;  %1265 = vmatprep.mubr.bf16.mxu0 %v1006_v49 }
 0x1e1   : > { %v917_v62 = vadd.f32 %v916_v59, %v12426_v47  ;;  %v918_v63 = vpop.f32.mrb[11].mxu1  ;;  %1266 = vmatmul.mubr.bf16.gmra.mrb[36].mxu0 %v1005_v46  ;;  %v979_v2 = vmax.f32 %v913_v50, 0.0 }
 0x1e2   : > { %v919_v0 = vadd.f32 %v918_v63, %v12429_v48  ;;  %v980_v5 = vmax.f32 %v915_v55, 0.0 }
 0x1e3   : > { %v981_v3 = vmax.f32 %v917_v62, 0.0 }
 0x1e4   : > { %v982_v8 = vmax.f32 %v919_v0, 0.0 }
 0x1e5   : > { %v1007_v10 = vpack.c.bf16 %v981_v3, %v979_v2 }
 0x1e6   : > { %v922_v11 = vpop.f32.mrb[12].mxu1  ;;  %v1008_v13 = vpack.c.bf16 %v982_v8, %v980_v5 }
 0x1e7   : > { %v923_v17 = vadd.f32 %v922_v11, %v12426_v47  ;;  %v924_v19 = vpop.f32.mrb[13].mxu1 }
 0x1e8   : > { %v925_v22 = vadd.f32 %v924_v19, %v12429_v48  ;;  %v926_v23 = vpop.f32.mrb[14].mxu1  ;;  %1275 = vmatprep.mubr.bf16.mxu0 %v1008_v13 }
 0x1e9   : > { %v927_v24 = vadd.f32 %v926_v23, %v12426_v47  ;;  %v928_v25 = vpop.f32.mrb[15].mxu1  ;;  %1276 = vmatmul.mubr.bf16.gmra.mrb[40].mxu0 %v1007_v10  ;;  %v983_v32 = vmax.f32 %v923_v17, 0.0 }
 0x1ea   : > { %v929_v26 = vadd.f32 %v928_v25, %v12429_v48  ;;  %v984_v38 = vmax.f32 %v925_v22, 0.0 }
 0x1eb   : > { %v985_v34 = vmax.f32 %v927_v24, 0.0 }
 0x1ec   : > { %v986_v30 = vmax.f32 %v929_v26, 0.0 }
 0x1ed   : > { %v1009_v46 = vpack.c.bf16 %v985_v34, %v983_v32 }
 0x1ee   : > { %v932_v31 = vpop.f32.mrb[16].mxu1  ;;  %v1010_v49 = vpack.c.bf16 %v986_v30, %v984_v38 }
 0x1ef   : > { %v933_v50 = vadd.f32 %v932_v31, %v12426_v47  ;;  %v934_v53 = vpop.f32.mrb[17].mxu1 }
 0x1f0   : > { %v935_v55 = vadd.f32 %v934_v53, %v12429_v48  ;;  %v936_v59 = vpop.f32.mrb[18].mxu1  ;;  %1285 = vmatprep.mubr.bf16.mxu0 %v1010_v49 }
 0x1f1   : > { %v937_v62 = vadd.f32 %v936_v59, %v12426_v47  ;;  %v938_v63 = vpop.f32.mrb[19].mxu1  ;;  %1286 = vmatmul.mubr.bf16.gmra.mrb[44].mxu0 %v1009_v46  ;;  %v987_v2 = vmax.f32 %v933_v50, 0.0 }
 0x1f2   : > { %v939_v0 = vadd.f32 %v938_v63, %v12429_v48  ;;  %v988_v5 = vmax.f32 %v935_v55, 0.0 }
 0x1f3   : > { %v989_v3 = vmax.f32 %v937_v62, 0.0 }
 0x1f4   : > { %v990_v8 = vmax.f32 %v939_v0, 0.0 }
 0x1f5   : > { %v1011_v10 = vpack.c.bf16 %v989_v3, %v987_v2 }
 0x1f6   : > { %v942_v11 = vpop.f32.mrb[20].mxu1  ;;  %v1012_v13 = vpack.c.bf16 %v990_v8, %v988_v5 }
 0x1f7   : > { %v943_v17 = vadd.f32 %v942_v11, %v12426_v47  ;;  %v944_v19 = vpop.f32.mrb[21].mxu1 }
 0x1f8   : > { %v945_v22 = vadd.f32 %v944_v19, %v12429_v48  ;;  %v946_v23 = vpop.f32.mrb[22].mxu1  ;;  %1295 = vmatprep.mubr.bf16.mxu0 %v1012_v13 }
 0x1f9   : > { %v947_v24 = vadd.f32 %v946_v23, %v12426_v47  ;;  %v948_v25 = vpop.f32.mrb[23].mxu1  ;;  %1296 = vmatmul.mubr.bf16.gmra.mrb[48].mxu0 %v1011_v10  ;;  %v991_v32 = vmax.f32 %v943_v17, 0.0 }
 0x1fa   : > { %v949_v26 = vadd.f32 %v948_v25, %v12429_v48  ;;  %v992_v38 = vmax.f32 %v945_v22, 0.0 }
 0x1fb   : > { %v993_v34 = vmax.f32 %v947_v24, 0.0 }
 0x1fc   : > { %v994_v30 = vmax.f32 %v949_v26, 0.0 }
 0x1fd   : > { %v1013_v46 = vpack.c.bf16 %v993_v34, %v991_v32 }
 0x1fe   : > { %v952_v31 = vpop.f32.mrb[24].mxu1  ;;  %v1014_v49 = vpack.c.bf16 %v994_v30, %v992_v38 }
 0x1ff   : > { %v953_v50 = vadd.f32 %v952_v31, %v12426_v47  ;;  %v954_v53 = vpop.f32.mrb[25].mxu1 }
 0x200   : > { %v955_v55 = vadd.f32 %v954_v53, %v12429_v48  ;;  %v956_v59 = vpop.f32.mrb[26].mxu1  ;;  %1305 = vmatprep.mubr.bf16.mxu0 %v1014_v49  ;;  %v10902_v49 = vld [vmem:[%s16825_s3 + $0x1d4] ss:$8 sps:$4 sm:$0xff]  }
 0x201   : > { %v957_v62 = vadd.f32 %v956_v59, %v12426_v47  ;;  %v958_v63 = vpop.f32.mrb[27].mxu1  ;;  %1306 = vmatmul.mubr.bf16.gmra.mrb[52].mxu0 %v1013_v46  ;;  %v995_v2 = vmax.f32 %v953_v50, 0.0  ;;  %1681 = vmatprep.subr.bf16.mxu1 %v10902_v49  ;;  %v10903_v50 = vld [vmem:[%s16825_s3 + $0x1e0] ss:$8 sps:$4 sm:$0xff]   ;;  %v10908_v53 = vld [vmem:[%s16825_s3 + $0x1f4] ss:$8 sps:$4 sm:$0xff]  }
 0x202   : > { %v959_v0 = vadd.f32 %v958_v63, %v12429_v48  ;;  %v996_v5 = vmax.f32 %v955_v55, 0.0  ;;  %v10906_v55 = vld [vmem:[%s16825_s3 + $0x1f0] ss:$8 sps:$4 sm:$0xff]   ;;  %v10909_v59 = vld [vmem:[%s16827_s5 + $0x100] ss:$8 sps:$4 sm:$0xff]  }
 0x203   : > { %v997_v3 = vmax.f32 %v957_v62, 0.0  ;;  %v10911_v62 = vld [vmem:[%s16827_s5 + $0x104] ss:$8 sps:$4 sm:$0xff]   ;;  %v10914_v63 = vld [vmem:[%s16827_s5 + $0x114] ss:$8 sps:$4 sm:$0xff]  }
 0x204   : > { %v998_v8 = vmax.f32 %v959_v0, 0.0  ;;  %2022 = vmatprep.subr.bf16.mxu0 %v10911_v62  ;;  %v10912_v0 = vld [vmem:[%s16827_s5 + $0x110] ss:$8 sps:$4 sm:$0xff]   ;;  %v10947_v49 = vld [vmem:[%s16827_s5 + $0x1c4] ss:$8 sps:$4 sm:$0xff]  }
 0x205   : > { %v1015_v10 = vpack.c.bf16 %v997_v3, %v995_v2  ;;  %2023 = vmatpush1.bf16.msra.mxu0 %v10909_v59  ;;  %v10917_v2 = vld [vmem:[%s16827_s5 + $0x124] ss:$8 sps:$4 sm:$0xff]   ;;  %v10915_v3 = vld [vmem:[%s16827_s5 + $0x120] ss:$8 sps:$4 sm:$0xff]  }
 0x206   : > { %v962_v11 = vpop.f32.mrb[28].mxu1  ;;  %v1016_v13 = vpack.c.bf16 %v998_v8, %v996_v5  ;;  %2024 = vmatprep.subr.bf16.mxu0 %v10914_v63  ;;  %v10920_v5 = vld [vmem:[%s16827_s5 + $0x134] ss:$8 sps:$4 sm:$0xff]   ;;  %v10918_v8 = vld [vmem:[%s16827_s5 + $0x130] ss:$8 sps:$4 sm:$0xff]  }
 0x207   : > { %v963_v17 = vadd.f32 %v962_v11, %v12426_v47  ;;  %v964_v19 = vpop.f32.mrb[29].mxu1  ;;  %v10921_v11 = vld [vmem:[%s16827_s5 + $0x140] ss:$8 sps:$4 sm:$0xff]  }
 0x208   : > { %v965_v22 = vadd.f32 %v964_v19, %v12429_v48  ;;  %v966_v23 = vpop.f32.mrb[30].mxu1  ;;  %1315 = vmatprep.mubr.bf16.mxu0 %v1016_v13  ;;  %v10926_v13 = vld [vmem:[%s16827_s5 + $0x154] ss:$8 sps:$4 sm:$0xff]   ;;  %v10929_v19 = vld [vmem:[%s16827_s5 + $0x164] ss:$8 sps:$4 sm:$0xff]  }
 0x209   : > { %v967_v24 = vadd.f32 %v966_v23, %v12426_v47  ;;  %v968_v25 = vpop.f32.mrb[31].mxu1  ;;  %1316 = vmatmul.mubr.bf16.gmra.mrb[56].mxu0 %v1015_v10  ;;  %v999_v32 = vmax.f32 %v963_v17, 0.0  ;;  %v10900_v47 = vld [vmem:[%s16825_s3 + $0x1d0] ss:$8 sps:$4 sm:$0xff]   ;;  %v10923_v10 = vld [vmem:[%s16827_s5 + $0x144] ss:$8 sps:$4 sm:$0xff]  }
 0x20a   : > { %v969_v26 = vadd.f32 %v968_v25, %v12429_v48  ;;  %v1000_v38 = vmax.f32 %v965_v22, 0.0  ;;  %1682 = vmatpush1.bf16.msra.mxu1 %v10900_v47  ;;  %v10905_v48 = vld [vmem:[%s16825_s3 + $0x1e4] ss:$8 sps:$4 sm:$0xff]   ;;  %2025 = vmatpush1.bf16.msra.mxu0 %v10912_v0  ;;  %v10924_v17 = vld [vmem:[%s16827_s5 + $0x150] ss:$8 sps:$4 sm:$0xff]  }
 0x20b   : > { %v1001_v34 = vmax.f32 %v967_v24, 0.0  ;;  %1683 = vmatprep.subr.bf16.mxu1 %v10905_v48  ;;  %2026 = vmatprep.subr.bf16.mxu0 %v10917_v2  ;;  %v10927_v22 = vld [vmem:[%s16827_s5 + $0x160] ss:$8 sps:$4 sm:$0xff]   ;;  %v10932_v23 = vld [vmem:[%s16827_s5 + $0x174] ss:$8 sps:$4 sm:$0xff]  }
 0x20c   : > { %v1002_v30 = vmax.f32 %v969_v26, 0.0  ;;  %v10930_v24 = vld [vmem:[%s16827_s5 + $0x170] ss:$8 sps:$4 sm:$0xff]   ;;  %v10935_v25 = vld [vmem:[%s16827_s5 + $0x184] ss:$8 sps:$4 sm:$0xff]  }
 0x20d   : > { %v1017_v46 = vpack.c.bf16 %v1001_v34, %v999_v32  ;;  %v10933_v26 = vld [vmem:[%s16827_s5 + $0x180] ss:$8 sps:$4 sm:$0xff]   ;;  %v10938_v32 = vld [vmem:[%s16827_s5 + $0x194] ss:$8 sps:$4 sm:$0xff]   ;;  %v10936_v34 = vld [vmem:[%s16827_s5 + $0x190] ss:$8 sps:$4 sm:$0xff]  }
 0x20e   : > { %v1018_v31 = vpack.c.bf16 %v1002_v30, %v1000_v38  ;;  %1684 = vmatpush1.bf16.msra.mxu1 %v10903_v50  ;;  %2027 = vmatpush1.bf16.msra.mxu0 %v10915_v3  ;;  %v10941_v38 = vld [vmem:[%s16827_s5 + $0x1a4] ss:$8 sps:$4 sm:$0xff]   ;;  %v10939_v30 = vld [vmem:[%s16827_s5 + $0x1a0] ss:$8 sps:$4 sm:$0xff]   ;;  %v10950_v48 = vld [vmem:[%s16827_s5 + $0x1d4] ss:$8 sps:$4 sm:$0xff]  }
 0x20f   : > { %1685 = vmatprep.subr.bf16.mxu1 %v10908_v53  ;;  %2028 = vmatprep.subr.bf16.mxu0 %v10920_v5  ;;  %v10945_v47 = vld [vmem:[%s16827_s5 + $0x1c0] ss:$8 sps:$4 sm:$0xff]   ;;  %v10948_v50 = vld [vmem:[%s16827_s5 + $0x1d0] ss:$8 sps:$4 sm:$0xff]  }
 0x210   : > { %1325 = vmatprep.mubr.bf16.mxu0 %v1018_v31  ;;  %v10942_v31 = vld [vmem:[%s16827_s5 + $0x1b0] ss:$8 sps:$4 sm:$0xff]   ;;  %v1051_v53 = vld [vmem:[%s16828_s6] sm:$0x3] }
 0x211   : > { %1326 = vmatmul.mubr.bf16.gmra.mrb[60].mxu0 %v1017_v46  ;;  %v10944_v46 = vld [vmem:[%s16827_s5 + $0x1b4] ss:$8 sps:$4 sm:$0xff]   ;;  %v12572_v59 = vrot.slane %v1051_v53, %v12127_v29 }
 0x212   : > { %1686 = vmatpush1.bf16.msra.mxu1 %v10906_v55  ;;  %2029 = vmatpush1.bf16.msra.mxu0 %v10918_v8  ;;  %v12569_v55 = vrot.slane %v1051_v53, %v12125_v28 }
 0x213   : > { %2030 = vmatprep.subr.bf16.mxu0 %v10923_v10 }
 0x216   : > { %2031 = vmatpush1.bf16.msra.mxu0 %v10921_v11 }
 0x217   : > { %2032 = vmatprep.subr.bf16.mxu0 %v10926_v13 }
 0x21a   : > { %2033 = vmatpush1.bf16.msra.mxu0 %v10924_v17 }
 0x21b   : > { %2034 = vmatprep.subr.bf16.mxu0 %v10929_v19 }
 0x21e   : > { %2035 = vmatpush1.bf16.msra.mxu0 %v10927_v22 }
 0x21f   : > { %2036 = vmatprep.subr.bf16.mxu0 %v10932_v23 }
 0x222   : > { %2037 = vmatpush1.bf16.msra.mxu0 %v10930_v24 }
 0x223   : > { %2038 = vmatprep.subr.bf16.mxu0 %v10935_v25 }
 0x226   : > { %2039 = vmatpush1.bf16.msra.mxu0 %v10933_v26 }
 0x227   : > { %2040 = vmatprep.subr.bf16.mxu0 %v10938_v32 }
 0x22a   : > { %2041 = vmatpush1.bf16.msra.mxu0 %v10936_v34 }
 0x22b   : > { %2042 = vmatprep.subr.bf16.mxu0 %v10941_v38 }
 0x22e   : > { %2043 = vmatpush1.bf16.msra.mxu0 %v10939_v30 }
 0x22f   : > { %2044 = vmatprep.subr.bf16.mxu0 %v10944_v46 }
 0x232   : > { %2045 = vmatpush1.bf16.msra.mxu0 %v10942_v31 }
 0x233   : > { %2046 = vmatprep.subr.bf16.mxu0 %v10947_v49 }
 0x236   : > { %2047 = vmatpush1.bf16.msra.mxu0 %v10945_v47 }
 0x237   : > { %2048 = vmatprep.subr.bf16.mxu0 %v10950_v48 }
 0x23a   : > { %2049 = vmatpush1.bf16.msra.mxu0 %v10948_v50 }
 0x2ac   : > { %v1257_v62 = vpop.f32.mrb[32].mxu0 }
 0x2ad   : > { %v1258_v63 = vadd.f32 %v1257_v62, %v12569_v55  ;;  %v1259_v0 = vpop.f32.mrb[33].mxu0 }
 0x2ae   : > { %v1260_v2 = vadd.f32 %v1259_v0, %v12572_v59  ;;  %v1261_v3 = vpop.f32.mrb[34].mxu0 }
 0x2af   : > { %v1336_v5 = vadd.f32 %v1258_v63, %v12140_v37  ;;  %v1262_v8 = vadd.f32 %v1261_v3, %v12569_v55  ;;  %v1263_v10 = vpop.f32.mrb[35].mxu0 }
 0x2b0   : > { %v1337_v11 = vadd.f32 %v1260_v2, %v12143_v40  ;;  %v1264_v13 = vadd.f32 %v1263_v10, %v12572_v59 }
 0x2b1   : > { %v12580_v17 = vmax.f32 %v1336_v5, 0.0  ;;  %v1338_v19 = vadd.f32 %v1262_v8, %v12150_v42 }
 0x2b2   : > { %v12583_v22 = vmax.f32 %v1337_v11, 0.0  ;;  %v1339_v23 = vadd.f32 %v1264_v13, %v12154_v43 }
 0x2b3   : > { %9112 = vst [vmem:[%s12146_s20 + $0x100] sm:$0xff] %v12580_v17  ;;  %v12588_v24 = vmax.f32 %v1338_v19, 0.0 }
 0x2b4   : > { %9113 = vst [vmem:[%s12146_s20 + $0x108] sm:$0xff] %v12583_v22  ;;  %v12592_v37 = vmax.f32 %v1339_v23, 0.0  ;;  %v1267_v25 = vpop.f32.mrb[36].mxu0 }
 0x2b5   : > { %9114 = vst [vmem:[%s12146_s20 + $0x110] sm:$0xff] %v12588_v24  ;;  %v1268_v40 = vadd.f32 %v1267_v25, %v12569_v55  ;;  %v1269_v26 = vpop.f32.mrb[37].mxu0  ;;  %v1433_v34 = vpack.c.bf16 %v12588_v24, %v12580_v17 }
 0x2b6   : > { %9115 = vst [vmem:[%s12146_s20 + $0x118] sm:$0xff] %v12592_v37  ;;  %v1270_v42 = vadd.f32 %v1269_v26, %v12572_v59  ;;  %v1271_v43 = vpop.f32.mrb[38].mxu0  ;;  %v1434_v32 = vpack.c.bf16 %v12592_v37, %v12583_v22 }
 0x2b7   : > { %v1340_v38 = vadd.f32 %v1268_v40, %v12166_v51  ;;  %v1272_v30 = vadd.f32 %v1271_v43, %v12569_v55  ;;  %v1273_v46 = vpop.f32.mrb[39].mxu0 }
 0x2b8   : > { %v1341_v31 = vadd.f32 %v1270_v42, %v12169_v54  ;;  %v1274_v49 = vadd.f32 %v1273_v46, %v12572_v59  ;;  %1687 = vmatprep.mubr.bf16.mxu1 %v1434_v32 }
 0x2b9   : > { %v12608_v47 = vmax.f32 %v1340_v38, 0.0  ;;  %v1342_v48 = vadd.f32 %v1272_v30, %v12174_v56  ;;  %1688 = vmatmul.mubr.bf16.vlgmr.msra.gmra.mrb[32].mxu1 %v1433_v34 }
 0x2ba   : > { %v12611_v50 = vmax.f32 %v1341_v31, 0.0  ;;  %v1343_v53 = vadd.f32 %v1274_v49, %v12178_v57 }
 0x2bb   : > { %9116 = vst [vmem:[%s12146_s20 + $0x120] sm:$0xff] %v12608_v47  ;;  %v12616_v51 = vmax.f32 %v1342_v48, 0.0 }
 0x2bc   : > { %9117 = vst [vmem:[%s12146_s20 + $0x128] sm:$0xff] %v12611_v50  ;;  %v12620_v54 = vmax.f32 %v1343_v53, 0.0  ;;  %v1277_v62 = vpop.f32.mrb[40].mxu0 }
 0x2bd   : > { %9118 = vst [vmem:[%s12146_s20 + $0x130] sm:$0xff] %v12616_v51  ;;  %v1278_v63 = vadd.f32 %v1277_v62, %v12569_v55  ;;  %v1279_v0 = vpop.f32.mrb[41].mxu0  ;;  %v1435_v10 = vpack.c.bf16 %v12616_v51, %v12608_v47 }
 0x2be   : > { %9119 = vst [vmem:[%s12146_s20 + $0x138] sm:$0xff] %v12620_v54  ;;  %v1280_v56 = vadd.f32 %v1279_v0, %v12572_v59  ;;  %v1281_v57 = vpop.f32.mrb[42].mxu0  ;;  %v1436_v2 = vpack.c.bf16 %v12620_v54, %v12611_v50 }
 0x2bf   : > { %v1344_v3 = vadd.f32 %v1278_v63, %v12190_v1  ;;  %v1282_v5 = vadd.f32 %v1281_v57, %v12569_v55  ;;  %v1283_v8 = vpop.f32.mrb[43].mxu0 }
 0x2c0   : > { %v1345_v11 = vadd.f32 %v1280_v56, %v12193_v4  ;;  %v1284_v13 = vadd.f32 %v1283_v8, %v12572_v59  ;;  %1697 = vmatprep.mubr.bf16.mxu1 %v1436_v2 }
 0x2c1   : > { %v12636_v19 = vmax.f32 %v1344_v3, 0.0  ;;  %v1346_v23 = vadd.f32 %v1282_v5, %v12198_v6  ;;  %1698 = vmatmul.mubr.bf16.gmra.mrb[36].mxu1 %v1435_v10 }
 0x2c2   : > { %v12639_v25 = vmax.f32 %v1345_v11, 0.0  ;;  %v1347_v1 = vadd.f32 %v1284_v13, %v12202_v7 }
 0x2c3   : > { %9120 = vst [vmem:[%s12146_s20 + $0x140] sm:$0xff] %v12636_v19  ;;  %v12644_v40 = vmax.f32 %v1346_v23, 0.0 }
 0x2c4   : > { %9121 = vst [vmem:[%s12146_s20 + $0x148] sm:$0xff] %v12639_v25  ;;  %v12648_v4 = vmax.f32 %v1347_v1, 0.0  ;;  %v1287_v26 = vpop.f32.mrb[44].mxu0 }
 0x2c5   : > { %9122 = vst [vmem:[%s12146_s20 + $0x150] sm:$0xff] %v12644_v40  ;;  %v1288_v42 = vadd.f32 %v1287_v26, %v12569_v55  ;;  %v1289_v43 = vpop.f32.mrb[45].mxu0  ;;  %v1437_v46 = vpack.c.bf16 %v12644_v40, %v12636_v19 }
 0x2c6   : > { %9123 = vst [vmem:[%s12146_s20 + $0x158] sm:$0xff] %v12648_v4  ;;  %v1290_v6 = vadd.f32 %v1289_v43, %v12572_v59  ;;  %v1291_v7 = vpop.f32.mrb[46].mxu0  ;;  %v1438_v32 = vpack.c.bf16 %v12648_v4, %v12639_v25 }
 0x2c7   : > { %v1348_v34 = vadd.f32 %v1288_v42, %v12214_v15  ;;  %v1292_v38 = vadd.f32 %v1291_v7, %v12569_v55  ;;  %v1293_v30 = vpop.f32.mrb[47].mxu0 }
 0x2c8   : > { %v1349_v31 = vadd.f32 %v1290_v6, %v12217_v18  ;;  %v1294_v49 = vadd.f32 %v1293_v30, %v12572_v59  ;;  %1707 = vmatprep.mubr.bf16.mxu1 %v1438_v32 }
 0x2c9   : > { %v12664_v48 = vmax.f32 %v1348_v34, 0.0  ;;  %v1350_v53 = vadd.f32 %v1292_v38, %v12222_v20  ;;  %1708 = vmatmul.mubr.bf16.gmra.mrb[40].mxu1 %v1437_v46 }
 0x2ca   : > { %v12667_v62 = vmax.f32 %v1349_v31, 0.0  ;;  %v1351_v15 = vadd.f32 %v1294_v49, %v12226_v21 }
 0x2cb   : > { %9124 = vst [vmem:[%s12146_s20 + $0x160] sm:$0xff] %v12664_v48  ;;  %v12672_v63 = vmax.f32 %v1350_v53, 0.0 }
 0x2cc   : > { %9125 = vst [vmem:[%s12146_s20 + $0x168] sm:$0xff] %v12667_v62  ;;  %v12676_v18 = vmax.f32 %v1351_v15, 0.0  ;;  %v1297_v0 = vpop.f32.mrb[48].mxu0 }
 0x2cd   : > { %9126 = vst [vmem:[%s12146_s20 + $0x170] sm:$0xff] %v12672_v63  ;;  %v1298_v56 = vadd.f32 %v1297_v0, %v12569_v55  ;;  %v1299_v57 = vpop.f32.mrb[49].mxu0  ;;  %v1439_v10 = vpack.c.bf16 %v12672_v63, %v12664_v48 }
 0x2ce   : > { %9127 = vst [vmem:[%s12146_s20 + $0x178] sm:$0xff] %v12676_v18  ;;  %v1300_v20 = vadd.f32 %v1299_v57, %v12572_v59  ;;  %v1301_v21 = vpop.f32.mrb[50].mxu0  ;;  %v1440_v2 = vpack.c.bf16 %v12676_v18, %v12667_v62 }
 0x2cf   : > { %v1352_v3 = vadd.f32 %v1298_v56, %v12238_v33  ;;  %v1302_v5 = vadd.f32 %v1301_v21, %v12569_v55  ;;  %v1303_v8 = vpop.f32.mrb[51].mxu0 }
 0x2d0   : > { %v1353_v11 = vadd.f32 %v1300_v20, %v12241_v36  ;;  %v1304_v13 = vadd.f32 %v1303_v8, %v12572_v59  ;;  %1717 = vmatprep.mubr.bf16.mxu1 %v1440_v2 }
 0x2d1   : > { %v12692_v23 = vmax.f32 %v1352_v3, 0.0  ;;  %v1354_v1 = vadd.f32 %v1302_v5, %v12246_v39  ;;  %1718 = vmatmul.mubr.bf16.gmra.mrb[44].mxu1 %v1439_v10 }
 0x2d2   : > { %v12695_v26 = vmax.f32 %v1353_v11, 0.0  ;;  %v1355_v33 = vadd.f32 %v1304_v13, %v12250_v41 }
 0x2d3   : > { %9128 = vst [vmem:[%s12146_s20 + $0x180] sm:$0xff] %v12692_v23  ;;  %v12700_v42 = vmax.f32 %v1354_v1, 0.0 }
 0x2d4   : > { %9129 = vst [vmem:[%s12146_s20 + $0x188] sm:$0xff] %v12695_v26  ;;  %v12704_v36 = vmax.f32 %v1355_v33, 0.0  ;;  %v1307_v43 = vpop.f32.mrb[52].mxu0 }
 0x2d5   : > { %9130 = vst [vmem:[%s12146_s20 + $0x190] sm:$0xff] %v12700_v42  ;;  %v1308_v6 = vadd.f32 %v1307_v43, %v12569_v55  ;;  %v1309_v7 = vpop.f32.mrb[53].mxu0  ;;  %v1441_v46 = vpack.c.bf16 %v12700_v42, %v12692_v23 }
 0x2d6   : > { %9131 = vst [vmem:[%s12146_s20 + $0x198] sm:$0xff] %v12704_v36  ;;  %v1310_v39 = vadd.f32 %v1309_v7, %v12572_v59  ;;  %v1311_v41 = vpop.f32.mrb[54].mxu0  ;;  %v1442_v32 = vpack.c.bf16 %v12704_v36, %v12695_v26 }
 0x2d7   : > { %v1356_v34 = vadd.f32 %v1308_v6, %v12262_v52  ;;  %v1312_v38 = vadd.f32 %v1311_v41, %v12569_v55  ;;  %v1313_v30 = vpop.f32.mrb[55].mxu0 }
 0x2d8   : > { %v1357_v31 = vadd.f32 %v1310_v39, %v12265_v58  ;;  %v1314_v49 = vadd.f32 %v1313_v30, %v12572_v59  ;;  %1727 = vmatprep.mubr.bf16.mxu1 %v1442_v32 }
 0x2d9   : > { %v12720_v53 = vmax.f32 %v1356_v34, 0.0  ;;  %v1358_v15 = vadd.f32 %v1312_v38, %v12270_v60  ;;  %1728 = vmatmul.mubr.bf16.gmra.mrb[48].mxu1 %v1441_v46 }
 0x2da   : > { %v12723_v0 = vmax.f32 %v1357_v31, 0.0  ;;  %v1359_v52 = vadd.f32 %v1314_v49, %v12274_v61 }
 0x2db   : > { %9132 = vst [vmem:[%s12146_s20 + $0x1a0] sm:$0xff] %v12720_v53  ;;  %v12728_v56 = vmax.f32 %v1358_v15, 0.0 }
 0x2dc   : > { %9133 = vst [vmem:[%s12146_s20 + $0x1a8] sm:$0xff] %v12723_v0  ;;  %v12732_v58 = vmax.f32 %v1359_v52, 0.0  ;;  %v1317_v57 = vpop.f32.mrb[56].mxu0 }
 0x2dd   : > { %9134 = vst [vmem:[%s12146_s20 + $0x1b0] sm:$0xff] %v12728_v56  ;;  %v1318_v20 = vadd.f32 %v1317_v57, %v12569_v55  ;;  %v1319_v21 = vpop.f32.mrb[57].mxu0  ;;  %v1443_v10 = vpack.c.bf16 %v12728_v56, %v12720_v53 }
 0x2de   : > { %9135 = vst [vmem:[%s12146_s20 + $0x1b8] sm:$0xff] %v12732_v58  ;;  %v1320_v60 = vadd.f32 %v1319_v21, %v12572_v59  ;;  %v1321_v61 = vpop.f32.mrb[58].mxu0  ;;  %v1444_v2 = vpack.c.bf16 %v12732_v58, %v12723_v0  ;;  %v10956_v21 = vld [vmem:[%s16827_s5 + $0x1f4] ss:$8 sps:$4 sm:$0xff]  }
 0x2df   : > { %v1360_v3 = vadd.f32 %v1318_v20, %v12286_v9  ;;  %v1322_v5 = vadd.f32 %v1321_v61, %v12569_v55  ;;  %v1323_v8 = vpop.f32.mrb[59].mxu0  ;;  %v10957_v61 = vld [vmem:[%s16825_s3 + $0x200] ss:$8 sps:$4 sm:$0xff]  }
 0x2e0   : > { %v1361_v11 = vadd.f32 %v1320_v60, %v12289_v12  ;;  %v1324_v13 = vadd.f32 %v1323_v8, %v12572_v59  ;;  %1737 = vmatprep.mubr.bf16.mxu1 %v1444_v2  ;;  %v10954_v60 = vld [vmem:[%s16827_s5 + $0x1f0] ss:$8 sps:$4 sm:$0xff]   ;;  %v10959_v2 = vld [vmem:[%s16825_s3 + $0x204] ss:$8 sps:$4 sm:$0xff]  }
 0x2e1   : > { %v12748_v1 = vmax.f32 %v1360_v3, 0.0  ;;  %v1362_v33 = vadd.f32 %v1322_v5, %v12294_v14  ;;  %1738 = vmatmul.mubr.bf16.gmra.mrb[52].mxu1 %v1443_v10  ;;  %v10962_v3 = vld [vmem:[%s16825_s3 + $0x214] ss:$8 sps:$4 sm:$0xff]   ;;  %2454 = vmatprep.subr.bf16.mxu1 %v10959_v2  ;;  %v10960_v5 = vld [vmem:[%s16825_s3 + $0x210] ss:$8 sps:$4 sm:$0xff]  }
 0x2e2   : > { %v12751_v43 = vmax.f32 %v1361_v11, 0.0  ;;  %v1363_v9 = vadd.f32 %v1324_v13, %v12298_v16  ;;  %2455 = vmatpush1.bf16.msra.mxu1 %v10957_v61  ;;  %v10965_v8 = vld [vmem:[%s16825_s3 + $0x224] ss:$8 sps:$4 sm:$0xff]   ;;  %v10963_v10 = vld [vmem:[%s16825_s3 + $0x220] ss:$8 sps:$4 sm:$0xff]  }
 0x2e3   : > { %9136 = vst [vmem:[%s12146_s20 + $0x1c0] sm:$0xff] %v12748_v1  ;;  %v12756_v6 = vmax.f32 %v1362_v33, 0.0  ;;  %2456 = vmatprep.subr.bf16.mxu1 %v10962_v3  ;;  %v10968_v11 = vld [vmem:[%s16825_s3 + $0x234] ss:$8 sps:$4 sm:$0xff]   ;;  %v10966_v13 = vld [vmem:[%s16825_s3 + $0x230] ss:$8 sps:$4 sm:$0xff]  }
 0x2e4   : > { %9137 = vst [vmem:[%s12146_s20 + $0x1c8] sm:$0xff] %v12751_v43  ;;  %v12760_v12 = vmax.f32 %v1363_v9, 0.0  ;;  %v1327_v7 = vpop.f32.mrb[60].mxu0  ;;  %v10971_v33 = vld [vmem:[%s16825_s3 + $0x244] ss:$8 sps:$4 sm:$0xff]  }
 0x2e5   : > { %9138 = vst [vmem:[%s12146_s20 + $0x1d0] sm:$0xff] %v12756_v6  ;;  %v1328_v39 = vadd.f32 %v1327_v7, %v12569_v55  ;;  %v1329_v41 = vpop.f32.mrb[61].mxu0  ;;  %v1445_v46 = vpack.c.bf16 %v12756_v6, %v12748_v1  ;;  %v10969_v9 = vld [vmem:[%s16825_s3 + $0x240] ss:$8 sps:$4 sm:$0xff]   ;;  %v10974_v7 = vld [vmem:[%s16825_s3 + $0x254] ss:$8 sps:$4 sm:$0xff]  }
 0x2e6   : > { %9139 = vst [vmem:[%s12146_s20 + $0x1d8] sm:$0xff] %v12760_v12  ;;  %v1330_v14 = vadd.f32 %v1329_v41, %v12572_v59  ;;  %v1331_v16 = vpop.f32.mrb[62].mxu0  ;;  %v1446_v32 = vpack.c.bf16 %v12760_v12, %v12751_v43  ;;  %2457 = vmatpush1.bf16.msra.mxu1 %v10960_v5  ;;  %v10977_v41 = vld [vmem:[%s16825_s3 + $0x264] ss:$8 sps:$4 sm:$0xff]  }
 0x2e7   : > { %v1364_v34 = vadd.f32 %v1328_v39, %v12310_v27  ;;  %v1332_v38 = vadd.f32 %v1331_v16, %v12569_v55  ;;  %v1333_v30 = vpop.f32.mrb[63].mxu0  ;;  %2458 = vmatprep.subr.bf16.mxu1 %v10965_v8  ;;  %v10972_v39 = vld [vmem:[%s16825_s3 + $0x250] ss:$8 sps:$4 sm:$0xff]   ;;  %v10980_v16 = vld [vmem:[%s16825_s3 + $0x274] ss:$8 sps:$4 sm:$0xff]  }
 0x2e8   : > { %v1365_v31 = vadd.f32 %v1330_v14, %v12313_v35  ;;  %v1334_v49 = vadd.f32 %v1333_v30, %v12572_v59  ;;  %1747 = vmatprep.mubr.bf16.mxu1 %v1446_v32  ;;  %v10951_v59 = vld [vmem:[%s16827_s5 + $0x1e0] ss:$8 sps:$4 sm:$0xff]   ;;  %v10978_v32 = vld [vmem:[%s16825_s3 + $0x270] ss:$8 sps:$4 sm:$0xff]   ;;  %v10986_v30 = vld [vmem:[%s16825_s3 + $0x294] ss:$8 sps:$4 sm:$0xff]  }
 0x2e9   : > { %v12776_v15 = vmax.f32 %v1364_v34, 0.0  ;;  %v1366_v52 = vadd.f32 %v1332_v38, %v12318_v44  ;;  %1748 = vmatmul.mubr.bf16.gmra.mrb[56].mxu1 %v1445_v46  ;;  %v10975_v14 = vld [vmem:[%s16825_s3 + $0x260] ss:$8 sps:$4 sm:$0xff]   ;;  %v10983_v34 = vld [vmem:[%s16825_s3 + $0x284] ss:$8 sps:$4 sm:$0xff]  }
 0x2ea   : > { %v12779_v57 = vmax.f32 %v1365_v31, 0.0  ;;  %v1367_v27 = vadd.f32 %v1334_v49, %v12322_v45  ;;  %v10953_v45 = vld [vmem:[%s16827_s5 + $0x1e4] ss:$8 sps:$4 sm:$0xff]   ;;  %2459 = vmatpush1.bf16.msra.mxu1 %v10963_v10  ;;  %v10981_v38 = vld [vmem:[%s16825_s3 + $0x280] ss:$8 sps:$4 sm:$0xff]  }
 0x2eb   : > { %9140 = vst [vmem:[%s12146_s20 + $0x1e0] sm:$0xff] %v12776_v15  ;;  %v12784_v55 = vmax.f32 %v1366_v52, 0.0  ;;  %2050 = vmatprep.subr.bf16.mxu0 %v10953_v45  ;;  %2460 = vmatprep.subr.bf16.mxu1 %v10968_v11  ;;  %v10984_v46 = vld [vmem:[%s16825_s3 + $0x290] ss:$8 sps:$4 sm:$0xff]   ;;  %v10989_v31 = vld [vmem:[%s16825_s3 + $0x2a4] ss:$8 sps:$4 sm:$0xff]  }
 0x2ec   : > { %9141 = vst [vmem:[%s12146_s20 + $0x1e8] sm:$0xff] %v12779_v57  ;;  %v12788_v20 = vmax.f32 %v1367_v27, 0.0  ;;  %2051 = vmatpush1.bf16.msra.mxu0 %v10951_v59  ;;  %v10987_v49 = vld [vmem:[%s16825_s3 + $0x2a0] ss:$8 sps:$4 sm:$0xff]   ;;  %v10992_v52 = vld [vmem:[%s16825_s3 + $0x2b4] ss:$8 sps:$4 sm:$0xff]  }
 0x2ed   : > { %9142 = vst [vmem:[%s12146_s20 + $0x1f0] sm:$0xff] %v12784_v55  ;;  %v1447_v44 = vpack.c.bf16 %v12784_v55, %v12776_v15  ;;  %2052 = vmatprep.subr.bf16.mxu0 %v10956_v21  ;;  %v10990_v27 = vld [vmem:[%s16825_s3 + $0x2b0] ss:$8 sps:$4 sm:$0xff]   ;;  %v9176_v45 = vld [vmem:[%s16826_s4 + $0x2] sm:$0x3] }
 0x2ee   : > { %9143 = vst [vmem:[%s12146_s20 + $0x1f8] sm:$0xff] %v12788_v20  ;;  %v1448_v35 = vpack.c.bf16 %v12788_v20, %v12779_v57  ;;  %2461 = vmatpush1.bf16.msra.mxu1 %v10966_v13  ;;  %v12892_v59 = vrot.slane %v9176_v45, %v12125_v28  ;;  %v12895_v21 = vrot.slane %v9176_v45, %v12127_v29 }
 0x2ef   : > { %2462 = vmatprep.subr.bf16.mxu1 %v10971_v33 }
 0x2f0   : > { %1757 = vmatprep.mubr.bf16.mxu1 %v1448_v35  ;;  %2053 = vmatpush1.bf16.msra.mxu0 %v10954_v60  ;;  %v10995_v35 = vld [vmem:[%s16825_s3 + $0x2c4] ss:$8 sps:$4 sm:$0xff]  }
 0x2f1   : > { %1758 = vmatmul.mubr.bf16.gmra.mrb[60].mxu1 %v1447_v44  ;;  %v10993_v44 = vld [vmem:[%s16825_s3 + $0x2c0] ss:$8 sps:$4 sm:$0xff]  }
 0x2f2   : > { %2463 = vmatpush1.bf16.msra.mxu1 %v10969_v9 }
 0x2f3   : > { %2464 = vmatprep.subr.bf16.mxu1 %v10974_v7 }
 0x2f6   : > { %2465 = vmatpush1.bf16.msra.mxu1 %v10972_v39 }
 0x2f7   : > { %2466 = vmatprep.subr.bf16.mxu1 %v10977_v41 }
 0x2fa   : > { %2467 = vmatpush1.bf16.msra.mxu1 %v10975_v14 }
 0x2fb   : > { %2468 = vmatprep.subr.bf16.mxu1 %v10980_v16 }
 0x2fe   : > { %2469 = vmatpush1.bf16.msra.mxu1 %v10978_v32 }
 0x2ff   : > { %2470 = vmatprep.subr.bf16.mxu1 %v10983_v34 }
 0x302   : > { %2471 = vmatpush1.bf16.msra.mxu1 %v10981_v38 }
 0x303   : > { %2472 = vmatprep.subr.bf16.mxu1 %v10986_v30 }
 0x306   : > { %2473 = vmatpush1.bf16.msra.mxu1 %v10984_v46 }
 0x307   : > { %2474 = vmatprep.subr.bf16.mxu1 %v10989_v31 }
 0x30a   : > { %2475 = vmatpush1.bf16.msra.mxu1 %v10987_v49 }
 0x30b   : > { %2476 = vmatprep.subr.bf16.mxu1 %v10992_v52 }
 0x30e   : > { %2477 = vmatpush1.bf16.msra.mxu1 %v10990_v27 }
 0x30f   : > { %2478 = vmatprep.subr.bf16.mxu1 %v10995_v35 }
 0x312   : > { %2479 = vmatpush1.bf16.msra.mxu1 %v10993_v44 }
 0x38c   : > { %v1689_v60 = vpop.f32.mrb[32].mxu1 }
 0x38d   : > { %v1690_v61 = vadd.f32 %v1689_v60, %v12892_v59  ;;  %v1691_v2 = vpop.f32.mrb[33].mxu1 }
 0x38e   : > { %v1692_v3 = vadd.f32 %v1691_v2, %v12895_v21  ;;  %v1693_v5 = vpop.f32.mrb[34].mxu1 }
 0x38f   : > { %v1694_v8 = vadd.f32 %v1693_v5, %v12892_v59  ;;  %v1695_v10 = vpop.f32.mrb[35].mxu1  ;;  %v1768_v13 = vmax.f32 %v1690_v61, 0.0 }
 0x390   : > { %v1696_v11 = vadd.f32 %v1695_v10, %v12895_v21  ;;  %v1769_v9 = vmax.f32 %v1692_v3, 0.0 }
 0x391   : > { %v1770_v33 = vmax.f32 %v1694_v8, 0.0 }
 0x392   : > { %v1771_v7 = vmax.f32 %v1696_v11, 0.0 }
 0x393   : > { %v1800_v39 = vpack.c.bf16 %v1770_v33, %v1768_v13 }
 0x394   : > { %v1699_v41 = vpop.f32.mrb[36].mxu1  ;;  %v1801_v14 = vpack.c.bf16 %v1771_v7, %v1769_v9 }
 0x395   : > { %v1700_v16 = vadd.f32 %v1699_v41, %v12892_v59  ;;  %v1701_v32 = vpop.f32.mrb[37].mxu1 }
 0x396   : > { %v1702_v34 = vadd.f32 %v1701_v32, %v12895_v21  ;;  %v1703_v38 = vpop.f32.mrb[38].mxu1  ;;  %2054 = vmatprep.mubr.bf16.mxu0 %v1801_v14 }
 0x397   : > { %v1704_v30 = vadd.f32 %v1703_v38, %v12892_v59  ;;  %v1705_v46 = vpop.f32.mrb[39].mxu1  ;;  %2055 = vmatmul.mubr.bf16.vlgmr.msra.gmra.mrb[64].mxu0 %v1800_v39  ;;  %v1772_v49 = vmax.f32 %v1700_v16, 0.0 }
 0x398   : > { %v1706_v31 = vadd.f32 %v1705_v46, %v12895_v21  ;;  %v1773_v27 = vmax.f32 %v1702_v34, 0.0 }
 0x399   : > { %v1774_v52 = vmax.f32 %v1704_v30, 0.0 }
 0x39a   : > { %v1775_v35 = vmax.f32 %v1706_v31, 0.0 }
 0x39b   : > { %v1802_v44 = vpack.c.bf16 %v1774_v52, %v1772_v49 }
 0x39c   : > { %v1709_v45 = vpop.f32.mrb[40].mxu1  ;;  %v1803_v60 = vpack.c.bf16 %v1775_v35, %v1773_v27 }
 0x39d   : > { %v1710_v61 = vadd.f32 %v1709_v45, %v12892_v59  ;;  %v1711_v2 = vpop.f32.mrb[41].mxu1 }
 0x39e   : > { %v1712_v3 = vadd.f32 %v1711_v2, %v12895_v21  ;;  %v1713_v5 = vpop.f32.mrb[42].mxu1  ;;  %2064 = vmatprep.mubr.bf16.mxu0 %v1803_v60 }
 0x39f   : > { %v1714_v8 = vadd.f32 %v1713_v5, %v12892_v59  ;;  %v1715_v10 = vpop.f32.mrb[43].mxu1  ;;  %2065 = vmatmul.mubr.bf16.gmra.mrb[68].mxu0 %v1802_v44  ;;  %v1776_v13 = vmax.f32 %v1710_v61, 0.0 }
 0x3a0   : > { %v1716_v11 = vadd.f32 %v1715_v10, %v12895_v21  ;;  %v1777_v9 = vmax.f32 %v1712_v3, 0.0 }
 0x3a1   : > { %v1778_v33 = vmax.f32 %v1714_v8, 0.0 }
 0x3a2   : > { %v1779_v7 = vmax.f32 %v1716_v11, 0.0 }
 0x3a3   : > { %v1804_v39 = vpack.c.bf16 %v1778_v33, %v1776_v13 }
 0x3a4   : > { %v1719_v41 = vpop.f32.mrb[44].mxu1  ;;  %v1805_v14 = vpack.c.bf16 %v1779_v7, %v1777_v9 }
 0x3a5   : > { %v1720_v16 = vadd.f32 %v1719_v41, %v12892_v59  ;;  %v1721_v32 = vpop.f32.mrb[45].mxu1 }
 0x3a6   : > { %v1722_v34 = vadd.f32 %v1721_v32, %v12895_v21  ;;  %v1723_v38 = vpop.f32.mrb[46].mxu1  ;;  %2074 = vmatprep.mubr.bf16.mxu0 %v1805_v14 }
 0x3a7   : > { %v1724_v30 = vadd.f32 %v1723_v38, %v12892_v59  ;;  %v1725_v46 = vpop.f32.mrb[47].mxu1  ;;  %2075 = vmatmul.mubr.bf16.gmra.mrb[72].mxu0 %v1804_v39  ;;  %v1780_v49 = vmax.f32 %v1720_v16, 0.0 }
 0x3a8   : > { %v1726_v31 = vadd.f32 %v1725_v46, %v12895_v21  ;;  %v1781_v27 = vmax.f32 %v1722_v34, 0.0 }
 0x3a9   : > { %v1782_v52 = vmax.f32 %v1724_v30, 0.0 }
 0x3aa   : > { %v1783_v35 = vmax.f32 %v1726_v31, 0.0 }
 0x3ab   : > { %v1806_v44 = vpack.c.bf16 %v1782_v52, %v1780_v49 }
 0x3ac   : > { %v1729_v45 = vpop.f32.mrb[48].mxu1  ;;  %v1807_v60 = vpack.c.bf16 %v1783_v35, %v1781_v27 }
 0x3ad   : > { %v1730_v61 = vadd.f32 %v1729_v45, %v12892_v59  ;;  %v1731_v2 = vpop.f32.mrb[49].mxu1 }
 0x3ae   : > { %v1732_v3 = vadd.f32 %v1731_v2, %v12895_v21  ;;  %v1733_v5 = vpop.f32.mrb[50].mxu1  ;;  %2084 = vmatprep.mubr.bf16.mxu0 %v1807_v60 }
 0x3af   : > { %v1734_v8 = vadd.f32 %v1733_v5, %v12892_v59  ;;  %v1735_v10 = vpop.f32.mrb[51].mxu1  ;;  %2085 = vmatmul.mubr.bf16.gmra.mrb[76].mxu0 %v1806_v44  ;;  %v1784_v13 = vmax.f32 %v1730_v61, 0.0 }
 0x3b0   : > { %v1736_v11 = vadd.f32 %v1735_v10, %v12895_v21  ;;  %v1785_v9 = vmax.f32 %v1732_v3, 0.0 }
 0x3b1   : > { %v1786_v33 = vmax.f32 %v1734_v8, 0.0 }
 0x3b2   : > { %v1787_v7 = vmax.f32 %v1736_v11, 0.0 }
 0x3b3   : > { %v1808_v39 = vpack.c.bf16 %v1786_v33, %v1784_v13 }
 0x3b4   : > { %v1739_v41 = vpop.f32.mrb[52].mxu1  ;;  %v1809_v14 = vpack.c.bf16 %v1787_v7, %v1785_v9 }
 0x3b5   : > { %v1740_v16 = vadd.f32 %v1739_v41, %v12892_v59  ;;  %v1741_v32 = vpop.f32.mrb[53].mxu1 }
 0x3b6   : > { %v1742_v34 = vadd.f32 %v1741_v32, %v12895_v21  ;;  %v1743_v38 = vpop.f32.mrb[54].mxu1  ;;  %2094 = vmatprep.mubr.bf16.mxu0 %v1809_v14 }
 0x3b7   : > { %v1744_v30 = vadd.f32 %v1743_v38, %v12892_v59  ;;  %v1745_v46 = vpop.f32.mrb[55].mxu1  ;;  %2095 = vmatmul.mubr.bf16.gmra.mrb[80].mxu0 %v1808_v39  ;;  %v1788_v49 = vmax.f32 %v1740_v16, 0.0 }
 0x3b8   : > { %v1746_v31 = vadd.f32 %v1745_v46, %v12895_v21  ;;  %v1789_v27 = vmax.f32 %v1742_v34, 0.0 }
 0x3b9   : > { %v1790_v52 = vmax.f32 %v1744_v30, 0.0 }
 0x3ba   : > { %v1791_v35 = vmax.f32 %v1746_v31, 0.0 }
 0x3bb   : > { %v1810_v44 = vpack.c.bf16 %v1790_v52, %v1788_v49 }
 0x3bc   : > { %v1749_v45 = vpop.f32.mrb[56].mxu1  ;;  %v1811_v60 = vpack.c.bf16 %v1791_v35, %v1789_v27 }
 0x3bd   : > { %v1750_v61 = vadd.f32 %v1749_v45, %v12892_v59  ;;  %v1751_v2 = vpop.f32.mrb[57].mxu1 }
 0x3be   : > { %v1752_v3 = vadd.f32 %v1751_v2, %v12895_v21  ;;  %v1753_v5 = vpop.f32.mrb[58].mxu1  ;;  %2104 = vmatprep.mubr.bf16.mxu0 %v1811_v60  ;;  %v10998_v60 = vld [vmem:[%s16825_s3 + $0x2d4] ss:$8 sps:$4 sm:$0xff]  }
 0x3bf   : > { %v1754_v8 = vadd.f32 %v1753_v5, %v12892_v59  ;;  %v1755_v10 = vpop.f32.mrb[59].mxu1  ;;  %2105 = vmatmul.mubr.bf16.gmra.mrb[84].mxu0 %v1810_v44  ;;  %v1792_v13 = vmax.f32 %v1750_v61, 0.0  ;;  %2480 = vmatprep.subr.bf16.mxu1 %v10998_v60  ;;  %v10999_v61 = vld [vmem:[%s16825_s3 + $0x2e0] ss:$8 sps:$4 sm:$0xff]   ;;  %v11004_v2 = vld [vmem:[%s16825_s3 + $0x2f4] ss:$8 sps:$4 sm:$0xff]  }
 0x3c0   : > { %v1756_v11 = vadd.f32 %v1755_v10, %v12895_v21  ;;  %v1793_v9 = vmax.f32 %v1752_v3, 0.0  ;;  %v11002_v3 = vld [vmem:[%s16825_s3 + $0x2f0] ss:$8 sps:$4 sm:$0xff]   ;;  %v11005_v5 = vld [vmem:[%s16827_s5 + $0x200] ss:$8 sps:$4 sm:$0xff]  }
 0x3c1   : > { %v1794_v33 = vmax.f32 %v1754_v8, 0.0  ;;  %v11007_v8 = vld [vmem:[%s16827_s5 + $0x204] ss:$8 sps:$4 sm:$0xff]   ;;  %v11010_v10 = vld [vmem:[%s16827_s5 + $0x214] ss:$8 sps:$4 sm:$0xff]  }
 0x3c2   : > { %v1795_v7 = vmax.f32 %v1756_v11, 0.0  ;;  %2821 = vmatprep.subr.bf16.mxu0 %v11007_v8  ;;  %v11008_v11 = vld [vmem:[%s16827_s5 + $0x210] ss:$8 sps:$4 sm:$0xff]   ;;  %v11043_v60 = vld [vmem:[%s16827_s5 + $0x2c4] ss:$8 sps:$4 sm:$0xff]  }
 0x3c3   : > { %v1812_v39 = vpack.c.bf16 %v1794_v33, %v1792_v13  ;;  %2822 = vmatpush1.bf16.msra.mxu0 %v11005_v5  ;;  %v11013_v13 = vld [vmem:[%s16827_s5 + $0x224] ss:$8 sps:$4 sm:$0xff]   ;;  %v11011_v33 = vld [vmem:[%s16827_s5 + $0x220] ss:$8 sps:$4 sm:$0xff]  }
 0x3c4   : > { %v1759_v41 = vpop.f32.mrb[60].mxu1  ;;  %v1813_v14 = vpack.c.bf16 %v1795_v7, %v1793_v9  ;;  %2823 = vmatprep.subr.bf16.mxu0 %v11010_v10  ;;  %v11016_v9 = vld [vmem:[%s16827_s5 + $0x234] ss:$8 sps:$4 sm:$0xff]   ;;  %v11014_v7 = vld [vmem:[%s16827_s5 + $0x230] ss:$8 sps:$4 sm:$0xff]  }
 0x3c5   : > { %v1760_v16 = vadd.f32 %v1759_v41, %v12892_v59  ;;  %v1761_v32 = vpop.f32.mrb[61].mxu1  ;;  %v11017_v41 = vld [vmem:[%s16827_s5 + $0x240] ss:$8 sps:$4 sm:$0xff]  }
 0x3c6   : > { %v1762_v34 = vadd.f32 %v1761_v32, %v12895_v21  ;;  %v1763_v38 = vpop.f32.mrb[62].mxu1  ;;  %2114 = vmatprep.mubr.bf16.mxu0 %v1813_v14  ;;  %v11022_v14 = vld [vmem:[%s16827_s5 + $0x254] ss:$8 sps:$4 sm:$0xff]   ;;  %v11025_v32 = vld [vmem:[%s16827_s5 + $0x264] ss:$8 sps:$4 sm:$0xff]  }
 0x3c7   : > { %v1764_v30 = vadd.f32 %v1763_v38, %v12892_v59  ;;  %v1765_v46 = vpop.f32.mrb[63].mxu1  ;;  %2115 = vmatmul.mubr.bf16.gmra.mrb[88].mxu0 %v1812_v39  ;;  %v1796_v49 = vmax.f32 %v1760_v16, 0.0  ;;  %v10996_v59 = vld [vmem:[%s16825_s3 + $0x2d0] ss:$8 sps:$4 sm:$0xff]   ;;  %v11019_v39 = vld [vmem:[%s16827_s5 + $0x244] ss:$8 sps:$4 sm:$0xff]  }
 0x3c8   : > { %v1766_v31 = vadd.f32 %v1765_v46, %v12895_v21  ;;  %v1797_v27 = vmax.f32 %v1762_v34, 0.0  ;;  %2481 = vmatpush1.bf16.msra.mxu1 %v10996_v59  ;;  %v11001_v21 = vld [vmem:[%s16825_s3 + $0x2e4] ss:$8 sps:$4 sm:$0xff]   ;;  %2824 = vmatpush1.bf16.msra.mxu0 %v11008_v11  ;;  %v11020_v16 = vld [vmem:[%s16827_s5 + $0x250] ss:$8 sps:$4 sm:$0xff]  }
 0x3c9   : > { %v1798_v52 = vmax.f32 %v1764_v30, 0.0  ;;  %2482 = vmatprep.subr.bf16.mxu1 %v11001_v21  ;;  %2825 = vmatprep.subr.bf16.mxu0 %v11013_v13  ;;  %v11023_v34 = vld [vmem:[%s16827_s5 + $0x260] ss:$8 sps:$4 sm:$0xff]   ;;  %v11028_v38 = vld [vmem:[%s16827_s5 + $0x274] ss:$8 sps:$4 sm:$0xff]  }
 0x3ca   : > { %v1799_v35 = vmax.f32 %v1766_v31, 0.0  ;;  %v11026_v30 = vld [vmem:[%s16827_s5 + $0x270] ss:$8 sps:$4 sm:$0xff]   ;;  %v11031_v46 = vld [vmem:[%s16827_s5 + $0x284] ss:$8 sps:$4 sm:$0xff]  }
 0x3cb   : > { %v1814_v44 = vpack.c.bf16 %v1798_v52, %v1796_v49  ;;  %v11029_v31 = vld [vmem:[%s16827_s5 + $0x280] ss:$8 sps:$4 sm:$0xff]   ;;  %v11034_v49 = vld [vmem:[%s16827_s5 + $0x294] ss:$8 sps:$4 sm:$0xff]   ;;  %v11032_v52 = vld [vmem:[%s16827_s5 + $0x290] ss:$8 sps:$4 sm:$0xff]  }
 0x3cc   : > { %v1815_v45 = vpack.c.bf16 %v1799_v35, %v1797_v27  ;;  %2483 = vmatpush1.bf16.msra.mxu1 %v10999_v61  ;;  %2826 = vmatpush1.bf16.msra.mxu0 %v11011_v33  ;;  %v11037_v27 = vld [vmem:[%s16827_s5 + $0x2a4] ss:$8 sps:$4 sm:$0xff]   ;;  %v11035_v35 = vld [vmem:[%s16827_s5 + $0x2a0] ss:$8 sps:$4 sm:$0xff]   ;;  %v11046_v21 = vld [vmem:[%s16827_s5 + $0x2d4] ss:$8 sps:$4 sm:$0xff]  }
 0x3cd   : > { %2484 = vmatprep.subr.bf16.mxu1 %v11004_v2  ;;  %2827 = vmatprep.subr.bf16.mxu0 %v11016_v9  ;;  %v11041_v59 = vld [vmem:[%s16827_s5 + $0x2c0] ss:$8 sps:$4 sm:$0xff]   ;;  %v11044_v61 = vld [vmem:[%s16827_s5 + $0x2d0] ss:$8 sps:$4 sm:$0xff]  }
 0x3ce   : > { %2124 = vmatprep.mubr.bf16.mxu0 %v1815_v45  ;;  %v11038_v45 = vld [vmem:[%s16827_s5 + $0x2b0] ss:$8 sps:$4 sm:$0xff]   ;;  %v9241_v2 = vld [vmem:[%s16828_s6 + $0x2] sm:$0x3] }
 0x3cf   : > { %2125 = vmatmul.mubr.bf16.gmra.mrb[92].mxu0 %v1814_v44  ;;  %v11040_v44 = vld [vmem:[%s16827_s5 + $0x2b4] ss:$8 sps:$4 sm:$0xff]   ;;  %v13038_v5 = vrot.slane %v9241_v2, %v12127_v29 }
 0x3d0   : > { %2485 = vmatpush1.bf16.msra.mxu1 %v11002_v3  ;;  %2828 = vmatpush1.bf16.msra.mxu0 %v11014_v7  ;;  %v13035_v3 = vrot.slane %v9241_v2, %v12125_v28 }
 0x3d1   : > { %2829 = vmatprep.subr.bf16.mxu0 %v11019_v39 }
 0x3d4   : > { %2830 = vmatpush1.bf16.msra.mxu0 %v11017_v41 }
 0x3d5   : > { %2831 = vmatprep.subr.bf16.mxu0 %v11022_v14 }
 0x3d8   : > { %2832 = vmatpush1.bf16.msra.mxu0 %v11020_v16 }
 0x3d9   : > { %2833 = vmatprep.subr.bf16.mxu0 %v11025_v32 }
 0x3dc   : > { %2834 = vmatpush1.bf16.msra.mxu0 %v11023_v34 }
 0x3dd   : > { %2835 = vmatprep.subr.bf16.mxu0 %v11028_v38 }
 0x3e0   : > { %2836 = vmatpush1.bf16.msra.mxu0 %v11026_v30 }
 0x3e1   : > { %2837 = vmatprep.subr.bf16.mxu0 %v11031_v46 }
 0x3e4   : > { %2838 = vmatpush1.bf16.msra.mxu0 %v11029_v31 }
 0x3e5   : > { %2839 = vmatprep.subr.bf16.mxu0 %v11034_v49 }
 0x3e8   : > { %2840 = vmatpush1.bf16.msra.mxu0 %v11032_v52 }
 0x3e9   : > { %2841 = vmatprep.subr.bf16.mxu0 %v11037_v27 }
 0x3ec   : > { %2842 = vmatpush1.bf16.msra.mxu0 %v11035_v35 }
 0x3ed   : > { %2843 = vmatprep.subr.bf16.mxu0 %v11040_v44 }
 0x3f0   : > { %2844 = vmatpush1.bf16.msra.mxu0 %v11038_v45 }
 0x3f1   : > { %2845 = vmatprep.subr.bf16.mxu0 %v11043_v60 }
 0x3f4   : > { %2846 = vmatpush1.bf16.msra.mxu0 %v11041_v59 }
 0x3f5   : > { %2847 = vmatprep.subr.bf16.mxu0 %v11046_v21 }
 0x3f8   : > { %2848 = vmatpush1.bf16.msra.mxu0 %v11044_v61 }
 0x46a   : > { %v2056_v8 = vpop.f32.mrb[64].mxu0 }
 0x46b   : > { %v2057_v10 = vadd.f32 %v2056_v8, %v13035_v3  ;;  %v2058_v11 = vpop.f32.mrb[65].mxu0 }
 0x46c   : > { %v2059_v13 = vadd.f32 %v2058_v11, %v13038_v5  ;;  %v2060_v33 = vpop.f32.mrb[66].mxu0 }
 0x46d   : > { %v2135_v9 = vadd.f32 %v2057_v10, %v12580_v17  ;;  %v2061_v7 = vadd.f32 %v2060_v33, %v13035_v3  ;;  %v2062_v39 = vpop.f32.mrb[67].mxu0 }
 0x46e   : > { %v2136_v41 = vadd.f32 %v2059_v13, %v12583_v22  ;;  %v2063_v14 = vadd.f32 %v2062_v39, %v13038_v5 }
 0x46f   : > { %v13046_v16 = vmax.f32 %v2135_v9, 0.0  ;;  %v2137_v32 = vadd.f32 %v2061_v7, %v12588_v24 }
 0x470   : > { %v13049_v34 = vmax.f32 %v2136_v41, 0.0  ;;  %v2138_v38 = vadd.f32 %v2063_v14, %v12592_v37 }
 0x471   : > { %9274 = vst [vmem:[%s12146_s20 + $0x200] sm:$0xff] %v13046_v16  ;;  %v13054_v30 = vmax.f32 %v2137_v32, 0.0 }
 0x472   : > { %9275 = vst [vmem:[%s12146_s20 + $0x208] sm:$0xff] %v13049_v34  ;;  %v13058_v17 = vmax.f32 %v2138_v38, 0.0  ;;  %v2066_v46 = vpop.f32.mrb[68].mxu0 }
 0x473   : > { %9276 = vst [vmem:[%s12146_s20 + $0x210] sm:$0xff] %v13054_v30  ;;  %v2067_v22 = vadd.f32 %v2066_v46, %v13035_v3  ;;  %v2068_v31 = vpop.f32.mrb[69].mxu0  ;;  %v2232_v52 = vpack.c.bf16 %v13054_v30, %v13046_v16 }
 0x474   : > { %9277 = vst [vmem:[%s12146_s20 + $0x218] sm:$0xff] %v13058_v17  ;;  %v2069_v24 = vadd.f32 %v2068_v31, %v13038_v5  ;;  %v2070_v37 = vpop.f32.mrb[70].mxu0  ;;  %v2233_v49 = vpack.c.bf16 %v13058_v17, %v13049_v34 }
 0x475   : > { %v2139_v27 = vadd.f32 %v2067_v22, %v12608_v47  ;;  %v2071_v35 = vadd.f32 %v2070_v37, %v13035_v3  ;;  %v2072_v44 = vpop.f32.mrb[71].mxu0 }
 0x476   : > { %v2140_v45 = vadd.f32 %v2069_v24, %v12611_v50  ;;  %v2073_v60 = vadd.f32 %v2072_v44, %v13038_v5  ;;  %2486 = vmatprep.mubr.bf16.mxu1 %v2233_v49 }
 0x477   : > { %v13074_v59 = vmax.f32 %v2139_v27, 0.0  ;;  %v2141_v21 = vadd.f32 %v2071_v35, %v12616_v51  ;;  %2487 = vmatmul.mubr.bf16.vlgmr.msra.gmra.mrb[64].mxu1 %v2232_v52 }
 0x478   : > { %v13077_v61 = vmax.f32 %v2140_v45, 0.0  ;;  %v2142_v2 = vadd.f32 %v2073_v60, %v12620_v54 }
 0x479   : > { %9278 = vst [vmem:[%s12146_s20 + $0x220] sm:$0xff] %v13074_v59  ;;  %v13082_v47 = vmax.f32 %v2141_v21, 0.0 }
 0x47a   : > { %9279 = vst [vmem:[%s12146_s20 + $0x228] sm:$0xff] %v13077_v61  ;;  %v13086_v50 = vmax.f32 %v2142_v2, 0.0  ;;  %v2076_v8 = vpop.f32.mrb[72].mxu0 }
 0x47b   : > { %9280 = vst [vmem:[%s12146_s20 + $0x230] sm:$0xff] %v13082_v47  ;;  %v2077_v10 = vadd.f32 %v2076_v8, %v13035_v3  ;;  %v2078_v11 = vpop.f32.mrb[73].mxu0  ;;  %v2234_v39 = vpack.c.bf16 %v13082_v47, %v13074_v59 }
 0x47c   : > { %9281 = vst [vmem:[%s12146_s20 + $0x238] sm:$0xff] %v13086_v50  ;;  %v2079_v51 = vadd.f32 %v2078_v11, %v13038_v5  ;;  %v2080_v54 = vpop.f32.mrb[74].mxu0  ;;  %v2235_v13 = vpack.c.bf16 %v13086_v50, %v13077_v61 }
 0x47d   : > { %v2143_v33 = vadd.f32 %v2077_v10, %v12636_v19  ;;  %v2081_v9 = vadd.f32 %v2080_v54, %v13035_v3  ;;  %v2082_v7 = vpop.f32.mrb[75].mxu0 }
 0x47e   : > { %v2144_v41 = vadd.f32 %v2079_v51, %v12639_v25  ;;  %v2083_v14 = vadd.f32 %v2082_v7, %v13038_v5  ;;  %2496 = vmatprep.mubr.bf16.mxu1 %v2235_v13 }
 0x47f   : > { %v13102_v32 = vmax.f32 %v2143_v33, 0.0  ;;  %v2145_v38 = vadd.f32 %v2081_v9, %v12644_v40  ;;  %2497 = vmatmul.mubr.bf16.gmra.mrb[68].mxu1 %v2234_v39 }
 0x480   : > { %v13105_v46 = vmax.f32 %v2144_v41, 0.0  ;;  %v2146_v19 = vadd.f32 %v2083_v14, %v12648_v4 }
 0x481   : > { %9282 = vst [vmem:[%s12146_s20 + $0x240] sm:$0xff] %v13102_v32  ;;  %v13110_v22 = vmax.f32 %v2145_v38, 0.0 }
 0x482   : > { %9283 = vst [vmem:[%s12146_s20 + $0x248] sm:$0xff] %v13105_v46  ;;  %v13114_v25 = vmax.f32 %v2146_v19, 0.0  ;;  %v2086_v31 = vpop.f32.mrb[76].mxu0 }
 0x483   : > { %9284 = vst [vmem:[%s12146_s20 + $0x250] sm:$0xff] %v13110_v22  ;;  %v2087_v24 = vadd.f32 %v2086_v31, %v13035_v3  ;;  %v2088_v37 = vpop.f32.mrb[77].mxu0  ;;  %v2236_v44 = vpack.c.bf16 %v13110_v22, %v13102_v32 }
 0x484   : > { %9285 = vst [vmem:[%s12146_s20 + $0x258] sm:$0xff] %v13114_v25  ;;  %v2089_v40 = vadd.f32 %v2088_v37, %v13038_v5  ;;  %v2090_v4 = vpop.f32.mrb[78].mxu0  ;;  %v2237_v49 = vpack.c.bf16 %v13114_v25, %v13105_v46 }
 0x485   : > { %v2147_v52 = vadd.f32 %v2087_v24, %v12664_v48  ;;  %v2091_v27 = vadd.f32 %v2090_v4, %v13035_v3  ;;  %v2092_v35 = vpop.f32.mrb[79].mxu0 }
 0x486   : > { %v2148_v45 = vadd.f32 %v2089_v40, %v12667_v62  ;;  %v2093_v60 = vadd.f32 %v2092_v35, %v13038_v5  ;;  %2506 = vmatprep.mubr.bf16.mxu1 %v2237_v49 }
 0x487   : > { %v13130_v21 = vmax.f32 %v2147_v52, 0.0  ;;  %v2149_v2 = vadd.f32 %v2091_v27, %v12672_v63  ;;  %2507 = vmatmul.mubr.bf16.gmra.mrb[72].mxu1 %v2236_v44 }
 0x488   : > { %v13133_v8 = vmax.f32 %v2148_v45, 0.0  ;;  %v2150_v48 = vadd.f32 %v2093_v60, %v12676_v18 }
 0x489   : > { %9286 = vst [vmem:[%s12146_s20 + $0x260] sm:$0xff] %v13130_v21  ;;  %v13138_v10 = vmax.f32 %v2149_v2, 0.0 }
 0x48a   : > { %9287 = vst [vmem:[%s12146_s20 + $0x268] sm:$0xff] %v13133_v8  ;;  %v13142_v62 = vmax.f32 %v2150_v48, 0.0  ;;  %v2096_v11 = vpop.f32.mrb[80].mxu0 }
 0x48b   : > { %9288 = vst [vmem:[%s12146_s20 + $0x270] sm:$0xff] %v13138_v10  ;;  %v2097_v51 = vadd.f32 %v2096_v11, %v13035_v3  ;;  %v2098_v54 = vpop.f32.mrb[81].mxu0  ;;  %v2238_v39 = vpack.c.bf16 %v13138_v10, %v13130_v21 }
 0x48c   : > { %9289 = vst [vmem:[%s12146_s20 + $0x278] sm:$0xff] %v13142_v62  ;;  %v2099_v63 = vadd.f32 %v2098_v54, %v13038_v5  ;;  %v2100_v18 = vpop.f32.mrb[82].mxu0  ;;  %v2239_v13 = vpack.c.bf16 %v13142_v62, %v13133_v8 }
 0x48d   : > { %v2151_v33 = vadd.f32 %v2097_v51, %v12692_v23  ;;  %v2101_v9 = vadd.f32 %v2100_v18, %v13035_v3  ;;  %v2102_v7 = vpop.f32.mrb[83].mxu0 }
 0x48e   : > { %v2152_v41 = vadd.f32 %v2099_v63, %v12695_v26  ;;  %v2103_v14 = vadd.f32 %v2102_v7, %v13038_v5  ;;  %2516 = vmatprep.mubr.bf16.mxu1 %v2239_v13 }
 0x48f   : > { %v13158_v38 = vmax.f32 %v2151_v33, 0.0  ;;  %v2153_v19 = vadd.f32 %v2101_v9, %v12700_v42  ;;  %2517 = vmatmul.mubr.bf16.gmra.mrb[76].mxu1 %v2238_v39 }
 0x490   : > { %v13161_v31 = vmax.f32 %v2152_v41, 0.0  ;;  %v2154_v23 = vadd.f32 %v2103_v14, %v12704_v36 }
 0x491   : > { %9290 = vst [vmem:[%s12146_s20 + $0x280] sm:$0xff] %v13158_v38  ;;  %v13166_v24 = vmax.f32 %v2153_v19, 0.0 }
 0x492   : > { %9291 = vst [vmem:[%s12146_s20 + $0x288] sm:$0xff] %v13161_v31  ;;  %v13170_v26 = vmax.f32 %v2154_v23, 0.0  ;;  %v2106_v37 = vpop.f32.mrb[84].mxu0 }
 0x493   : > { %9292 = vst [vmem:[%s12146_s20 + $0x290] sm:$0xff] %v13166_v24  ;;  %v2107_v40 = vadd.f32 %v2106_v37, %v13035_v3  ;;  %v2108_v4 = vpop.f32.mrb[85].mxu0  ;;  %v2240_v44 = vpack.c.bf16 %v13166_v24, %v13158_v38 }
 0x494   : > { %9293 = vst [vmem:[%s12146_s20 + $0x298] sm:$0xff] %v13170_v26  ;;  %v2109_v42 = vadd.f32 %v2108_v4, %v13038_v5  ;;  %v2110_v36 = vpop.f32.mrb[86].mxu0  ;;  %v2241_v49 = vpack.c.bf16 %v13170_v26, %v13161_v31 }
 0x495   : > { %v2155_v52 = vadd.f32 %v2107_v40, %v12720_v53  ;;  %v2111_v27 = vadd.f32 %v2110_v36, %v13035_v3  ;;  %v2112_v35 = vpop.f32.mrb[87].mxu0 }
 0x496   : > { %v2156_v45 = vadd.f32 %v2109_v42, %v12723_v0  ;;  %v2113_v60 = vadd.f32 %v2112_v35, %v13038_v5  ;;  %2526 = vmatprep.mubr.bf16.mxu1 %v2241_v49 }
 0x497   : > { %v13186_v2 = vmax.f32 %v2155_v52, 0.0  ;;  %v2157_v48 = vadd.f32 %v2111_v27, %v12728_v56  ;;  %2527 = vmatmul.mubr.bf16.gmra.mrb[80].mxu1 %v2240_v44 }
 0x498   : > { %v13189_v11 = vmax.f32 %v2156_v45, 0.0  ;;  %v2158_v53 = vadd.f32 %v2113_v60, %v12732_v58 }
 0x499   : > { %9294 = vst [vmem:[%s12146_s20 + $0x2a0] sm:$0xff] %v13186_v2  ;;  %v13194_v51 = vmax.f32 %v2157_v48, 0.0 }
 0x49a   : > { %9295 = vst [vmem:[%s12146_s20 + $0x2a8] sm:$0xff] %v13189_v11  ;;  %v13198_v0 = vmax.f32 %v2158_v53, 0.0  ;;  %v2116_v54 = vpop.f32.mrb[88].mxu0 }
 0x49b   : > { %9296 = vst [vmem:[%s12146_s20 + $0x2b0] sm:$0xff] %v13194_v51  ;;  %v2117_v63 = vadd.f32 %v2116_v54, %v13035_v3  ;;  %v2118_v18 = vpop.f32.mrb[89].mxu0  ;;  %v2242_v39 = vpack.c.bf16 %v13194_v51, %v13186_v2 }
 0x49c   : > { %9297 = vst [vmem:[%s12146_s20 + $0x2b8] sm:$0xff] %v13198_v0  ;;  %v2119_v56 = vadd.f32 %v2118_v18, %v13038_v5  ;;  %v2120_v58 = vpop.f32.mrb[90].mxu0  ;;  %v2243_v13 = vpack.c.bf16 %v13198_v0, %v13189_v11  ;;  %v11052_v18 = vld [vmem:[%s16827_s5 + $0x2f4] ss:$8 sps:$4 sm:$0xff]  }
 0x49d   : > { %v2159_v33 = vadd.f32 %v2117_v63, %v12748_v1  ;;  %v2121_v9 = vadd.f32 %v2120_v58, %v13035_v3  ;;  %v2122_v7 = vpop.f32.mrb[91].mxu0  ;;  %v11053_v58 = vld [vmem:[%s16825_s3 + $0x300] ss:$8 sps:$4 sm:$0xff]  }
 0x49e   : > { %v2160_v41 = vadd.f32 %v2119_v56, %v12751_v43  ;;  %v2123_v14 = vadd.f32 %v2122_v7, %v13038_v5  ;;  %2536 = vmatprep.mubr.bf16.mxu1 %v2243_v13  ;;  %v11050_v56 = vld [vmem:[%s16827_s5 + $0x2f0] ss:$8 sps:$4 sm:$0xff]   ;;  %v11055_v13 = vld [vmem:[%s16825_s3 + $0x304] ss:$8 sps:$4 sm:$0xff]  }
 0x49f   : > { %v13214_v19 = vmax.f32 %v2159_v33, 0.0  ;;  %v2161_v23 = vadd.f32 %v2121_v9, %v12756_v6  ;;  %2537 = vmatmul.mubr.bf16.gmra.mrb[84].mxu1 %v2242_v39  ;;  %v11058_v33 = vld [vmem:[%s16825_s3 + $0x314] ss:$8 sps:$4 sm:$0xff]   ;;  %3253 = vmatprep.subr.bf16.mxu1 %v11055_v13  ;;  %v11056_v9 = vld [vmem:[%s16825_s3 + $0x310] ss:$8 sps:$4 sm:$0xff]  }
 0x4a0   : > { %v13217_v37 = vmax.f32 %v2160_v41, 0.0  ;;  %v2162_v1 = vadd.f32 %v2123_v14, %v12760_v12  ;;  %3254 = vmatpush1.bf16.msra.mxu1 %v11053_v58  ;;  %v11061_v7 = vld [vmem:[%s16825_s3 + $0x324] ss:$8 sps:$4 sm:$0xff]   ;;  %v11059_v39 = vld [vmem:[%s16825_s3 + $0x320] ss:$8 sps:$4 sm:$0xff]  }
 0x4a1   : > { %9298 = vst [vmem:[%s12146_s20 + $0x2c0] sm:$0xff] %v13214_v19  ;;  %v13222_v40 = vmax.f32 %v2161_v23, 0.0  ;;  %3255 = vmatprep.subr.bf16.mxu1 %v11058_v33  ;;  %v11064_v41 = vld [vmem:[%s16825_s3 + $0x334] ss:$8 sps:$4 sm:$0xff]   ;;  %v11062_v14 = vld [vmem:[%s16825_s3 + $0x330] ss:$8 sps:$4 sm:$0xff]  }
 0x4a2   : > { %9299 = vst [vmem:[%s12146_s20 + $0x2c8] sm:$0xff] %v13217_v37  ;;  %v13226_v43 = vmax.f32 %v2162_v1, 0.0  ;;  %v2126_v4 = vpop.f32.mrb[92].mxu0  ;;  %v11067_v23 = vld [vmem:[%s16825_s3 + $0x344] ss:$8 sps:$4 sm:$0xff]  }
 0x4a3   : > { %9300 = vst [vmem:[%s12146_s20 + $0x2d0] sm:$0xff] %v13222_v40  ;;  %v2127_v42 = vadd.f32 %v2126_v4, %v13035_v3  ;;  %v2128_v36 = vpop.f32.mrb[93].mxu0  ;;  %v2244_v44 = vpack.c.bf16 %v13222_v40, %v13214_v19  ;;  %v11065_v1 = vld [vmem:[%s16825_s3 + $0x340] ss:$8 sps:$4 sm:$0xff]   ;;  %v11070_v4 = vld [vmem:[%s16825_s3 + $0x354] ss:$8 sps:$4 sm:$0xff]  }
 0x4a4   : > { %9301 = vst [vmem:[%s12146_s20 + $0x2d8] sm:$0xff] %v13226_v43  ;;  %v2129_v6 = vadd.f32 %v2128_v36, %v13038_v5  ;;  %v2130_v12 = vpop.f32.mrb[94].mxu0  ;;  %v2245_v49 = vpack.c.bf16 %v13226_v43, %v13217_v37  ;;  %3256 = vmatpush1.bf16.msra.mxu1 %v11056_v9  ;;  %v11073_v36 = vld [vmem:[%s16825_s3 + $0x364] ss:$8 sps:$4 sm:$0xff]  }
 0x4a5   : > { %v2163_v52 = vadd.f32 %v2127_v42, %v12776_v15  ;;  %v2131_v27 = vadd.f32 %v2130_v12, %v13035_v3  ;;  %v2132_v35 = vpop.f32.mrb[95].mxu0  ;;  %3257 = vmatprep.subr.bf16.mxu1 %v11061_v7  ;;  %v11068_v42 = vld [vmem:[%s16825_s3 + $0x350] ss:$8 sps:$4 sm:$0xff]   ;;  %v11076_v12 = vld [vmem:[%s16825_s3 + $0x374] ss:$8 sps:$4 sm:$0xff]  }
 0x4a6   : > { %v2164_v45 = vadd.f32 %v2129_v6, %v12779_v57  ;;  %v2133_v60 = vadd.f32 %v2132_v35, %v13038_v5  ;;  %2546 = vmatprep.mubr.bf16.mxu1 %v2245_v49  ;;  %v11047_v5 = vld [vmem:[%s16827_s5 + $0x2e0] ss:$8 sps:$4 sm:$0xff]   ;;  %v11074_v49 = vld [vmem:[%s16825_s3 + $0x370] ss:$8 sps:$4 sm:$0xff]   ;;  %v11082_v35 = vld [vmem:[%s16825_s3 + $0x394] ss:$8 sps:$4 sm:$0xff]  }
 0x4a7   : > { %v13242_v48 = vmax.f32 %v2163_v52, 0.0  ;;  %v2165_v53 = vadd.f32 %v2131_v27, %v12784_v55  ;;  %2547 = vmatmul.mubr.bf16.gmra.mrb[88].mxu1 %v2244_v44  ;;  %v11071_v6 = vld [vmem:[%s16825_s3 + $0x360] ss:$8 sps:$4 sm:$0xff]   ;;  %v11079_v52 = vld [vmem:[%s16825_s3 + $0x384] ss:$8 sps:$4 sm:$0xff]  }
 0x4a8   : > { %v13245_v54 = vmax.f32 %v2164_v45, 0.0  ;;  %v2166_v15 = vadd.f32 %v2133_v60, %v12788_v20  ;;  %v11049_v20 = vld [vmem:[%s16827_s5 + $0x2e4] ss:$8 sps:$4 sm:$0xff]   ;;  %3258 = vmatpush1.bf16.msra.mxu1 %v11059_v39  ;;  %v11077_v27 = vld [vmem:[%s16825_s3 + $0x380] ss:$8 sps:$4 sm:$0xff]  }
 0x4a9   : > { %9302 = vst [vmem:[%s12146_s20 + $0x2e0] sm:$0xff] %v13242_v48  ;;  %v13250_v3 = vmax.f32 %v2165_v53, 0.0  ;;  %2849 = vmatprep.subr.bf16.mxu0 %v11049_v20  ;;  %3259 = vmatprep.subr.bf16.mxu1 %v11064_v41  ;;  %v11080_v44 = vld [vmem:[%s16825_s3 + $0x390] ss:$8 sps:$4 sm:$0xff]   ;;  %v11085_v45 = vld [vmem:[%s16825_s3 + $0x3a4] ss:$8 sps:$4 sm:$0xff]  }
 0x4aa   : > { %9303 = vst [vmem:[%s12146_s20 + $0x2e8] sm:$0xff] %v13245_v54  ;;  %v13254_v63 = vmax.f32 %v2166_v15, 0.0  ;;  %2850 = vmatpush1.bf16.msra.mxu0 %v11047_v5  ;;  %v11083_v60 = vld [vmem:[%s16825_s3 + $0x3a0] ss:$8 sps:$4 sm:$0xff]   ;;  %v11088_v53 = vld [vmem:[%s16825_s3 + $0x3b4] ss:$8 sps:$4 sm:$0xff]  }
 0x4ab   : > { %9304 = vst [vmem:[%s12146_s20 + $0x2f0] sm:$0xff] %v13250_v3  ;;  %v2246_v55 = vpack.c.bf16 %v13250_v3, %v13242_v48  ;;  %2851 = vmatprep.subr.bf16.mxu0 %v11052_v18  ;;  %v11086_v15 = vld [vmem:[%s16825_s3 + $0x3b0] ss:$8 sps:$4 sm:$0xff]   ;;  %v9338_v20 = vld [vmem:[%s16826_s4 + $0x4] sm:$0x3] }
 0x4ac   : > { %9305 = vst [vmem:[%s12146_s20 + $0x2f8] sm:$0xff] %v13254_v63  ;;  %v2247_v57 = vpack.c.bf16 %v13254_v63, %v13245_v54  ;;  %3260 = vmatpush1.bf16.msra.mxu1 %v11062_v14  ;;  %v13358_v5 = vrot.slane %v9338_v20, %v12125_v28  ;;  %v13361_v18 = vrot.slane %v9338_v20, %v12127_v29 }
 0x4ad   : > { %3261 = vmatprep.subr.bf16.mxu1 %v11067_v23 }
 0x4ae   : > { %2556 = vmatprep.mubr.bf16.mxu1 %v2247_v57  ;;  %2852 = vmatpush1.bf16.msra.mxu0 %v11050_v56  ;;  %v11091_v57 = vld [vmem:[%s16825_s3 + $0x3c4] ss:$8 sps:$4 sm:$0xff]  }
 0x4af   : > { %2557 = vmatmul.mubr.bf16.gmra.mrb[92].mxu1 %v2246_v55  ;;  %v11089_v55 = vld [vmem:[%s16825_s3 + $0x3c0] ss:$8 sps:$4 sm:$0xff]  }
 0x4b0   : > { %3262 = vmatpush1.bf16.msra.mxu1 %v11065_v1 }
 0x4b1   : > { %3263 = vmatprep.subr.bf16.mxu1 %v11070_v4 }
 0x4b4   : > { %3264 = vmatpush1.bf16.msra.mxu1 %v11068_v42 }
 0x4b5   : > { %3265 = vmatprep.subr.bf16.mxu1 %v11073_v36 }
 0x4b8   : > { %3266 = vmatpush1.bf16.msra.mxu1 %v11071_v6 }
 0x4b9   : > { %3267 = vmatprep.subr.bf16.mxu1 %v11076_v12 }
 0x4bc   : > { %3268 = vmatpush1.bf16.msra.mxu1 %v11074_v49 }
 0x4bd   : > { %3269 = vmatprep.subr.bf16.mxu1 %v11079_v52 }
 0x4c0   : > { %3270 = vmatpush1.bf16.msra.mxu1 %v11077_v27 }
 0x4c1   : > { %3271 = vmatprep.subr.bf16.mxu1 %v11082_v35 }
 0x4c4   : > { %3272 = vmatpush1.bf16.msra.mxu1 %v11080_v44 }
 0x4c5   : > { %3273 = vmatprep.subr.bf16.mxu1 %v11085_v45 }
 0x4c8   : > { %3274 = vmatpush1.bf16.msra.mxu1 %v11083_v60 }
 0x4c9   : > { %3275 = vmatprep.subr.bf16.mxu1 %v11088_v53 }
 0x4cc   : > { %3276 = vmatpush1.bf16.msra.mxu1 %v11086_v15 }
 0x4cd   : > { %3277 = vmatprep.subr.bf16.mxu1 %v11091_v57 }
 0x4d0   : > { %3278 = vmatpush1.bf16.msra.mxu1 %v11089_v55 }
 0x54a   : > { %v2488_v56 = vpop.f32.mrb[64].mxu1 }
 0x54b   : > { %v2489_v58 = vadd.f32 %v2488_v56, %v13358_v5  ;;  %v2490_v13 = vpop.f32.mrb[65].mxu1 }
 0x54c   : > { %v2491_v33 = vadd.f32 %v2490_v13, %v13361_v18  ;;  %v2492_v9 = vpop.f32.mrb[66].mxu1 }
 0x54d   : > { %v2493_v7 = vadd.f32 %v2492_v9, %v13358_v5  ;;  %v2494_v39 = vpop.f32.mrb[67].mxu1  ;;  %v2567_v14 = vmax.f32 %v2489_v58, 0.0 }
 0x54e   : > { %v2495_v41 = vadd.f32 %v2494_v39, %v13361_v18  ;;  %v2568_v1 = vmax.f32 %v2491_v33, 0.0 }
 0x54f   : > { %v2569_v23 = vmax.f32 %v2493_v7, 0.0 }
 0x550   : > { %v2570_v4 = vmax.f32 %v2495_v41, 0.0 }
 0x551   : > { %v2599_v42 = vpack.c.bf16 %v2569_v23, %v2567_v14 }
 0x552   : > { %v2498_v36 = vpop.f32.mrb[68].mxu1  ;;  %v2600_v6 = vpack.c.bf16 %v2570_v4, %v2568_v1 }
 0x553   : > { %v2499_v12 = vadd.f32 %v2498_v36, %v13358_v5  ;;  %v2500_v49 = vpop.f32.mrb[69].mxu1 }
 0x554   : > { %v2501_v52 = vadd.f32 %v2500_v49, %v13361_v18  ;;  %v2502_v27 = vpop.f32.mrb[70].mxu1  ;;  %2853 = vmatprep.mubr.bf16.mxu0 %v2600_v6 }
 0x555   : > { %v2503_v35 = vadd.f32 %v2502_v27, %v13358_v5  ;;  %v2504_v44 = vpop.f32.mrb[71].mxu1  ;;  %2854 = vmatmul.mubr.bf16.vlgmr.msra.gmra.mrb[96].mxu0 %v2599_v42  ;;  %v2571_v60 = vmax.f32 %v2499_v12, 0.0 }
 0x556   : > { %v2505_v45 = vadd.f32 %v2504_v44, %v13361_v18  ;;  %v2572_v15 = vmax.f32 %v2501_v52, 0.0 }
 0x557   : > { %v2573_v53 = vmax.f32 %v2503_v35, 0.0 }
 0x558   : > { %v2574_v57 = vmax.f32 %v2505_v45, 0.0 }
 0x559   : > { %v2601_v55 = vpack.c.bf16 %v2573_v53, %v2571_v60 }
 0x55a   : > { %v2508_v20 = vpop.f32.mrb[72].mxu1  ;;  %v2602_v56 = vpack.c.bf16 %v2574_v57, %v2572_v15 }
 0x55b   : > { %v2509_v58 = vadd.f32 %v2508_v20, %v13358_v5  ;;  %v2510_v13 = vpop.f32.mrb[73].mxu1 }
 0x55c   : > { %v2511_v33 = vadd.f32 %v2510_v13, %v13361_v18  ;;  %v2512_v9 = vpop.f32.mrb[74].mxu1  ;;  %2863 = vmatprep.mubr.bf16.mxu0 %v2602_v56 }
 0x55d   : > { %v2513_v7 = vadd.f32 %v2512_v9, %v13358_v5  ;;  %v2514_v39 = vpop.f32.mrb[75].mxu1  ;;  %2864 = vmatmul.mubr.bf16.gmra.mrb[100].mxu0 %v2601_v55  ;;  %v2575_v14 = vmax.f32 %v2509_v58, 0.0 }
 0x55e   : > { %v2515_v41 = vadd.f32 %v2514_v39, %v13361_v18  ;;  %v2576_v1 = vmax.f32 %v2511_v33, 0.0 }
 0x55f   : > { %v2577_v23 = vmax.f32 %v2513_v7, 0.0 }
 0x560   : > { %v2578_v4 = vmax.f32 %v2515_v41, 0.0 }
 0x561   : > { %v2603_v42 = vpack.c.bf16 %v2577_v23, %v2575_v14 }
 0x562   : > { %v2518_v36 = vpop.f32.mrb[76].mxu1  ;;  %v2604_v6 = vpack.c.bf16 %v2578_v4, %v2576_v1 }
 0x563   : > { %v2519_v12 = vadd.f32 %v2518_v36, %v13358_v5  ;;  %v2520_v49 = vpop.f32.mrb[77].mxu1 }
 0x564   : > { %v2521_v52 = vadd.f32 %v2520_v49, %v13361_v18  ;;  %v2522_v27 = vpop.f32.mrb[78].mxu1  ;;  %2873 = vmatprep.mubr.bf16.mxu0 %v2604_v6 }
 0x565   : > { %v2523_v35 = vadd.f32 %v2522_v27, %v13358_v5  ;;  %v2524_v44 = vpop.f32.mrb[79].mxu1  ;;  %2874 = vmatmul.mubr.bf16.gmra.mrb[104].mxu0 %v2603_v42  ;;  %v2579_v60 = vmax.f32 %v2519_v12, 0.0 }
 0x566   : > { %v2525_v45 = vadd.f32 %v2524_v44, %v13361_v18  ;;  %v2580_v15 = vmax.f32 %v2521_v52, 0.0 }
 0x567   : > { %v2581_v53 = vmax.f32 %v2523_v35, 0.0 }
 0x568   : > { %v2582_v57 = vmax.f32 %v2525_v45, 0.0 }
 0x569   : > { %v2605_v55 = vpack.c.bf16 %v2581_v53, %v2579_v60 }
 0x56a   : > { %v2528_v20 = vpop.f32.mrb[80].mxu1  ;;  %v2606_v56 = vpack.c.bf16 %v2582_v57, %v2580_v15 }
 0x56b   : > { %v2529_v58 = vadd.f32 %v2528_v20, %v13358_v5  ;;  %v2530_v13 = vpop.f32.mrb[81].mxu1 }
 0x56c   : > { %v2531_v33 = vadd.f32 %v2530_v13, %v13361_v18  ;;  %v2532_v9 = vpop.f32.mrb[82].mxu1  ;;  %2883 = vmatprep.mubr.bf16.mxu0 %v2606_v56 }
 0x56d   : > { %v2533_v7 = vadd.f32 %v2532_v9, %v13358_v5  ;;  %v2534_v39 = vpop.f32.mrb[83].mxu1  ;;  %2884 = vmatmul.mubr.bf16.gmra.mrb[108].mxu0 %v2605_v55  ;;  %v2583_v14 = vmax.f32 %v2529_v58, 0.0 }
 0x56e   : > { %v2535_v41 = vadd.f32 %v2534_v39, %v13361_v18  ;;  %v2584_v1 = vmax.f32 %v2531_v33, 0.0 }
 0x56f   : > { %v2585_v23 = vmax.f32 %v2533_v7, 0.0 }
 0x570   : > { %v2586_v4 = vmax.f32 %v2535_v41, 0.0 }
 0x571   : > { %v2607_v42 = vpack.c.bf16 %v2585_v23, %v2583_v14 }
 0x572   : > { %v2538_v36 = vpop.f32.mrb[84].mxu1  ;;  %v2608_v6 = vpack.c.bf16 %v2586_v4, %v2584_v1 }
 0x573   : > { %v2539_v12 = vadd.f32 %v2538_v36, %v13358_v5  ;;  %v2540_v49 = vpop.f32.mrb[85].mxu1 }
 0x574   : > { %v2541_v52 = vadd.f32 %v2540_v49, %v13361_v18  ;;  %v2542_v27 = vpop.f32.mrb[86].mxu1  ;;  %2893 = vmatprep.mubr.bf16.mxu0 %v2608_v6 }
 0x575   : > { %v2543_v35 = vadd.f32 %v2542_v27, %v13358_v5  ;;  %v2544_v44 = vpop.f32.mrb[87].mxu1  ;;  %2894 = vmatmul.mubr.bf16.gmra.mrb[112].mxu0 %v2607_v42  ;;  %v2587_v60 = vmax.f32 %v2539_v12, 0.0 }
 0x576   : > { %v2545_v45 = vadd.f32 %v2544_v44, %v13361_v18  ;;  %v2588_v15 = vmax.f32 %v2541_v52, 0.0 }
 0x577   : > { %v2589_v53 = vmax.f32 %v2543_v35, 0.0 }
 0x578   : > { %v2590_v57 = vmax.f32 %v2545_v45, 0.0 }
 0x579   : > { %v2609_v55 = vpack.c.bf16 %v2589_v53, %v2587_v60 }
 0x57a   : > { %v2610_v20 = vpack.c.bf16 %v2590_v57, %v2588_v15  ;;  %v2548_v56 = vpop.f32.mrb[88].mxu1 }
 0x57b   : > { %v2549_v58 = vadd.f32 %v2548_v56, %v13358_v5  ;;  %v2550_v13 = vpop.f32.mrb[89].mxu1  ;;  %v11094_v56 = vld [vmem:[%s16825_s3 + $0x3d4] ss:$8 sps:$4 sm:$0xff]  }
 0x57c   : > { %v2551_v33 = vadd.f32 %v2550_v13, %v13361_v18  ;;  %v2552_v9 = vpop.f32.mrb[90].mxu1  ;;  %2903 = vmatprep.mubr.bf16.mxu0 %v2610_v20  ;;  %3279 = vmatprep.subr.bf16.mxu1 %v11094_v56  ;;  %v11100_v13 = vld [vmem:[%s16825_s3 + $0x3f4] ss:$8 sps:$4 sm:$0xff]   ;;  %v11139_v56 = vld [vmem:[%s16827_s5 + $0x3c4] ss:$8 sps:$4 sm:$0xff]  }
 0x57d   : > { %v2553_v7 = vadd.f32 %v2552_v9, %v13358_v5  ;;  %v2554_v39 = vpop.f32.mrb[91].mxu1  ;;  %2904 = vmatmul.mubr.bf16.gmra.mrb[116].mxu0 %v2609_v55  ;;  %v2591_v14 = vmax.f32 %v2549_v58, 0.0  ;;  %v11095_v58 = vld [vmem:[%s16825_s3 + $0x3e0] ss:$8 sps:$4 sm:$0xff]  }
 0x57e   : > { %v2555_v41 = vadd.f32 %v2554_v39, %v13361_v18  ;;  %v2592_v1 = vmax.f32 %v2551_v33, 0.0  ;;  %v11098_v33 = vld [vmem:[%s16825_s3 + $0x3f0] ss:$8 sps:$4 sm:$0xff]   ;;  %v11101_v9 = vld [vmem:[%s16827_s5 + $0x300] ss:$8 sps:$4 sm:$0xff]  }
 0x57f   : > { %v2593_v23 = vmax.f32 %v2553_v7, 0.0  ;;  %v11103_v7 = vld [vmem:[%s16827_s5 + $0x304] ss:$8 sps:$4 sm:$0xff]   ;;  %v11106_v39 = vld [vmem:[%s16827_s5 + $0x314] ss:$8 sps:$4 sm:$0xff]  }
 0x580   : > { %v2594_v4 = vmax.f32 %v2555_v41, 0.0  ;;  %3620 = vmatprep.subr.bf16.mxu0 %v11103_v7  ;;  %v11104_v41 = vld [vmem:[%s16827_s5 + $0x310] ss:$8 sps:$4 sm:$0xff]  }
 0x581   : > { %v2611_v42 = vpack.c.bf16 %v2593_v23, %v2591_v14  ;;  %3621 = vmatpush1.bf16.msra.mxu0 %v11101_v9  ;;  %v11109_v14 = vld [vmem:[%s16827_s5 + $0x324] ss:$8 sps:$4 sm:$0xff]   ;;  %v11107_v23 = vld [vmem:[%s16827_s5 + $0x320] ss:$8 sps:$4 sm:$0xff]  }
 0x582   : > { %v2612_v36 = vpack.c.bf16 %v2594_v4, %v2592_v1  ;;  %v2558_v6 = vpop.f32.mrb[92].mxu1  ;;  %3622 = vmatprep.subr.bf16.mxu0 %v11106_v39  ;;  %v11112_v1 = vld [vmem:[%s16827_s5 + $0x334] ss:$8 sps:$4 sm:$0xff]   ;;  %v11110_v4 = vld [vmem:[%s16827_s5 + $0x330] ss:$8 sps:$4 sm:$0xff]  }
 0x583   : > { %v2559_v12 = vadd.f32 %v2558_v6, %v13358_v5  ;;  %v2560_v49 = vpop.f32.mrb[93].mxu1  ;;  %v11118_v6 = vld [vmem:[%s16827_s5 + $0x354] ss:$8 sps:$4 sm:$0xff]  }
 0x584   : > { %v2561_v52 = vadd.f32 %v2560_v49, %v13361_v18  ;;  %v2562_v27 = vpop.f32.mrb[94].mxu1  ;;  %2913 = vmatprep.mubr.bf16.mxu0 %v2612_v36  ;;  %v11113_v36 = vld [vmem:[%s16827_s5 + $0x340] ss:$8 sps:$4 sm:$0xff]   ;;  %v11121_v49 = vld [vmem:[%s16827_s5 + $0x364] ss:$8 sps:$4 sm:$0xff]  }
 0x585   : > { %v2563_v35 = vadd.f32 %v2562_v27, %v13358_v5  ;;  %v2564_v44 = vpop.f32.mrb[95].mxu1  ;;  %2914 = vmatmul.mubr.bf16.gmra.mrb[120].mxu0 %v2611_v42  ;;  %v2595_v60 = vmax.f32 %v2559_v12, 0.0  ;;  %v11092_v5 = vld [vmem:[%s16825_s3 + $0x3d0] ss:$8 sps:$4 sm:$0xff]   ;;  %v11115_v42 = vld [vmem:[%s16827_s5 + $0x344] ss:$8 sps:$4 sm:$0xff]  }
 0x586   : > { %v2565_v45 = vadd.f32 %v2564_v44, %v13361_v18  ;;  %v2596_v15 = vmax.f32 %v2561_v52, 0.0  ;;  %3280 = vmatpush1.bf16.msra.mxu1 %v11092_v5  ;;  %v11097_v18 = vld [vmem:[%s16825_s3 + $0x3e4] ss:$8 sps:$4 sm:$0xff]   ;;  %3623 = vmatpush1.bf16.msra.mxu0 %v11104_v41  ;;  %v11116_v12 = vld [vmem:[%s16827_s5 + $0x350] ss:$8 sps:$4 sm:$0xff]  }
 0x587   : > { %v2597_v53 = vmax.f32 %v2563_v35, 0.0  ;;  %3281 = vmatprep.subr.bf16.mxu1 %v11097_v18  ;;  %3624 = vmatprep.subr.bf16.mxu0 %v11109_v14  ;;  %v11119_v52 = vld [vmem:[%s16827_s5 + $0x360] ss:$8 sps:$4 sm:$0xff]   ;;  %v11124_v27 = vld [vmem:[%s16827_s5 + $0x374] ss:$8 sps:$4 sm:$0xff]  }
 0x588   : > { %v2598_v57 = vmax.f32 %v2565_v45, 0.0  ;;  %v11122_v35 = vld [vmem:[%s16827_s5 + $0x370] ss:$8 sps:$4 sm:$0xff]   ;;  %v11127_v44 = vld [vmem:[%s16827_s5 + $0x384] ss:$8 sps:$4 sm:$0xff]  }
 0x589   : > { %v2613_v55 = vpack.c.bf16 %v2597_v53, %v2595_v60  ;;  %v11125_v45 = vld [vmem:[%s16827_s5 + $0x380] ss:$8 sps:$4 sm:$0xff]   ;;  %v11130_v60 = vld [vmem:[%s16827_s5 + $0x394] ss:$8 sps:$4 sm:$0xff]   ;;  %v11128_v53 = vld [vmem:[%s16827_s5 + $0x390] ss:$8 sps:$4 sm:$0xff]  }
 0x58a   : > { %v2614_v20 = vpack.c.bf16 %v2598_v57, %v2596_v15  ;;  %3282 = vmatpush1.bf16.msra.mxu1 %v11095_v58  ;;  %3625 = vmatpush1.bf16.msra.mxu0 %v11107_v23  ;;  %v11133_v15 = vld [vmem:[%s16827_s5 + $0x3a4] ss:$8 sps:$4 sm:$0xff]   ;;  %v11131_v57 = vld [vmem:[%s16827_s5 + $0x3a0] ss:$8 sps:$4 sm:$0xff]   ;;  %v11142_v18 = vld [vmem:[%s16827_s5 + $0x3d4] ss:$8 sps:$4 sm:$0xff]  }
 0x58b   : > { %3283 = vmatprep.subr.bf16.mxu1 %v11100_v13  ;;  %3626 = vmatprep.subr.bf16.mxu0 %v11112_v1  ;;  %v11137_v5 = vld [vmem:[%s16827_s5 + $0x3c0] ss:$8 sps:$4 sm:$0xff]   ;;  %v11140_v58 = vld [vmem:[%s16827_s5 + $0x3d0] ss:$8 sps:$4 sm:$0xff]   ;;  %v9403_v13 = vld [vmem:[%s16828_s6 + $0x4] sm:$0x3] }
 0x58c   : > { %2923 = vmatprep.mubr.bf16.mxu0 %v2614_v20  ;;  %v11134_v20 = vld [vmem:[%s16827_s5 + $0x3b0] ss:$8 sps:$4 sm:$0xff]   ;;  %v13504_v9 = vrot.slane %v9403_v13, %v12127_v29 }
 0x58d   : > { %2924 = vmatmul.mubr.bf16.gmra.mrb[124].mxu0 %v2613_v55  ;;  %v11136_v55 = vld [vmem:[%s16827_s5 + $0x3b4] ss:$8 sps:$4 sm:$0xff]  }
 0x58e   : > { %3284 = vmatpush1.bf16.msra.mxu1 %v11098_v33  ;;  %3627 = vmatpush1.bf16.msra.mxu0 %v11110_v4  ;;  %v13501_v33 = vrot.slane %v9403_v13, %v12125_v28 }
 0x58f   : > { %3628 = vmatprep.subr.bf16.mxu0 %v11115_v42 }
 0x592   : > { %3629 = vmatpush1.bf16.msra.mxu0 %v11113_v36 }
 0x593   : > { %3630 = vmatprep.subr.bf16.mxu0 %v11118_v6 }
 0x596   : > { %3631 = vmatpush1.bf16.msra.mxu0 %v11116_v12 }
 0x597   : > { %3632 = vmatprep.subr.bf16.mxu0 %v11121_v49 }
 0x59a   : > { %3633 = vmatpush1.bf16.msra.mxu0 %v11119_v52 }
 0x59b   : > { %3634 = vmatprep.subr.bf16.mxu0 %v11124_v27 }
 0x59e   : > { %3635 = vmatpush1.bf16.msra.mxu0 %v11122_v35 }
 0x59f   : > { %3636 = vmatprep.subr.bf16.mxu0 %v11127_v44 }
 0x5a2   : > { %3637 = vmatpush1.bf16.msra.mxu0 %v11125_v45 }
 0x5a3   : > { %3638 = vmatprep.subr.bf16.mxu0 %v11130_v60 }
 0x5a6   : > { %3639 = vmatpush1.bf16.msra.mxu0 %v11128_v53 }
 0x5a7   : > { %3640 = vmatprep.subr.bf16.mxu0 %v11133_v15 }
 0x5aa   : > { %3641 = vmatpush1.bf16.msra.mxu0 %v11131_v57 }
 0x5ab   : > { %3642 = vmatprep.subr.bf16.mxu0 %v11136_v55 }
 0x5ae   : > { %3643 = vmatpush1.bf16.msra.mxu0 %v11134_v20 }
 0x5af   : > { %3644 = vmatprep.subr.bf16.mxu0 %v11139_v56 }
 0x5b2   : > { %3645 = vmatpush1.bf16.msra.mxu0 %v11137_v5 }
 0x5b3   : > { %3646 = vmatprep.subr.bf16.mxu0 %v11142_v18 }
 0x5b6   : > { %3647 = vmatpush1.bf16.msra.mxu0 %v11140_v58 }
 0x628   : > { %v2855_v7 = vpop.f32.mrb[96].mxu0 }
 0x629   : > { %v2856_v39 = vadd.f32 %v2855_v7, %v13501_v33  ;;  %v2857_v41 = vpop.f32.mrb[97].mxu0 }
 0x62a   : > { %v2858_v14 = vadd.f32 %v2857_v41, %v13504_v9  ;;  %v2859_v23 = vpop.f32.mrb[98].mxu0 }
 0x62b   : > { %v2934_v1 = vadd.f32 %v2856_v39, %v13046_v16  ;;  %v2860_v4 = vadd.f32 %v2859_v23, %v13501_v33  ;;  %v2861_v42 = vpop.f32.mrb[99].mxu0 }
 0x62c   : > { %v2935_v36 = vadd.f32 %v2858_v14, %v13049_v34  ;;  %v2862_v6 = vadd.f32 %v2861_v42, %v13504_v9 }
 0x62d   : > { %v13512_v12 = vmax.f32 %v2934_v1, 0.0  ;;  %v2936_v49 = vadd.f32 %v2860_v4, %v13054_v30 }
 0x62e   : > { %v13515_v52 = vmax.f32 %v2935_v36, 0.0  ;;  %v2937_v27 = vadd.f32 %v2862_v6, %v13058_v17 }
 0x62f   : > { %9436 = vst [vmem:[%s12146_s20 + $0x300] sm:$0xff] %v13512_v12  ;;  %v13520_v35 = vmax.f32 %v2936_v49, 0.0 }
 0x630   : > { %9437 = vst [vmem:[%s12146_s20 + $0x308] sm:$0xff] %v13515_v52  ;;  %v13524_v16 = vmax.f32 %v2937_v27, 0.0  ;;  %v2865_v44 = vpop.f32.mrb[100].mxu0 }
 0x631   : > { %9438 = vst [vmem:[%s12146_s20 + $0x310] sm:$0xff] %v13520_v35  ;;  %v2866_v34 = vadd.f32 %v2865_v44, %v13501_v33  ;;  %v2867_v45 = vpop.f32.mrb[101].mxu0  ;;  %v3031_v53 = vpack.c.bf16 %v13520_v35, %v13512_v12 }
 0x632   : > { %9439 = vst [vmem:[%s12146_s20 + $0x318] sm:$0xff] %v13524_v16  ;;  %v2868_v30 = vadd.f32 %v2867_v45, %v13504_v9  ;;  %v2869_v17 = vpop.f32.mrb[102].mxu0  ;;  %v3032_v60 = vpack.c.bf16 %v13524_v16, %v13515_v52 }
 0x633   : > { %v2938_v15 = vadd.f32 %v2866_v34, %v13074_v59  ;;  %v2870_v57 = vadd.f32 %v2869_v17, %v13501_v33  ;;  %v2871_v55 = vpop.f32.mrb[103].mxu0 }
 0x634   : > { %v2939_v20 = vadd.f32 %v2868_v30, %v13077_v61  ;;  %v2872_v56 = vadd.f32 %v2871_v55, %v13504_v9  ;;  %3285 = vmatprep.mubr.bf16.mxu1 %v3032_v60 }
 0x635   : > { %v13540_v5 = vmax.f32 %v2938_v15, 0.0  ;;  %v2940_v18 = vadd.f32 %v2870_v57, %v13082_v47  ;;  %3286 = vmatmul.mubr.bf16.vlgmr.msra.gmra.mrb[96].mxu1 %v3031_v53 }
 0x636   : > { %v13543_v58 = vmax.f32 %v2939_v20, 0.0  ;;  %v2941_v13 = vadd.f32 %v2872_v56, %v13086_v50 }
 0x637   : > { %9440 = vst [vmem:[%s12146_s20 + $0x320] sm:$0xff] %v13540_v5  ;;  %v13548_v59 = vmax.f32 %v2940_v18, 0.0 }
 0x638   : > { %9441 = vst [vmem:[%s12146_s20 + $0x328] sm:$0xff] %v13543_v58  ;;  %v13552_v61 = vmax.f32 %v2941_v13, 0.0  ;;  %v2875_v7 = vpop.f32.mrb[104].mxu0 }
 0x639   : > { %9442 = vst [vmem:[%s12146_s20 + $0x330] sm:$0xff] %v13548_v59  ;;  %v2876_v39 = vadd.f32 %v2875_v7, %v13501_v33  ;;  %v2877_v41 = vpop.f32.mrb[105].mxu0  ;;  %v3033_v42 = vpack.c.bf16 %v13548_v59, %v13540_v5 }
 0x63a   : > { %9443 = vst [vmem:[%s12146_s20 + $0x338] sm:$0xff] %v13552_v61  ;;  %v2878_v47 = vadd.f32 %v2877_v41, %v13504_v9  ;;  %v2879_v50 = vpop.f32.mrb[106].mxu0  ;;  %v3034_v14 = vpack.c.bf16 %v13552_v61, %v13543_v58 }
 0x63b   : > { %v2942_v23 = vadd.f32 %v2876_v39, %v13102_v32  ;;  %v2880_v1 = vadd.f32 %v2879_v50, %v13501_v33  ;;  %v2881_v4 = vpop.f32.mrb[107].mxu0 }
 0x63c   : > { %v2943_v36 = vadd.f32 %v2878_v47, %v13105_v46  ;;  %v2882_v6 = vadd.f32 %v2881_v4, %v13504_v9  ;;  %3295 = vmatprep.mubr.bf16.mxu1 %v3034_v14 }
 0x63d   : > { %v13568_v49 = vmax.f32 %v2942_v23, 0.0  ;;  %v2944_v27 = vadd.f32 %v2880_v1, %v13110_v22  ;;  %3296 = vmatmul.mubr.bf16.gmra.mrb[100].mxu1 %v3033_v42 }
 0x63e   : > { %v13571_v44 = vmax.f32 %v2943_v36, 0.0  ;;  %v2945_v32 = vadd.f32 %v2882_v6, %v13114_v25 }
 0x63f   : > { %9444 = vst [vmem:[%s12146_s20 + $0x340] sm:$0xff] %v13568_v49  ;;  %v13576_v34 = vmax.f32 %v2944_v27, 0.0 }
 0x640   : > { %9445 = vst [vmem:[%s12146_s20 + $0x348] sm:$0xff] %v13571_v44  ;;  %v13580_v46 = vmax.f32 %v2945_v32, 0.0  ;;  %v2885_v45 = vpop.f32.mrb[108].mxu0 }
 0x641   : > { %9446 = vst [vmem:[%s12146_s20 + $0x350] sm:$0xff] %v13576_v34  ;;  %v2886_v30 = vadd.f32 %v2885_v45, %v13501_v33  ;;  %v2887_v17 = vpop.f32.mrb[109].mxu0  ;;  %v3035_v55 = vpack.c.bf16 %v13576_v34, %v13568_v49 }
 0x642   : > { %9447 = vst [vmem:[%s12146_s20 + $0x358] sm:$0xff] %v13580_v46  ;;  %v2888_v22 = vadd.f32 %v2887_v17, %v13504_v9  ;;  %v2889_v25 = vpop.f32.mrb[110].mxu0  ;;  %v3036_v60 = vpack.c.bf16 %v13580_v46, %v13571_v44 }
 0x643   : > { %v2946_v53 = vadd.f32 %v2886_v30, %v13130_v21  ;;  %v2890_v15 = vadd.f32 %v2889_v25, %v13501_v33  ;;  %v2891_v57 = vpop.f32.mrb[111].mxu0 }
 0x644   : > { %v2947_v20 = vadd.f32 %v2888_v22, %v13133_v8  ;;  %v2892_v56 = vadd.f32 %v2891_v57, %v13504_v9  ;;  %3305 = vmatprep.mubr.bf16.mxu1 %v3036_v60 }
 0x645   : > { %v13596_v18 = vmax.f32 %v2946_v53, 0.0  ;;  %v2948_v13 = vadd.f32 %v2890_v15, %v13138_v10  ;;  %3306 = vmatmul.mubr.bf16.gmra.mrb[104].mxu1 %v3035_v55 }
 0x646   : > { %v13599_v7 = vmax.f32 %v2947_v20, 0.0  ;;  %v2949_v21 = vadd.f32 %v2892_v56, %v13142_v62 }
 0x647   : > { %9448 = vst [vmem:[%s12146_s20 + $0x360] sm:$0xff] %v13596_v18  ;;  %v13604_v39 = vmax.f32 %v2948_v13, 0.0 }
 0x648   : > { %9449 = vst [vmem:[%s12146_s20 + $0x368] sm:$0xff] %v13599_v7  ;;  %v13608_v8 = vmax.f32 %v2949_v21, 0.0  ;;  %v2895_v41 = vpop.f32.mrb[112].mxu0 }
 0x649   : > { %9450 = vst [vmem:[%s12146_s20 + $0x370] sm:$0xff] %v13604_v39  ;;  %v2896_v47 = vadd.f32 %v2895_v41, %v13501_v33  ;;  %v2897_v50 = vpop.f32.mrb[113].mxu0  ;;  %v3037_v42 = vpack.c.bf16 %v13604_v39, %v13596_v18 }
 0x64a   : > { %9451 = vst [vmem:[%s12146_s20 + $0x378] sm:$0xff] %v13608_v8  ;;  %v2898_v10 = vadd.f32 %v2897_v50, %v13504_v9  ;;  %v2899_v62 = vpop.f32.mrb[114].mxu0  ;;  %v3038_v14 = vpack.c.bf16 %v13608_v8, %v13599_v7 }
 0x64b   : > { %v2950_v23 = vadd.f32 %v2896_v47, %v13158_v38  ;;  %v2900_v1 = vadd.f32 %v2899_v62, %v13501_v33  ;;  %v2901_v4 = vpop.f32.mrb[115].mxu0 }
 0x64c   : > { %v2951_v36 = vadd.f32 %v2898_v10, %v13161_v31  ;;  %v2902_v6 = vadd.f32 %v2901_v4, %v13504_v9  ;;  %3315 = vmatprep.mubr.bf16.mxu1 %v3038_v14 }
 0x64d   : > { %v13624_v27 = vmax.f32 %v2950_v23, 0.0  ;;  %v2952_v32 = vadd.f32 %v2900_v1, %v13166_v24  ;;  %3316 = vmatmul.mubr.bf16.gmra.mrb[108].mxu1 %v3037_v42 }
 0x64e   : > { %v13627_v45 = vmax.f32 %v2951_v36, 0.0  ;;  %v2953_v38 = vadd.f32 %v2902_v6, %v13170_v26 }
 0x64f   : > { %9452 = vst [vmem:[%s12146_s20 + $0x380] sm:$0xff] %v13624_v27  ;;  %v13632_v30 = vmax.f32 %v2952_v32, 0.0 }
 0x650   : > { %9453 = vst [vmem:[%s12146_s20 + $0x388] sm:$0xff] %v13627_v45  ;;  %v13636_v31 = vmax.f32 %v2953_v38, 0.0  ;;  %v2905_v17 = vpop.f32.mrb[116].mxu0 }
 0x651   : > { %9454 = vst [vmem:[%s12146_s20 + $0x390] sm:$0xff] %v13632_v30  ;;  %v2906_v22 = vadd.f32 %v2905_v17, %v13501_v33  ;;  %v2907_v25 = vpop.f32.mrb[117].mxu0  ;;  %v3039_v55 = vpack.c.bf16 %v13632_v30, %v13624_v27 }
 0x652   : > { %9455 = vst [vmem:[%s12146_s20 + $0x398] sm:$0xff] %v13636_v31  ;;  %v2908_v24 = vadd.f32 %v2907_v25, %v13504_v9  ;;  %v2909_v26 = vpop.f32.mrb[118].mxu0  ;;  %v3040_v60 = vpack.c.bf16 %v13636_v31, %v13627_v45 }
 0x653   : > { %v2954_v53 = vadd.f32 %v2906_v22, %v13186_v2  ;;  %v2910_v15 = vadd.f32 %v2909_v26, %v13501_v33  ;;  %v2911_v57 = vpop.f32.mrb[119].mxu0 }
 0x654   : > { %v2955_v20 = vadd.f32 %v2908_v24, %v13189_v11  ;;  %v2912_v56 = vadd.f32 %v2911_v57, %v13504_v9  ;;  %3325 = vmatprep.mubr.bf16.mxu1 %v3040_v60 }
 0x655   : > { %v13652_v13 = vmax.f32 %v2954_v53, 0.0  ;;  %v2956_v21 = vadd.f32 %v2910_v15, %v13194_v51  ;;  %3326 = vmatmul.mubr.bf16.gmra.mrb[112].mxu1 %v3039_v55 }
 0x656   : > { %v13655_v41 = vmax.f32 %v2955_v20, 0.0  ;;  %v2957_v2 = vadd.f32 %v2912_v56, %v13198_v0 }
 0x657   : > { %9456 = vst [vmem:[%s12146_s20 + $0x3a0] sm:$0xff] %v13652_v13  ;;  %v13660_v47 = vmax.f32 %v2956_v21, 0.0 }
 0x658   : > { %9457 = vst [vmem:[%s12146_s20 + $0x3a8] sm:$0xff] %v13655_v41  ;;  %v13664_v11 = vmax.f32 %v2957_v2, 0.0  ;;  %v2915_v50 = vpop.f32.mrb[120].mxu0 }
 0x659   : > { %9458 = vst [vmem:[%s12146_s20 + $0x3b0] sm:$0xff] %v13660_v47  ;;  %v2916_v10 = vadd.f32 %v2915_v50, %v13501_v33  ;;  %v2917_v62 = vpop.f32.mrb[121].mxu0  ;;  %v3041_v42 = vpack.c.bf16 %v13660_v47, %v13652_v13 }
 0x65a   : > { %9459 = vst [vmem:[%s12146_s20 + $0x3b8] sm:$0xff] %v13664_v11  ;;  %v2918_v51 = vadd.f32 %v2917_v62, %v13504_v9  ;;  %v2919_v0 = vpop.f32.mrb[122].mxu0  ;;  %v3042_v14 = vpack.c.bf16 %v13664_v11, %v13655_v41  ;;  %v11148_v62 = vld [vmem:[%s16827_s5 + $0x3f4] ss:$8 sps:$4 sm:$0xff]  }
 0x65b   : > { %v2958_v23 = vadd.f32 %v2916_v10, %v13214_v19  ;;  %v2920_v1 = vadd.f32 %v2919_v0, %v13501_v33  ;;  %v2921_v4 = vpop.f32.mrb[123].mxu0  ;;  %v11149_v0 = vld [vmem:[%s16825_s3 + $0x400] ss:$8 sps:$4 sm:$0xff]  }
 0x65c   : > { %v2959_v36 = vadd.f32 %v2918_v51, %v13217_v37  ;;  %v2922_v6 = vadd.f32 %v2921_v4, %v13504_v9  ;;  %3335 = vmatprep.mubr.bf16.mxu1 %v3042_v14  ;;  %v11146_v51 = vld [vmem:[%s16827_s5 + $0x3f0] ss:$8 sps:$4 sm:$0xff]   ;;  %v11151_v14 = vld [vmem:[%s16825_s3 + $0x404] ss:$8 sps:$4 sm:$0xff]  }
 0x65d   : > { %v13680_v32 = vmax.f32 %v2958_v23, 0.0  ;;  %v2960_v38 = vadd.f32 %v2920_v1, %v13222_v40  ;;  %3336 = vmatmul.mubr.bf16.gmra.mrb[116].mxu1 %v3041_v42  ;;  %v11154_v23 = vld [vmem:[%s16825_s3 + $0x414] ss:$8 sps:$4 sm:$0xff]   ;;  %4052 = vmatprep.subr.bf16.mxu1 %v11151_v14  ;;  %v11152_v1 = vld [vmem:[%s16825_s3 + $0x410] ss:$8 sps:$4 sm:$0xff]  }
 0x65e   : > { %v13683_v17 = vmax.f32 %v2959_v36, 0.0  ;;  %v2961_v19 = vadd.f32 %v2922_v6, %v13226_v43  ;;  %4053 = vmatpush1.bf16.msra.mxu1 %v11149_v0  ;;  %v11157_v4 = vld [vmem:[%s16825_s3 + $0x424] ss:$8 sps:$4 sm:$0xff]   ;;  %v11155_v42 = vld [vmem:[%s16825_s3 + $0x420] ss:$8 sps:$4 sm:$0xff]  }
 0x65f   : > { %9460 = vst [vmem:[%s12146_s20 + $0x3c0] sm:$0xff] %v13680_v32  ;;  %v13688_v22 = vmax.f32 %v2960_v38, 0.0  ;;  %4054 = vmatprep.subr.bf16.mxu1 %v11154_v23  ;;  %v11160_v36 = vld [vmem:[%s16825_s3 + $0x434] ss:$8 sps:$4 sm:$0xff]   ;;  %v11158_v6 = vld [vmem:[%s16825_s3 + $0x430] ss:$8 sps:$4 sm:$0xff]  }
 0x660   : > { %9461 = vst [vmem:[%s12146_s20 + $0x3c8] sm:$0xff] %v13683_v17  ;;  %v13692_v37 = vmax.f32 %v2961_v19, 0.0  ;;  %v2925_v25 = vpop.f32.mrb[124].mxu0  ;;  %v11163_v38 = vld [vmem:[%s16825_s3 + $0x444] ss:$8 sps:$4 sm:$0xff]  }
 0x661   : > { %9462 = vst [vmem:[%s12146_s20 + $0x3d0] sm:$0xff] %v13688_v22  ;;  %v2926_v24 = vadd.f32 %v2925_v25, %v13501_v33  ;;  %v2927_v26 = vpop.f32.mrb[125].mxu0  ;;  %v3043_v55 = vpack.c.bf16 %v13688_v22, %v13680_v32  ;;  %v11161_v19 = vld [vmem:[%s16825_s3 + $0x440] ss:$8 sps:$4 sm:$0xff]   ;;  %v11166_v25 = vld [vmem:[%s16825_s3 + $0x454] ss:$8 sps:$4 sm:$0xff]  }
 0x662   : > { %9463 = vst [vmem:[%s12146_s20 + $0x3d8] sm:$0xff] %v13692_v37  ;;  %v2928_v40 = vadd.f32 %v2927_v26, %v13504_v9  ;;  %v2929_v43 = vpop.f32.mrb[126].mxu0  ;;  %v3044_v60 = vpack.c.bf16 %v13692_v37, %v13683_v17  ;;  %4055 = vmatpush1.bf16.msra.mxu1 %v11152_v1  ;;  %v11169_v26 = vld [vmem:[%s16825_s3 + $0x464] ss:$8 sps:$4 sm:$0xff]  }
 0x663   : > { %v2962_v53 = vadd.f32 %v2926_v24, %v13242_v48  ;;  %v2930_v15 = vadd.f32 %v2929_v43, %v13501_v33  ;;  %v2931_v57 = vpop.f32.mrb[127].mxu0  ;;  %4056 = vmatprep.subr.bf16.mxu1 %v11157_v4  ;;  %v11164_v24 = vld [vmem:[%s16825_s3 + $0x450] ss:$8 sps:$4 sm:$0xff]   ;;  %v11172_v43 = vld [vmem:[%s16825_s3 + $0x474] ss:$8 sps:$4 sm:$0xff]  }
 0x664   : > { %v2963_v20 = vadd.f32 %v2928_v40, %v13245_v54  ;;  %v2932_v56 = vadd.f32 %v2931_v57, %v13504_v9  ;;  %3345 = vmatprep.mubr.bf16.mxu1 %v3044_v60  ;;  %v11143_v9 = vld [vmem:[%s16827_s5 + $0x3e0] ss:$8 sps:$4 sm:$0xff]   ;;  %v11170_v60 = vld [vmem:[%s16825_s3 + $0x470] ss:$8 sps:$4 sm:$0xff]   ;;  %v11178_v57 = vld [vmem:[%s16825_s3 + $0x494] ss:$8 sps:$4 sm:$0xff]  }
 0x665   : > { %v13708_v21 = vmax.f32 %v2962_v53, 0.0  ;;  %v2964_v2 = vadd.f32 %v2930_v15, %v13250_v3  ;;  %3346 = vmatmul.mubr.bf16.gmra.mrb[120].mxu1 %v3043_v55  ;;  %v11167_v40 = vld [vmem:[%s16825_s3 + $0x460] ss:$8 sps:$4 sm:$0xff]   ;;  %v11175_v53 = vld [vmem:[%s16825_s3 + $0x484] ss:$8 sps:$4 sm:$0xff]  }
 0x666   : > { %v13711_v50 = vmax.f32 %v2963_v20, 0.0  ;;  %v2965_v48 = vadd.f32 %v2932_v56, %v13254_v63  ;;  %v11145_v63 = vld [vmem:[%s16827_s5 + $0x3e4] ss:$8 sps:$4 sm:$0xff]   ;;  %4057 = vmatpush1.bf16.msra.mxu1 %v11155_v42  ;;  %v11173_v15 = vld [vmem:[%s16825_s3 + $0x480] ss:$8 sps:$4 sm:$0xff]  }
 0x667   : > { %9464 = vst [vmem:[%s12146_s20 + $0x3e0] sm:$0xff] %v13708_v21  ;;  %v13716_v33 = vmax.f32 %v2964_v2, 0.0  ;;  %3648 = vmatprep.subr.bf16.mxu0 %v11145_v63  ;;  %4058 = vmatprep.subr.bf16.mxu1 %v11160_v36  ;;  %v11176_v55 = vld [vmem:[%s16825_s3 + $0x490] ss:$8 sps:$4 sm:$0xff]   ;;  %v11181_v20 = vld [vmem:[%s16825_s3 + $0x4a4] ss:$8 sps:$4 sm:$0xff]  }
 0x668   : > { %9465 = vst [vmem:[%s12146_s20 + $0x3e8] sm:$0xff] %v13711_v50  ;;  %v13720_v10 = vmax.f32 %v2965_v48, 0.0  ;;  %3649 = vmatpush1.bf16.msra.mxu0 %v11143_v9  ;;  %v11179_v56 = vld [vmem:[%s16825_s3 + $0x4a0] ss:$8 sps:$4 sm:$0xff]   ;;  %v11184_v2 = vld [vmem:[%s16825_s3 + $0x4b4] ss:$8 sps:$4 sm:$0xff]  }
 0x669   : > { %9466 = vst [vmem:[%s12146_s20 + $0x3f0] sm:$0xff] %v13716_v33  ;;  %v3045_v3 = vpack.c.bf16 %v13716_v33, %v13708_v21  ;;  %3650 = vmatprep.subr.bf16.mxu0 %v11148_v62  ;;  %v11182_v48 = vld [vmem:[%s16825_s3 + $0x4b0] ss:$8 sps:$4 sm:$0xff]   ;;  %v9500_v63 = vld [vmem:[%s16826_s4 + $0x6] sm:$0x3] }
 0x66a   : > { %9467 = vst [vmem:[%s12146_s20 + $0x3f8] sm:$0xff] %v13720_v10  ;;  %v3046_v54 = vpack.c.bf16 %v13720_v10, %v13711_v50  ;;  %4059 = vmatpush1.bf16.msra.mxu1 %v11158_v6  ;;  %v13824_v9 = vrot.slane %v9500_v63, %v12125_v28  ;;  %v13827_v62 = vrot.slane %v9500_v63, %v12127_v29 }
 0x66b   : > { %4060 = vmatprep.subr.bf16.mxu1 %v11163_v38 }
 0x66c   : > { %3355 = vmatprep.mubr.bf16.mxu1 %v3046_v54  ;;  %3651 = vmatpush1.bf16.msra.mxu0 %v11146_v51  ;;  %v11187_v54 = vld [vmem:[%s16825_s3 + $0x4c4] ss:$8 sps:$4 sm:$0xff]  }
 0x66d   : > { %3356 = vmatmul.mubr.bf16.gmra.mrb[124].mxu1 %v3045_v3  ;;  %v11185_v3 = vld [vmem:[%s16825_s3 + $0x4c0] ss:$8 sps:$4 sm:$0xff]  }
 0x66e   : > { %4061 = vmatpush1.bf16.msra.mxu1 %v11161_v19 }
 0x66f   : > { %4062 = vmatprep.subr.bf16.mxu1 %v11166_v25 }
 0x672   : > { %4063 = vmatpush1.bf16.msra.mxu1 %v11164_v24 }
 0x673   : > { %4064 = vmatprep.subr.bf16.mxu1 %v11169_v26 }
 0x676   : > { %4065 = vmatpush1.bf16.msra.mxu1 %v11167_v40 }
 0x677   : > { %4066 = vmatprep.subr.bf16.mxu1 %v11172_v43 }
 0x67a   : > { %4067 = vmatpush1.bf16.msra.mxu1 %v11170_v60 }
 0x67b   : > { %4068 = vmatprep.subr.bf16.mxu1 %v11175_v53 }
 0x67e   : > { %4069 = vmatpush1.bf16.msra.mxu1 %v11173_v15 }
 0x67f   : > { %4070 = vmatprep.subr.bf16.mxu1 %v11178_v57 }
 0x682   : > { %4071 = vmatpush1.bf16.msra.mxu1 %v11176_v55 }
 0x683   : > { %4072 = vmatprep.subr.bf16.mxu1 %v11181_v20 }
 0x686   : > { %4073 = vmatpush1.bf16.msra.mxu1 %v11179_v56 }
 0x687   : > { %4074 = vmatprep.subr.bf16.mxu1 %v11184_v2 }
 0x68a   : > { %4075 = vmatpush1.bf16.msra.mxu1 %v11182_v48 }
 0x68b   : > { %4076 = vmatprep.subr.bf16.mxu1 %v11187_v54 }
 0x68e   : > { %4077 = vmatpush1.bf16.msra.mxu1 %v11185_v3 }
 0x708   : > { %v3287_v51 = vpop.f32.mrb[96].mxu1 }
 0x709   : > { %v3288_v0 = vadd.f32 %v3287_v51, %v13824_v9  ;;  %v3289_v14 = vpop.f32.mrb[97].mxu1 }
 0x70a   : > { %v3290_v23 = vadd.f32 %v3289_v14, %v13827_v62  ;;  %v3291_v1 = vpop.f32.mrb[98].mxu1 }
 0x70b   : > { %v3292_v4 = vadd.f32 %v3291_v1, %v13824_v9  ;;  %v3293_v42 = vpop.f32.mrb[99].mxu1  ;;  %v3366_v6 = vmax.f32 %v3288_v0, 0.0 }
 0x70c   : > { %v3294_v36 = vadd.f32 %v3293_v42, %v13827_v62  ;;  %v3367_v19 = vmax.f32 %v3290_v23, 0.0 }
 0x70d   : > { %v3368_v38 = vmax.f32 %v3292_v4, 0.0 }
 0x70e   : > { %v3369_v25 = vmax.f32 %v3294_v36, 0.0 }
 0x70f   : > { %v3398_v24 = vpack.c.bf16 %v3368_v38, %v3366_v6 }
 0x710   : > { %v3399_v26 = vpack.c.bf16 %v3369_v25, %v3367_v19  ;;  %v3297_v40 = vpop.f32.mrb[100].mxu1 }
 0x711   : > { %v3298_v43 = vadd.f32 %v3297_v40, %v13824_v9  ;;  %v3299_v60 = vpop.f32.mrb[101].mxu1 }
 0x712   : > { %v3300_v53 = vadd.f32 %v3299_v60, %v13827_v62  ;;  %v3301_v15 = vpop.f32.mrb[102].mxu1  ;;  %3652 = vmatprep.mubr.bf16.mxu0 %v3399_v26 }
 0x713   : > { %v3302_v57 = vadd.f32 %v3301_v15, %v13824_v9  ;;  %v3303_v55 = vpop.f32.mrb[103].mxu1  ;;  %3653 = vmatmul.mubr.bf16.vlgmr.msra.gmra.mrb[128].mxu0 %v3398_v24  ;;  %v3370_v56 = vmax.f32 %v3298_v43, 0.0 }
 0x714   : > { %v3304_v20 = vadd.f32 %v3303_v55, %v13827_v62  ;;  %v3371_v48 = vmax.f32 %v3300_v53, 0.0 }
 0x715   : > { %v3372_v2 = vmax.f32 %v3302_v57, 0.0 }
 0x716   : > { %v3373_v54 = vmax.f32 %v3304_v20, 0.0 }
 0x717   : > { %v3400_v3 = vpack.c.bf16 %v3372_v2, %v3370_v56 }
 0x718   : > { %v3401_v63 = vpack.c.bf16 %v3373_v54, %v3371_v48  ;;  %v3307_v51 = vpop.f32.mrb[104].mxu1 }
 0x719   : > { %v3308_v0 = vadd.f32 %v3307_v51, %v13824_v9  ;;  %v3309_v14 = vpop.f32.mrb[105].mxu1 }
 0x71a   : > { %v3310_v23 = vadd.f32 %v3309_v14, %v13827_v62  ;;  %v3311_v1 = vpop.f32.mrb[106].mxu1  ;;  %3662 = vmatprep.mubr.bf16.mxu0 %v3401_v63 }
 0x71b   : > { %v3312_v4 = vadd.f32 %v3311_v1, %v13824_v9  ;;  %v3313_v42 = vpop.f32.mrb[107].mxu1  ;;  %3663 = vmatmul.mubr.bf16.gmra.mrb[132].mxu0 %v3400_v3  ;;  %v3374_v6 = vmax.f32 %v3308_v0, 0.0 }
 0x71c   : > { %v3314_v36 = vadd.f32 %v3313_v42, %v13827_v62  ;;  %v3375_v19 = vmax.f32 %v3310_v23, 0.0 }
 0x71d   : > { %v3376_v38 = vmax.f32 %v3312_v4, 0.0 }
 0x71e   : > { %v3377_v25 = vmax.f32 %v3314_v36, 0.0 }
 0x71f   : > { %v3402_v24 = vpack.c.bf16 %v3376_v38, %v3374_v6 }
 0x720   : > { %v3403_v26 = vpack.c.bf16 %v3377_v25, %v3375_v19  ;;  %v3317_v40 = vpop.f32.mrb[108].mxu1 }
 0x721   : > { %v3318_v43 = vadd.f32 %v3317_v40, %v13824_v9  ;;  %v3319_v60 = vpop.f32.mrb[109].mxu1 }
 0x722   : > { %v3320_v53 = vadd.f32 %v3319_v60, %v13827_v62  ;;  %v3321_v15 = vpop.f32.mrb[110].mxu1  ;;  %3672 = vmatprep.mubr.bf16.mxu0 %v3403_v26 }
 0x723   : > { %v3322_v57 = vadd.f32 %v3321_v15, %v13824_v9  ;;  %v3323_v55 = vpop.f32.mrb[111].mxu1  ;;  %3673 = vmatmul.mubr.bf16.gmra.mrb[136].mxu0 %v3402_v24  ;;  %v3378_v56 = vmax.f32 %v3318_v43, 0.0 }
 0x724   : > { %v3324_v20 = vadd.f32 %v3323_v55, %v13827_v62  ;;  %v3379_v48 = vmax.f32 %v3320_v53, 0.0 }
 0x725   : > { %v3380_v2 = vmax.f32 %v3322_v57, 0.0 }
 0x726   : > { %v3381_v54 = vmax.f32 %v3324_v20, 0.0 }
 0x727   : > { %v3404_v3 = vpack.c.bf16 %v3380_v2, %v3378_v56 }
 0x728   : > { %v3405_v63 = vpack.c.bf16 %v3381_v54, %v3379_v48  ;;  %v3327_v51 = vpop.f32.mrb[112].mxu1 }
 0x729   : > { %v3328_v0 = vadd.f32 %v3327_v51, %v13824_v9  ;;  %v3329_v14 = vpop.f32.mrb[113].mxu1 }
 0x72a   : > { %v3330_v23 = vadd.f32 %v3329_v14, %v13827_v62  ;;  %v3331_v1 = vpop.f32.mrb[114].mxu1  ;;  %3682 = vmatprep.mubr.bf16.mxu0 %v3405_v63 }
 0x72b   : > { %v3332_v4 = vadd.f32 %v3331_v1, %v13824_v9  ;;  %v3333_v42 = vpop.f32.mrb[115].mxu1  ;;  %3683 = vmatmul.mubr.bf16.gmra.mrb[140].mxu0 %v3404_v3  ;;  %v3382_v6 = vmax.f32 %v3328_v0, 0.0 }
 0x72c   : > { %v3334_v36 = vadd.f32 %v3333_v42, %v13827_v62  ;;  %v3383_v19 = vmax.f32 %v3330_v23, 0.0 }
 0x72d   : > { %v3384_v38 = vmax.f32 %v3332_v4, 0.0 }
 0x72e   : > { %v3385_v25 = vmax.f32 %v3334_v36, 0.0 }
 0x72f   : > { %v3406_v24 = vpack.c.bf16 %v3384_v38, %v3382_v6 }
 0x730   : > { %v3407_v26 = vpack.c.bf16 %v3385_v25, %v3383_v19  ;;  %v3337_v40 = vpop.f32.mrb[116].mxu1 }
 0x731   : > { %v3338_v43 = vadd.f32 %v3337_v40, %v13824_v9  ;;  %v3339_v60 = vpop.f32.mrb[117].mxu1 }
 0x732   : > { %v3340_v53 = vadd.f32 %v3339_v60, %v13827_v62  ;;  %v3341_v15 = vpop.f32.mrb[118].mxu1  ;;  %3692 = vmatprep.mubr.bf16.mxu0 %v3407_v26 }
 0x733   : > { %v3342_v57 = vadd.f32 %v3341_v15, %v13824_v9  ;;  %v3343_v55 = vpop.f32.mrb[119].mxu1  ;;  %3693 = vmatmul.mubr.bf16.gmra.mrb[144].mxu0 %v3406_v24  ;;  %v3386_v56 = vmax.f32 %v3338_v43, 0.0 }
 0x734   : > { %v3344_v20 = vadd.f32 %v3343_v55, %v13827_v62  ;;  %v3387_v48 = vmax.f32 %v3340_v53, 0.0 }
 0x735   : > { %v3388_v2 = vmax.f32 %v3342_v57, 0.0 }
 0x736   : > { %v3389_v54 = vmax.f32 %v3344_v20, 0.0 }
 0x737   : > { %v3408_v3 = vpack.c.bf16 %v3388_v2, %v3386_v56 }
 0x738   : > { %v3409_v63 = vpack.c.bf16 %v3389_v54, %v3387_v48  ;;  %v3347_v51 = vpop.f32.mrb[120].mxu1 }
 0x739   : > { %v3348_v0 = vadd.f32 %v3347_v51, %v13824_v9  ;;  %v3349_v14 = vpop.f32.mrb[121].mxu1  ;;  %v11190_v51 = vld [vmem:[%s16825_s3 + $0x4d4] ss:$8 sps:$4 sm:$0xff]  }
 0x73a   : > { %v3350_v23 = vadd.f32 %v3349_v14, %v13827_v62  ;;  %v3351_v1 = vpop.f32.mrb[122].mxu1  ;;  %3702 = vmatprep.mubr.bf16.mxu0 %v3409_v63  ;;  %4078 = vmatprep.subr.bf16.mxu1 %v11190_v51  ;;  %v11196_v14 = vld [vmem:[%s16825_s3 + $0x4f4] ss:$8 sps:$4 sm:$0xff]   ;;  %v11235_v51 = vld [vmem:[%s16827_s5 + $0x4c4] ss:$8 sps:$4 sm:$0xff]  }
 0x73b   : > { %v3352_v4 = vadd.f32 %v3351_v1, %v13824_v9  ;;  %v3353_v42 = vpop.f32.mrb[123].mxu1  ;;  %3703 = vmatmul.mubr.bf16.gmra.mrb[148].mxu0 %v3408_v3  ;;  %v3390_v6 = vmax.f32 %v3348_v0, 0.0  ;;  %v11191_v0 = vld [vmem:[%s16825_s3 + $0x4e0] ss:$8 sps:$4 sm:$0xff]  }
 0x73c   : > { %v3354_v36 = vadd.f32 %v3353_v42, %v13827_v62  ;;  %v3391_v19 = vmax.f32 %v3350_v23, 0.0  ;;  %v11194_v23 = vld [vmem:[%s16825_s3 + $0x4f0] ss:$8 sps:$4 sm:$0xff]   ;;  %v11197_v1 = vld [vmem:[%s16827_s5 + $0x400] ss:$8 sps:$4 sm:$0xff]  }
 0x73d   : > { %v3392_v38 = vmax.f32 %v3352_v4, 0.0  ;;  %v11199_v4 = vld [vmem:[%s16827_s5 + $0x404] ss:$8 sps:$4 sm:$0xff]   ;;  %v11202_v42 = vld [vmem:[%s16827_s5 + $0x414] ss:$8 sps:$4 sm:$0xff]  }
 0x73e   : > { %v3393_v25 = vmax.f32 %v3354_v36, 0.0  ;;  %4419 = vmatprep.subr.bf16.mxu0 %v11199_v4  ;;  %v11200_v36 = vld [vmem:[%s16827_s5 + $0x410] ss:$8 sps:$4 sm:$0xff]  }
 0x73f   : > { %v3410_v24 = vpack.c.bf16 %v3392_v38, %v3390_v6  ;;  %4420 = vmatpush1.bf16.msra.mxu0 %v11197_v1  ;;  %v11205_v6 = vld [vmem:[%s16827_s5 + $0x424] ss:$8 sps:$4 sm:$0xff]   ;;  %v11203_v38 = vld [vmem:[%s16827_s5 + $0x420] ss:$8 sps:$4 sm:$0xff]  }
 0x740   : > { %v3411_v26 = vpack.c.bf16 %v3393_v25, %v3391_v19  ;;  %v3357_v40 = vpop.f32.mrb[124].mxu1  ;;  %4421 = vmatprep.subr.bf16.mxu0 %v11202_v42  ;;  %v11208_v19 = vld [vmem:[%s16827_s5 + $0x434] ss:$8 sps:$4 sm:$0xff]   ;;  %v11206_v25 = vld [vmem:[%s16827_s5 + $0x430] ss:$8 sps:$4 sm:$0xff]  }
 0x741   : > { %v3358_v43 = vadd.f32 %v3357_v40, %v13824_v9  ;;  %v3359_v60 = vpop.f32.mrb[125].mxu1  ;;  %v11214_v40 = vld [vmem:[%s16827_s5 + $0x454] ss:$8 sps:$4 sm:$0xff]  }
 0x742   : > { %v3360_v53 = vadd.f32 %v3359_v60, %v13827_v62  ;;  %v3361_v15 = vpop.f32.mrb[126].mxu1  ;;  %3712 = vmatprep.mubr.bf16.mxu0 %v3411_v26  ;;  %v11209_v26 = vld [vmem:[%s16827_s5 + $0x440] ss:$8 sps:$4 sm:$0xff]   ;;  %v11217_v60 = vld [vmem:[%s16827_s5 + $0x464] ss:$8 sps:$4 sm:$0xff]  }
 0x743   : > { %v3362_v57 = vadd.f32 %v3361_v15, %v13824_v9  ;;  %v3363_v55 = vpop.f32.mrb[127].mxu1  ;;  %3713 = vmatmul.mubr.bf16.gmra.mrb[152].mxu0 %v3410_v24  ;;  %v3394_v56 = vmax.f32 %v3358_v43, 0.0  ;;  %v11188_v9 = vld [vmem:[%s16825_s3 + $0x4d0] ss:$8 sps:$4 sm:$0xff]   ;;  %v11211_v24 = vld [vmem:[%s16827_s5 + $0x444] ss:$8 sps:$4 sm:$0xff]  }
 0x744   : > { %v3364_v20 = vadd.f32 %v3363_v55, %v13827_v62  ;;  %v3395_v48 = vmax.f32 %v3360_v53, 0.0  ;;  %4079 = vmatpush1.bf16.msra.mxu1 %v11188_v9  ;;  %v11193_v62 = vld [vmem:[%s16825_s3 + $0x4e4] ss:$8 sps:$4 sm:$0xff]   ;;  %4422 = vmatpush1.bf16.msra.mxu0 %v11200_v36  ;;  %v11212_v43 = vld [vmem:[%s16827_s5 + $0x450] ss:$8 sps:$4 sm:$0xff]  }
 0x745   : > { %v3396_v2 = vmax.f32 %v3362_v57, 0.0  ;;  %4080 = vmatprep.subr.bf16.mxu1 %v11193_v62  ;;  %4423 = vmatprep.subr.bf16.mxu0 %v11205_v6  ;;  %v11215_v53 = vld [vmem:[%s16827_s5 + $0x460] ss:$8 sps:$4 sm:$0xff]   ;;  %v11220_v15 = vld [vmem:[%s16827_s5 + $0x474] ss:$8 sps:$4 sm:$0xff]  }
 0x746   : > { %v3397_v54 = vmax.f32 %v3364_v20, 0.0  ;;  %v11218_v57 = vld [vmem:[%s16827_s5 + $0x470] ss:$8 sps:$4 sm:$0xff]   ;;  %v11223_v55 = vld [vmem:[%s16827_s5 + $0x484] ss:$8 sps:$4 sm:$0xff]  }
 0x747   : > { %v3412_v3 = vpack.c.bf16 %v3396_v2, %v3394_v56  ;;  %v11221_v20 = vld [vmem:[%s16827_s5 + $0x480] ss:$8 sps:$4 sm:$0xff]   ;;  %v11226_v56 = vld [vmem:[%s16827_s5 + $0x494] ss:$8 sps:$4 sm:$0xff]   ;;  %v11224_v2 = vld [vmem:[%s16827_s5 + $0x490] ss:$8 sps:$4 sm:$0xff]  }
 0x748   : > { %v3413_v63 = vpack.c.bf16 %v3397_v54, %v3395_v48  ;;  %4081 = vmatpush1.bf16.msra.mxu1 %v11191_v0  ;;  %4424 = vmatpush1.bf16.msra.mxu0 %v11203_v38  ;;  %v11229_v48 = vld [vmem:[%s16827_s5 + $0x4a4] ss:$8 sps:$4 sm:$0xff]   ;;  %v11227_v54 = vld [vmem:[%s16827_s5 + $0x4a0] ss:$8 sps:$4 sm:$0xff]   ;;  %v11238_v62 = vld [vmem:[%s16827_s5 + $0x4d4] ss:$8 sps:$4 sm:$0xff]  }
 0x749   : > { %4082 = vmatprep.subr.bf16.mxu1 %v11196_v14  ;;  %4425 = vmatprep.subr.bf16.mxu0 %v11208_v19  ;;  %v11233_v9 = vld [vmem:[%s16827_s5 + $0x4c0] ss:$8 sps:$4 sm:$0xff]   ;;  %v11236_v0 = vld [vmem:[%s16827_s5 + $0x4d0] ss:$8 sps:$4 sm:$0xff]   ;;  %v9565_v14 = vld [vmem:[%s16828_s6 + $0x6] sm:$0x3] }
 0x74a   : > { %3722 = vmatprep.mubr.bf16.mxu0 %v3413_v63  ;;  %v11230_v63 = vld [vmem:[%s16827_s5 + $0x4b0] ss:$8 sps:$4 sm:$0xff]   ;;  %v13970_v1 = vrot.slane %v9565_v14, %v12127_v29 }
 0x74b   : > { %3723 = vmatmul.mubr.bf16.gmra.mrb[156].mxu0 %v3412_v3  ;;  %v11232_v3 = vld [vmem:[%s16827_s5 + $0x4b4] ss:$8 sps:$4 sm:$0xff]  }
 0x74c   : > { %4083 = vmatpush1.bf16.msra.mxu1 %v11194_v23  ;;  %4426 = vmatpush1.bf16.msra.mxu0 %v11206_v25  ;;  %v13967_v23 = vrot.slane %v9565_v14, %v12125_v28 }
 0x74d   : > { %4427 = vmatprep.subr.bf16.mxu0 %v11211_v24 }
 0x750   : > { %4428 = vmatpush1.bf16.msra.mxu0 %v11209_v26 }
 0x751   : > { %4429 = vmatprep.subr.bf16.mxu0 %v11214_v40 }
 0x754   : > { %4430 = vmatpush1.bf16.msra.mxu0 %v11212_v43 }
 0x755   : > { %4431 = vmatprep.subr.bf16.mxu0 %v11217_v60 }
 0x758   : > { %4432 = vmatpush1.bf16.msra.mxu0 %v11215_v53 }
 0x759   : > { %4433 = vmatprep.subr.bf16.mxu0 %v11220_v15 }
 0x75c   : > { %4434 = vmatpush1.bf16.msra.mxu0 %v11218_v57 }
 0x75d   : > { %4435 = vmatprep.subr.bf16.mxu0 %v11223_v55 }
 0x760   : > { %4436 = vmatpush1.bf16.msra.mxu0 %v11221_v20 }
 0x761   : > { %4437 = vmatprep.subr.bf16.mxu0 %v11226_v56 }
 0x764   : > { %4438 = vmatpush1.bf16.msra.mxu0 %v11224_v2 }
 0x765   : > { %4439 = vmatprep.subr.bf16.mxu0 %v11229_v48 }
 0x768   : > { %4440 = vmatpush1.bf16.msra.mxu0 %v11227_v54 }
 0x769   : > { %4441 = vmatprep.subr.bf16.mxu0 %v11232_v3 }
 0x76c   : > { %4442 = vmatpush1.bf16.msra.mxu0 %v11230_v63 }
 0x76d   : > { %4443 = vmatprep.subr.bf16.mxu0 %v11235_v51 }
 0x770   : > { %4444 = vmatpush1.bf16.msra.mxu0 %v11233_v9 }
 0x771   : > { %4445 = vmatprep.subr.bf16.mxu0 %v11238_v62 }
 0x774   : > { %4446 = vmatpush1.bf16.msra.mxu0 %v11236_v0 }
 0x7e6   : > { %v3654_v4 = vpop.f32.mrb[128].mxu0 }
 0x7e7   : > { %v3655_v42 = vadd.f32 %v3654_v4, %v13967_v23  ;;  %v3656_v36 = vpop.f32.mrb[129].mxu0 }
 0x7e8   : > { %v3657_v6 = vadd.f32 %v3656_v36, %v13970_v1  ;;  %v3658_v38 = vpop.f32.mrb[130].mxu0 }
 0x7e9   : > { %v3733_v19 = vadd.f32 %v3655_v42, %v13512_v12  ;;  %v3659_v25 = vadd.f32 %v3658_v38, %v13967_v23  ;;  %v3660_v24 = vpop.f32.mrb[131].mxu0 }
 0x7ea   : > { %v3734_v26 = vadd.f32 %v3657_v6, %v13515_v52  ;;  %v3661_v40 = vadd.f32 %v3660_v24, %v13970_v1 }
 0x7eb   : > { %v13978_v43 = vmax.f32 %v3733_v19, 0.0  ;;  %v3735_v60 = vadd.f32 %v3659_v25, %v13520_v35 }
 0x7ec   : > { %v13981_v53 = vmax.f32 %v3734_v26, 0.0  ;;  %v3736_v15 = vadd.f32 %v3661_v40, %v13524_v16 }
 0x7ed   : > { %9598 = vst [vmem:[%s12146_s20 + $0x400] sm:$0xff] %v13978_v43  ;;  %v13986_v57 = vmax.f32 %v3735_v60, 0.0 }
 0x7ee   : > { %9599 = vst [vmem:[%s12146_s20 + $0x408] sm:$0xff] %v13981_v53  ;;  %v13990_v12 = vmax.f32 %v3736_v15, 0.0  ;;  %v3664_v55 = vpop.f32.mrb[132].mxu0 }
 0x7ef   : > { %9600 = vst [vmem:[%s12146_s20 + $0x410] sm:$0xff] %v13986_v57  ;;  %v3665_v52 = vadd.f32 %v3664_v55, %v13967_v23  ;;  %v3666_v20 = vpop.f32.mrb[133].mxu0  ;;  %v3830_v2 = vpack.c.bf16 %v13986_v57, %v13978_v43 }
 0x7f0   : > { %9601 = vst [vmem:[%s12146_s20 + $0x418] sm:$0xff] %v13990_v12  ;;  %v3667_v35 = vadd.f32 %v3666_v20, %v13970_v1  ;;  %v3668_v16 = vpop.f32.mrb[134].mxu0  ;;  %v3831_v56 = vpack.c.bf16 %v13990_v12, %v13981_v53 }
 0x7f1   : > { %v3737_v48 = vadd.f32 %v3665_v52, %v13540_v5  ;;  %v3669_v54 = vadd.f32 %v3668_v16, %v13967_v23  ;;  %v3670_v3 = vpop.f32.mrb[135].mxu0 }
 0x7f2   : > { %v3738_v63 = vadd.f32 %v3667_v35, %v13543_v58  ;;  %v3671_v51 = vadd.f32 %v3670_v3, %v13970_v1  ;;  %4084 = vmatprep.mubr.bf16.mxu1 %v3831_v56 }
 0x7f3   : > { %v14006_v9 = vmax.f32 %v3737_v48, 0.0  ;;  %v3739_v62 = vadd.f32 %v3669_v54, %v13548_v59  ;;  %4085 = vmatmul.mubr.bf16.vlgmr.msra.gmra.mrb[128].mxu1 %v3830_v2 }
 0x7f4   : > { %v14009_v0 = vmax.f32 %v3738_v63, 0.0  ;;  %v3740_v14 = vadd.f32 %v3671_v51, %v13552_v61 }
 0x7f5   : > { %9602 = vst [vmem:[%s12146_s20 + $0x420] sm:$0xff] %v14006_v9  ;;  %v14014_v5 = vmax.f32 %v3739_v62, 0.0 }
 0x7f6   : > { %9603 = vst [vmem:[%s12146_s20 + $0x428] sm:$0xff] %v14009_v0  ;;  %v14018_v58 = vmax.f32 %v3740_v14, 0.0  ;;  %v3674_v4 = vpop.f32.mrb[136].mxu0 }
 0x7f7   : > { %9604 = vst [vmem:[%s12146_s20 + $0x430] sm:$0xff] %v14014_v5  ;;  %v3675_v42 = vadd.f32 %v3674_v4, %v13967_v23  ;;  %v3676_v36 = vpop.f32.mrb[137].mxu0  ;;  %v3832_v24 = vpack.c.bf16 %v14014_v5, %v14006_v9 }
 0x7f8   : > { %9605 = vst [vmem:[%s12146_s20 + $0x438] sm:$0xff] %v14018_v58  ;;  %v3677_v59 = vadd.f32 %v3676_v36, %v13970_v1  ;;  %v3678_v61 = vpop.f32.mrb[138].mxu0  ;;  %v3833_v6 = vpack.c.bf16 %v14018_v58, %v14009_v0 }
 0x7f9   : > { %v3741_v38 = vadd.f32 %v3675_v42, %v13568_v49  ;;  %v3679_v19 = vadd.f32 %v3678_v61, %v13967_v23  ;;  %v3680_v25 = vpop.f32.mrb[139].mxu0 }
 0x7fa   : > { %v3742_v26 = vadd.f32 %v3677_v59, %v13571_v44  ;;  %v3681_v40 = vadd.f32 %v3680_v25, %v13970_v1  ;;  %4094 = vmatprep.mubr.bf16.mxu1 %v3833_v6 }
 0x7fb   : > { %v14034_v60 = vmax.f32 %v3741_v38, 0.0  ;;  %v3743_v15 = vadd.f32 %v3679_v19, %v13576_v34  ;;  %4095 = vmatmul.mubr.bf16.gmra.mrb[132].mxu1 %v3832_v24 }
 0x7fc   : > { %v14037_v55 = vmax.f32 %v3742_v26, 0.0  ;;  %v3744_v49 = vadd.f32 %v3681_v40, %v13580_v46 }
 0x7fd   : > { %9606 = vst [vmem:[%s12146_s20 + $0x440] sm:$0xff] %v14034_v60  ;;  %v14042_v52 = vmax.f32 %v3743_v15, 0.0 }
 0x7fe   : > { %9607 = vst [vmem:[%s12146_s20 + $0x448] sm:$0xff] %v14037_v55  ;;  %v14046_v44 = vmax.f32 %v3744_v49, 0.0  ;;  %v3684_v20 = vpop.f32.mrb[140].mxu0 }
 0x7ff   : > { %9608 = vst [vmem:[%s12146_s20 + $0x450] sm:$0xff] %v14042_v52  ;;  %v3685_v35 = vadd.f32 %v3684_v20, %v13967_v23  ;;  %v3686_v16 = vpop.f32.mrb[141].mxu0  ;;  %v3834_v3 = vpack.c.bf16 %v14042_v52, %v14034_v60 }
 0x800   : > { %9609 = vst [vmem:[%s12146_s20 + $0x458] sm:$0xff] %v14046_v44  ;;  %v3687_v34 = vadd.f32 %v3686_v16, %v13970_v1  ;;  %v3688_v46 = vpop.f32.mrb[142].mxu0  ;;  %v3835_v56 = vpack.c.bf16 %v14046_v44, %v14037_v55 }
 0x801   : > { %v3745_v2 = vadd.f32 %v3685_v35, %v13596_v18  ;;  %v3689_v48 = vadd.f32 %v3688_v46, %v13967_v23  ;;  %v3690_v54 = vpop.f32.mrb[143].mxu0 }
 0x802   : > { %v3746_v63 = vadd.f32 %v3687_v34, %v13599_v7  ;;  %v3691_v51 = vadd.f32 %v3690_v54, %v13970_v1  ;;  %4104 = vmatprep.mubr.bf16.mxu1 %v3835_v56 }
 0x803   : > { %v14062_v62 = vmax.f32 %v3745_v2, 0.0  ;;  %v3747_v14 = vadd.f32 %v3689_v48, %v13604_v39  ;;  %4105 = vmatmul.mubr.bf16.gmra.mrb[136].mxu1 %v3834_v3 }
 0x804   : > { %v14065_v4 = vmax.f32 %v3746_v63, 0.0  ;;  %v3748_v18 = vadd.f32 %v3691_v51, %v13608_v8 }
 0x805   : > { %9610 = vst [vmem:[%s12146_s20 + $0x460] sm:$0xff] %v14062_v62  ;;  %v14070_v42 = vmax.f32 %v3747_v14, 0.0 }
 0x806   : > { %9611 = vst [vmem:[%s12146_s20 + $0x468] sm:$0xff] %v14065_v4  ;;  %v14074_v7 = vmax.f32 %v3748_v18, 0.0  ;;  %v3694_v36 = vpop.f32.mrb[144].mxu0 }
 0x807   : > { %9612 = vst [vmem:[%s12146_s20 + $0x470] sm:$0xff] %v14070_v42  ;;  %v3695_v59 = vadd.f32 %v3694_v36, %v13967_v23  ;;  %v3696_v61 = vpop.f32.mrb[145].mxu0  ;;  %v3836_v24 = vpack.c.bf16 %v14070_v42, %v14062_v62 }
 0x808   : > { %9613 = vst [vmem:[%s12146_s20 + $0x478] sm:$0xff] %v14074_v7  ;;  %v3697_v39 = vadd.f32 %v3696_v61, %v13970_v1  ;;  %v3698_v8 = vpop.f32.mrb[146].mxu0  ;;  %v3837_v6 = vpack.c.bf16 %v14074_v7, %v14065_v4 }
 0x809   : > { %v3749_v38 = vadd.f32 %v3695_v59, %v13624_v27  ;;  %v3699_v19 = vadd.f32 %v3698_v8, %v13967_v23  ;;  %v3700_v25 = vpop.f32.mrb[147].mxu0 }
 0x80a   : > { %v3750_v26 = vadd.f32 %v3697_v39, %v13627_v45  ;;  %v3701_v40 = vadd.f32 %v3700_v25, %v13970_v1  ;;  %4114 = vmatprep.mubr.bf16.mxu1 %v3837_v6 }
 0x80b   : > { %v14090_v15 = vmax.f32 %v3749_v38, 0.0  ;;  %v3751_v49 = vadd.f32 %v3699_v19, %v13632_v30  ;;  %4115 = vmatmul.mubr.bf16.gmra.mrb[140].mxu1 %v3836_v24 }
 0x80c   : > { %v14093_v20 = vmax.f32 %v3750_v26, 0.0  ;;  %v3752_v27 = vadd.f32 %v3701_v40, %v13636_v31 }
 0x80d   : > { %9614 = vst [vmem:[%s12146_s20 + $0x480] sm:$0xff] %v14090_v15  ;;  %v14098_v35 = vmax.f32 %v3751_v49, 0.0 }
 0x80e   : > { %9615 = vst [vmem:[%s12146_s20 + $0x488] sm:$0xff] %v14093_v20  ;;  %v14102_v45 = vmax.f32 %v3752_v27, 0.0  ;;  %v3704_v16 = vpop.f32.mrb[148].mxu0 }
 0x80f   : > { %9616 = vst [vmem:[%s12146_s20 + $0x490] sm:$0xff] %v14098_v35  ;;  %v3705_v34 = vadd.f32 %v3704_v16, %v13967_v23  ;;  %v3706_v46 = vpop.f32.mrb[149].mxu0  ;;  %v3838_v3 = vpack.c.bf16 %v14098_v35, %v14090_v15 }
 0x810   : > { %9617 = vst [vmem:[%s12146_s20 + $0x498] sm:$0xff] %v14102_v45  ;;  %v3707_v30 = vadd.f32 %v3706_v46, %v13970_v1  ;;  %v3708_v31 = vpop.f32.mrb[150].mxu0  ;;  %v3839_v56 = vpack.c.bf16 %v14102_v45, %v14093_v20 }
 0x811   : > { %v3753_v2 = vadd.f32 %v3705_v34, %v13652_v13  ;;  %v3709_v48 = vadd.f32 %v3708_v31, %v13967_v23  ;;  %v3710_v54 = vpop.f32.mrb[151].mxu0 }
 0x812   : > { %v3754_v63 = vadd.f32 %v3707_v30, %v13655_v41  ;;  %v3711_v51 = vadd.f32 %v3710_v54, %v13970_v1  ;;  %4124 = vmatprep.mubr.bf16.mxu1 %v3839_v56 }
 0x813   : > { %v14118_v14 = vmax.f32 %v3753_v2, 0.0  ;;  %v3755_v18 = vadd.f32 %v3709_v48, %v13660_v47  ;;  %4125 = vmatmul.mubr.bf16.gmra.mrb[144].mxu1 %v3838_v3 }
 0x814   : > { %v14121_v36 = vmax.f32 %v3754_v63, 0.0  ;;  %v3756_v13 = vadd.f32 %v3711_v51, %v13664_v11 }
 0x815   : > { %9618 = vst [vmem:[%s12146_s20 + $0x4a0] sm:$0xff] %v14118_v14  ;;  %v14126_v59 = vmax.f32 %v3755_v18, 0.0 }
 0x816   : > { %9619 = vst [vmem:[%s12146_s20 + $0x4a8] sm:$0xff] %v14121_v36  ;;  %v14130_v41 = vmax.f32 %v3756_v13, 0.0  ;;  %v3714_v61 = vpop.f32.mrb[152].mxu0 }
 0x817   : > { %9620 = vst [vmem:[%s12146_s20 + $0x4b0] sm:$0xff] %v14126_v59  ;;  %v3715_v39 = vadd.f32 %v3714_v61, %v13967_v23  ;;  %v3716_v8 = vpop.f32.mrb[153].mxu0  ;;  %v3840_v24 = vpack.c.bf16 %v14126_v59, %v14118_v14 }
 0x818   : > { %9621 = vst [vmem:[%s12146_s20 + $0x4b8] sm:$0xff] %v14130_v41  ;;  %v3717_v47 = vadd.f32 %v3716_v8, %v13970_v1  ;;  %v3718_v11 = vpop.f32.mrb[154].mxu0  ;;  %v3841_v6 = vpack.c.bf16 %v14130_v41, %v14121_v36  ;;  %v11244_v8 = vld [vmem:[%s16827_s5 + $0x4f4] ss:$8 sps:$4 sm:$0xff]  }
 0x819   : > { %v3757_v38 = vadd.f32 %v3715_v39, %v13680_v32  ;;  %v3719_v19 = vadd.f32 %v3718_v11, %v13967_v23  ;;  %v3720_v25 = vpop.f32.mrb[155].mxu0  ;;  %v11245_v11 = vld [vmem:[%s16825_s3 + $0x500] ss:$8 sps:$4 sm:$0xff]  }
 0x81a   : > { %v3758_v26 = vadd.f32 %v3717_v47, %v13683_v17  ;;  %v3721_v40 = vadd.f32 %v3720_v25, %v13970_v1  ;;  %4134 = vmatprep.mubr.bf16.mxu1 %v3841_v6  ;;  %v11242_v47 = vld [vmem:[%s16827_s5 + $0x4f0] ss:$8 sps:$4 sm:$0xff]   ;;  %v11247_v6 = vld [vmem:[%s16825_s3 + $0x504] ss:$8 sps:$4 sm:$0xff]  }
 0x81b   : > { %v14146_v49 = vmax.f32 %v3757_v38, 0.0  ;;  %v3759_v27 = vadd.f32 %v3719_v19, %v13688_v22  ;;  %4135 = vmatmul.mubr.bf16.gmra.mrb[148].mxu1 %v3840_v24  ;;  %v11250_v38 = vld [vmem:[%s16825_s3 + $0x514] ss:$8 sps:$4 sm:$0xff]   ;;  %4851 = vmatprep.subr.bf16.mxu1 %v11247_v6  ;;  %v11248_v19 = vld [vmem:[%s16825_s3 + $0x510] ss:$8 sps:$4 sm:$0xff]  }
 0x81c   : > { %v14149_v16 = vmax.f32 %v3758_v26, 0.0  ;;  %v3760_v32 = vadd.f32 %v3721_v40, %v13692_v37  ;;  %4852 = vmatpush1.bf16.msra.mxu1 %v11245_v11  ;;  %v11253_v25 = vld [vmem:[%s16825_s3 + $0x524] ss:$8 sps:$4 sm:$0xff]   ;;  %v11251_v24 = vld [vmem:[%s16825_s3 + $0x520] ss:$8 sps:$4 sm:$0xff]  }
 0x81d   : > { %9622 = vst [vmem:[%s12146_s20 + $0x4c0] sm:$0xff] %v14146_v49  ;;  %v14154_v34 = vmax.f32 %v3759_v27, 0.0  ;;  %4853 = vmatprep.subr.bf16.mxu1 %v11250_v38  ;;  %v11256_v26 = vld [vmem:[%s16825_s3 + $0x534] ss:$8 sps:$4 sm:$0xff]   ;;  %v11254_v40 = vld [vmem:[%s16825_s3 + $0x530] ss:$8 sps:$4 sm:$0xff]  }
 0x81e   : > { %9623 = vst [vmem:[%s12146_s20 + $0x4c8] sm:$0xff] %v14149_v16  ;;  %v14158_v17 = vmax.f32 %v3760_v32, 0.0  ;;  %v3724_v46 = vpop.f32.mrb[156].mxu0  ;;  %v11259_v27 = vld [vmem:[%s16825_s3 + $0x544] ss:$8 sps:$4 sm:$0xff]  }
 0x81f   : > { %9624 = vst [vmem:[%s12146_s20 + $0x4d0] sm:$0xff] %v14154_v34  ;;  %v3725_v30 = vadd.f32 %v3724_v46, %v13967_v23  ;;  %v3726_v31 = vpop.f32.mrb[157].mxu0  ;;  %v3842_v3 = vpack.c.bf16 %v14154_v34, %v14146_v49  ;;  %v11257_v32 = vld [vmem:[%s16825_s3 + $0x540] ss:$8 sps:$4 sm:$0xff]   ;;  %v11262_v46 = vld [vmem:[%s16825_s3 + $0x554] ss:$8 sps:$4 sm:$0xff]  }
 0x820   : > { %9625 = vst [vmem:[%s12146_s20 + $0x4d8] sm:$0xff] %v14158_v17  ;;  %v3727_v22 = vadd.f32 %v3726_v31, %v13970_v1  ;;  %v3728_v37 = vpop.f32.mrb[158].mxu0  ;;  %v3843_v56 = vpack.c.bf16 %v14158_v17, %v14149_v16  ;;  %4854 = vmatpush1.bf16.msra.mxu1 %v11248_v19  ;;  %v11265_v31 = vld [vmem:[%s16825_s3 + $0x564] ss:$8 sps:$4 sm:$0xff]  }
 0x821   : > { %v3761_v2 = vadd.f32 %v3725_v30, %v13708_v21  ;;  %v3729_v48 = vadd.f32 %v3728_v37, %v13967_v23  ;;  %v3730_v54 = vpop.f32.mrb[159].mxu0  ;;  %4855 = vmatprep.subr.bf16.mxu1 %v11253_v25  ;;  %v11260_v30 = vld [vmem:[%s16825_s3 + $0x550] ss:$8 sps:$4 sm:$0xff]   ;;  %v11268_v37 = vld [vmem:[%s16825_s3 + $0x574] ss:$8 sps:$4 sm:$0xff]  }
 0x822   : > { %v3762_v63 = vadd.f32 %v3727_v22, %v13711_v50  ;;  %v3731_v51 = vadd.f32 %v3730_v54, %v13970_v1  ;;  %4144 = vmatprep.mubr.bf16.mxu1 %v3843_v56  ;;  %v11239_v1 = vld [vmem:[%s16827_s5 + $0x4e0] ss:$8 sps:$4 sm:$0xff]   ;;  %v11266_v56 = vld [vmem:[%s16825_s3 + $0x570] ss:$8 sps:$4 sm:$0xff]   ;;  %v11274_v54 = vld [vmem:[%s16825_s3 + $0x594] ss:$8 sps:$4 sm:$0xff]  }
 0x823   : > { %v14174_v18 = vmax.f32 %v3761_v2, 0.0  ;;  %v3763_v13 = vadd.f32 %v3729_v48, %v13716_v33  ;;  %4145 = vmatmul.mubr.bf16.gmra.mrb[152].mxu1 %v3842_v3  ;;  %v11263_v22 = vld [vmem:[%s16825_s3 + $0x560] ss:$8 sps:$4 sm:$0xff]   ;;  %v11271_v2 = vld [vmem:[%s16825_s3 + $0x584] ss:$8 sps:$4 sm:$0xff]  }
 0x824   : > { %v14177_v61 = vmax.f32 %v3762_v63, 0.0  ;;  %v3764_v21 = vadd.f32 %v3731_v51, %v13720_v10  ;;  %v11241_v10 = vld [vmem:[%s16827_s5 + $0x4e4] ss:$8 sps:$4 sm:$0xff]   ;;  %4856 = vmatpush1.bf16.msra.mxu1 %v11251_v24  ;;  %v11269_v48 = vld [vmem:[%s16825_s3 + $0x580] ss:$8 sps:$4 sm:$0xff]  }
 0x825   : > { %9626 = vst [vmem:[%s12146_s20 + $0x4e0] sm:$0xff] %v14174_v18  ;;  %v14182_v23 = vmax.f32 %v3763_v13, 0.0  ;;  %4447 = vmatprep.subr.bf16.mxu0 %v11241_v10  ;;  %4857 = vmatprep.subr.bf16.mxu1 %v11256_v26  ;;  %v11272_v3 = vld [vmem:[%s16825_s3 + $0x590] ss:$8 sps:$4 sm:$0xff]   ;;  %v11277_v63 = vld [vmem:[%s16825_s3 + $0x5a4] ss:$8 sps:$4 sm:$0xff]  }
 0x826   : > { %9627 = vst [vmem:[%s12146_s20 + $0x4e8] sm:$0xff] %v14177_v61  ;;  %v14186_v39 = vmax.f32 %v3764_v21, 0.0  ;;  %4448 = vmatpush1.bf16.msra.mxu0 %v11239_v1  ;;  %v11275_v51 = vld [vmem:[%s16825_s3 + $0x5a0] ss:$8 sps:$4 sm:$0xff]   ;;  %v11280_v13 = vld [vmem:[%s16825_s3 + $0x5b4] ss:$8 sps:$4 sm:$0xff]  }
 0x827   : > { %9628 = vst [vmem:[%s12146_s20 + $0x4f0] sm:$0xff] %v14182_v23  ;;  %v3844_v33 = vpack.c.bf16 %v14182_v23, %v14174_v18  ;;  %4449 = vmatprep.subr.bf16.mxu0 %v11244_v8  ;;  %v11278_v21 = vld [vmem:[%s16825_s3 + $0x5b0] ss:$8 sps:$4 sm:$0xff]   ;;  %v9662_v10 = vld [vmem:[%s16826_s4 + $0x8] sm:$0x3] }
 0x828   : > { %9629 = vst [vmem:[%s12146_s20 + $0x4f8] sm:$0xff] %v14186_v39  ;;  %v3845_v50 = vpack.c.bf16 %v14186_v39, %v14177_v61  ;;  %4858 = vmatpush1.bf16.msra.mxu1 %v11254_v40  ;;  %v14290_v1 = vrot.slane %v9662_v10, %v12125_v28  ;;  %v14293_v8 = vrot.slane %v9662_v10, %v12127_v29 }
 0x829   : > { %4859 = vmatprep.subr.bf16.mxu1 %v11259_v27 }
 0x82a   : > { %4154 = vmatprep.mubr.bf16.mxu1 %v3845_v50  ;;  %4450 = vmatpush1.bf16.msra.mxu0 %v11242_v47  ;;  %v11283_v50 = vld [vmem:[%s16825_s3 + $0x5c4] ss:$8 sps:$4 sm:$0xff]  }
 0x82b   : > { %4155 = vmatmul.mubr.bf16.gmra.mrb[156].mxu1 %v3844_v33  ;;  %v11281_v33 = vld [vmem:[%s16825_s3 + $0x5c0] ss:$8 sps:$4 sm:$0xff]  }
 0x82c   : > { %4860 = vmatpush1.bf16.msra.mxu1 %v11257_v32 }
 0x82d   : > { %4861 = vmatprep.subr.bf16.mxu1 %v11262_v46 }
 0x830   : > { %4862 = vmatpush1.bf16.msra.mxu1 %v11260_v30 }
 0x831   : > { %4863 = vmatprep.subr.bf16.mxu1 %v11265_v31 }
 0x834   : > { %4864 = vmatpush1.bf16.msra.mxu1 %v11263_v22 }
 0x835   : > { %4865 = vmatprep.subr.bf16.mxu1 %v11268_v37 }
 0x838   : > { %4866 = vmatpush1.bf16.msra.mxu1 %v11266_v56 }
 0x839   : > { %4867 = vmatprep.subr.bf16.mxu1 %v11271_v2 }
 0x83c   : > { %4868 = vmatpush1.bf16.msra.mxu1 %v11269_v48 }
 0x83d   : > { %4869 = vmatprep.subr.bf16.mxu1 %v11274_v54 }
 0x840   : > { %4870 = vmatpush1.bf16.msra.mxu1 %v11272_v3 }
 0x841   : > { %4871 = vmatprep.subr.bf16.mxu1 %v11277_v63 }
 0x844   : > { %4872 = vmatpush1.bf16.msra.mxu1 %v11275_v51 }
 0x845   : > { %4873 = vmatprep.subr.bf16.mxu1 %v11280_v13 }
 0x848   : > { %4874 = vmatpush1.bf16.msra.mxu1 %v11278_v21 }
 0x849   : > { %4875 = vmatprep.subr.bf16.mxu1 %v11283_v50 }
 0x84c   : > { %4876 = vmatpush1.bf16.msra.mxu1 %v11281_v33 }
 0x8c6   : > { %v4086_v47 = vpop.f32.mrb[128].mxu1 }
 0x8c7   : > { %v4087_v11 = vadd.f32 %v4086_v47, %v14290_v1  ;;  %v4088_v6 = vpop.f32.mrb[129].mxu1 }
 0x8c8   : > { %v4089_v38 = vadd.f32 %v4088_v6, %v14293_v8  ;;  %v4090_v19 = vpop.f32.mrb[130].mxu1 }
 0x8c9   : > { %v4091_v25 = vadd.f32 %v4090_v19, %v14290_v1  ;;  %v4092_v24 = vpop.f32.mrb[131].mxu1  ;;  %v4165_v40 = vmax.f32 %v4087_v11, 0.0 }
 0x8ca   : > { %v4093_v26 = vadd.f32 %v4092_v24, %v14293_v8  ;;  %v4166_v32 = vmax.f32 %v4089_v38, 0.0 }
 0x8cb   : > { %v4167_v27 = vmax.f32 %v4091_v25, 0.0 }
 0x8cc   : > { %v4168_v46 = vmax.f32 %v4093_v26, 0.0 }
 0x8cd   : > { %v4197_v30 = vpack.c.bf16 %v4167_v27, %v4165_v40 }
 0x8ce   : > { %v4198_v31 = vpack.c.bf16 %v4168_v46, %v4166_v32  ;;  %v4096_v22 = vpop.f32.mrb[132].mxu1 }
 0x8cf   : > { %v4097_v37 = vadd.f32 %v4096_v22, %v14290_v1  ;;  %v4098_v56 = vpop.f32.mrb[133].mxu1 }
 0x8d0   : > { %v4099_v2 = vadd.f32 %v4098_v56, %v14293_v8  ;;  %v4100_v48 = vpop.f32.mrb[134].mxu1  ;;  %4451 = vmatprep.mubr.bf16.mxu0 %v4198_v31 }
 0x8d1   : > { %v4101_v54 = vadd.f32 %v4100_v48, %v14290_v1  ;;  %v4102_v3 = vpop.f32.mrb[135].mxu1  ;;  %4452 = vmatmul.mubr.bf16.vlgmr.msra.gmra.mrb[160].mxu0 %v4197_v30  ;;  %v4169_v51 = vmax.f32 %v4097_v37, 0.0 }
 0x8d2   : > { %v4103_v63 = vadd.f32 %v4102_v3, %v14293_v8  ;;  %v4170_v21 = vmax.f32 %v4099_v2, 0.0 }
 0x8d3   : > { %v4171_v13 = vmax.f32 %v4101_v54, 0.0 }
 0x8d4   : > { %v4172_v50 = vmax.f32 %v4103_v63, 0.0 }
 0x8d5   : > { %v4199_v33 = vpack.c.bf16 %v4171_v13, %v4169_v51 }
 0x8d6   : > { %v4200_v10 = vpack.c.bf16 %v4172_v50, %v4170_v21  ;;  %v4106_v47 = vpop.f32.mrb[136].mxu1 }
 0x8d7   : > { %v4107_v11 = vadd.f32 %v4106_v47, %v14290_v1  ;;  %v4108_v6 = vpop.f32.mrb[137].mxu1 }
 0x8d8   : > { %v4109_v38 = vadd.f32 %v4108_v6, %v14293_v8  ;;  %v4110_v19 = vpop.f32.mrb[138].mxu1  ;;  %4461 = vmatprep.mubr.bf16.mxu0 %v4200_v10 }
 0x8d9   : > { %v4111_v25 = vadd.f32 %v4110_v19, %v14290_v1  ;;  %v4112_v24 = vpop.f32.mrb[139].mxu1  ;;  %4462 = vmatmul.mubr.bf16.gmra.mrb[164].mxu0 %v4199_v33  ;;  %v4173_v40 = vmax.f32 %v4107_v11, 0.0 }
 0x8da   : > { %v4113_v26 = vadd.f32 %v4112_v24, %v14293_v8  ;;  %v4174_v32 = vmax.f32 %v4109_v38, 0.0 }
 0x8db   : > { %v4175_v27 = vmax.f32 %v4111_v25, 0.0 }
 0x8dc   : > { %v4176_v46 = vmax.f32 %v4113_v26, 0.0 }
 0x8dd   : > { %v4201_v30 = vpack.c.bf16 %v4175_v27, %v4173_v40 }
 0x8de   : > { %v4202_v31 = vpack.c.bf16 %v4176_v46, %v4174_v32  ;;  %v4116_v22 = vpop.f32.mrb[140].mxu1 }
 0x8df   : > { %v4117_v37 = vadd.f32 %v4116_v22, %v14290_v1  ;;  %v4118_v56 = vpop.f32.mrb[141].mxu1 }
 0x8e0   : > { %v4119_v2 = vadd.f32 %v4118_v56, %v14293_v8  ;;  %v4120_v48 = vpop.f32.mrb[142].mxu1  ;;  %4471 = vmatprep.mubr.bf16.mxu0 %v4202_v31 }
 0x8e1   : > { %v4121_v54 = vadd.f32 %v4120_v48, %v14290_v1  ;;  %v4122_v3 = vpop.f32.mrb[143].mxu1  ;;  %4472 = vmatmul.mubr.bf16.gmra.mrb[168].mxu0 %v4201_v30  ;;  %v4177_v51 = vmax.f32 %v4117_v37, 0.0 }
 0x8e2   : > { %v4123_v63 = vadd.f32 %v4122_v3, %v14293_v8  ;;  %v4178_v21 = vmax.f32 %v4119_v2, 0.0 }
 0x8e3   : > { %v4179_v13 = vmax.f32 %v4121_v54, 0.0 }
 0x8e4   : > { %v4180_v50 = vmax.f32 %v4123_v63, 0.0 }
 0x8e5   : > { %v4203_v33 = vpack.c.bf16 %v4179_v13, %v4177_v51 }
 0x8e6   : > { %v4204_v10 = vpack.c.bf16 %v4180_v50, %v4178_v21  ;;  %v4126_v47 = vpop.f32.mrb[144].mxu1 }
 0x8e7   : > { %v4127_v11 = vadd.f32 %v4126_v47, %v14290_v1  ;;  %v4128_v6 = vpop.f32.mrb[145].mxu1 }
 0x8e8   : > { %v4129_v38 = vadd.f32 %v4128_v6, %v14293_v8  ;;  %v4130_v19 = vpop.f32.mrb[146].mxu1  ;;  %4481 = vmatprep.mubr.bf16.mxu0 %v4204_v10 }
 0x8e9   : > { %v4131_v25 = vadd.f32 %v4130_v19, %v14290_v1  ;;  %v4132_v24 = vpop.f32.mrb[147].mxu1  ;;  %4482 = vmatmul.mubr.bf16.gmra.mrb[172].mxu0 %v4203_v33  ;;  %v4181_v40 = vmax.f32 %v4127_v11, 0.0 }
 0x8ea   : > { %v4133_v26 = vadd.f32 %v4132_v24, %v14293_v8  ;;  %v4182_v32 = vmax.f32 %v4129_v38, 0.0 }
 0x8eb   : > { %v4183_v27 = vmax.f32 %v4131_v25, 0.0 }
 0x8ec   : > { %v4184_v46 = vmax.f32 %v4133_v26, 0.0 }
 0x8ed   : > { %v4205_v30 = vpack.c.bf16 %v4183_v27, %v4181_v40 }
 0x8ee   : > { %v4206_v31 = vpack.c.bf16 %v4184_v46, %v4182_v32  ;;  %v4136_v22 = vpop.f32.mrb[148].mxu1 }
 0x8ef   : > { %v4137_v37 = vadd.f32 %v4136_v22, %v14290_v1  ;;  %v4138_v56 = vpop.f32.mrb[149].mxu1 }
 0x8f0   : > { %v4139_v2 = vadd.f32 %v4138_v56, %v14293_v8  ;;  %v4140_v48 = vpop.f32.mrb[150].mxu1  ;;  %4491 = vmatprep.mubr.bf16.mxu0 %v4206_v31 }
 0x8f1   : > { %v4141_v54 = vadd.f32 %v4140_v48, %v14290_v1  ;;  %v4142_v3 = vpop.f32.mrb[151].mxu1  ;;  %4492 = vmatmul.mubr.bf16.gmra.mrb[176].mxu0 %v4205_v30  ;;  %v4185_v51 = vmax.f32 %v4137_v37, 0.0 }
 0x8f2   : > { %v4143_v63 = vadd.f32 %v4142_v3, %v14293_v8  ;;  %v4186_v21 = vmax.f32 %v4139_v2, 0.0 }
 0x8f3   : > { %v4187_v13 = vmax.f32 %v4141_v54, 0.0 }
 0x8f4   : > { %v4188_v50 = vmax.f32 %v4143_v63, 0.0 }
 0x8f5   : > { %v4207_v33 = vpack.c.bf16 %v4187_v13, %v4185_v51 }
 0x8f6   : > { %v4208_v10 = vpack.c.bf16 %v4188_v50, %v4186_v21  ;;  %v4146_v47 = vpop.f32.mrb[152].mxu1 }
 0x8f7   : > { %v4147_v11 = vadd.f32 %v4146_v47, %v14290_v1  ;;  %v4148_v6 = vpop.f32.mrb[153].mxu1  ;;  %v11286_v47 = vld [vmem:[%s16825_s3 + $0x5d4] ss:$8 sps:$4 sm:$0xff]  }
 0x8f8   : > { %v4149_v38 = vadd.f32 %v4148_v6, %v14293_v8  ;;  %v4150_v19 = vpop.f32.mrb[154].mxu1  ;;  %4501 = vmatprep.mubr.bf16.mxu0 %v4208_v10  ;;  %4877 = vmatprep.subr.bf16.mxu1 %v11286_v47  ;;  %v11292_v6 = vld [vmem:[%s16825_s3 + $0x5f4] ss:$8 sps:$4 sm:$0xff]   ;;  %v11331_v47 = vld [vmem:[%s16827_s5 + $0x5c4] ss:$8 sps:$4 sm:$0xff]  }
 0x8f9   : > { %v4151_v25 = vadd.f32 %v4150_v19, %v14290_v1  ;;  %v4152_v24 = vpop.f32.mrb[155].mxu1  ;;  %4502 = vmatmul.mubr.bf16.gmra.mrb[180].mxu0 %v4207_v33  ;;  %v4189_v40 = vmax.f32 %v4147_v11, 0.0  ;;  %v11287_v11 = vld [vmem:[%s16825_s3 + $0x5e0] ss:$8 sps:$4 sm:$0xff]  }
 0x8fa   : > { %v4153_v26 = vadd.f32 %v4152_v24, %v14293_v8  ;;  %v4190_v32 = vmax.f32 %v4149_v38, 0.0  ;;  %v11290_v38 = vld [vmem:[%s16825_s3 + $0x5f0] ss:$8 sps:$4 sm:$0xff]   ;;  %v11293_v19 = vld [vmem:[%s16827_s5 + $0x500] ss:$8 sps:$4 sm:$0xff]  }
 0x8fb   : > { %v4191_v27 = vmax.f32 %v4151_v25, 0.0  ;;  %v11295_v25 = vld [vmem:[%s16827_s5 + $0x504] ss:$8 sps:$4 sm:$0xff]   ;;  %v11298_v24 = vld [vmem:[%s16827_s5 + $0x514] ss:$8 sps:$4 sm:$0xff]  }
 0x8fc   : > { %v4192_v46 = vmax.f32 %v4153_v26, 0.0  ;;  %5218 = vmatprep.subr.bf16.mxu0 %v11295_v25  ;;  %v11296_v26 = vld [vmem:[%s16827_s5 + $0x510] ss:$8 sps:$4 sm:$0xff]  }
 0x8fd   : > { %v4209_v30 = vpack.c.bf16 %v4191_v27, %v4189_v40  ;;  %5219 = vmatpush1.bf16.msra.mxu0 %v11293_v19  ;;  %v11301_v40 = vld [vmem:[%s16827_s5 + $0x524] ss:$8 sps:$4 sm:$0xff]   ;;  %v11299_v27 = vld [vmem:[%s16827_s5 + $0x520] ss:$8 sps:$4 sm:$0xff]  }
 0x8fe   : > { %v4210_v31 = vpack.c.bf16 %v4192_v46, %v4190_v32  ;;  %v4156_v22 = vpop.f32.mrb[156].mxu1  ;;  %5220 = vmatprep.subr.bf16.mxu0 %v11298_v24  ;;  %v11304_v32 = vld [vmem:[%s16827_s5 + $0x534] ss:$8 sps:$4 sm:$0xff]   ;;  %v11302_v46 = vld [vmem:[%s16827_s5 + $0x530] ss:$8 sps:$4 sm:$0xff]  }
 0x8ff   : > { %v4157_v37 = vadd.f32 %v4156_v22, %v14290_v1  ;;  %v4158_v56 = vpop.f32.mrb[157].mxu1  ;;  %v11310_v22 = vld [vmem:[%s16827_s5 + $0x554] ss:$8 sps:$4 sm:$0xff]  }
 0x900   : > { %v4159_v2 = vadd.f32 %v4158_v56, %v14293_v8  ;;  %v4160_v48 = vpop.f32.mrb[158].mxu1  ;;  %4511 = vmatprep.mubr.bf16.mxu0 %v4210_v31  ;;  %v11305_v31 = vld [vmem:[%s16827_s5 + $0x540] ss:$8 sps:$4 sm:$0xff]   ;;  %v11313_v56 = vld [vmem:[%s16827_s5 + $0x564] ss:$8 sps:$4 sm:$0xff]  }
 0x901   : > { %v4161_v54 = vadd.f32 %v4160_v48, %v14290_v1  ;;  %v4162_v3 = vpop.f32.mrb[159].mxu1  ;;  %4512 = vmatmul.mubr.bf16.gmra.mrb[184].mxu0 %v4209_v30  ;;  %v4193_v51 = vmax.f32 %v4157_v37, 0.0  ;;  %v11284_v1 = vld [vmem:[%s16825_s3 + $0x5d0] ss:$8 sps:$4 sm:$0xff]   ;;  %v11307_v30 = vld [vmem:[%s16827_s5 + $0x544] ss:$8 sps:$4 sm:$0xff]  }
 0x902   : > { %v4163_v63 = vadd.f32 %v4162_v3, %v14293_v8  ;;  %v4194_v21 = vmax.f32 %v4159_v2, 0.0  ;;  %4878 = vmatpush1.bf16.msra.mxu1 %v11284_v1  ;;  %v11289_v8 = vld [vmem:[%s16825_s3 + $0x5e4] ss:$8 sps:$4 sm:$0xff]   ;;  %5221 = vmatpush1.bf16.msra.mxu0 %v11296_v26  ;;  %v11308_v37 = vld [vmem:[%s16827_s5 + $0x550] ss:$8 sps:$4 sm:$0xff]  }
 0x903   : > { %v4195_v13 = vmax.f32 %v4161_v54, 0.0  ;;  %4879 = vmatprep.subr.bf16.mxu1 %v11289_v8  ;;  %5222 = vmatprep.subr.bf16.mxu0 %v11301_v40  ;;  %v11311_v2 = vld [vmem:[%s16827_s5 + $0x560] ss:$8 sps:$4 sm:$0xff]   ;;  %v11316_v48 = vld [vmem:[%s16827_s5 + $0x574] ss:$8 sps:$4 sm:$0xff]  }
 0x904   : > { %v4196_v50 = vmax.f32 %v4163_v63, 0.0  ;;  %v11314_v54 = vld [vmem:[%s16827_s5 + $0x570] ss:$8 sps:$4 sm:$0xff]   ;;  %v11319_v3 = vld [vmem:[%s16827_s5 + $0x584] ss:$8 sps:$4 sm:$0xff]  }
 0x905   : > { %v4211_v33 = vpack.c.bf16 %v4195_v13, %v4193_v51  ;;  %v11317_v63 = vld [vmem:[%s16827_s5 + $0x580] ss:$8 sps:$4 sm:$0xff]   ;;  %v11322_v51 = vld [vmem:[%s16827_s5 + $0x594] ss:$8 sps:$4 sm:$0xff]   ;;  %v11320_v13 = vld [vmem:[%s16827_s5 + $0x590] ss:$8 sps:$4 sm:$0xff]  }
 0x906   : > { %v4212_v10 = vpack.c.bf16 %v4196_v50, %v4194_v21  ;;  %4880 = vmatpush1.bf16.msra.mxu1 %v11287_v11  ;;  %5223 = vmatpush1.bf16.msra.mxu0 %v11299_v27  ;;  %v11325_v21 = vld [vmem:[%s16827_s5 + $0x5a4] ss:$8 sps:$4 sm:$0xff]   ;;  %v11323_v50 = vld [vmem:[%s16827_s5 + $0x5a0] ss:$8 sps:$4 sm:$0xff]   ;;  %v11334_v8 = vld [vmem:[%s16827_s5 + $0x5d4] ss:$8 sps:$4 sm:$0xff]  }
 0x907   : > { %4881 = vmatprep.subr.bf16.mxu1 %v11292_v6  ;;  %5224 = vmatprep.subr.bf16.mxu0 %v11304_v32  ;;  %v11329_v1 = vld [vmem:[%s16827_s5 + $0x5c0] ss:$8 sps:$4 sm:$0xff]   ;;  %v11332_v11 = vld [vmem:[%s16827_s5 + $0x5d0] ss:$8 sps:$4 sm:$0xff]  }
 0x908   : > { %4521 = vmatprep.mubr.bf16.mxu0 %v4212_v10  ;;  %v11326_v10 = vld [vmem:[%s16827_s5 + $0x5b0] ss:$8 sps:$4 sm:$0xff]   ;;  %v9727_v6 = vld [vmem:[%s16828_s6 + $0x8] sm:$0x3] }
 0x909   : > { %4522 = vmatmul.mubr.bf16.gmra.mrb[188].mxu0 %v4211_v33  ;;  %v11328_v33 = vld [vmem:[%s16827_s5 + $0x5b4] ss:$8 sps:$4 sm:$0xff]   ;;  %v14436_v19 = vrot.slane %v9727_v6, %v12127_v29 }
 0x90a   : > { %4882 = vmatpush1.bf16.msra.mxu1 %v11290_v38  ;;  %5225 = vmatpush1.bf16.msra.mxu0 %v11302_v46  ;;  %v14433_v38 = vrot.slane %v9727_v6, %v12125_v28 }
 0x90b   : > { %5226 = vmatprep.subr.bf16.mxu0 %v11307_v30 }
 0x90e   : > { %5227 = vmatpush1.bf16.msra.mxu0 %v11305_v31 }
 0x90f   : > { %5228 = vmatprep.subr.bf16.mxu0 %v11310_v22 }
 0x912   : > { %5229 = vmatpush1.bf16.msra.mxu0 %v11308_v37 }
 0x913   : > { %5230 = vmatprep.subr.bf16.mxu0 %v11313_v56 }
 0x916   : > { %5231 = vmatpush1.bf16.msra.mxu0 %v11311_v2 }
 0x917   : > { %5232 = vmatprep.subr.bf16.mxu0 %v11316_v48 }
 0x91a   : > { %5233 = vmatpush1.bf16.msra.mxu0 %v11314_v54 }
 0x91b   : > { %5234 = vmatprep.subr.bf16.mxu0 %v11319_v3 }
 0x91e   : > { %5235 = vmatpush1.bf16.msra.mxu0 %v11317_v63 }
 0x91f   : > { %5236 = vmatprep.subr.bf16.mxu0 %v11322_v51 }
 0x922   : > { %5237 = vmatpush1.bf16.msra.mxu0 %v11320_v13 }
 0x923   : > { %5238 = vmatprep.subr.bf16.mxu0 %v11325_v21 }
 0x926   : > { %5239 = vmatpush1.bf16.msra.mxu0 %v11323_v50 }
 0x927   : > { %5240 = vmatprep.subr.bf16.mxu0 %v11328_v33 }
 0x92a   : > { %5241 = vmatpush1.bf16.msra.mxu0 %v11326_v10 }
 0x92b   : > { %5242 = vmatprep.subr.bf16.mxu0 %v11331_v47 }
 0x92e   : > { %5243 = vmatpush1.bf16.msra.mxu0 %v11329_v1 }
 0x92f   : > { %5244 = vmatprep.subr.bf16.mxu0 %v11334_v8 }
 0x932   : > { %5245 = vmatpush1.bf16.msra.mxu0 %v11332_v11 }
 0x9a4   : > { %v4453_v25 = vpop.f32.mrb[160].mxu0 }
 0x9a5   : > { %v4454_v24 = vadd.f32 %v4453_v25, %v14433_v38  ;;  %v4455_v26 = vpop.f32.mrb[161].mxu0 }
 0x9a6   : > { %v4456_v40 = vadd.f32 %v4455_v26, %v14436_v19  ;;  %v4457_v27 = vpop.f32.mrb[162].mxu0 }
 0x9a7   : > { %v4532_v32 = vadd.f32 %v4454_v24, %v13978_v43  ;;  %v4458_v46 = vadd.f32 %v4457_v27, %v14433_v38  ;;  %v4459_v30 = vpop.f32.mrb[163].mxu0 }
 0x9a8   : > { %v4533_v31 = vadd.f32 %v4456_v40, %v13981_v53  ;;  %v4460_v22 = vadd.f32 %v4459_v30, %v14436_v19 }
 0x9a9   : > { %v14444_v37 = vmax.f32 %v4532_v32, 0.0  ;;  %v4534_v56 = vadd.f32 %v4458_v46, %v13986_v57 }
 0x9aa   : > { %v14447_v2 = vmax.f32 %v4533_v31, 0.0  ;;  %v4535_v48 = vadd.f32 %v4460_v22, %v13990_v12 }
 0x9ab   : > { %9760 = vst [vmem:[%s12146_s20 + $0x500] sm:$0xff] %v14444_v37  ;;  %v14452_v54 = vmax.f32 %v4534_v56, 0.0 }
 0x9ac   : > { %9761 = vst [vmem:[%s12146_s20 + $0x508] sm:$0xff] %v14447_v2  ;;  %v14456_v43 = vmax.f32 %v4535_v48, 0.0  ;;  %v4463_v3 = vpop.f32.mrb[164].mxu0 }
 0x9ad   : > { %9762 = vst [vmem:[%s12146_s20 + $0x510] sm:$0xff] %v14452_v54  ;;  %v4464_v53 = vadd.f32 %v4463_v3, %v14433_v38  ;;  %v4465_v63 = vpop.f32.mrb[165].mxu0  ;;  %v4629_v13 = vpack.c.bf16 %v14452_v54, %v14444_v37 }
 0x9ae   : > { %9763 = vst [vmem:[%s12146_s20 + $0x518] sm:$0xff] %v14456_v43  ;;  %v4466_v57 = vadd.f32 %v4465_v63, %v14436_v19  ;;  %v4467_v12 = vpop.f32.mrb[166].mxu0  ;;  %v4630_v51 = vpack.c.bf16 %v14456_v43, %v14447_v2 }
 0x9af   : > { %v4536_v21 = vadd.f32 %v4464_v53, %v14006_v9  ;;  %v4468_v50 = vadd.f32 %v4467_v12, %v14433_v38  ;;  %v4469_v33 = vpop.f32.mrb[167].mxu0 }
 0x9b0   : > { %v4537_v10 = vadd.f32 %v4466_v57, %v14009_v0  ;;  %v4470_v47 = vadd.f32 %v4469_v33, %v14436_v19  ;;  %4883 = vmatprep.mubr.bf16.mxu1 %v4630_v51 }
 0x9b1   : > { %v14472_v1 = vmax.f32 %v4536_v21, 0.0  ;;  %v4538_v8 = vadd.f32 %v4468_v50, %v14014_v5  ;;  %4884 = vmatmul.mubr.bf16.vlgmr.msra.gmra.mrb[160].mxu1 %v4629_v13 }
 0x9b2   : > { %v14475_v11 = vmax.f32 %v4537_v10, 0.0  ;;  %v4539_v6 = vadd.f32 %v4470_v47, %v14018_v58 }
 0x9b3   : > { %9764 = vst [vmem:[%s12146_s20 + $0x520] sm:$0xff] %v14472_v1  ;;  %v14480_v9 = vmax.f32 %v4538_v8, 0.0 }
 0x9b4   : > { %9765 = vst [vmem:[%s12146_s20 + $0x528] sm:$0xff] %v14475_v11  ;;  %v14484_v0 = vmax.f32 %v4539_v6, 0.0  ;;  %v4473_v25 = vpop.f32.mrb[168].mxu0 }
 0x9b5   : > { %9766 = vst [vmem:[%s12146_s20 + $0x530] sm:$0xff] %v14480_v9  ;;  %v4474_v24 = vadd.f32 %v4473_v25, %v14433_v38  ;;  %v4475_v26 = vpop.f32.mrb[169].mxu0  ;;  %v4631_v30 = vpack.c.bf16 %v14480_v9, %v14472_v1 }
 0x9b6   : > { %9767 = vst [vmem:[%s12146_s20 + $0x538] sm:$0xff] %v14484_v0  ;;  %v4476_v5 = vadd.f32 %v4475_v26, %v14436_v19  ;;  %v4477_v58 = vpop.f32.mrb[170].mxu0  ;;  %v4632_v40 = vpack.c.bf16 %v14484_v0, %v14475_v11 }
 0x9b7   : > { %v4540_v27 = vadd.f32 %v4474_v24, %v14034_v60  ;;  %v4478_v32 = vadd.f32 %v4477_v58, %v14433_v38  ;;  %v4479_v46 = vpop.f32.mrb[171].mxu0 }
 0x9b8   : > { %v4541_v31 = vadd.f32 %v4476_v5, %v14037_v55  ;;  %v4480_v22 = vadd.f32 %v4479_v46, %v14436_v19  ;;  %4893 = vmatprep.mubr.bf16.mxu1 %v4632_v40 }
 0x9b9   : > { %v14500_v56 = vmax.f32 %v4540_v27, 0.0  ;;  %v4542_v48 = vadd.f32 %v4478_v32, %v14042_v52  ;;  %4894 = vmatmul.mubr.bf16.gmra.mrb[164].mxu1 %v4631_v30 }
 0x9ba   : > { %v14503_v3 = vmax.f32 %v4541_v31, 0.0  ;;  %v4543_v60 = vadd.f32 %v4480_v22, %v14046_v44 }
 0x9bb   : > { %9768 = vst [vmem:[%s12146_s20 + $0x540] sm:$0xff] %v14500_v56  ;;  %v14508_v53 = vmax.f32 %v4542_v48, 0.0 }
 0x9bc   : > { %9769 = vst [vmem:[%s12146_s20 + $0x548] sm:$0xff] %v14503_v3  ;;  %v14512_v55 = vmax.f32 %v4543_v60, 0.0  ;;  %v4483_v63 = vpop.f32.mrb[172].mxu0 }
 0x9bd   : > { %9770 = vst [vmem:[%s12146_s20 + $0x550] sm:$0xff] %v14508_v53  ;;  %v4484_v57 = vadd.f32 %v4483_v63, %v14433_v38  ;;  %v4485_v12 = vpop.f32.mrb[173].mxu0  ;;  %v4633_v33 = vpack.c.bf16 %v14508_v53, %v14500_v56 }
 0x9be   : > { %9771 = vst [vmem:[%s12146_s20 + $0x558] sm:$0xff] %v14512_v55  ;;  %v4486_v52 = vadd.f32 %v4485_v12, %v14436_v19  ;;  %v4487_v44 = vpop.f32.mrb[174].mxu0  ;;  %v4634_v51 = vpack.c.bf16 %v14512_v55, %v14503_v3 }
 0x9bf   : > { %v4544_v13 = vadd.f32 %v4484_v57, %v14062_v62  ;;  %v4488_v21 = vadd.f32 %v4487_v44, %v14433_v38  ;;  %v4489_v50 = vpop.f32.mrb[175].mxu0 }
 0x9c0   : > { %v4545_v10 = vadd.f32 %v4486_v52, %v14065_v4  ;;  %v4490_v47 = vadd.f32 %v4489_v50, %v14436_v19  ;;  %4903 = vmatprep.mubr.bf16.mxu1 %v4634_v51 }
 0x9c1   : > { %v14528_v8 = vmax.f32 %v4544_v13, 0.0  ;;  %v4546_v6 = vadd.f32 %v4488_v21, %v14070_v42  ;;  %4904 = vmatmul.mubr.bf16.gmra.mrb[168].mxu1 %v4633_v33 }
 0x9c2   : > { %v14531_v25 = vmax.f32 %v4545_v10, 0.0  ;;  %v4547_v62 = vadd.f32 %v4490_v47, %v14074_v7 }
 0x9c3   : > { %9772 = vst [vmem:[%s12146_s20 + $0x560] sm:$0xff] %v14528_v8  ;;  %v14536_v24 = vmax.f32 %v4546_v6, 0.0 }
 0x9c4   : > { %9773 = vst [vmem:[%s12146_s20 + $0x568] sm:$0xff] %v14531_v25  ;;  %v14540_v4 = vmax.f32 %v4547_v62, 0.0  ;;  %v4493_v26 = vpop.f32.mrb[176].mxu0 }
 0x9c5   : > { %9774 = vst [vmem:[%s12146_s20 + $0x570] sm:$0xff] %v14536_v24  ;;  %v4494_v5 = vadd.f32 %v4493_v26, %v14433_v38  ;;  %v4495_v58 = vpop.f32.mrb[177].mxu0  ;;  %v4635_v30 = vpack.c.bf16 %v14536_v24, %v14528_v8 }
 0x9c6   : > { %9775 = vst [vmem:[%s12146_s20 + $0x578] sm:$0xff] %v14540_v4  ;;  %v4496_v42 = vadd.f32 %v4495_v58, %v14436_v19  ;;  %v4497_v7 = vpop.f32.mrb[178].mxu0  ;;  %v4636_v40 = vpack.c.bf16 %v14540_v4, %v14531_v25 }
 0x9c7   : > { %v4548_v27 = vadd.f32 %v4494_v5, %v14090_v15  ;;  %v4498_v32 = vadd.f32 %v4497_v7, %v14433_v38  ;;  %v4499_v46 = vpop.f32.mrb[179].mxu0 }
 0x9c8   : > { %v4549_v31 = vadd.f32 %v4496_v42, %v14093_v20  ;;  %v4500_v22 = vadd.f32 %v4499_v46, %v14436_v19  ;;  %4913 = vmatprep.mubr.bf16.mxu1 %v4636_v40 }
 0x9c9   : > { %v14556_v48 = vmax.f32 %v4548_v27, 0.0  ;;  %v4550_v60 = vadd.f32 %v4498_v32, %v14098_v35  ;;  %4914 = vmatmul.mubr.bf16.gmra.mrb[172].mxu1 %v4635_v30 }
 0x9ca   : > { %v14559_v63 = vmax.f32 %v4549_v31, 0.0  ;;  %v4551_v15 = vadd.f32 %v4500_v22, %v14102_v45 }
 0x9cb   : > { %9776 = vst [vmem:[%s12146_s20 + $0x580] sm:$0xff] %v14556_v48  ;;  %v14564_v57 = vmax.f32 %v4550_v60, 0.0 }
 0x9cc   : > { %9777 = vst [vmem:[%s12146_s20 + $0x588] sm:$0xff] %v14559_v63  ;;  %v14568_v20 = vmax.f32 %v4551_v15, 0.0  ;;  %v4503_v12 = vpop.f32.mrb[180].mxu0 }
 0x9cd   : > { %9778 = vst [vmem:[%s12146_s20 + $0x590] sm:$0xff] %v14564_v57  ;;  %v4504_v52 = vadd.f32 %v4503_v12, %v14433_v38  ;;  %v4505_v44 = vpop.f32.mrb[181].mxu0  ;;  %v4637_v33 = vpack.c.bf16 %v14564_v57, %v14556_v48 }
 0x9ce   : > { %9779 = vst [vmem:[%s12146_s20 + $0x598] sm:$0xff] %v14568_v20  ;;  %v4506_v35 = vadd.f32 %v4505_v44, %v14436_v19  ;;  %v4507_v45 = vpop.f32.mrb[182].mxu0  ;;  %v4638_v51 = vpack.c.bf16 %v14568_v20, %v14559_v63 }
 0x9cf   : > { %v4552_v13 = vadd.f32 %v4504_v52, %v14118_v14  ;;  %v4508_v21 = vadd.f32 %v4507_v45, %v14433_v38  ;;  %v4509_v50 = vpop.f32.mrb[183].mxu0 }
 0x9d0   : > { %v4553_v10 = vadd.f32 %v4506_v35, %v14121_v36  ;;  %v4510_v47 = vadd.f32 %v4509_v50, %v14436_v19  ;;  %4923 = vmatprep.mubr.bf16.mxu1 %v4638_v51 }
 0x9d1   : > { %v14584_v6 = vmax.f32 %v4552_v13, 0.0  ;;  %v4554_v62 = vadd.f32 %v4508_v21, %v14126_v59  ;;  %4924 = vmatmul.mubr.bf16.gmra.mrb[176].mxu1 %v4637_v33 }
 0x9d2   : > { %v14587_v26 = vmax.f32 %v4553_v10, 0.0  ;;  %v4555_v14 = vadd.f32 %v4510_v47, %v14130_v41 }
 0x9d3   : > { %9780 = vst [vmem:[%s12146_s20 + $0x5a0] sm:$0xff] %v14584_v6  ;;  %v14592_v5 = vmax.f32 %v4554_v62, 0.0 }
 0x9d4   : > { %9781 = vst [vmem:[%s12146_s20 + $0x5a8] sm:$0xff] %v14587_v26  ;;  %v14596_v36 = vmax.f32 %v4555_v14, 0.0  ;;  %v4513_v58 = vpop.f32.mrb[184].mxu0 }
 0x9d5   : > { %9782 = vst [vmem:[%s12146_s20 + $0x5b0] sm:$0xff] %v14592_v5  ;;  %v4514_v42 = vadd.f32 %v4513_v58, %v14433_v38  ;;  %v4515_v7 = vpop.f32.mrb[185].mxu0  ;;  %v4639_v30 = vpack.c.bf16 %v14592_v5, %v14584_v6 }
 0x9d6   : > { %9783 = vst [vmem:[%s12146_s20 + $0x5b8] sm:$0xff] %v14596_v36  ;;  %v4516_v59 = vadd.f32 %v4515_v7, %v14436_v19  ;;  %v4517_v41 = vpop.f32.mrb[186].mxu0  ;;  %v4640_v40 = vpack.c.bf16 %v14596_v36, %v14587_v26  ;;  %v11340_v7 = vld [vmem:[%s16827_s5 + $0x5f4] ss:$8 sps:$4 sm:$0xff]  }
 0x9d7   : > { %v4556_v27 = vadd.f32 %v4514_v42, %v14146_v49  ;;  %v4518_v32 = vadd.f32 %v4517_v41, %v14433_v38  ;;  %v4519_v46 = vpop.f32.mrb[187].mxu0  ;;  %v11341_v41 = vld [vmem:[%s16825_s3 + $0x600] ss:$8 sps:$4 sm:$0xff]  }
 0x9d8   : > { %v4557_v31 = vadd.f32 %v4516_v59, %v14149_v16  ;;  %v4520_v22 = vadd.f32 %v4519_v46, %v14436_v19  ;;  %4933 = vmatprep.mubr.bf16.mxu1 %v4640_v40  ;;  %v11338_v59 = vld [vmem:[%s16827_s5 + $0x5f0] ss:$8 sps:$4 sm:$0xff]   ;;  %v11343_v40 = vld [vmem:[%s16825_s3 + $0x604] ss:$8 sps:$4 sm:$0xff]  }
 0x9d9   : > { %v14612_v60 = vmax.f32 %v4556_v27, 0.0  ;;  %v4558_v15 = vadd.f32 %v4518_v32, %v14154_v34  ;;  %4934 = vmatmul.mubr.bf16.gmra.mrb[180].mxu1 %v4639_v30  ;;  %v11346_v27 = vld [vmem:[%s16825_s3 + $0x614] ss:$8 sps:$4 sm:$0xff]   ;;  %5650 = vmatprep.subr.bf16.mxu1 %v11343_v40  ;;  %v11344_v32 = vld [vmem:[%s16825_s3 + $0x610] ss:$8 sps:$4 sm:$0xff]  }
 0x9da   : > { %v14615_v12 = vmax.f32 %v4557_v31, 0.0  ;;  %v4559_v49 = vadd.f32 %v4520_v22, %v14158_v17  ;;  %5651 = vmatpush1.bf16.msra.mxu1 %v11341_v41  ;;  %v11349_v46 = vld [vmem:[%s16825_s3 + $0x624] ss:$8 sps:$4 sm:$0xff]   ;;  %v11347_v30 = vld [vmem:[%s16825_s3 + $0x620] ss:$8 sps:$4 sm:$0xff]  }
 0x9db   : > { %9784 = vst [vmem:[%s12146_s20 + $0x5c0] sm:$0xff] %v14612_v60  ;;  %v14620_v52 = vmax.f32 %v4558_v15, 0.0  ;;  %5652 = vmatprep.subr.bf16.mxu1 %v11346_v27  ;;  %v11352_v31 = vld [vmem:[%s16825_s3 + $0x634] ss:$8 sps:$4 sm:$0xff]   ;;  %v11350_v22 = vld [vmem:[%s16825_s3 + $0x630] ss:$8 sps:$4 sm:$0xff]  }
 0x9dc   : > { %9785 = vst [vmem:[%s12146_s20 + $0x5c8] sm:$0xff] %v14615_v12  ;;  %v14624_v16 = vmax.f32 %v4559_v49, 0.0  ;;  %v4523_v44 = vpop.f32.mrb[188].mxu0  ;;  %v11355_v15 = vld [vmem:[%s16825_s3 + $0x644] ss:$8 sps:$4 sm:$0xff]  }
 0x9dd   : > { %9786 = vst [vmem:[%s12146_s20 + $0x5d0] sm:$0xff] %v14620_v52  ;;  %v4524_v35 = vadd.f32 %v4523_v44, %v14433_v38  ;;  %v4525_v45 = vpop.f32.mrb[189].mxu0  ;;  %v4641_v33 = vpack.c.bf16 %v14620_v52, %v14612_v60  ;;  %v11353_v49 = vld [vmem:[%s16825_s3 + $0x640] ss:$8 sps:$4 sm:$0xff]   ;;  %v11358_v44 = vld [vmem:[%s16825_s3 + $0x654] ss:$8 sps:$4 sm:$0xff]  }
 0x9de   : > { %9787 = vst [vmem:[%s12146_s20 + $0x5d8] sm:$0xff] %v14624_v16  ;;  %v4526_v34 = vadd.f32 %v4525_v45, %v14436_v19  ;;  %v4527_v17 = vpop.f32.mrb[190].mxu0  ;;  %v4642_v51 = vpack.c.bf16 %v14624_v16, %v14615_v12  ;;  %5653 = vmatpush1.bf16.msra.mxu1 %v11344_v32  ;;  %v11361_v45 = vld [vmem:[%s16825_s3 + $0x664] ss:$8 sps:$4 sm:$0xff]  }
 0x9df   : > { %v4560_v13 = vadd.f32 %v4524_v35, %v14174_v18  ;;  %v4528_v21 = vadd.f32 %v4527_v17, %v14433_v38  ;;  %v4529_v50 = vpop.f32.mrb[191].mxu0  ;;  %5654 = vmatprep.subr.bf16.mxu1 %v11349_v46  ;;  %v11356_v35 = vld [vmem:[%s16825_s3 + $0x650] ss:$8 sps:$4 sm:$0xff]   ;;  %v11364_v17 = vld [vmem:[%s16825_s3 + $0x674] ss:$8 sps:$4 sm:$0xff]  }
 0x9e0   : > { %v4561_v10 = vadd.f32 %v4526_v34, %v14177_v61  ;;  %v4530_v47 = vadd.f32 %v4529_v50, %v14436_v19  ;;  %4943 = vmatprep.mubr.bf16.mxu1 %v4642_v51  ;;  %v11335_v19 = vld [vmem:[%s16827_s5 + $0x5e0] ss:$8 sps:$4 sm:$0xff]   ;;  %v11362_v51 = vld [vmem:[%s16825_s3 + $0x670] ss:$8 sps:$4 sm:$0xff]   ;;  %v11370_v50 = vld [vmem:[%s16825_s3 + $0x694] ss:$8 sps:$4 sm:$0xff]  }
 0x9e1   : > { %v14640_v62 = vmax.f32 %v4560_v13, 0.0  ;;  %v4562_v14 = vadd.f32 %v4528_v21, %v14182_v23  ;;  %4944 = vmatmul.mubr.bf16.gmra.mrb[184].mxu1 %v4641_v33  ;;  %v11359_v34 = vld [vmem:[%s16825_s3 + $0x660] ss:$8 sps:$4 sm:$0xff]   ;;  %v11367_v13 = vld [vmem:[%s16825_s3 + $0x684] ss:$8 sps:$4 sm:$0xff]  }
 0x9e2   : > { %v14643_v58 = vmax.f32 %v4561_v10, 0.0  ;;  %v4563_v18 = vadd.f32 %v4530_v47, %v14186_v39  ;;  %v11337_v39 = vld [vmem:[%s16827_s5 + $0x5e4] ss:$8 sps:$4 sm:$0xff]   ;;  %5655 = vmatpush1.bf16.msra.mxu1 %v11347_v30  ;;  %v11365_v21 = vld [vmem:[%s16825_s3 + $0x680] ss:$8 sps:$4 sm:$0xff]  }
 0x9e3   : > { %9788 = vst [vmem:[%s12146_s20 + $0x5e0] sm:$0xff] %v14640_v62  ;;  %v14648_v38 = vmax.f32 %v4562_v14, 0.0  ;;  %5246 = vmatprep.subr.bf16.mxu0 %v11337_v39  ;;  %5656 = vmatprep.subr.bf16.mxu1 %v11352_v31  ;;  %v11368_v33 = vld [vmem:[%s16825_s3 + $0x690] ss:$8 sps:$4 sm:$0xff]   ;;  %v11373_v10 = vld [vmem:[%s16825_s3 + $0x6a4] ss:$8 sps:$4 sm:$0xff]  }
 0x9e4   : > { %9789 = vst [vmem:[%s12146_s20 + $0x5e8] sm:$0xff] %v14643_v58  ;;  %v14652_v42 = vmax.f32 %v4563_v18, 0.0  ;;  %5247 = vmatpush1.bf16.msra.mxu0 %v11335_v19  ;;  %v11371_v47 = vld [vmem:[%s16825_s3 + $0x6a0] ss:$8 sps:$4 sm:$0xff]   ;;  %v11376_v14 = vld [vmem:[%s16825_s3 + $0x6b4] ss:$8 sps:$4 sm:$0xff]  }
 0x9e5   : > { %9790 = vst [vmem:[%s12146_s20 + $0x5f0] sm:$0xff] %v14648_v38  ;;  %v4643_v23 = vpack.c.bf16 %v14648_v38, %v14640_v62  ;;  %5248 = vmatprep.subr.bf16.mxu0 %v11340_v7  ;;  %v11374_v18 = vld [vmem:[%s16825_s3 + $0x6b0] ss:$8 sps:$4 sm:$0xff]   ;;  %v9824_v39 = vld [vmem:[%s16826_s4 + $0xa] sm:$0x3] }
 0x9e6   : > { %9791 = vst [vmem:[%s12146_s20 + $0x5f8] sm:$0xff] %v14652_v42  ;;  %v4644_v61 = vpack.c.bf16 %v14652_v42, %v14643_v58  ;;  %5657 = vmatpush1.bf16.msra.mxu1 %v11350_v22  ;;  %v14756_v19 = vrot.slane %v9824_v39, %v12125_v28  ;;  %v14759_v7 = vrot.slane %v9824_v39, %v12127_v29 }
 0x9e7   : > { %5658 = vmatprep.subr.bf16.mxu1 %v11355_v15 }
 0x9e8   : > { %4953 = vmatprep.mubr.bf16.mxu1 %v4644_v61  ;;  %5249 = vmatpush1.bf16.msra.mxu0 %v11338_v59  ;;  %v11379_v61 = vld [vmem:[%s16825_s3 + $0x6c4] ss:$8 sps:$4 sm:$0xff]  }
 0x9e9   : > { %4954 = vmatmul.mubr.bf16.gmra.mrb[188].mxu1 %v4643_v23  ;;  %v11377_v23 = vld [vmem:[%s16825_s3 + $0x6c0] ss:$8 sps:$4 sm:$0xff]  }
 0x9ea   : > { %5659 = vmatpush1.bf16.msra.mxu1 %v11353_v49 }
 0x9eb   : > { %5660 = vmatprep.subr.bf16.mxu1 %v11358_v44 }
 0x9ee   : > { %5661 = vmatpush1.bf16.msra.mxu1 %v11356_v35 }
 0x9ef   : > { %5662 = vmatprep.subr.bf16.mxu1 %v11361_v45 }
 0x9f2   : > { %5663 = vmatpush1.bf16.msra.mxu1 %v11359_v34 }
 0x9f3   : > { %5664 = vmatprep.subr.bf16.mxu1 %v11364_v17 }
 0x9f6   : > { %5665 = vmatpush1.bf16.msra.mxu1 %v11362_v51 }
 0x9f7   : > { %5666 = vmatprep.subr.bf16.mxu1 %v11367_v13 }
 0x9fa   : > { %5667 = vmatpush1.bf16.msra.mxu1 %v11365_v21 }
 0x9fb   : > { %5668 = vmatprep.subr.bf16.mxu1 %v11370_v50 }
 0x9fe   : > { %5669 = vmatpush1.bf16.msra.mxu1 %v11368_v33 }
 0x9ff   : > { %5670 = vmatprep.subr.bf16.mxu1 %v11373_v10 }
 0xa02   : > { %5671 = vmatpush1.bf16.msra.mxu1 %v11371_v47 }
 0xa03   : > { %5672 = vmatprep.subr.bf16.mxu1 %v11376_v14 }
 0xa06   : > { %5673 = vmatpush1.bf16.msra.mxu1 %v11374_v18 }
 0xa07   : > { %5674 = vmatprep.subr.bf16.mxu1 %v11379_v61 }
 0xa0a   : > { %5675 = vmatpush1.bf16.msra.mxu1 %v11377_v23 }
 0xa84   : > { %v4885_v59 = vpop.f32.mrb[160].mxu1 }
 0xa85   : > { %v4886_v41 = vadd.f32 %v4885_v59, %v14756_v19  ;;  %v4887_v40 = vpop.f32.mrb[161].mxu1 }
 0xa86   : > { %v4888_v27 = vadd.f32 %v4887_v40, %v14759_v7  ;;  %v4889_v32 = vpop.f32.mrb[162].mxu1 }
 0xa87   : > { %v4890_v46 = vadd.f32 %v4889_v32, %v14756_v19  ;;  %v4891_v30 = vpop.f32.mrb[163].mxu1  ;;  %v4964_v22 = vmax.f32 %v4886_v41, 0.0 }
 0xa88   : > { %v4892_v31 = vadd.f32 %v4891_v30, %v14759_v7  ;;  %v4965_v49 = vmax.f32 %v4888_v27, 0.0 }
 0xa89   : > { %v4966_v15 = vmax.f32 %v4890_v46, 0.0 }
 0xa8a   : > { %v4967_v44 = vmax.f32 %v4892_v31, 0.0 }
 0xa8b   : > { %v4996_v35 = vpack.c.bf16 %v4966_v15, %v4964_v22 }
 0xa8c   : > { %v4997_v45 = vpack.c.bf16 %v4967_v44, %v4965_v49  ;;  %v4895_v34 = vpop.f32.mrb[164].mxu1 }
 0xa8d   : > { %v4896_v17 = vadd.f32 %v4895_v34, %v14756_v19  ;;  %v4897_v51 = vpop.f32.mrb[165].mxu1 }
 0xa8e   : > { %v4898_v13 = vadd.f32 %v4897_v51, %v14759_v7  ;;  %v4899_v21 = vpop.f32.mrb[166].mxu1  ;;  %5250 = vmatprep.mubr.bf16.mxu0 %v4997_v45 }
 0xa8f   : > { %v4900_v50 = vadd.f32 %v4899_v21, %v14756_v19  ;;  %v4901_v33 = vpop.f32.mrb[167].mxu1  ;;  %5251 = vmatmul.mubr.bf16.vlgmr.msra.gmra.mrb[192].mxu0 %v4996_v35  ;;  %v4968_v47 = vmax.f32 %v4896_v17, 0.0 }
 0xa90   : > { %v4902_v10 = vadd.f32 %v4901_v33, %v14759_v7  ;;  %v4969_v18 = vmax.f32 %v4898_v13, 0.0 }
 0xa91   : > { %v4970_v14 = vmax.f32 %v4900_v50, 0.0 }
 0xa92   : > { %v4971_v61 = vmax.f32 %v4902_v10, 0.0 }
 0xa93   : > { %v4998_v23 = vpack.c.bf16 %v4970_v14, %v4968_v47 }
 0xa94   : > { %v4999_v39 = vpack.c.bf16 %v4971_v61, %v4969_v18  ;;  %v4905_v59 = vpop.f32.mrb[168].mxu1 }
 0xa95   : > { %v4906_v41 = vadd.f32 %v4905_v59, %v14756_v19  ;;  %v4907_v40 = vpop.f32.mrb[169].mxu1 }
 0xa96   : > { %v4908_v27 = vadd.f32 %v4907_v40, %v14759_v7  ;;  %v4909_v32 = vpop.f32.mrb[170].mxu1  ;;  %5260 = vmatprep.mubr.bf16.mxu0 %v4999_v39 }
 0xa97   : > { %v4910_v46 = vadd.f32 %v4909_v32, %v14756_v19  ;;  %v4911_v30 = vpop.f32.mrb[171].mxu1  ;;  %5261 = vmatmul.mubr.bf16.gmra.mrb[196].mxu0 %v4998_v23  ;;  %v4972_v22 = vmax.f32 %v4906_v41, 0.0 }
 0xa98   : > { %v4912_v31 = vadd.f32 %v4911_v30, %v14759_v7  ;;  %v4973_v49 = vmax.f32 %v4908_v27, 0.0 }
 0xa99   : > { %v4974_v15 = vmax.f32 %v4910_v46, 0.0 }
 0xa9a   : > { %v4975_v44 = vmax.f32 %v4912_v31, 0.0 }
 0xa9b   : > { %v5000_v35 = vpack.c.bf16 %v4974_v15, %v4972_v22 }
 0xa9c   : > { %v5001_v45 = vpack.c.bf16 %v4975_v44, %v4973_v49  ;;  %v4915_v34 = vpop.f32.mrb[172].mxu1 }
 0xa9d   : > { %v4916_v17 = vadd.f32 %v4915_v34, %v14756_v19  ;;  %v4917_v51 = vpop.f32.mrb[173].mxu1 }
 0xa9e   : > { %v4918_v13 = vadd.f32 %v4917_v51, %v14759_v7  ;;  %v4919_v21 = vpop.f32.mrb[174].mxu1  ;;  %5270 = vmatprep.mubr.bf16.mxu0 %v5001_v45 }
 0xa9f   : > { %v4920_v50 = vadd.f32 %v4919_v21, %v14756_v19  ;;  %v4921_v33 = vpop.f32.mrb[175].mxu1  ;;  %5271 = vmatmul.mubr.bf16.gmra.mrb[200].mxu0 %v5000_v35  ;;  %v4976_v47 = vmax.f32 %v4916_v17, 0.0 }
 0xaa0   : > { %v4922_v10 = vadd.f32 %v4921_v33, %v14759_v7  ;;  %v4977_v18 = vmax.f32 %v4918_v13, 0.0 }
 0xaa1   : > { %v4978_v14 = vmax.f32 %v4920_v50, 0.0 }
 0xaa2   : > { %v4979_v61 = vmax.f32 %v4922_v10, 0.0 }
 0xaa3   : > { %v5002_v23 = vpack.c.bf16 %v4978_v14, %v4976_v47 }
 0xaa4   : > { %v5003_v39 = vpack.c.bf16 %v4979_v61, %v4977_v18  ;;  %v4925_v59 = vpop.f32.mrb[176].mxu1 }
 0xaa5   : > { %v4926_v41 = vadd.f32 %v4925_v59, %v14756_v19  ;;  %v4927_v40 = vpop.f32.mrb[177].mxu1 }
 0xaa6   : > { %v4928_v27 = vadd.f32 %v4927_v40, %v14759_v7  ;;  %v4929_v32 = vpop.f32.mrb[178].mxu1  ;;  %5280 = vmatprep.mubr.bf16.mxu0 %v5003_v39 }
 0xaa7   : > { %v4930_v46 = vadd.f32 %v4929_v32, %v14756_v19  ;;  %v4931_v30 = vpop.f32.mrb[179].mxu1  ;;  %5281 = vmatmul.mubr.bf16.gmra.mrb[204].mxu0 %v5002_v23  ;;  %v4980_v22 = vmax.f32 %v4926_v41, 0.0 }
 0xaa8   : > { %v4932_v31 = vadd.f32 %v4931_v30, %v14759_v7  ;;  %v4981_v49 = vmax.f32 %v4928_v27, 0.0 }
 0xaa9   : > { %v4982_v15 = vmax.f32 %v4930_v46, 0.0 }
 0xaaa   : > { %v4983_v44 = vmax.f32 %v4932_v31, 0.0 }
 0xaab   : > { %v5004_v35 = vpack.c.bf16 %v4982_v15, %v4980_v22 }
 0xaac   : > { %v5005_v45 = vpack.c.bf16 %v4983_v44, %v4981_v49  ;;  %v4935_v34 = vpop.f32.mrb[180].mxu1 }
 0xaad   : > { %v4936_v17 = vadd.f32 %v4935_v34, %v14756_v19  ;;  %v4937_v51 = vpop.f32.mrb[181].mxu1 }
 0xaae   : > { %v4938_v13 = vadd.f32 %v4937_v51, %v14759_v7  ;;  %v4939_v21 = vpop.f32.mrb[182].mxu1  ;;  %5290 = vmatprep.mubr.bf16.mxu0 %v5005_v45 }
 0xaaf   : > { %v4940_v50 = vadd.f32 %v4939_v21, %v14756_v19  ;;  %v4941_v33 = vpop.f32.mrb[183].mxu1  ;;  %5291 = vmatmul.mubr.bf16.gmra.mrb[208].mxu0 %v5004_v35  ;;  %v4984_v47 = vmax.f32 %v4936_v17, 0.0 }
 0xab0   : > { %v4942_v10 = vadd.f32 %v4941_v33, %v14759_v7  ;;  %v4985_v18 = vmax.f32 %v4938_v13, 0.0 }
 0xab1   : > { %v4986_v14 = vmax.f32 %v4940_v50, 0.0 }
 0xab2   : > { %v4987_v61 = vmax.f32 %v4942_v10, 0.0 }
 0xab3   : > { %v5006_v23 = vpack.c.bf16 %v4986_v14, %v4984_v47 }
 0xab4   : > { %v5007_v39 = vpack.c.bf16 %v4987_v61, %v4985_v18  ;;  %v4945_v59 = vpop.f32.mrb[184].mxu1 }
 0xab5   : > { %v4946_v41 = vadd.f32 %v4945_v59, %v14756_v19  ;;  %v4947_v40 = vpop.f32.mrb[185].mxu1  ;;  %v11382_v59 = vld [vmem:[%s16825_s3 + $0x6d4] ss:$8 sps:$4 sm:$0xff]  }
 0xab6   : > { %v4948_v27 = vadd.f32 %v4947_v40, %v14759_v7  ;;  %v4949_v32 = vpop.f32.mrb[186].mxu1  ;;  %5300 = vmatprep.mubr.bf16.mxu0 %v5007_v39  ;;  %5676 = vmatprep.subr.bf16.mxu1 %v11382_v59  ;;  %v11388_v40 = vld [vmem:[%s16825_s3 + $0x6f4] ss:$8 sps:$4 sm:$0xff]   ;;  %v11427_v59 = vld [vmem:[%s16827_s5 + $0x6c4] ss:$8 sps:$4 sm:$0xff]  }
 0xab7   : > { %v4950_v46 = vadd.f32 %v4949_v32, %v14756_v19  ;;  %v4951_v30 = vpop.f32.mrb[187].mxu1  ;;  %5301 = vmatmul.mubr.bf16.gmra.mrb[212].mxu0 %v5006_v23  ;;  %v4988_v22 = vmax.f32 %v4946_v41, 0.0  ;;  %v11383_v41 = vld [vmem:[%s16825_s3 + $0x6e0] ss:$8 sps:$4 sm:$0xff]  }
 0xab8   : > { %v4952_v31 = vadd.f32 %v4951_v30, %v14759_v7  ;;  %v4989_v49 = vmax.f32 %v4948_v27, 0.0  ;;  %v11386_v27 = vld [vmem:[%s16825_s3 + $0x6f0] ss:$8 sps:$4 sm:$0xff]   ;;  %v11389_v32 = vld [vmem:[%s16827_s5 + $0x600] ss:$8 sps:$4 sm:$0xff]  }
 0xab9   : > { %v4990_v15 = vmax.f32 %v4950_v46, 0.0  ;;  %v11391_v46 = vld [vmem:[%s16827_s5 + $0x604] ss:$8 sps:$4 sm:$0xff]   ;;  %v11394_v30 = vld [vmem:[%s16827_s5 + $0x614] ss:$8 sps:$4 sm:$0xff]  }
 0xaba   : > { %v4991_v44 = vmax.f32 %v4952_v31, 0.0  ;;  %6017 = vmatprep.subr.bf16.mxu0 %v11391_v46  ;;  %v11392_v31 = vld [vmem:[%s16827_s5 + $0x610] ss:$8 sps:$4 sm:$0xff]  }
 0xabb   : > { %v5008_v35 = vpack.c.bf16 %v4990_v15, %v4988_v22  ;;  %6018 = vmatpush1.bf16.msra.mxu0 %v11389_v32  ;;  %v11397_v22 = vld [vmem:[%s16827_s5 + $0x624] ss:$8 sps:$4 sm:$0xff]   ;;  %v11395_v15 = vld [vmem:[%s16827_s5 + $0x620] ss:$8 sps:$4 sm:$0xff]  }
 0xabc   : > { %v5009_v45 = vpack.c.bf16 %v4991_v44, %v4989_v49  ;;  %v4955_v34 = vpop.f32.mrb[188].mxu1  ;;  %6019 = vmatprep.subr.bf16.mxu0 %v11394_v30  ;;  %v11400_v49 = vld [vmem:[%s16827_s5 + $0x634] ss:$8 sps:$4 sm:$0xff]   ;;  %v11398_v44 = vld [vmem:[%s16827_s5 + $0x630] ss:$8 sps:$4 sm:$0xff]  }
 0xabd   : > { %v4956_v17 = vadd.f32 %v4955_v34, %v14756_v19  ;;  %v4957_v51 = vpop.f32.mrb[189].mxu1  ;;  %v11406_v34 = vld [vmem:[%s16827_s5 + $0x654] ss:$8 sps:$4 sm:$0xff]  }
 0xabe   : > { %v4958_v13 = vadd.f32 %v4957_v51, %v14759_v7  ;;  %v4959_v21 = vpop.f32.mrb[190].mxu1  ;;  %5310 = vmatprep.mubr.bf16.mxu0 %v5009_v45  ;;  %v11401_v45 = vld [vmem:[%s16827_s5 + $0x640] ss:$8 sps:$4 sm:$0xff]   ;;  %v11409_v51 = vld [vmem:[%s16827_s5 + $0x664] ss:$8 sps:$4 sm:$0xff]  }
 0xabf   : > { %v4960_v50 = vadd.f32 %v4959_v21, %v14756_v19  ;;  %v4961_v33 = vpop.f32.mrb[191].mxu1  ;;  %5311 = vmatmul.mubr.bf16.gmra.mrb[216].mxu0 %v5008_v35  ;;  %v4992_v47 = vmax.f32 %v4956_v17, 0.0  ;;  %v11380_v19 = vld [vmem:[%s16825_s3 + $0x6d0] ss:$8 sps:$4 sm:$0xff]   ;;  %v11403_v35 = vld [vmem:[%s16827_s5 + $0x644] ss:$8 sps:$4 sm:$0xff]  }
 0xac0   : > { %v4962_v10 = vadd.f32 %v4961_v33, %v14759_v7  ;;  %v4993_v18 = vmax.f32 %v4958_v13, 0.0  ;;  %5677 = vmatpush1.bf16.msra.mxu1 %v11380_v19  ;;  %v11385_v7 = vld [vmem:[%s16825_s3 + $0x6e4] ss:$8 sps:$4 sm:$0xff]   ;;  %6020 = vmatpush1.bf16.msra.mxu0 %v11392_v31  ;;  %v11404_v17 = vld [vmem:[%s16827_s5 + $0x650] ss:$8 sps:$4 sm:$0xff]  }
 0xac1   : > { %v4994_v14 = vmax.f32 %v4960_v50, 0.0  ;;  %5678 = vmatprep.subr.bf16.mxu1 %v11385_v7  ;;  %6021 = vmatprep.subr.bf16.mxu0 %v11397_v22  ;;  %v11407_v13 = vld [vmem:[%s16827_s5 + $0x660] ss:$8 sps:$4 sm:$0xff]   ;;  %v11412_v21 = vld [vmem:[%s16827_s5 + $0x674] ss:$8 sps:$4 sm:$0xff]  }
 0xac2   : > { %v4995_v61 = vmax.f32 %v4962_v10, 0.0  ;;  %v11410_v50 = vld [vmem:[%s16827_s5 + $0x670] ss:$8 sps:$4 sm:$0xff]   ;;  %v11415_v33 = vld [vmem:[%s16827_s5 + $0x684] ss:$8 sps:$4 sm:$0xff]  }
 0xac3   : > { %v5010_v23 = vpack.c.bf16 %v4994_v14, %v4992_v47  ;;  %v11413_v10 = vld [vmem:[%s16827_s5 + $0x680] ss:$8 sps:$4 sm:$0xff]   ;;  %v11418_v47 = vld [vmem:[%s16827_s5 + $0x694] ss:$8 sps:$4 sm:$0xff]   ;;  %v11416_v14 = vld [vmem:[%s16827_s5 + $0x690] ss:$8 sps:$4 sm:$0xff]  }
 0xac4   : > { %v5011_v39 = vpack.c.bf16 %v4995_v61, %v4993_v18  ;;  %5679 = vmatpush1.bf16.msra.mxu1 %v11383_v41  ;;  %6022 = vmatpush1.bf16.msra.mxu0 %v11395_v15  ;;  %v11421_v18 = vld [vmem:[%s16827_s5 + $0x6a4] ss:$8 sps:$4 sm:$0xff]   ;;  %v11419_v61 = vld [vmem:[%s16827_s5 + $0x6a0] ss:$8 sps:$4 sm:$0xff]   ;;  %v11430_v7 = vld [vmem:[%s16827_s5 + $0x6d4] ss:$8 sps:$4 sm:$0xff]  }
 0xac5   : > { %5680 = vmatprep.subr.bf16.mxu1 %v11388_v40  ;;  %6023 = vmatprep.subr.bf16.mxu0 %v11400_v49  ;;  %v11425_v19 = vld [vmem:[%s16827_s5 + $0x6c0] ss:$8 sps:$4 sm:$0xff]   ;;  %v11428_v41 = vld [vmem:[%s16827_s5 + $0x6d0] ss:$8 sps:$4 sm:$0xff]  }
 0xac6   : > { %5320 = vmatprep.mubr.bf16.mxu0 %v5011_v39  ;;  %v11422_v39 = vld [vmem:[%s16827_s5 + $0x6b0] ss:$8 sps:$4 sm:$0xff]   ;;  %v9889_v40 = vld [vmem:[%s16828_s6 + $0xa] sm:$0x3] }
 0xac7   : > { %5321 = vmatmul.mubr.bf16.gmra.mrb[220].mxu0 %v5010_v23  ;;  %v11424_v23 = vld [vmem:[%s16827_s5 + $0x6b4] ss:$8 sps:$4 sm:$0xff]   ;;  %v14902_v32 = vrot.slane %v9889_v40, %v12127_v29 }
 0xac8   : > { %5681 = vmatpush1.bf16.msra.mxu1 %v11386_v27  ;;  %6024 = vmatpush1.bf16.msra.mxu0 %v11398_v44  ;;  %v14899_v27 = vrot.slane %v9889_v40, %v12125_v28 }
 0xac9   : > { %6025 = vmatprep.subr.bf16.mxu0 %v11403_v35 }
 0xacc   : > { %6026 = vmatpush1.bf16.msra.mxu0 %v11401_v45 }
 0xacd   : > { %6027 = vmatprep.subr.bf16.mxu0 %v11406_v34 }
 0xad0   : > { %6028 = vmatpush1.bf16.msra.mxu0 %v11404_v17 }
 0xad1   : > { %6029 = vmatprep.subr.bf16.mxu0 %v11409_v51 }
 0xad4   : > { %6030 = vmatpush1.bf16.msra.mxu0 %v11407_v13 }
 0xad5   : > { %6031 = vmatprep.subr.bf16.mxu0 %v11412_v21 }
 0xad8   : > { %6032 = vmatpush1.bf16.msra.mxu0 %v11410_v50 }
 0xad9   : > { %6033 = vmatprep.subr.bf16.mxu0 %v11415_v33 }
 0xadc   : > { %6034 = vmatpush1.bf16.msra.mxu0 %v11413_v10 }
 0xadd   : > { %6035 = vmatprep.subr.bf16.mxu0 %v11418_v47 }
 0xae0   : > { %6036 = vmatpush1.bf16.msra.mxu0 %v11416_v14 }
 0xae1   : > { %6037 = vmatprep.subr.bf16.mxu0 %v11421_v18 }
 0xae4   : > { %6038 = vmatpush1.bf16.msra.mxu0 %v11419_v61 }
 0xae5   : > { %6039 = vmatprep.subr.bf16.mxu0 %v11424_v23 }
 0xae8   : > { %6040 = vmatpush1.bf16.msra.mxu0 %v11422_v39 }
 0xae9   : > { %6041 = vmatprep.subr.bf16.mxu0 %v11427_v59 }
 0xaec   : > { %6042 = vmatpush1.bf16.msra.mxu0 %v11425_v19 }
 0xaed   : > { %6043 = vmatprep.subr.bf16.mxu0 %v11430_v7 }
 0xaf0   : > { %6044 = vmatpush1.bf16.msra.mxu0 %v11428_v41 }
 0xb62   : > { %v5252_v46 = vpop.f32.mrb[192].mxu0 }
 0xb63   : > { %v5253_v30 = vadd.f32 %v5252_v46, %v14899_v27  ;;  %v5254_v31 = vpop.f32.mrb[193].mxu0 }
 0xb64   : > { %v5255_v22 = vadd.f32 %v5254_v31, %v14902_v32  ;;  %v5256_v15 = vpop.f32.mrb[194].mxu0 }
 0xb65   : > { %v5331_v49 = vadd.f32 %v5253_v30, %v14444_v37  ;;  %v5257_v44 = vadd.f32 %v5256_v15, %v14899_v27  ;;  %v5258_v35 = vpop.f32.mrb[195].mxu0 }
 0xb66   : > { %v5332_v45 = vadd.f32 %v5255_v22, %v14447_v2  ;;  %v5259_v34 = vadd.f32 %v5258_v35, %v14902_v32 }
 0xb67   : > { %v14910_v17 = vmax.f32 %v5331_v49, 0.0  ;;  %v5333_v51 = vadd.f32 %v5257_v44, %v14452_v54 }
 0xb68   : > { %v14913_v13 = vmax.f32 %v5332_v45, 0.0  ;;  %v5334_v21 = vadd.f32 %v5259_v34, %v14456_v43 }
 0xb69   : > { %9922 = vst [vmem:[%s12146_s20 + $0x600] sm:$0xff] %v14910_v17  ;;  %v14918_v50 = vmax.f32 %v5333_v51, 0.0 }
 0xb6a   : > { %9923 = vst [vmem:[%s12146_s20 + $0x608] sm:$0xff] %v14913_v13  ;;  %v14922_v37 = vmax.f32 %v5334_v21, 0.0  ;;  %v5262_v33 = vpop.f32.mrb[196].mxu0 }
 0xb6b   : > { %9924 = vst [vmem:[%s12146_s20 + $0x610] sm:$0xff] %v14918_v50  ;;  %v5263_v2 = vadd.f32 %v5262_v33, %v14899_v27  ;;  %v5264_v10 = vpop.f32.mrb[197].mxu0  ;;  %v5428_v14 = vpack.c.bf16 %v14918_v50, %v14910_v17 }
 0xb6c   : > { %9925 = vst [vmem:[%s12146_s20 + $0x618] sm:$0xff] %v14922_v37  ;;  %v5265_v54 = vadd.f32 %v5264_v10, %v14902_v32  ;;  %v5266_v43 = vpop.f32.mrb[198].mxu0  ;;  %v5429_v47 = vpack.c.bf16 %v14922_v37, %v14913_v13 }
 0xb6d   : > { %v5335_v18 = vadd.f32 %v5263_v2, %v14472_v1  ;;  %v5267_v61 = vadd.f32 %v5266_v43, %v14899_v27  ;;  %v5268_v23 = vpop.f32.mrb[199].mxu0 }
 0xb6e   : > { %v5336_v39 = vadd.f32 %v5265_v54, %v14475_v11  ;;  %v5269_v59 = vadd.f32 %v5268_v23, %v14902_v32  ;;  %5682 = vmatprep.mubr.bf16.mxu1 %v5429_v47 }
 0xb6f   : > { %v14938_v19 = vmax.f32 %v5335_v18, 0.0  ;;  %v5337_v7 = vadd.f32 %v5267_v61, %v14480_v9  ;;  %5683 = vmatmul.mubr.bf16.vlgmr.msra.gmra.mrb[192].mxu1 %v5428_v14 }
 0xb70   : > { %v14941_v41 = vmax.f32 %v5336_v39, 0.0  ;;  %v5338_v40 = vadd.f32 %v5269_v59, %v14484_v0 }
 0xb71   : > { %9926 = vst [vmem:[%s12146_s20 + $0x620] sm:$0xff] %v14938_v19  ;;  %v14946_v1 = vmax.f32 %v5337_v7, 0.0 }
 0xb72   : > { %9927 = vst [vmem:[%s12146_s20 + $0x628] sm:$0xff] %v14941_v41  ;;  %v14950_v11 = vmax.f32 %v5338_v40, 0.0  ;;  %v5272_v46 = vpop.f32.mrb[200].mxu0 }
 0xb73   : > { %9928 = vst [vmem:[%s12146_s20 + $0x630] sm:$0xff] %v14946_v1  ;;  %v5273_v30 = vadd.f32 %v5272_v46, %v14899_v27  ;;  %v5274_v31 = vpop.f32.mrb[201].mxu0  ;;  %v5430_v35 = vpack.c.bf16 %v14946_v1, %v14938_v19 }
 0xb74   : > { %9929 = vst [vmem:[%s12146_s20 + $0x638] sm:$0xff] %v14950_v11  ;;  %v5275_v9 = vadd.f32 %v5274_v31, %v14902_v32  ;;  %v5276_v0 = vpop.f32.mrb[202].mxu0  ;;  %v5431_v22 = vpack.c.bf16 %v14950_v11, %v14941_v41 }
 0xb75   : > { %v5339_v15 = vadd.f32 %v5273_v30, %v14500_v56  ;;  %v5277_v49 = vadd.f32 %v5276_v0, %v14899_v27  ;;  %v5278_v44 = vpop.f32.mrb[203].mxu0 }
 0xb76   : > { %v5340_v45 = vadd.f32 %v5275_v9, %v14503_v3  ;;  %v5279_v34 = vadd.f32 %v5278_v44, %v14902_v32  ;;  %5692 = vmatprep.mubr.bf16.mxu1 %v5431_v22 }
 0xb77   : > { %v14966_v51 = vmax.f32 %v5339_v15, 0.0  ;;  %v5341_v21 = vadd.f32 %v5277_v49, %v14508_v53  ;;  %5693 = vmatmul.mubr.bf16.gmra.mrb[196].mxu1 %v5430_v35 }
 0xb78   : > { %v14969_v33 = vmax.f32 %v5340_v45, 0.0  ;;  %v5342_v56 = vadd.f32 %v5279_v34, %v14512_v55 }
 0xb79   : > { %9930 = vst [vmem:[%s12146_s20 + $0x640] sm:$0xff] %v14966_v51  ;;  %v14974_v2 = vmax.f32 %v5341_v21, 0.0 }
 0xb7a   : > { %9931 = vst [vmem:[%s12146_s20 + $0x648] sm:$0xff] %v14969_v33  ;;  %v14978_v3 = vmax.f32 %v5342_v56, 0.0  ;;  %v5282_v10 = vpop.f32.mrb[204].mxu0 }
 0xb7b   : > { %9932 = vst [vmem:[%s12146_s20 + $0x650] sm:$0xff] %v14974_v2  ;;  %v5283_v54 = vadd.f32 %v5282_v10, %v14899_v27  ;;  %v5284_v43 = vpop.f32.mrb[205].mxu0  ;;  %v5432_v23 = vpack.c.bf16 %v14974_v2, %v14966_v51 }
 0xb7c   : > { %9933 = vst [vmem:[%s12146_s20 + $0x658] sm:$0xff] %v14978_v3  ;;  %v5285_v53 = vadd.f32 %v5284_v43, %v14902_v32  ;;  %v5286_v55 = vpop.f32.mrb[206].mxu0  ;;  %v5433_v47 = vpack.c.bf16 %v14978_v3, %v14969_v33 }
 0xb7d   : > { %v5343_v14 = vadd.f32 %v5283_v54, %v14528_v8  ;;  %v5287_v18 = vadd.f32 %v5286_v55, %v14899_v27  ;;  %v5288_v61 = vpop.f32.mrb[207].mxu0 }
 0xb7e   : > { %v5344_v39 = vadd.f32 %v5285_v53, %v14531_v25  ;;  %v5289_v59 = vadd.f32 %v5288_v61, %v14902_v32  ;;  %5702 = vmatprep.mubr.bf16.mxu1 %v5433_v47 }
 0xb7f   : > { %v14994_v7 = vmax.f32 %v5343_v14, 0.0  ;;  %v5345_v40 = vadd.f32 %v5287_v18, %v14536_v24  ;;  %5703 = vmatmul.mubr.bf16.gmra.mrb[200].mxu1 %v5432_v23 }
 0xb80   : > { %v14997_v46 = vmax.f32 %v5344_v39, 0.0  ;;  %v5346_v8 = vadd.f32 %v5289_v59, %v14540_v4 }
 0xb81   : > { %9934 = vst [vmem:[%s12146_s20 + $0x660] sm:$0xff] %v14994_v7  ;;  %v15002_v30 = vmax.f32 %v5345_v40, 0.0 }
 0xb82   : > { %9935 = vst [vmem:[%s12146_s20 + $0x668] sm:$0xff] %v14997_v46  ;;  %v15006_v25 = vmax.f32 %v5346_v8, 0.0  ;;  %v5292_v31 = vpop.f32.mrb[208].mxu0 }
 0xb83   : > { %9936 = vst [vmem:[%s12146_s20 + $0x670] sm:$0xff] %v15002_v30  ;;  %v5293_v9 = vadd.f32 %v5292_v31, %v14899_v27  ;;  %v5294_v0 = vpop.f32.mrb[209].mxu0  ;;  %v5434_v35 = vpack.c.bf16 %v15002_v30, %v14994_v7 }
 0xb84   : > { %9937 = vst [vmem:[%s12146_s20 + $0x678] sm:$0xff] %v15006_v25  ;;  %v5295_v24 = vadd.f32 %v5294_v0, %v14902_v32  ;;  %v5296_v4 = vpop.f32.mrb[210].mxu0  ;;  %v5435_v22 = vpack.c.bf16 %v15006_v25, %v14997_v46 }
 0xb85   : > { %v5347_v15 = vadd.f32 %v5293_v9, %v14556_v48  ;;  %v5297_v49 = vadd.f32 %v5296_v4, %v14899_v27  ;;  %v5298_v44 = vpop.f32.mrb[211].mxu0 }
 0xb86   : > { %v5348_v45 = vadd.f32 %v5295_v24, %v14559_v63  ;;  %v5299_v34 = vadd.f32 %v5298_v44, %v14902_v32  ;;  %5712 = vmatprep.mubr.bf16.mxu1 %v5435_v22 }
 0xb87   : > { %v15022_v21 = vmax.f32 %v5347_v15, 0.0  ;;  %v5349_v56 = vadd.f32 %v5297_v49, %v14564_v57  ;;  %5713 = vmatmul.mubr.bf16.gmra.mrb[204].mxu1 %v5434_v35 }
 0xb88   : > { %v15025_v10 = vmax.f32 %v5348_v45, 0.0  ;;  %v5350_v48 = vadd.f32 %v5299_v34, %v14568_v20 }
 0xb89   : > { %9938 = vst [vmem:[%s12146_s20 + $0x680] sm:$0xff] %v15022_v21  ;;  %v15030_v54 = vmax.f32 %v5349_v56, 0.0 }
 0xb8a   : > { %9939 = vst [vmem:[%s12146_s20 + $0x688] sm:$0xff] %v15025_v10  ;;  %v15034_v63 = vmax.f32 %v5350_v48, 0.0  ;;  %v5302_v43 = vpop.f32.mrb[212].mxu0 }
 0xb8b   : > { %9940 = vst [vmem:[%s12146_s20 + $0x690] sm:$0xff] %v15030_v54  ;;  %v5303_v53 = vadd.f32 %v5302_v43, %v14899_v27  ;;  %v5304_v55 = vpop.f32.mrb[213].mxu0  ;;  %v5436_v23 = vpack.c.bf16 %v15030_v54, %v15022_v21 }
 0xb8c   : > { %9941 = vst [vmem:[%s12146_s20 + $0x698] sm:$0xff] %v15034_v63  ;;  %v5305_v57 = vadd.f32 %v5304_v55, %v14902_v32  ;;  %v5306_v20 = vpop.f32.mrb[214].mxu0  ;;  %v5437_v47 = vpack.c.bf16 %v15034_v63, %v15025_v10 }
 0xb8d   : > { %v5351_v14 = vadd.f32 %v5303_v53, %v14584_v6  ;;  %v5307_v18 = vadd.f32 %v5306_v20, %v14899_v27  ;;  %v5308_v61 = vpop.f32.mrb[215].mxu0 }
 0xb8e   : > { %v5352_v39 = vadd.f32 %v5305_v57, %v14587_v26  ;;  %v5309_v59 = vadd.f32 %v5308_v61, %v14902_v32  ;;  %5722 = vmatprep.mubr.bf16.mxu1 %v5437_v47 }
 0xb8f   : > { %v15050_v40 = vmax.f32 %v5351_v14, 0.0  ;;  %v5353_v8 = vadd.f32 %v5307_v18, %v14592_v5  ;;  %5723 = vmatmul.mubr.bf16.gmra.mrb[208].mxu1 %v5436_v23 }
 0xb90   : > { %v15053_v31 = vmax.f32 %v5352_v39, 0.0  ;;  %v5354_v6 = vadd.f32 %v5309_v59, %v14596_v36 }
 0xb91   : > { %9942 = vst [vmem:[%s12146_s20 + $0x6a0] sm:$0xff] %v15050_v40  ;;  %v15058_v9 = vmax.f32 %v5353_v8, 0.0 }
 0xb92   : > { %9943 = vst [vmem:[%s12146_s20 + $0x6a8] sm:$0xff] %v15053_v31  ;;  %v15062_v26 = vmax.f32 %v5354_v6, 0.0  ;;  %v5312_v0 = vpop.f32.mrb[216].mxu0 }
 0xb93   : > { %9944 = vst [vmem:[%s12146_s20 + $0x6b0] sm:$0xff] %v15058_v9  ;;  %v5313_v24 = vadd.f32 %v5312_v0, %v14899_v27  ;;  %v5314_v4 = vpop.f32.mrb[217].mxu0  ;;  %v5438_v35 = vpack.c.bf16 %v15058_v9, %v15050_v40 }
 0xb94   : > { %9945 = vst [vmem:[%s12146_s20 + $0x6b8] sm:$0xff] %v15062_v26  ;;  %v5315_v5 = vadd.f32 %v5314_v4, %v14902_v32  ;;  %v5316_v36 = vpop.f32.mrb[218].mxu0  ;;  %v5439_v22 = vpack.c.bf16 %v15062_v26, %v15053_v31  ;;  %v11436_v4 = vld [vmem:[%s16827_s5 + $0x6f4] ss:$8 sps:$4 sm:$0xff]  }
 0xb95   : > { %v5355_v15 = vadd.f32 %v5313_v24, %v14612_v60  ;;  %v5317_v49 = vadd.f32 %v5316_v36, %v14899_v27  ;;  %v5318_v44 = vpop.f32.mrb[219].mxu0  ;;  %v11437_v36 = vld [vmem:[%s16825_s3 + $0x700] ss:$8 sps:$4 sm:$0xff]  }
 0xb96   : > { %v5356_v45 = vadd.f32 %v5315_v5, %v14615_v12  ;;  %v5319_v34 = vadd.f32 %v5318_v44, %v14902_v32  ;;  %5732 = vmatprep.mubr.bf16.mxu1 %v5439_v22  ;;  %v11434_v5 = vld [vmem:[%s16827_s5 + $0x6f0] ss:$8 sps:$4 sm:$0xff]   ;;  %v11439_v22 = vld [vmem:[%s16825_s3 + $0x704] ss:$8 sps:$4 sm:$0xff]  }
 0xb97   : > { %v15078_v56 = vmax.f32 %v5355_v15, 0.0  ;;  %v5357_v48 = vadd.f32 %v5317_v49, %v14620_v52  ;;  %5733 = vmatmul.mubr.bf16.gmra.mrb[212].mxu1 %v5438_v35  ;;  %v11442_v15 = vld [vmem:[%s16825_s3 + $0x714] ss:$8 sps:$4 sm:$0xff]   ;;  %6449 = vmatprep.subr.bf16.mxu1 %v11439_v22  ;;  %v11440_v49 = vld [vmem:[%s16825_s3 + $0x710] ss:$8 sps:$4 sm:$0xff]  }
 0xb98   : > { %v15081_v43 = vmax.f32 %v5356_v45, 0.0  ;;  %v5358_v60 = vadd.f32 %v5319_v34, %v14624_v16  ;;  %6450 = vmatpush1.bf16.msra.mxu1 %v11437_v36  ;;  %v11445_v44 = vld [vmem:[%s16825_s3 + $0x724] ss:$8 sps:$4 sm:$0xff]   ;;  %v11443_v35 = vld [vmem:[%s16825_s3 + $0x720] ss:$8 sps:$4 sm:$0xff]  }
 0xb99   : > { %9946 = vst [vmem:[%s12146_s20 + $0x6c0] sm:$0xff] %v15078_v56  ;;  %v15086_v53 = vmax.f32 %v5357_v48, 0.0  ;;  %6451 = vmatprep.subr.bf16.mxu1 %v11442_v15  ;;  %v11448_v45 = vld [vmem:[%s16825_s3 + $0x734] ss:$8 sps:$4 sm:$0xff]   ;;  %v11446_v34 = vld [vmem:[%s16825_s3 + $0x730] ss:$8 sps:$4 sm:$0xff]  }
 0xb9a   : > { %9947 = vst [vmem:[%s12146_s20 + $0x6c8] sm:$0xff] %v15081_v43  ;;  %v15090_v12 = vmax.f32 %v5358_v60, 0.0  ;;  %v5322_v55 = vpop.f32.mrb[220].mxu0  ;;  %v11451_v48 = vld [vmem:[%s16825_s3 + $0x744] ss:$8 sps:$4 sm:$0xff]  }
 0xb9b   : > { %9948 = vst [vmem:[%s12146_s20 + $0x6d0] sm:$0xff] %v15086_v53  ;;  %v5323_v57 = vadd.f32 %v5322_v55, %v14899_v27  ;;  %v5324_v20 = vpop.f32.mrb[221].mxu0  ;;  %v5440_v23 = vpack.c.bf16 %v15086_v53, %v15078_v56  ;;  %v11449_v60 = vld [vmem:[%s16825_s3 + $0x740] ss:$8 sps:$4 sm:$0xff]   ;;  %v11454_v55 = vld [vmem:[%s16825_s3 + $0x754] ss:$8 sps:$4 sm:$0xff]  }
 0xb9c   : > { %9949 = vst [vmem:[%s12146_s20 + $0x6d8] sm:$0xff] %v15090_v12  ;;  %v5325_v52 = vadd.f32 %v5324_v20, %v14902_v32  ;;  %v5326_v16 = vpop.f32.mrb[222].mxu0  ;;  %v5441_v47 = vpack.c.bf16 %v15090_v12, %v15081_v43  ;;  %6452 = vmatpush1.bf16.msra.mxu1 %v11440_v49  ;;  %v11457_v20 = vld [vmem:[%s16825_s3 + $0x764] ss:$8 sps:$4 sm:$0xff]  }
 0xb9d   : > { %v5359_v14 = vadd.f32 %v5323_v57, %v14640_v62  ;;  %v5327_v18 = vadd.f32 %v5326_v16, %v14899_v27  ;;  %v5328_v61 = vpop.f32.mrb[223].mxu0  ;;  %6453 = vmatprep.subr.bf16.mxu1 %v11445_v44  ;;  %v11452_v57 = vld [vmem:[%s16825_s3 + $0x750] ss:$8 sps:$4 sm:$0xff]   ;;  %v11460_v16 = vld [vmem:[%s16825_s3 + $0x774] ss:$8 sps:$4 sm:$0xff]  }
 0xb9e   : > { %v5360_v39 = vadd.f32 %v5325_v52, %v14643_v58  ;;  %v5329_v59 = vadd.f32 %v5328_v61, %v14902_v32  ;;  %5742 = vmatprep.mubr.bf16.mxu1 %v5441_v47  ;;  %v11431_v32 = vld [vmem:[%s16827_s5 + $0x6e0] ss:$8 sps:$4 sm:$0xff]   ;;  %v11458_v47 = vld [vmem:[%s16825_s3 + $0x770] ss:$8 sps:$4 sm:$0xff]   ;;  %v11466_v61 = vld [vmem:[%s16825_s3 + $0x794] ss:$8 sps:$4 sm:$0xff]  }
 0xb9f   : > { %v15106_v8 = vmax.f32 %v5359_v14, 0.0  ;;  %v5361_v6 = vadd.f32 %v5327_v18, %v14648_v38  ;;  %5743 = vmatmul.mubr.bf16.gmra.mrb[216].mxu1 %v5440_v23  ;;  %v11455_v52 = vld [vmem:[%s16825_s3 + $0x760] ss:$8 sps:$4 sm:$0xff]   ;;  %v11463_v14 = vld [vmem:[%s16825_s3 + $0x784] ss:$8 sps:$4 sm:$0xff]  }
 0xba0   : > { %v15109_v0 = vmax.f32 %v5360_v39, 0.0  ;;  %v5362_v62 = vadd.f32 %v5329_v59, %v14652_v42  ;;  %v11433_v42 = vld [vmem:[%s16827_s5 + $0x6e4] ss:$8 sps:$4 sm:$0xff]   ;;  %6454 = vmatpush1.bf16.msra.mxu1 %v11443_v35  ;;  %v11461_v18 = vld [vmem:[%s16825_s3 + $0x780] ss:$8 sps:$4 sm:$0xff]  }
 0xba1   : > { %9950 = vst [vmem:[%s12146_s20 + $0x6e0] sm:$0xff] %v15106_v8  ;;  %v15114_v27 = vmax.f32 %v5361_v6, 0.0  ;;  %6045 = vmatprep.subr.bf16.mxu0 %v11433_v42  ;;  %6455 = vmatprep.subr.bf16.mxu1 %v11448_v45  ;;  %v11464_v23 = vld [vmem:[%s16825_s3 + $0x790] ss:$8 sps:$4 sm:$0xff]   ;;  %v11469_v39 = vld [vmem:[%s16825_s3 + $0x7a4] ss:$8 sps:$4 sm:$0xff]  }
 0xba2   : > { %9951 = vst [vmem:[%s12146_s20 + $0x6e8] sm:$0xff] %v15109_v0  ;;  %v15118_v24 = vmax.f32 %v5362_v62, 0.0  ;;  %6046 = vmatpush1.bf16.msra.mxu0 %v11431_v32  ;;  %v11467_v59 = vld [vmem:[%s16825_s3 + $0x7a0] ss:$8 sps:$4 sm:$0xff]   ;;  %v11472_v6 = vld [vmem:[%s16825_s3 + $0x7b4] ss:$8 sps:$4 sm:$0xff]  }
 0xba3   : > { %9952 = vst [vmem:[%s12146_s20 + $0x6f0] sm:$0xff] %v15114_v27  ;;  %v5442_v38 = vpack.c.bf16 %v15114_v27, %v15106_v8  ;;  %6047 = vmatprep.subr.bf16.mxu0 %v11436_v4  ;;  %v11470_v62 = vld [vmem:[%s16825_s3 + $0x7b0] ss:$8 sps:$4 sm:$0xff]   ;;  %v9986_v42 = vld [vmem:[%s16826_s4 + $0xc] sm:$0x3] }
 0xba4   : > { %9953 = vst [vmem:[%s12146_s20 + $0x6f8] sm:$0xff] %v15118_v24  ;;  %v5443_v58 = vpack.c.bf16 %v15118_v24, %v15109_v0  ;;  %6456 = vmatpush1.bf16.msra.mxu1 %v11446_v34  ;;  %v15222_v32 = vrot.slane %v9986_v42, %v12125_v28  ;;  %v15225_v4 = vrot.slane %v9986_v42, %v12127_v29 }
 0xba5   : > { %6457 = vmatprep.subr.bf16.mxu1 %v11451_v48 }
 0xba6   : > { %5752 = vmatprep.mubr.bf16.mxu1 %v5443_v58  ;;  %6048 = vmatpush1.bf16.msra.mxu0 %v11434_v5  ;;  %v11475_v58 = vld [vmem:[%s16825_s3 + $0x7c4] ss:$8 sps:$4 sm:$0xff]  }
 0xba7   : > { %5753 = vmatmul.mubr.bf16.gmra.mrb[220].mxu1 %v5442_v38  ;;  %v11473_v38 = vld [vmem:[%s16825_s3 + $0x7c0] ss:$8 sps:$4 sm:$0xff]  }
 0xba8   : > { %6458 = vmatpush1.bf16.msra.mxu1 %v11449_v60 }
 0xba9   : > { %6459 = vmatprep.subr.bf16.mxu1 %v11454_v55 }
 0xbac   : > { %6460 = vmatpush1.bf16.msra.mxu1 %v11452_v57 }
 0xbad   : > { %6461 = vmatprep.subr.bf16.mxu1 %v11457_v20 }
 0xbb0   : > { %6462 = vmatpush1.bf16.msra.mxu1 %v11455_v52 }
 0xbb1   : > { %6463 = vmatprep.subr.bf16.mxu1 %v11460_v16 }
 0xbb4   : > { %6464 = vmatpush1.bf16.msra.mxu1 %v11458_v47 }
 0xbb5   : > { %6465 = vmatprep.subr.bf16.mxu1 %v11463_v14 }
 0xbb8   : > { %6466 = vmatpush1.bf16.msra.mxu1 %v11461_v18 }
 0xbb9   : > { %6467 = vmatprep.subr.bf16.mxu1 %v11466_v61 }
 0xbbc   : > { %6468 = vmatpush1.bf16.msra.mxu1 %v11464_v23 }
 0xbbd   : > { %6469 = vmatprep.subr.bf16.mxu1 %v11469_v39 }
 0xbc0   : > { %6470 = vmatpush1.bf16.msra.mxu1 %v11467_v59 }
 0xbc1   : > { %6471 = vmatprep.subr.bf16.mxu1 %v11472_v6 }
 0xbc4   : > { %6472 = vmatpush1.bf16.msra.mxu1 %v11470_v62 }
 0xbc5   : > { %6473 = vmatprep.subr.bf16.mxu1 %v11475_v58 }
 0xbc8   : > { %6474 = vmatpush1.bf16.msra.mxu1 %v11473_v38 }
 0xc42   : > { %v5684_v5 = vpop.f32.mrb[192].mxu1 }
 0xc43   : > { %v5685_v36 = vadd.f32 %v5684_v5, %v15222_v32  ;;  %v5686_v22 = vpop.f32.mrb[193].mxu1 }
 0xc44   : > { %v5687_v15 = vadd.f32 %v5686_v22, %v15225_v4  ;;  %v5688_v49 = vpop.f32.mrb[194].mxu1 }
 0xc45   : > { %v5689_v44 = vadd.f32 %v5688_v49, %v15222_v32  ;;  %v5690_v35 = vpop.f32.mrb[195].mxu1  ;;  %v5763_v34 = vmax.f32 %v5685_v36, 0.0 }
 0xc46   : > { %v5691_v45 = vadd.f32 %v5690_v35, %v15225_v4  ;;  %v5764_v60 = vmax.f32 %v5687_v15, 0.0 }
 0xc47   : > { %v5765_v48 = vmax.f32 %v5689_v44, 0.0 }
 0xc48   : > { %v5766_v55 = vmax.f32 %v5691_v45, 0.0 }
 0xc49   : > { %v5795_v57 = vpack.c.bf16 %v5765_v48, %v5763_v34 }
 0xc4a   : > { %v5796_v20 = vpack.c.bf16 %v5766_v55, %v5764_v60  ;;  %v5694_v52 = vpop.f32.mrb[196].mxu1 }
 0xc4b   : > { %v5695_v16 = vadd.f32 %v5694_v52, %v15222_v32  ;;  %v5696_v47 = vpop.f32.mrb[197].mxu1 }
 0xc4c   : > { %v5697_v14 = vadd.f32 %v5696_v47, %v15225_v4  ;;  %v5698_v18 = vpop.f32.mrb[198].mxu1  ;;  %6049 = vmatprep.mubr.bf16.mxu0 %v5796_v20 }
 0xc4d   : > { %v5699_v61 = vadd.f32 %v5698_v18, %v15222_v32  ;;  %v5700_v23 = vpop.f32.mrb[199].mxu1  ;;  %6050 = vmatmul.mubr.bf16.vlgmr.msra.gmra.mrb[224].mxu0 %v5795_v57  ;;  %v5767_v59 = vmax.f32 %v5695_v16, 0.0 }
 0xc4e   : > { %v5701_v39 = vadd.f32 %v5700_v23, %v15225_v4  ;;  %v5768_v62 = vmax.f32 %v5697_v14, 0.0 }
 0xc4f   : > { %v5769_v6 = vmax.f32 %v5699_v61, 0.0 }
 0xc50   : > { %v5770_v58 = vmax.f32 %v5701_v39, 0.0 }
 0xc51   : > { %v5797_v38 = vpack.c.bf16 %v5769_v6, %v5767_v59 }
 0xc52   : > { %v5798_v42 = vpack.c.bf16 %v5770_v58, %v5768_v62  ;;  %v5704_v5 = vpop.f32.mrb[200].mxu1 }
 0xc53   : > { %v5705_v36 = vadd.f32 %v5704_v5, %v15222_v32  ;;  %v5706_v22 = vpop.f32.mrb[201].mxu1 }
 0xc54   : > { %v5707_v15 = vadd.f32 %v5706_v22, %v15225_v4  ;;  %v5708_v49 = vpop.f32.mrb[202].mxu1  ;;  %6059 = vmatprep.mubr.bf16.mxu0 %v5798_v42 }
 0xc55   : > { %v5709_v44 = vadd.f32 %v5708_v49, %v15222_v32  ;;  %v5710_v35 = vpop.f32.mrb[203].mxu1  ;;  %6060 = vmatmul.mubr.bf16.gmra.mrb[228].mxu0 %v5797_v38  ;;  %v5771_v34 = vmax.f32 %v5705_v36, 0.0 }
 0xc56   : > { %v5711_v45 = vadd.f32 %v5710_v35, %v15225_v4  ;;  %v5772_v60 = vmax.f32 %v5707_v15, 0.0 }
 0xc57   : > { %v5773_v48 = vmax.f32 %v5709_v44, 0.0 }
 0xc58   : > { %v5774_v55 = vmax.f32 %v5711_v45, 0.0 }
 0xc59   : > { %v5799_v57 = vpack.c.bf16 %v5773_v48, %v5771_v34 }
 0xc5a   : > { %v5800_v20 = vpack.c.bf16 %v5774_v55, %v5772_v60  ;;  %v5714_v52 = vpop.f32.mrb[204].mxu1 }
 0xc5b   : > { %v5715_v16 = vadd.f32 %v5714_v52, %v15222_v32  ;;  %v5716_v47 = vpop.f32.mrb[205].mxu1 }
 0xc5c   : > { %v5717_v14 = vadd.f32 %v5716_v47, %v15225_v4  ;;  %v5718_v18 = vpop.f32.mrb[206].mxu1  ;;  %6069 = vmatprep.mubr.bf16.mxu0 %v5800_v20 }
 0xc5d   : > { %v5719_v61 = vadd.f32 %v5718_v18, %v15222_v32  ;;  %v5720_v23 = vpop.f32.mrb[207].mxu1  ;;  %6070 = vmatmul.mubr.bf16.gmra.mrb[232].mxu0 %v5799_v57  ;;  %v5775_v59 = vmax.f32 %v5715_v16, 0.0 }
 0xc5e   : > { %v5721_v39 = vadd.f32 %v5720_v23, %v15225_v4  ;;  %v5776_v62 = vmax.f32 %v5717_v14, 0.0 }
 0xc5f   : > { %v5777_v6 = vmax.f32 %v5719_v61, 0.0 }
 0xc60   : > { %v5778_v58 = vmax.f32 %v5721_v39, 0.0 }
 0xc61   : > { %v5801_v38 = vpack.c.bf16 %v5777_v6, %v5775_v59 }
 0xc62   : > { %v5802_v42 = vpack.c.bf16 %v5778_v58, %v5776_v62  ;;  %v5724_v5 = vpop.f32.mrb[208].mxu1 }
 0xc63   : > { %v5725_v36 = vadd.f32 %v5724_v5, %v15222_v32  ;;  %v5726_v22 = vpop.f32.mrb[209].mxu1 }
 0xc64   : > { %v5727_v15 = vadd.f32 %v5726_v22, %v15225_v4  ;;  %v5728_v49 = vpop.f32.mrb[210].mxu1  ;;  %6079 = vmatprep.mubr.bf16.mxu0 %v5802_v42 }
 0xc65   : > { %v5729_v44 = vadd.f32 %v5728_v49, %v15222_v32  ;;  %v5730_v35 = vpop.f32.mrb[211].mxu1  ;;  %6080 = vmatmul.mubr.bf16.gmra.mrb[236].mxu0 %v5801_v38  ;;  %v5779_v34 = vmax.f32 %v5725_v36, 0.0 }
 0xc66   : > { %v5731_v45 = vadd.f32 %v5730_v35, %v15225_v4  ;;  %v5780_v60 = vmax.f32 %v5727_v15, 0.0 }
 0xc67   : > { %v5781_v48 = vmax.f32 %v5729_v44, 0.0 }
 0xc68   : > { %v5782_v55 = vmax.f32 %v5731_v45, 0.0 }
 0xc69   : > { %v5803_v57 = vpack.c.bf16 %v5781_v48, %v5779_v34 }
 0xc6a   : > { %v5804_v20 = vpack.c.bf16 %v5782_v55, %v5780_v60  ;;  %v5734_v52 = vpop.f32.mrb[212].mxu1 }
 0xc6b   : > { %v5735_v16 = vadd.f32 %v5734_v52, %v15222_v32  ;;  %v5736_v47 = vpop.f32.mrb[213].mxu1 }
 0xc6c   : > { %v5737_v14 = vadd.f32 %v5736_v47, %v15225_v4  ;;  %v5738_v18 = vpop.f32.mrb[214].mxu1  ;;  %6089 = vmatprep.mubr.bf16.mxu0 %v5804_v20 }
 0xc6d   : > { %v5739_v61 = vadd.f32 %v5738_v18, %v15222_v32  ;;  %v5740_v23 = vpop.f32.mrb[215].mxu1  ;;  %6090 = vmatmul.mubr.bf16.gmra.mrb[240].mxu0 %v5803_v57  ;;  %v5783_v59 = vmax.f32 %v5735_v16, 0.0 }
 0xc6e   : > { %v5741_v39 = vadd.f32 %v5740_v23, %v15225_v4  ;;  %v5784_v62 = vmax.f32 %v5737_v14, 0.0 }
 0xc6f   : > { %v5785_v6 = vmax.f32 %v5739_v61, 0.0 }
 0xc70   : > { %v5786_v58 = vmax.f32 %v5741_v39, 0.0 }
 0xc71   : > { %v5805_v38 = vpack.c.bf16 %v5785_v6, %v5783_v59 }
 0xc72   : > { %v5806_v42 = vpack.c.bf16 %v5786_v58, %v5784_v62  ;;  %v5744_v5 = vpop.f32.mrb[216].mxu1 }
 0xc73   : > { %v5745_v36 = vadd.f32 %v5744_v5, %v15222_v32  ;;  %v5746_v22 = vpop.f32.mrb[217].mxu1  ;;  %v11478_v5 = vld [vmem:[%s16825_s3 + $0x7d4] ss:$8 sps:$4 sm:$0xff]  }
 0xc74   : > { %v5747_v15 = vadd.f32 %v5746_v22, %v15225_v4  ;;  %v5748_v49 = vpop.f32.mrb[218].mxu1  ;;  %6099 = vmatprep.mubr.bf16.mxu0 %v5806_v42  ;;  %6475 = vmatprep.subr.bf16.mxu1 %v11478_v5  ;;  %v11484_v22 = vld [vmem:[%s16825_s3 + $0x7f4] ss:$8 sps:$4 sm:$0xff]   ;;  %v11523_v5 = vld [vmem:[%s16827_s5 + $0x7c4] ss:$8 sps:$4 sm:$0xff]  }
 0xc75   : > { %v5749_v44 = vadd.f32 %v5748_v49, %v15222_v32  ;;  %v5750_v35 = vpop.f32.mrb[219].mxu1  ;;  %6100 = vmatmul.mubr.bf16.gmra.mrb[244].mxu0 %v5805_v38  ;;  %v5787_v34 = vmax.f32 %v5745_v36, 0.0  ;;  %v11479_v36 = vld [vmem:[%s16825_s3 + $0x7e0] ss:$8 sps:$4 sm:$0xff]  }
 0xc76   : > { %v5751_v45 = vadd.f32 %v5750_v35, %v15225_v4  ;;  %v5788_v60 = vmax.f32 %v5747_v15, 0.0  ;;  %v11482_v15 = vld [vmem:[%s16825_s3 + $0x7f0] ss:$8 sps:$4 sm:$0xff]   ;;  %v11485_v49 = vld [vmem:[%s16827_s5 + $0x700] ss:$8 sps:$4 sm:$0xff]  }
 0xc77   : > { %v5789_v48 = vmax.f32 %v5749_v44, 0.0  ;;  %v11487_v44 = vld [vmem:[%s16827_s5 + $0x704] ss:$8 sps:$4 sm:$0xff]   ;;  %v11490_v35 = vld [vmem:[%s16827_s5 + $0x714] ss:$8 sps:$4 sm:$0xff]  }
 0xc78   : > { %v5790_v55 = vmax.f32 %v5751_v45, 0.0  ;;  %6816 = vmatprep.subr.bf16.mxu0 %v11487_v44  ;;  %v11488_v45 = vld [vmem:[%s16827_s5 + $0x710] ss:$8 sps:$4 sm:$0xff]  }
 0xc79   : > { %v5807_v57 = vpack.c.bf16 %v5789_v48, %v5787_v34  ;;  %6817 = vmatpush1.bf16.msra.mxu0 %v11485_v49  ;;  %v11493_v34 = vld [vmem:[%s16827_s5 + $0x724] ss:$8 sps:$4 sm:$0xff]   ;;  %v11491_v48 = vld [vmem:[%s16827_s5 + $0x720] ss:$8 sps:$4 sm:$0xff]  }
 0xc7a   : > { %v5808_v20 = vpack.c.bf16 %v5790_v55, %v5788_v60  ;;  %v5754_v52 = vpop.f32.mrb[220].mxu1  ;;  %6818 = vmatprep.subr.bf16.mxu0 %v11490_v35  ;;  %v11496_v60 = vld [vmem:[%s16827_s5 + $0x734] ss:$8 sps:$4 sm:$0xff]   ;;  %v11494_v55 = vld [vmem:[%s16827_s5 + $0x730] ss:$8 sps:$4 sm:$0xff]  }
 0xc7b   : > { %v5755_v16 = vadd.f32 %v5754_v52, %v15222_v32  ;;  %v5756_v47 = vpop.f32.mrb[221].mxu1  ;;  %v11502_v52 = vld [vmem:[%s16827_s5 + $0x754] ss:$8 sps:$4 sm:$0xff]  }
 0xc7c   : > { %v5757_v14 = vadd.f32 %v5756_v47, %v15225_v4  ;;  %v5758_v18 = vpop.f32.mrb[222].mxu1  ;;  %6109 = vmatprep.mubr.bf16.mxu0 %v5808_v20  ;;  %v11497_v20 = vld [vmem:[%s16827_s5 + $0x740] ss:$8 sps:$4 sm:$0xff]   ;;  %v11505_v47 = vld [vmem:[%s16827_s5 + $0x764] ss:$8 sps:$4 sm:$0xff]  }
 0xc7d   : > { %v5759_v61 = vadd.f32 %v5758_v18, %v15222_v32  ;;  %v5760_v23 = vpop.f32.mrb[223].mxu1  ;;  %6110 = vmatmul.mubr.bf16.gmra.mrb[248].mxu0 %v5807_v57  ;;  %v5791_v59 = vmax.f32 %v5755_v16, 0.0  ;;  %v11476_v32 = vld [vmem:[%s16825_s3 + $0x7d0] ss:$8 sps:$4 sm:$0xff]   ;;  %v11499_v57 = vld [vmem:[%s16827_s5 + $0x744] ss:$8 sps:$4 sm:$0xff]  }
 0xc7e   : > { %v5761_v39 = vadd.f32 %v5760_v23, %v15225_v4  ;;  %v5792_v62 = vmax.f32 %v5757_v14, 0.0  ;;  %6476 = vmatpush1.bf16.msra.mxu1 %v11476_v32  ;;  %v11481_v4 = vld [vmem:[%s16825_s3 + $0x7e4] ss:$8 sps:$4 sm:$0xff]   ;;  %6819 = vmatpush1.bf16.msra.mxu0 %v11488_v45  ;;  %v11500_v16 = vld [vmem:[%s16827_s5 + $0x750] ss:$8 sps:$4 sm:$0xff]  }
 0xc7f   : > { %v5793_v6 = vmax.f32 %v5759_v61, 0.0  ;;  %6477 = vmatprep.subr.bf16.mxu1 %v11481_v4  ;;  %6820 = vmatprep.subr.bf16.mxu0 %v11493_v34  ;;  %v11503_v14 = vld [vmem:[%s16827_s5 + $0x760] ss:$8 sps:$4 sm:$0xff]   ;;  %v11508_v18 = vld [vmem:[%s16827_s5 + $0x774] ss:$8 sps:$4 sm:$0xff]  }
 0xc80   : > { %v5794_v58 = vmax.f32 %v5761_v39, 0.0  ;;  %v11506_v61 = vld [vmem:[%s16827_s5 + $0x770] ss:$8 sps:$4 sm:$0xff]   ;;  %v11511_v23 = vld [vmem:[%s16827_s5 + $0x784] ss:$8 sps:$4 sm:$0xff]  }
 0xc81   : > { %v5809_v38 = vpack.c.bf16 %v5793_v6, %v5791_v59  ;;  %v11509_v39 = vld [vmem:[%s16827_s5 + $0x780] ss:$8 sps:$4 sm:$0xff]   ;;  %v11514_v59 = vld [vmem:[%s16827_s5 + $0x794] ss:$8 sps:$4 sm:$0xff]   ;;  %v11512_v6 = vld [vmem:[%s16827_s5 + $0x790] ss:$8 sps:$4 sm:$0xff]  }
 0xc82   : > { %v5810_v42 = vpack.c.bf16 %v5794_v58, %v5792_v62  ;;  %6478 = vmatpush1.bf16.msra.mxu1 %v11479_v36  ;;  %6821 = vmatpush1.bf16.msra.mxu0 %v11491_v48  ;;  %v11517_v62 = vld [vmem:[%s16827_s5 + $0x7a4] ss:$8 sps:$4 sm:$0xff]   ;;  %v11515_v58 = vld [vmem:[%s16827_s5 + $0x7a0] ss:$8 sps:$4 sm:$0xff]   ;;  %v11526_v4 = vld [vmem:[%s16827_s5 + $0x7d4] ss:$8 sps:$4 sm:$0xff]  }
 0xc83   : > { %6479 = vmatprep.subr.bf16.mxu1 %v11484_v22  ;;  %6822 = vmatprep.subr.bf16.mxu0 %v11496_v60  ;;  %v11521_v32 = vld [vmem:[%s16827_s5 + $0x7c0] ss:$8 sps:$4 sm:$0xff]   ;;  %v11524_v36 = vld [vmem:[%s16827_s5 + $0x7d0] ss:$8 sps:$4 sm:$0xff]   ;;  %v10051_v22 = vld [vmem:[%s16828_s6 + $0xc] sm:$0x3] }
 0xc84   : > { %6119 = vmatprep.mubr.bf16.mxu0 %v5810_v42  ;;  %v11518_v42 = vld [vmem:[%s16827_s5 + $0x7b0] ss:$8 sps:$4 sm:$0xff]   ;;  %v15368_v49 = vrot.slane %v10051_v22, %v12127_v29 }
 0xc85   : > { %6120 = vmatmul.mubr.bf16.gmra.mrb[252].mxu0 %v5809_v38  ;;  %v11520_v38 = vld [vmem:[%s16827_s5 + $0x7b4] ss:$8 sps:$4 sm:$0xff]  }
 0xc86   : > { %6480 = vmatpush1.bf16.msra.mxu1 %v11482_v15  ;;  %6823 = vmatpush1.bf16.msra.mxu0 %v11494_v55  ;;  %v15365_v15 = vrot.slane %v10051_v22, %v12125_v28 }
 0xc87   : > { %6824 = vmatprep.subr.bf16.mxu0 %v11499_v57 }
 0xc8a   : > { %6825 = vmatpush1.bf16.msra.mxu0 %v11497_v20 }
 0xc8b   : > { %6826 = vmatprep.subr.bf16.mxu0 %v11502_v52 }
 0xc8e   : > { %6827 = vmatpush1.bf16.msra.mxu0 %v11500_v16 }
 0xc8f   : > { %6828 = vmatprep.subr.bf16.mxu0 %v11505_v47 }
 0xc92   : > { %6829 = vmatpush1.bf16.msra.mxu0 %v11503_v14 }
 0xc93   : > { %6830 = vmatprep.subr.bf16.mxu0 %v11508_v18 }
 0xc96   : > { %6831 = vmatpush1.bf16.msra.mxu0 %v11506_v61 }
 0xc97   : > { %6832 = vmatprep.subr.bf16.mxu0 %v11511_v23 }
 0xc9a   : > { %6833 = vmatpush1.bf16.msra.mxu0 %v11509_v39 }
 0xc9b   : > { %6834 = vmatprep.subr.bf16.mxu0 %v11514_v59 }
 0xc9e   : > { %6835 = vmatpush1.bf16.msra.mxu0 %v11512_v6 }
 0xc9f   : > { %6836 = vmatprep.subr.bf16.mxu0 %v11517_v62 }
 0xca2   : > { %6837 = vmatpush1.bf16.msra.mxu0 %v11515_v58 }
 0xca3   : > { %6838 = vmatprep.subr.bf16.mxu0 %v11520_v38 }
 0xca6   : > { %6839 = vmatpush1.bf16.msra.mxu0 %v11518_v42 }
 0xca7   : > { %6840 = vmatprep.subr.bf16.mxu0 %v11523_v5 }
 0xcaa   : > { %6841 = vmatpush1.bf16.msra.mxu0 %v11521_v32 }
 0xcab   : > { %6842 = vmatprep.subr.bf16.mxu0 %v11526_v4 }
 0xcae   : > { %6843 = vmatpush1.bf16.msra.mxu0 %v11524_v36 }
 0xd20   : > { %v6051_v44 = vpop.f32.mrb[224].mxu0 }
 0xd21   : > { %v6052_v35 = vadd.f32 %v6051_v44, %v15365_v15  ;;  %v6053_v45 = vpop.f32.mrb[225].mxu0 }
 0xd22   : > { %v6054_v34 = vadd.f32 %v6053_v45, %v15368_v49  ;;  %v6055_v48 = vpop.f32.mrb[226].mxu0 }
 0xd23   : > { %v6130_v60 = vadd.f32 %v6052_v35, %v14910_v17  ;;  %v6056_v55 = vadd.f32 %v6055_v48, %v15365_v15  ;;  %v6057_v57 = vpop.f32.mrb[227].mxu0 }
 0xd24   : > { %v6131_v20 = vadd.f32 %v6054_v34, %v14913_v13  ;;  %v6058_v52 = vadd.f32 %v6057_v57, %v15368_v49 }
 0xd25   : > { %v15376_v16 = vmax.f32 %v6130_v60, 0.0  ;;  %v6132_v47 = vadd.f32 %v6056_v55, %v14918_v50 }
 0xd26   : > { %v15379_v14 = vmax.f32 %v6131_v20, 0.0  ;;  %v6133_v18 = vadd.f32 %v6058_v52, %v14922_v37 }
 0xd27   : > { %10084 = vst [vmem:[%s12146_s20 + $0x700] sm:$0xff] %v15376_v16  ;;  %v15384_v61 = vmax.f32 %v6132_v47, 0.0 }
 0xd28   : > { %10085 = vst [vmem:[%s12146_s20 + $0x708] sm:$0xff] %v15379_v14  ;;  %v15388_v17 = vmax.f32 %v6133_v18, 0.0  ;;  %v6061_v23 = vpop.f32.mrb[228].mxu0 }
 0xd29   : > { %10086 = vst [vmem:[%s12146_s20 + $0x710] sm:$0xff] %v15384_v61  ;;  %v6062_v13 = vadd.f32 %v6061_v23, %v15365_v15  ;;  %v6063_v39 = vpop.f32.mrb[229].mxu0  ;;  %v6227_v6 = vpack.c.bf16 %v15384_v61, %v15376_v16 }
 0xd2a   : > { %10087 = vst [vmem:[%s12146_s20 + $0x718] sm:$0xff] %v15388_v17  ;;  %v6064_v50 = vadd.f32 %v6063_v39, %v15368_v49  ;;  %v6065_v37 = vpop.f32.mrb[230].mxu0  ;;  %v6228_v59 = vpack.c.bf16 %v15388_v17, %v15379_v14 }
 0xd2b   : > { %v6134_v62 = vadd.f32 %v6062_v13, %v14938_v19  ;;  %v6066_v58 = vadd.f32 %v6065_v37, %v15365_v15  ;;  %v6067_v38 = vpop.f32.mrb[231].mxu0 }
 0xd2c   : > { %v6135_v42 = vadd.f32 %v6064_v50, %v14941_v41  ;;  %v6068_v5 = vadd.f32 %v6067_v38, %v15368_v49  ;;  %6481 = vmatprep.mubr.bf16.mxu1 %v6228_v59 }
 0xd2d   : > { %v15404_v32 = vmax.f32 %v6134_v62, 0.0  ;;  %v6136_v4 = vadd.f32 %v6066_v58, %v14946_v1  ;;  %6482 = vmatmul.mubr.bf16.vlgmr.msra.gmra.mrb[224].mxu1 %v6227_v6 }
 0xd2e   : > { %v15407_v36 = vmax.f32 %v6135_v42, 0.0  ;;  %v6137_v22 = vadd.f32 %v6068_v5, %v14950_v11 }
 0xd2f   : > { %10088 = vst [vmem:[%s12146_s20 + $0x720] sm:$0xff] %v15404_v32  ;;  %v15412_v19 = vmax.f32 %v6136_v4, 0.0 }
 0xd30   : > { %10089 = vst [vmem:[%s12146_s20 + $0x728] sm:$0xff] %v15407_v36  ;;  %v15416_v41 = vmax.f32 %v6137_v22, 0.0  ;;  %v6071_v44 = vpop.f32.mrb[232].mxu0 }
 0xd31   : > { %10090 = vst [vmem:[%s12146_s20 + $0x730] sm:$0xff] %v15412_v19  ;;  %v6072_v35 = vadd.f32 %v6071_v44, %v15365_v15  ;;  %v6073_v45 = vpop.f32.mrb[233].mxu0  ;;  %v6229_v57 = vpack.c.bf16 %v15412_v19, %v15404_v32 }
 0xd32   : > { %10091 = vst [vmem:[%s12146_s20 + $0x738] sm:$0xff] %v15416_v41  ;;  %v6074_v1 = vadd.f32 %v6073_v45, %v15368_v49  ;;  %v6075_v11 = vpop.f32.mrb[234].mxu0  ;;  %v6230_v34 = vpack.c.bf16 %v15416_v41, %v15407_v36 }
 0xd33   : > { %v6138_v48 = vadd.f32 %v6072_v35, %v14966_v51  ;;  %v6076_v60 = vadd.f32 %v6075_v11, %v15365_v15  ;;  %v6077_v55 = vpop.f32.mrb[235].mxu0 }
 0xd34   : > { %v6139_v20 = vadd.f32 %v6074_v1, %v14969_v33  ;;  %v6078_v52 = vadd.f32 %v6077_v55, %v15368_v49  ;;  %6491 = vmatprep.mubr.bf16.mxu1 %v6230_v34 }
 0xd35   : > { %v15432_v47 = vmax.f32 %v6138_v48, 0.0  ;;  %v6140_v18 = vadd.f32 %v6076_v60, %v14974_v2  ;;  %6492 = vmatmul.mubr.bf16.gmra.mrb[228].mxu1 %v6229_v57 }
 0xd36   : > { %v15435_v23 = vmax.f32 %v6139_v20, 0.0  ;;  %v6141_v51 = vadd.f32 %v6078_v52, %v14978_v3 }
 0xd37   : > { %10092 = vst [vmem:[%s12146_s20 + $0x740] sm:$0xff] %v15432_v47  ;;  %v15440_v13 = vmax.f32 %v6140_v18, 0.0 }
 0xd38   : > { %10093 = vst [vmem:[%s12146_s20 + $0x748] sm:$0xff] %v15435_v23  ;;  %v15444_v33 = vmax.f32 %v6141_v51, 0.0  ;;  %v6081_v39 = vpop.f32.mrb[236].mxu0 }
 0xd39   : > { %10094 = vst [vmem:[%s12146_s20 + $0x750] sm:$0xff] %v15440_v13  ;;  %v6082_v50 = vadd.f32 %v6081_v39, %v15365_v15  ;;  %v6083_v37 = vpop.f32.mrb[237].mxu0  ;;  %v6231_v38 = vpack.c.bf16 %v15440_v13, %v15432_v47 }
 0xd3a   : > { %10095 = vst [vmem:[%s12146_s20 + $0x758] sm:$0xff] %v15444_v33  ;;  %v6084_v2 = vadd.f32 %v6083_v37, %v15368_v49  ;;  %v6085_v3 = vpop.f32.mrb[238].mxu0  ;;  %v6232_v59 = vpack.c.bf16 %v15444_v33, %v15435_v23 }
 0xd3b   : > { %v6142_v6 = vadd.f32 %v6082_v50, %v14994_v7  ;;  %v6086_v62 = vadd.f32 %v6085_v3, %v15365_v15  ;;  %v6087_v58 = vpop.f32.mrb[239].mxu0 }
 0xd3c   : > { %v6143_v42 = vadd.f32 %v6084_v2, %v14997_v46  ;;  %v6088_v5 = vadd.f32 %v6087_v58, %v15368_v49  ;;  %6501 = vmatprep.mubr.bf16.mxu1 %v6232_v59 }
 0xd3d   : > { %v15460_v4 = vmax.f32 %v6142_v6, 0.0  ;;  %v6144_v22 = vadd.f32 %v6086_v62, %v15002_v30  ;;  %6502 = vmatmul.mubr.bf16.gmra.mrb[232].mxu1 %v6231_v38 }
 0xd3e   : > { %v15463_v44 = vmax.f32 %v6143_v42, 0.0  ;;  %v6145_v7 = vadd.f32 %v6088_v5, %v15006_v25 }
 0xd3f   : > { %10096 = vst [vmem:[%s12146_s20 + $0x760] sm:$0xff] %v15460_v4  ;;  %v15468_v35 = vmax.f32 %v6144_v22, 0.0 }
 0xd40   : > { %10097 = vst [vmem:[%s12146_s20 + $0x768] sm:$0xff] %v15463_v44  ;;  %v15472_v46 = vmax.f32 %v6145_v7, 0.0  ;;  %v6091_v45 = vpop.f32.mrb[240].mxu0 }
 0xd41   : > { %10098 = vst [vmem:[%s12146_s20 + $0x770] sm:$0xff] %v15468_v35  ;;  %v6092_v1 = vadd.f32 %v6091_v45, %v15365_v15  ;;  %v6093_v11 = vpop.f32.mrb[241].mxu0  ;;  %v6233_v57 = vpack.c.bf16 %v15468_v35, %v15460_v4 }
 0xd42   : > { %10099 = vst [vmem:[%s12146_s20 + $0x778] sm:$0xff] %v15472_v46  ;;  %v6094_v30 = vadd.f32 %v6093_v11, %v15368_v49  ;;  %v6095_v25 = vpop.f32.mrb[242].mxu0  ;;  %v6234_v34 = vpack.c.bf16 %v15472_v46, %v15463_v44 }
 0xd43   : > { %v6146_v48 = vadd.f32 %v6092_v1, %v15022_v21  ;;  %v6096_v60 = vadd.f32 %v6095_v25, %v15365_v15  ;;  %v6097_v55 = vpop.f32.mrb[243].mxu0 }
 0xd44   : > { %v6147_v20 = vadd.f32 %v6094_v30, %v15025_v10  ;;  %v6098_v52 = vadd.f32 %v6097_v55, %v15368_v49  ;;  %6511 = vmatprep.mubr.bf16.mxu1 %v6234_v34 }
 0xd45   : > { %v15488_v18 = vmax.f32 %v6146_v48, 0.0  ;;  %v6148_v51 = vadd.f32 %v6096_v60, %v15030_v54  ;;  %6512 = vmatmul.mubr.bf16.gmra.mrb[236].mxu1 %v6233_v57 }
 0xd46   : > { %v15491_v39 = vmax.f32 %v6147_v20, 0.0  ;;  %v6149_v21 = vadd.f32 %v6098_v52, %v15034_v63 }
 0xd47   : > { %10100 = vst [vmem:[%s12146_s20 + $0x780] sm:$0xff] %v15488_v18  ;;  %v15496_v50 = vmax.f32 %v6148_v51, 0.0 }
 0xd48   : > { %10101 = vst [vmem:[%s12146_s20 + $0x788] sm:$0xff] %v15491_v39  ;;  %v15500_v10 = vmax.f32 %v6149_v21, 0.0  ;;  %v6101_v37 = vpop.f32.mrb[244].mxu0 }
 0xd49   : > { %10102 = vst [vmem:[%s12146_s20 + $0x790] sm:$0xff] %v15496_v50  ;;  %v6102_v2 = vadd.f32 %v6101_v37, %v15365_v15  ;;  %v6103_v3 = vpop.f32.mrb[245].mxu0  ;;  %v6235_v38 = vpack.c.bf16 %v15496_v50, %v15488_v18 }
 0xd4a   : > { %10103 = vst [vmem:[%s12146_s20 + $0x798] sm:$0xff] %v15500_v10  ;;  %v6104_v54 = vadd.f32 %v6103_v3, %v15368_v49  ;;  %v6105_v63 = vpop.f32.mrb[246].mxu0  ;;  %v6236_v59 = vpack.c.bf16 %v15500_v10, %v15491_v39 }
 0xd4b   : > { %v6150_v6 = vadd.f32 %v6102_v2, %v15050_v40  ;;  %v6106_v62 = vadd.f32 %v6105_v63, %v15365_v15  ;;  %v6107_v58 = vpop.f32.mrb[247].mxu0 }
 0xd4c   : > { %v6151_v42 = vadd.f32 %v6104_v54, %v15053_v31  ;;  %v6108_v5 = vadd.f32 %v6107_v58, %v15368_v49  ;;  %6521 = vmatprep.mubr.bf16.mxu1 %v6236_v59 }
 0xd4d   : > { %v15516_v22 = vmax.f32 %v6150_v6, 0.0  ;;  %v6152_v7 = vadd.f32 %v6106_v62, %v15058_v9  ;;  %6522 = vmatmul.mubr.bf16.gmra.mrb[240].mxu1 %v6235_v38 }
 0xd4e   : > { %v15519_v45 = vmax.f32 %v6151_v42, 0.0  ;;  %v6153_v40 = vadd.f32 %v6108_v5, %v15062_v26 }
 0xd4f   : > { %10104 = vst [vmem:[%s12146_s20 + $0x7a0] sm:$0xff] %v15516_v22  ;;  %v15524_v1 = vmax.f32 %v6152_v7, 0.0 }
 0xd50   : > { %10105 = vst [vmem:[%s12146_s20 + $0x7a8] sm:$0xff] %v15519_v45  ;;  %v15528_v31 = vmax.f32 %v6153_v40, 0.0  ;;  %v6111_v11 = vpop.f32.mrb[248].mxu0 }
 0xd51   : > { %10106 = vst [vmem:[%s12146_s20 + $0x7b0] sm:$0xff] %v15524_v1  ;;  %v6112_v30 = vadd.f32 %v6111_v11, %v15365_v15  ;;  %v6113_v25 = vpop.f32.mrb[249].mxu0  ;;  %v6237_v57 = vpack.c.bf16 %v15524_v1, %v15516_v22 }
 0xd52   : > { %10107 = vst [vmem:[%s12146_s20 + $0x7b8] sm:$0xff] %v15528_v31  ;;  %v6114_v9 = vadd.f32 %v6113_v25, %v15368_v49  ;;  %v6115_v26 = vpop.f32.mrb[250].mxu0  ;;  %v6238_v34 = vpack.c.bf16 %v15528_v31, %v15519_v45  ;;  %v11532_v25 = vld [vmem:[%s16827_s5 + $0x7f4] ss:$8 sps:$4 sm:$0xff]  }
 0xd53   : > { %v6154_v48 = vadd.f32 %v6112_v30, %v15078_v56  ;;  %v6116_v60 = vadd.f32 %v6115_v26, %v15365_v15  ;;  %v6117_v55 = vpop.f32.mrb[251].mxu0  ;;  %v11533_v26 = vld [vmem:[%s16825_s3 + $0x800] ss:$8 sps:$4 sm:$0xff]  }
 0xd54   : > { %v6155_v20 = vadd.f32 %v6114_v9, %v15081_v43  ;;  %v6118_v52 = vadd.f32 %v6117_v55, %v15368_v49  ;;  %6531 = vmatprep.mubr.bf16.mxu1 %v6238_v34  ;;  %v11530_v9 = vld [vmem:[%s16827_s5 + $0x7f0] ss:$8 sps:$4 sm:$0xff]   ;;  %v11535_v34 = vld [vmem:[%s16825_s3 + $0x804] ss:$8 sps:$4 sm:$0xff]  }
 0xd55   : > { %v15544_v51 = vmax.f32 %v6154_v48, 0.0  ;;  %v6156_v21 = vadd.f32 %v6116_v60, %v15086_v53  ;;  %6532 = vmatmul.mubr.bf16.gmra.mrb[244].mxu1 %v6237_v57  ;;  %v11538_v48 = vld [vmem:[%s16825_s3 + $0x814] ss:$8 sps:$4 sm:$0xff]   ;;  %7248 = vmatprep.subr.bf16.mxu1 %v11535_v34  ;;  %v11536_v60 = vld [vmem:[%s16825_s3 + $0x810] ss:$8 sps:$4 sm:$0xff]  }
 0xd56   : > { %v15547_v37 = vmax.f32 %v6155_v20, 0.0  ;;  %v6157_v56 = vadd.f32 %v6118_v52, %v15090_v12  ;;  %7249 = vmatpush1.bf16.msra.mxu1 %v11533_v26  ;;  %v11541_v55 = vld [vmem:[%s16825_s3 + $0x824] ss:$8 sps:$4 sm:$0xff]   ;;  %v11539_v57 = vld [vmem:[%s16825_s3 + $0x820] ss:$8 sps:$4 sm:$0xff]  }
 0xd57   : > { %10108 = vst [vmem:[%s12146_s20 + $0x7c0] sm:$0xff] %v15544_v51  ;;  %v15552_v2 = vmax.f32 %v6156_v21, 0.0  ;;  %7250 = vmatprep.subr.bf16.mxu1 %v11538_v48  ;;  %v11544_v20 = vld [vmem:[%s16825_s3 + $0x834] ss:$8 sps:$4 sm:$0xff]   ;;  %v11542_v52 = vld [vmem:[%s16825_s3 + $0x830] ss:$8 sps:$4 sm:$0xff]  }
 0xd58   : > { %10109 = vst [vmem:[%s12146_s20 + $0x7c8] sm:$0xff] %v15547_v37  ;;  %v15556_v43 = vmax.f32 %v6157_v56, 0.0  ;;  %v6121_v3 = vpop.f32.mrb[252].mxu0  ;;  %v11547_v21 = vld [vmem:[%s16825_s3 + $0x844] ss:$8 sps:$4 sm:$0xff]  }
 0xd59   : > { %10110 = vst [vmem:[%s12146_s20 + $0x7d0] sm:$0xff] %v15552_v2  ;;  %v6122_v54 = vadd.f32 %v6121_v3, %v15365_v15  ;;  %v6123_v63 = vpop.f32.mrb[253].mxu0  ;;  %v6239_v38 = vpack.c.bf16 %v15552_v2, %v15544_v51  ;;  %v11545_v56 = vld [vmem:[%s16825_s3 + $0x840] ss:$8 sps:$4 sm:$0xff]   ;;  %v11550_v3 = vld [vmem:[%s16825_s3 + $0x854] ss:$8 sps:$4 sm:$0xff]  }
 0xd5a   : > { %10111 = vst [vmem:[%s12146_s20 + $0x7d8] sm:$0xff] %v15556_v43  ;;  %v6124_v53 = vadd.f32 %v6123_v63, %v15368_v49  ;;  %v6125_v12 = vpop.f32.mrb[254].mxu0  ;;  %v6240_v59 = vpack.c.bf16 %v15556_v43, %v15547_v37  ;;  %7251 = vmatpush1.bf16.msra.mxu1 %v11536_v60  ;;  %v11553_v63 = vld [vmem:[%s16825_s3 + $0x864] ss:$8 sps:$4 sm:$0xff]  }
 0xd5b   : > { %v6158_v6 = vadd.f32 %v6122_v54, %v15106_v8  ;;  %v6126_v62 = vadd.f32 %v6125_v12, %v15365_v15  ;;  %v6127_v58 = vpop.f32.mrb[255].mxu0  ;;  %7252 = vmatprep.subr.bf16.mxu1 %v11541_v55  ;;  %v11548_v54 = vld [vmem:[%s16825_s3 + $0x850] ss:$8 sps:$4 sm:$0xff]   ;;  %v11556_v12 = vld [vmem:[%s16825_s3 + $0x874] ss:$8 sps:$4 sm:$0xff]  }
 0xd5c   : > { %v6159_v42 = vadd.f32 %v6124_v53, %v15109_v0  ;;  %v6128_v5 = vadd.f32 %v6127_v58, %v15368_v49  ;;  %6541 = vmatprep.mubr.bf16.mxu1 %v6240_v59  ;;  %v11527_v49 = vld [vmem:[%s16827_s5 + $0x7e0] ss:$8 sps:$4 sm:$0xff]   ;;  %v11554_v59 = vld [vmem:[%s16825_s3 + $0x870] ss:$8 sps:$4 sm:$0xff]   ;;  %v11562_v58 = vld [vmem:[%s16825_s3 + $0x894] ss:$8 sps:$4 sm:$0xff]  }
 0xd5d   : > { %v15572_v7 = vmax.f32 %v6158_v6, 0.0  ;;  %v6160_v40 = vadd.f32 %v6126_v62, %v15114_v27  ;;  %6542 = vmatmul.mubr.bf16.gmra.mrb[248].mxu1 %v6239_v38  ;;  %v11551_v53 = vld [vmem:[%s16825_s3 + $0x860] ss:$8 sps:$4 sm:$0xff]   ;;  %v11559_v6 = vld [vmem:[%s16825_s3 + $0x884] ss:$8 sps:$4 sm:$0xff]  }
 0xd5e   : > { %v15575_v11 = vmax.f32 %v6159_v42, 0.0  ;;  %v6161_v8 = vadd.f32 %v6128_v5, %v15118_v24  ;;  %v11529_v24 = vld [vmem:[%s16827_s5 + $0x7e4] ss:$8 sps:$4 sm:$0xff]   ;;  %7253 = vmatpush1.bf16.msra.mxu1 %v11539_v57  ;;  %v11557_v62 = vld [vmem:[%s16825_s3 + $0x880] ss:$8 sps:$4 sm:$0xff]  }
 0xd5f   : > { %10112 = vst [vmem:[%s12146_s20 + $0x7e0] sm:$0xff] %v15572_v7  ;;  %v15580_v15 = vmax.f32 %v6160_v40, 0.0  ;;  %6844 = vmatprep.subr.bf16.mxu0 %v11529_v24  ;;  %7254 = vmatprep.subr.bf16.mxu1 %v11544_v20  ;;  %v11560_v38 = vld [vmem:[%s16825_s3 + $0x890] ss:$8 sps:$4 sm:$0xff]   ;;  %v11565_v42 = vld [vmem:[%s16825_s3 + $0x8a4] ss:$8 sps:$4 sm:$0xff]  }
 0xd60   : > { %10113 = vst [vmem:[%s12146_s20 + $0x7e8] sm:$0xff] %v15575_v11  ;;  %v15584_v30 = vmax.f32 %v6161_v8, 0.0  ;;  %6845 = vmatpush1.bf16.msra.mxu0 %v11527_v49  ;;  %v11563_v5 = vld [vmem:[%s16825_s3 + $0x8a0] ss:$8 sps:$4 sm:$0xff]   ;;  %v11568_v40 = vld [vmem:[%s16825_s3 + $0x8b4] ss:$8 sps:$4 sm:$0xff]  }
 0xd61   : > { %10114 = vst [vmem:[%s12146_s20 + $0x7f0] sm:$0xff] %v15580_v15  ;;  %v6241_v27 = vpack.c.bf16 %v15580_v15, %v15572_v7  ;;  %6846 = vmatprep.subr.bf16.mxu0 %v11532_v25  ;;  %v11566_v8 = vld [vmem:[%s16825_s3 + $0x8b0] ss:$8 sps:$4 sm:$0xff]   ;;  %v10148_v24 = vld [vmem:[%s16826_s4 + $0xe] sm:$0x3] }
 0xd62   : > { %10115 = vst [vmem:[%s12146_s20 + $0x7f8] sm:$0xff] %v15584_v30  ;;  %v6242_v0 = vpack.c.bf16 %v15584_v30, %v15575_v11  ;;  %7255 = vmatpush1.bf16.msra.mxu1 %v11542_v52  ;;  %v15688_v49 = vrot.slane %v10148_v24, %v12125_v28  ;;  %v15691_v25 = vrot.slane %v10148_v24, %v12127_v29 }
 0xd63   : > { %7256 = vmatprep.subr.bf16.mxu1 %v11547_v21 }
 0xd64   : > { %6551 = vmatprep.mubr.bf16.mxu1 %v6242_v0  ;;  %6847 = vmatpush1.bf16.msra.mxu0 %v11530_v9  ;;  %v11571_v0 = vld [vmem:[%s16825_s3 + $0x8c4] ss:$8 sps:$4 sm:$0xff]  }
 0xd65   : > { %6552 = vmatmul.mubr.bf16.gmra.mrb[252].mxu1 %v6241_v27  ;;  %v11569_v27 = vld [vmem:[%s16825_s3 + $0x8c0] ss:$8 sps:$4 sm:$0xff]  }
 0xd66   : > { %7257 = vmatpush1.bf16.msra.mxu1 %v11545_v56 }
 0xd67   : > { %7258 = vmatprep.subr.bf16.mxu1 %v11550_v3 }
 0xd6a   : > { %7259 = vmatpush1.bf16.msra.mxu1 %v11548_v54 }
 0xd6b   : > { %7260 = vmatprep.subr.bf16.mxu1 %v11553_v63 }
 0xd6e   : > { %7261 = vmatpush1.bf16.msra.mxu1 %v11551_v53 }
 0xd6f   : > { %7262 = vmatprep.subr.bf16.mxu1 %v11556_v12 }
 0xd72   : > { %7263 = vmatpush1.bf16.msra.mxu1 %v11554_v59 }
 0xd73   : > { %7264 = vmatprep.subr.bf16.mxu1 %v11559_v6 }
 0xd76   : > { %7265 = vmatpush1.bf16.msra.mxu1 %v11557_v62 }
 0xd77   : > { %7266 = vmatprep.subr.bf16.mxu1 %v11562_v58 }
 0xd7a   : > { %7267 = vmatpush1.bf16.msra.mxu1 %v11560_v38 }
 0xd7b   : > { %7268 = vmatprep.subr.bf16.mxu1 %v11565_v42 }
 0xd7e   : > { %7269 = vmatpush1.bf16.msra.mxu1 %v11563_v5 }
 0xd7f   : > { %7270 = vmatprep.subr.bf16.mxu1 %v11568_v40 }
 0xd82   : > { %7271 = vmatpush1.bf16.msra.mxu1 %v11566_v8 }
 0xd83   : > { %7272 = vmatprep.subr.bf16.mxu1 %v11571_v0 }
 0xd86   : > { %7273 = vmatpush1.bf16.msra.mxu1 %v11569_v27 }
 0xe00   : > { %v6483_v9 = vpop.f32.mrb[224].mxu1 }
 0xe01   : > { %v6484_v26 = vadd.f32 %v6483_v9, %v15688_v49  ;;  %v6485_v34 = vpop.f32.mrb[225].mxu1 }
 0xe02   : > { %v6486_v48 = vadd.f32 %v6485_v34, %v15691_v25  ;;  %v6487_v60 = vpop.f32.mrb[226].mxu1 }
 0xe03   : > { %v6488_v55 = vadd.f32 %v6487_v60, %v15688_v49  ;;  %v6489_v57 = vpop.f32.mrb[227].mxu1  ;;  %v6562_v52 = vmax.f32 %v6484_v26, 0.0 }
 0xe04   : > { %v6490_v20 = vadd.f32 %v6489_v57, %v15691_v25  ;;  %v6563_v56 = vmax.f32 %v6486_v48, 0.0 }
 0xe05   : > { %v6564_v21 = vmax.f32 %v6488_v55, 0.0 }
 0xe06   : > { %v6565_v3 = vmax.f32 %v6490_v20, 0.0 }
 0xe07   : > { %v6594_v54 = vpack.c.bf16 %v6564_v21, %v6562_v52 }
 0xe08   : > { %v6595_v63 = vpack.c.bf16 %v6565_v3, %v6563_v56  ;;  %v6493_v53 = vpop.f32.mrb[228].mxu1 }
 0xe09   : > { %v6494_v12 = vadd.f32 %v6493_v53, %v15688_v49  ;;  %v6495_v59 = vpop.f32.mrb[229].mxu1 }
 0xe0a   : > { %v6496_v6 = vadd.f32 %v6495_v59, %v15691_v25  ;;  %v6497_v62 = vpop.f32.mrb[230].mxu1  ;;  %6848 = vmatprep.mubr.bf16.mxu0 %v6595_v63 }
 0xe0b   : > { %v6498_v58 = vadd.f32 %v6497_v62, %v15688_v49  ;;  %v6499_v38 = vpop.f32.mrb[231].mxu1  ;;  %6849 = vmatmul.mubr.bf16.vlgmr.msra.gmra.mrb[0].mxu0 %v6594_v54  ;;  %v6566_v5 = vmax.f32 %v6494_v12, 0.0 }
 0xe0c   : > { %v6500_v42 = vadd.f32 %v6499_v38, %v15691_v25  ;;  %v6567_v8 = vmax.f32 %v6496_v6, 0.0 }
 0xe0d   : > { %v6568_v40 = vmax.f32 %v6498_v58, 0.0 }
 0xe0e   : > { %v6569_v0 = vmax.f32 %v6500_v42, 0.0 }
 0xe0f   : > { %v6596_v27 = vpack.c.bf16 %v6568_v40, %v6566_v5 }
 0xe10   : > { %v6597_v24 = vpack.c.bf16 %v6569_v0, %v6567_v8  ;;  %v6503_v9 = vpop.f32.mrb[232].mxu1 }
 0xe11   : > { %v6504_v26 = vadd.f32 %v6503_v9, %v15688_v49  ;;  %v6505_v34 = vpop.f32.mrb[233].mxu1 }
 0xe12   : > { %v6506_v48 = vadd.f32 %v6505_v34, %v15691_v25  ;;  %v6507_v60 = vpop.f32.mrb[234].mxu1  ;;  %6858 = vmatprep.mubr.bf16.mxu0 %v6597_v24 }
 0xe13   : > { %v6508_v55 = vadd.f32 %v6507_v60, %v15688_v49  ;;  %v6509_v57 = vpop.f32.mrb[235].mxu1  ;;  %6859 = vmatmul.mubr.bf16.gmra.mrb[4].mxu0 %v6596_v27  ;;  %v6570_v52 = vmax.f32 %v6504_v26, 0.0 }
 0xe14   : > { %v6510_v20 = vadd.f32 %v6509_v57, %v15691_v25  ;;  %v6571_v56 = vmax.f32 %v6506_v48, 0.0 }
 0xe15   : > { %v6572_v21 = vmax.f32 %v6508_v55, 0.0 }
 0xe16   : > { %v6573_v3 = vmax.f32 %v6510_v20, 0.0 }
 0xe17   : > { %v6598_v54 = vpack.c.bf16 %v6572_v21, %v6570_v52 }
 0xe18   : > { %v6599_v63 = vpack.c.bf16 %v6573_v3, %v6571_v56  ;;  %v6513_v53 = vpop.f32.mrb[236].mxu1 }
 0xe19   : > { %v6514_v12 = vadd.f32 %v6513_v53, %v15688_v49  ;;  %v6515_v59 = vpop.f32.mrb[237].mxu1 }
 0xe1a   : > { %v6516_v6 = vadd.f32 %v6515_v59, %v15691_v25  ;;  %v6517_v62 = vpop.f32.mrb[238].mxu1  ;;  %6868 = vmatprep.mubr.bf16.mxu0 %v6599_v63 }
 0xe1b   : > { %v6518_v58 = vadd.f32 %v6517_v62, %v15688_v49  ;;  %v6519_v38 = vpop.f32.mrb[239].mxu1  ;;  %6869 = vmatmul.mubr.bf16.gmra.mrb[8].mxu0 %v6598_v54  ;;  %v6574_v5 = vmax.f32 %v6514_v12, 0.0 }
 0xe1c   : > { %v6520_v42 = vadd.f32 %v6519_v38, %v15691_v25  ;;  %v6575_v8 = vmax.f32 %v6516_v6, 0.0 }
 0xe1d   : > { %v6576_v40 = vmax.f32 %v6518_v58, 0.0 }
 0xe1e   : > { %v6577_v0 = vmax.f32 %v6520_v42, 0.0 }
 0xe1f   : > { %v6600_v27 = vpack.c.bf16 %v6576_v40, %v6574_v5 }
 0xe20   : > { %v6601_v24 = vpack.c.bf16 %v6577_v0, %v6575_v8  ;;  %v6523_v9 = vpop.f32.mrb[240].mxu1 }
 0xe21   : > { %v6524_v26 = vadd.f32 %v6523_v9, %v15688_v49  ;;  %v6525_v34 = vpop.f32.mrb[241].mxu1 }
 0xe22   : > { %v6526_v48 = vadd.f32 %v6525_v34, %v15691_v25  ;;  %v6527_v60 = vpop.f32.mrb[242].mxu1  ;;  %6878 = vmatprep.mubr.bf16.mxu0 %v6601_v24 }
 0xe23   : > { %v6528_v55 = vadd.f32 %v6527_v60, %v15688_v49  ;;  %v6529_v57 = vpop.f32.mrb[243].mxu1  ;;  %6879 = vmatmul.mubr.bf16.gmra.mrb[12].mxu0 %v6600_v27  ;;  %v6578_v52 = vmax.f32 %v6524_v26, 0.0 }
 0xe24   : > { %v6530_v20 = vadd.f32 %v6529_v57, %v15691_v25  ;;  %v6579_v56 = vmax.f32 %v6526_v48, 0.0 }
 0xe25   : > { %v6580_v21 = vmax.f32 %v6528_v55, 0.0 }
 0xe26   : > { %v6581_v3 = vmax.f32 %v6530_v20, 0.0 }
 0xe27   : > { %v6602_v54 = vpack.c.bf16 %v6580_v21, %v6578_v52 }
 0xe28   : > { %v6603_v63 = vpack.c.bf16 %v6581_v3, %v6579_v56  ;;  %v6533_v53 = vpop.f32.mrb[244].mxu1 }
 0xe29   : > { %v6534_v12 = vadd.f32 %v6533_v53, %v15688_v49  ;;  %v6535_v59 = vpop.f32.mrb[245].mxu1 }
 0xe2a   : > { %v6536_v6 = vadd.f32 %v6535_v59, %v15691_v25  ;;  %v6537_v62 = vpop.f32.mrb[246].mxu1  ;;  %6888 = vmatprep.mubr.bf16.mxu0 %v6603_v63 }
 0xe2b   : > { %v6538_v58 = vadd.f32 %v6537_v62, %v15688_v49  ;;  %v6539_v38 = vpop.f32.mrb[247].mxu1  ;;  %6889 = vmatmul.mubr.bf16.gmra.mrb[16].mxu0 %v6602_v54  ;;  %v6582_v5 = vmax.f32 %v6534_v12, 0.0 }
 0xe2c   : > { %v6540_v42 = vadd.f32 %v6539_v38, %v15691_v25  ;;  %v6583_v8 = vmax.f32 %v6536_v6, 0.0 }
 0xe2d   : > { %v6584_v40 = vmax.f32 %v6538_v58, 0.0 }
 0xe2e   : > { %v6585_v0 = vmax.f32 %v6540_v42, 0.0 }
 0xe2f   : > { %v6604_v27 = vpack.c.bf16 %v6584_v40, %v6582_v5 }
 0xe30   : > { %v6605_v24 = vpack.c.bf16 %v6585_v0, %v6583_v8  ;;  %v6543_v9 = vpop.f32.mrb[248].mxu1 }
 0xe31   : > { %v6544_v26 = vadd.f32 %v6543_v9, %v15688_v49  ;;  %v6545_v34 = vpop.f32.mrb[249].mxu1  ;;  %v11574_v9 = vld [vmem:[%s16825_s3 + $0x8d4] ss:$8 sps:$4 sm:$0xff]  }
 0xe32   : > { %v6546_v48 = vadd.f32 %v6545_v34, %v15691_v25  ;;  %v6547_v60 = vpop.f32.mrb[250].mxu1  ;;  %6898 = vmatprep.mubr.bf16.mxu0 %v6605_v24  ;;  %7274 = vmatprep.subr.bf16.mxu1 %v11574_v9  ;;  %v11580_v34 = vld [vmem:[%s16825_s3 + $0x8f4] ss:$8 sps:$4 sm:$0xff]   ;;  %v11619_v9 = vld [vmem:[%s16827_s5 + $0x8c4] ss:$8 sps:$4 sm:$0xff]  }
 0xe33   : > { %v6548_v55 = vadd.f32 %v6547_v60, %v15688_v49  ;;  %v6549_v57 = vpop.f32.mrb[251].mxu1  ;;  %6899 = vmatmul.mubr.bf16.gmra.mrb[20].mxu0 %v6604_v27  ;;  %v6586_v52 = vmax.f32 %v6544_v26, 0.0  ;;  %v11575_v26 = vld [vmem:[%s16825_s3 + $0x8e0] ss:$8 sps:$4 sm:$0xff]  }
 0xe34   : > { %v6550_v20 = vadd.f32 %v6549_v57, %v15691_v25  ;;  %v6587_v56 = vmax.f32 %v6546_v48, 0.0  ;;  %v11578_v48 = vld [vmem:[%s16825_s3 + $0x8f0] ss:$8 sps:$4 sm:$0xff]   ;;  %v11581_v60 = vld [vmem:[%s16827_s5 + $0x800] ss:$8 sps:$4 sm:$0xff]  }
 0xe35   : > { %v6588_v21 = vmax.f32 %v6548_v55, 0.0  ;;  %v11583_v55 = vld [vmem:[%s16827_s5 + $0x804] ss:$8 sps:$4 sm:$0xff]   ;;  %v11586_v57 = vld [vmem:[%s16827_s5 + $0x814] ss:$8 sps:$4 sm:$0xff]  }
 0xe36   : > { %v6589_v3 = vmax.f32 %v6550_v20, 0.0  ;;  %7615 = vmatprep.subr.bf16.mxu0 %v11583_v55  ;;  %v11584_v20 = vld [vmem:[%s16827_s5 + $0x810] ss:$8 sps:$4 sm:$0xff]  }
 0xe37   : > { %v6606_v54 = vpack.c.bf16 %v6588_v21, %v6586_v52  ;;  %7616 = vmatpush1.bf16.msra.mxu0 %v11581_v60  ;;  %v11589_v52 = vld [vmem:[%s16827_s5 + $0x824] ss:$8 sps:$4 sm:$0xff]   ;;  %v11587_v21 = vld [vmem:[%s16827_s5 + $0x820] ss:$8 sps:$4 sm:$0xff]  }
 0xe38   : > { %v6607_v63 = vpack.c.bf16 %v6589_v3, %v6587_v56  ;;  %v6553_v53 = vpop.f32.mrb[252].mxu1  ;;  %7617 = vmatprep.subr.bf16.mxu0 %v11586_v57  ;;  %v11592_v56 = vld [vmem:[%s16827_s5 + $0x834] ss:$8 sps:$4 sm:$0xff]   ;;  %v11590_v3 = vld [vmem:[%s16827_s5 + $0x830] ss:$8 sps:$4 sm:$0xff]  }
 0xe39   : > { %v6554_v12 = vadd.f32 %v6553_v53, %v15688_v49  ;;  %v6555_v59 = vpop.f32.mrb[253].mxu1  ;;  %v11598_v53 = vld [vmem:[%s16827_s5 + $0x854] ss:$8 sps:$4 sm:$0xff]  }
 0xe3a   : > { %v6556_v6 = vadd.f32 %v6555_v59, %v15691_v25  ;;  %v6557_v62 = vpop.f32.mrb[254].mxu1  ;;  %6908 = vmatprep.mubr.bf16.mxu0 %v6607_v63  ;;  %v11593_v63 = vld [vmem:[%s16827_s5 + $0x840] ss:$8 sps:$4 sm:$0xff]   ;;  %v11601_v59 = vld [vmem:[%s16827_s5 + $0x864] ss:$8 sps:$4 sm:$0xff]  }
 0xe3b   : > { %v6558_v58 = vadd.f32 %v6557_v62, %v15688_v49  ;;  %v6559_v38 = vpop.f32.mrb[255].mxu1  ;;  %6909 = vmatmul.mubr.bf16.gmra.mrb[24].mxu0 %v6606_v54  ;;  %v6590_v5 = vmax.f32 %v6554_v12, 0.0  ;;  %v11572_v49 = vld [vmem:[%s16825_s3 + $0x8d0] ss:$8 sps:$4 sm:$0xff]   ;;  %v11595_v54 = vld [vmem:[%s16827_s5 + $0x844] ss:$8 sps:$4 sm:$0xff]  }
 0xe3c   : > { %v6560_v42 = vadd.f32 %v6559_v38, %v15691_v25  ;;  %v6591_v8 = vmax.f32 %v6556_v6, 0.0  ;;  %7275 = vmatpush1.bf16.msra.mxu1 %v11572_v49  ;;  %v11577_v25 = vld [vmem:[%s16825_s3 + $0x8e4] ss:$8 sps:$4 sm:$0xff]   ;;  %7618 = vmatpush1.bf16.msra.mxu0 %v11584_v20  ;;  %v11596_v12 = vld [vmem:[%s16827_s5 + $0x850] ss:$8 sps:$4 sm:$0xff]  }
 0xe3d   : > { %v6592_v40 = vmax.f32 %v6558_v58, 0.0  ;;  %7276 = vmatprep.subr.bf16.mxu1 %v11577_v25  ;;  %7619 = vmatprep.subr.bf16.mxu0 %v11589_v52  ;;  %v11599_v6 = vld [vmem:[%s16827_s5 + $0x860] ss:$8 sps:$4 sm:$0xff]   ;;  %v11604_v62 = vld [vmem:[%s16827_s5 + $0x874] ss:$8 sps:$4 sm:$0xff]  }
 0xe3e   : > { %v6593_v0 = vmax.f32 %v6560_v42, 0.0  ;;  %v11602_v58 = vld [vmem:[%s16827_s5 + $0x870] ss:$8 sps:$4 sm:$0xff]   ;;  %v11607_v38 = vld [vmem:[%s16827_s5 + $0x884] ss:$8 sps:$4 sm:$0xff]  }
 0xe3f   : > { %v6608_v27 = vpack.c.bf16 %v6592_v40, %v6590_v5  ;;  %v11605_v42 = vld [vmem:[%s16827_s5 + $0x880] ss:$8 sps:$4 sm:$0xff]   ;;  %v11610_v5 = vld [vmem:[%s16827_s5 + $0x894] ss:$8 sps:$4 sm:$0xff]   ;;  %v11608_v40 = vld [vmem:[%s16827_s5 + $0x890] ss:$8 sps:$4 sm:$0xff]  }
 0xe40   : > { %v6609_v24 = vpack.c.bf16 %v6593_v0, %v6591_v8  ;;  %7277 = vmatpush1.bf16.msra.mxu1 %v11575_v26  ;;  %7620 = vmatpush1.bf16.msra.mxu0 %v11587_v21  ;;  %v11613_v8 = vld [vmem:[%s16827_s5 + $0x8a4] ss:$8 sps:$4 sm:$0xff]   ;;  %v11611_v0 = vld [vmem:[%s16827_s5 + $0x8a0] ss:$8 sps:$4 sm:$0xff]   ;;  %v11622_v25 = vld [vmem:[%s16827_s5 + $0x8d4] ss:$8 sps:$4 sm:$0xff]  }
 0xe41   : > { %7278 = vmatprep.subr.bf16.mxu1 %v11580_v34  ;;  %7621 = vmatprep.subr.bf16.mxu0 %v11592_v56  ;;  %v11617_v49 = vld [vmem:[%s16827_s5 + $0x8c0] ss:$8 sps:$4 sm:$0xff]   ;;  %v11620_v26 = vld [vmem:[%s16827_s5 + $0x8d0] ss:$8 sps:$4 sm:$0xff]   ;;  %v10213_v34 = vld [vmem:[%s16828_s6 + $0xe] sm:$0x3] }
 0xe42   : > { %6918 = vmatprep.mubr.bf16.mxu0 %v6609_v24  ;;  %v11614_v24 = vld [vmem:[%s16827_s5 + $0x8b0] ss:$8 sps:$4 sm:$0xff]   ;;  %v15834_v60 = vrot.slane %v10213_v34, %v12127_v29 }
 0xe43   : > { %6919 = vmatmul.mubr.bf16.gmra.mrb[28].mxu0 %v6608_v27  ;;  %v11616_v27 = vld [vmem:[%s16827_s5 + $0x8b4] ss:$8 sps:$4 sm:$0xff]  }
 0xe44   : > { %7279 = vmatpush1.bf16.msra.mxu1 %v11578_v48  ;;  %7622 = vmatpush1.bf16.msra.mxu0 %v11590_v3  ;;  %v15831_v48 = vrot.slane %v10213_v34, %v12125_v28 }
 0xe45   : > { %7623 = vmatprep.subr.bf16.mxu0 %v11595_v54 }
 0xe48   : > { %7624 = vmatpush1.bf16.msra.mxu0 %v11593_v63 }
 0xe49   : > { %7625 = vmatprep.subr.bf16.mxu0 %v11598_v53 }
 0xe4c   : > { %7626 = vmatpush1.bf16.msra.mxu0 %v11596_v12 }
 0xe4d   : > { %7627 = vmatprep.subr.bf16.mxu0 %v11601_v59 }
 0xe50   : > { %7628 = vmatpush1.bf16.msra.mxu0 %v11599_v6 }
 0xe51   : > { %7629 = vmatprep.subr.bf16.mxu0 %v11604_v62 }
 0xe54   : > { %7630 = vmatpush1.bf16.msra.mxu0 %v11602_v58 }
 0xe55   : > { %7631 = vmatprep.subr.bf16.mxu0 %v11607_v38 }
 0xe58   : > { %7632 = vmatpush1.bf16.msra.mxu0 %v11605_v42 }
 0xe59   : > { %7633 = vmatprep.subr.bf16.mxu0 %v11610_v5 }
 0xe5c   : > { %7634 = vmatpush1.bf16.msra.mxu0 %v11608_v40 }
 0xe5d   : > { %7635 = vmatprep.subr.bf16.mxu0 %v11613_v8 }
 0xe60   : > { %7636 = vmatpush1.bf16.msra.mxu0 %v11611_v0 }
 0xe61   : > { %7637 = vmatprep.subr.bf16.mxu0 %v11616_v27 }
 0xe64   : > { %7638 = vmatpush1.bf16.msra.mxu0 %v11614_v24 }
 0xe65   : > { %7639 = vmatprep.subr.bf16.mxu0 %v11619_v9 }
 0xe68   : > { %7640 = vmatpush1.bf16.msra.mxu0 %v11617_v49 }
 0xe69   : > { %7641 = vmatprep.subr.bf16.mxu0 %v11622_v25 }
 0xe6c   : > { %7642 = vmatpush1.bf16.msra.mxu0 %v11620_v26 }
 0xede   : > { %v6850_v55 = vpop.f32.mrb[0].mxu0 }
 0xedf   : > { %v6851_v57 = vadd.f32 %v6850_v55, %v15831_v48  ;;  %v6852_v20 = vpop.f32.mrb[1].mxu0 }
 0xee0   : > { %v6853_v52 = vadd.f32 %v6852_v20, %v15834_v60  ;;  %v6854_v21 = vpop.f32.mrb[2].mxu0 }
 0xee1   : > { %v6929_v56 = vadd.f32 %v6851_v57, %v15376_v16  ;;  %v6855_v3 = vadd.f32 %v6854_v21, %v15831_v48  ;;  %v6856_v54 = vpop.f32.mrb[3].mxu0 }
 0xee2   : > { %v6930_v63 = vadd.f32 %v6853_v52, %v15379_v14  ;;  %v6857_v53 = vadd.f32 %v6856_v54, %v15834_v60 }
 0xee3   : > { %v15842_v12 = vmax.f32 %v6929_v56, 0.0  ;;  %v6931_v59 = vadd.f32 %v6855_v3, %v15384_v61 }
 0xee4   : > { %v15845_v6 = vmax.f32 %v6930_v63, 0.0  ;;  %v6932_v62 = vadd.f32 %v6857_v53, %v15388_v17 }
 0xee5   : > { %10246 = vst [vmem:[%s12146_s20 + $0x800] sm:$0xff] %v15842_v12  ;;  %v15850_v58 = vmax.f32 %v6931_v59, 0.0 }
 0xee6   : > { %10247 = vst [vmem:[%s12146_s20 + $0x808] sm:$0xff] %v15845_v6  ;;  %v15854_v16 = vmax.f32 %v6932_v62, 0.0  ;;  %v6860_v38 = vpop.f32.mrb[4].mxu0 }
 0xee7   : > { %10248 = vst [vmem:[%s12146_s20 + $0x810] sm:$0xff] %v15850_v58  ;;  %v6861_v14 = vadd.f32 %v6860_v38, %v15831_v48  ;;  %v6862_v42 = vpop.f32.mrb[5].mxu0  ;;  %v7026_v40 = vpack.c.bf16 %v15850_v58, %v15842_v12 }
 0xee8   : > { %10249 = vst [vmem:[%s12146_s20 + $0x818] sm:$0xff] %v15854_v16  ;;  %v6863_v61 = vadd.f32 %v6862_v42, %v15834_v60  ;;  %v6864_v17 = vpop.f32.mrb[6].mxu0  ;;  %v7027_v5 = vpack.c.bf16 %v15854_v16, %v15845_v6 }
 0xee9   : > { %v6933_v8 = vadd.f32 %v6861_v14, %v15404_v32  ;;  %v6865_v0 = vadd.f32 %v6864_v17, %v15831_v48  ;;  %v6866_v27 = vpop.f32.mrb[7].mxu0 }
 0xeea   : > { %v6934_v24 = vadd.f32 %v6863_v61, %v15407_v36  ;;  %v6867_v9 = vadd.f32 %v6866_v27, %v15834_v60  ;;  %7280 = vmatprep.mubr.bf16.mxu1 %v7027_v5 }
 0xeeb   : > { %v15870_v49 = vmax.f32 %v6933_v8, 0.0  ;;  %v6935_v25 = vadd.f32 %v6865_v0, %v15412_v19  ;;  %7281 = vmatmul.mubr.bf16.vlgmr.msra.gmra.mrb[0].mxu1 %v7026_v40 }
 0xeec   : > { %v15873_v26 = vmax.f32 %v6934_v24, 0.0  ;;  %v6936_v34 = vadd.f32 %v6867_v9, %v15416_v41 }
 0xeed   : > { %10250 = vst [vmem:[%s12146_s20 + $0x820] sm:$0xff] %v15870_v49  ;;  %v15878_v32 = vmax.f32 %v6935_v25, 0.0 }
 0xeee   : > { %10251 = vst [vmem:[%s12146_s20 + $0x828] sm:$0xff] %v15873_v26  ;;  %v15882_v36 = vmax.f32 %v6936_v34, 0.0  ;;  %v6870_v55 = vpop.f32.mrb[8].mxu0 }
 0xeef   : > { %10252 = vst [vmem:[%s12146_s20 + $0x830] sm:$0xff] %v15878_v32  ;;  %v6871_v57 = vadd.f32 %v6870_v55, %v15831_v48  ;;  %v6872_v20 = vpop.f32.mrb[9].mxu0  ;;  %v7028_v21 = vpack.c.bf16 %v15878_v32, %v15870_v49 }
 0xef0   : > { %10253 = vst [vmem:[%s12146_s20 + $0x838] sm:$0xff] %v15882_v36  ;;  %v6873_v19 = vadd.f32 %v6872_v20, %v15834_v60  ;;  %v6874_v41 = vpop.f32.mrb[10].mxu0  ;;  %v7029_v52 = vpack.c.bf16 %v15882_v36, %v15873_v26 }
 0xef1   : > { %v6937_v56 = vadd.f32 %v6871_v57, %v15432_v47  ;;  %v6875_v3 = vadd.f32 %v6874_v41, %v15831_v48  ;;  %v6876_v54 = vpop.f32.mrb[11].mxu0 }
 0xef2   : > { %v6938_v63 = vadd.f32 %v6873_v19, %v15435_v23  ;;  %v6877_v53 = vadd.f32 %v6876_v54, %v15834_v60  ;;  %7290 = vmatprep.mubr.bf16.mxu1 %v7029_v52 }
 0xef3   : > { %v15898_v59 = vmax.f32 %v6937_v56, 0.0  ;;  %v6939_v62 = vadd.f32 %v6875_v3, %v15440_v13  ;;  %7291 = vmatmul.mubr.bf16.gmra.mrb[4].mxu1 %v7028_v21 }
 0xef4   : > { %v15901_v38 = vmax.f32 %v6938_v63, 0.0  ;;  %v6940_v14 = vadd.f32 %v6877_v53, %v15444_v33 }
 0xef5   : > { %10254 = vst [vmem:[%s12146_s20 + $0x840] sm:$0xff] %v15898_v59  ;;  %v15906_v47 = vmax.f32 %v6939_v62, 0.0 }
 0xef6   : > { %10255 = vst [vmem:[%s12146_s20 + $0x848] sm:$0xff] %v15901_v38  ;;  %v15910_v23 = vmax.f32 %v6940_v14, 0.0  ;;  %v6880_v42 = vpop.f32.mrb[12].mxu0 }
 0xef7   : > { %10256 = vst [vmem:[%s12146_s20 + $0x850] sm:$0xff] %v15906_v47  ;;  %v6881_v61 = vadd.f32 %v6880_v42, %v15831_v48  ;;  %v6882_v17 = vpop.f32.mrb[13].mxu0  ;;  %v7030_v40 = vpack.c.bf16 %v15906_v47, %v15898_v59 }
 0xef8   : > { %10257 = vst [vmem:[%s12146_s20 + $0x858] sm:$0xff] %v15910_v23  ;;  %v6883_v13 = vadd.f32 %v6882_v17, %v15834_v60  ;;  %v6884_v33 = vpop.f32.mrb[14].mxu0  ;;  %v7031_v5 = vpack.c.bf16 %v15910_v23, %v15901_v38 }
 0xef9   : > { %v6941_v8 = vadd.f32 %v6881_v61, %v15460_v4  ;;  %v6885_v0 = vadd.f32 %v6884_v33, %v15831_v48  ;;  %v6886_v27 = vpop.f32.mrb[15].mxu0 }
 0xefa   : > { %v6942_v24 = vadd.f32 %v6883_v13, %v15463_v44  ;;  %v6887_v9 = vadd.f32 %v6886_v27, %v15834_v60  ;;  %7300 = vmatprep.mubr.bf16.mxu1 %v7031_v5 }
 0xefb   : > { %v15926_v25 = vmax.f32 %v6941_v8, 0.0  ;;  %v6943_v34 = vadd.f32 %v6885_v0, %v15468_v35  ;;  %7301 = vmatmul.mubr.bf16.gmra.mrb[8].mxu1 %v7030_v40 }
 0xefc   : > { %v15929_v55 = vmax.f32 %v6942_v24, 0.0  ;;  %v6944_v57 = vadd.f32 %v6887_v9, %v15472_v46 }
 0xefd   : > { %10258 = vst [vmem:[%s12146_s20 + $0x860] sm:$0xff] %v15926_v25  ;;  %v15934_v4 = vmax.f32 %v6943_v34, 0.0 }
 0xefe   : > { %10259 = vst [vmem:[%s12146_s20 + $0x868] sm:$0xff] %v15929_v55  ;;  %v15938_v44 = vmax.f32 %v6944_v57, 0.0  ;;  %v6890_v20 = vpop.f32.mrb[16].mxu0 }
 0xeff   : > { %10260 = vst [vmem:[%s12146_s20 + $0x870] sm:$0xff] %v15934_v4  ;;  %v6891_v19 = vadd.f32 %v6890_v20, %v15831_v48  ;;  %v6892_v41 = vpop.f32.mrb[17].mxu0  ;;  %v7032_v21 = vpack.c.bf16 %v15934_v4, %v15926_v25 }
 0xf00   : > { %10261 = vst [vmem:[%s12146_s20 + $0x878] sm:$0xff] %v15938_v44  ;;  %v6893_v35 = vadd.f32 %v6892_v41, %v15834_v60  ;;  %v6894_v46 = vpop.f32.mrb[18].mxu0  ;;  %v7033_v52 = vpack.c.bf16 %v15938_v44, %v15929_v55 }
 0xf01   : > { %v6945_v56 = vadd.f32 %v6891_v19, %v15488_v18  ;;  %v6895_v3 = vadd.f32 %v6894_v46, %v15831_v48  ;;  %v6896_v54 = vpop.f32.mrb[19].mxu0 }
 0xf02   : > { %v6946_v63 = vadd.f32 %v6893_v35, %v15491_v39  ;;  %v6897_v53 = vadd.f32 %v6896_v54, %v15834_v60  ;;  %7310 = vmatprep.mubr.bf16.mxu1 %v7033_v52 }
 0xf03   : > { %v15954_v62 = vmax.f32 %v6945_v56, 0.0  ;;  %v6947_v14 = vadd.f32 %v6895_v3, %v15496_v50  ;;  %7311 = vmatmul.mubr.bf16.gmra.mrb[12].mxu1 %v7032_v21 }
 0xf04   : > { %v15957_v42 = vmax.f32 %v6946_v63, 0.0  ;;  %v6948_v61 = vadd.f32 %v6897_v53, %v15500_v10 }
 0xf05   : > { %10262 = vst [vmem:[%s12146_s20 + $0x880] sm:$0xff] %v15954_v62  ;;  %v15962_v18 = vmax.f32 %v6947_v14, 0.0 }
 0xf06   : > { %10263 = vst [vmem:[%s12146_s20 + $0x888] sm:$0xff] %v15957_v42  ;;  %v15966_v39 = vmax.f32 %v6948_v61, 0.0  ;;  %v6900_v17 = vpop.f32.mrb[20].mxu0 }
 0xf07   : > { %10264 = vst [vmem:[%s12146_s20 + $0x890] sm:$0xff] %v15962_v18  ;;  %v6901_v13 = vadd.f32 %v6900_v17, %v15831_v48  ;;  %v6902_v33 = vpop.f32.mrb[21].mxu0  ;;  %v7034_v40 = vpack.c.bf16 %v15962_v18, %v15954_v62 }
 0xf08   : > { %10265 = vst [vmem:[%s12146_s20 + $0x898] sm:$0xff] %v15966_v39  ;;  %v6903_v50 = vadd.f32 %v6902_v33, %v15834_v60  ;;  %v6904_v10 = vpop.f32.mrb[22].mxu0  ;;  %v7035_v5 = vpack.c.bf16 %v15966_v39, %v15957_v42 }
 0xf09   : > { %v6949_v8 = vadd.f32 %v6901_v13, %v15516_v22  ;;  %v6905_v0 = vadd.f32 %v6904_v10, %v15831_v48  ;;  %v6906_v27 = vpop.f32.mrb[23].mxu0 }
 0xf0a   : > { %v6950_v24 = vadd.f32 %v6903_v50, %v15519_v45  ;;  %v6907_v9 = vadd.f32 %v6906_v27, %v15834_v60  ;;  %7320 = vmatprep.mubr.bf16.mxu1 %v7035_v5 }
 0xf0b   : > { %v15982_v34 = vmax.f32 %v6949_v8, 0.0  ;;  %v6951_v57 = vadd.f32 %v6905_v0, %v15524_v1  ;;  %7321 = vmatmul.mubr.bf16.gmra.mrb[16].mxu1 %v7034_v40 }
 0xf0c   : > { %v15985_v20 = vmax.f32 %v6950_v24, 0.0  ;;  %v6952_v19 = vadd.f32 %v6907_v9, %v15528_v31 }
 0xf0d   : > { %10266 = vst [vmem:[%s12146_s20 + $0x8a0] sm:$0xff] %v15982_v34  ;;  %v15990_v22 = vmax.f32 %v6951_v57, 0.0 }
 0xf0e   : > { %10267 = vst [vmem:[%s12146_s20 + $0x8a8] sm:$0xff] %v15985_v20  ;;  %v15994_v45 = vmax.f32 %v6952_v19, 0.0  ;;  %v6910_v41 = vpop.f32.mrb[24].mxu0 }
 0xf0f   : > { %10268 = vst [vmem:[%s12146_s20 + $0x8b0] sm:$0xff] %v15990_v22  ;;  %v6911_v35 = vadd.f32 %v6910_v41, %v15831_v48  ;;  %v6912_v46 = vpop.f32.mrb[25].mxu0  ;;  %v7036_v21 = vpack.c.bf16 %v15990_v22, %v15982_v34 }
 0xf10   : > { %10269 = vst [vmem:[%s12146_s20 + $0x8b8] sm:$0xff] %v15994_v45  ;;  %v6913_v1 = vadd.f32 %v6912_v46, %v15834_v60  ;;  %v6914_v31 = vpop.f32.mrb[26].mxu0  ;;  %v7037_v52 = vpack.c.bf16 %v15994_v45, %v15985_v20  ;;  %v11628_v46 = vld [vmem:[%s16827_s5 + $0x8f4] ss:$8 sps:$4 sm:$0xff]  }
 0xf11   : > { %v6953_v56 = vadd.f32 %v6911_v35, %v15544_v51  ;;  %v6915_v3 = vadd.f32 %v6914_v31, %v15831_v48  ;;  %v6916_v54 = vpop.f32.mrb[27].mxu0  ;;  %v11629_v31 = vld [vmem:[%s16825_s3 + $0x900] ss:$8 sps:$4 sm:$0xff]  }
 0xf12   : > { %v6954_v63 = vadd.f32 %v6913_v1, %v15547_v37  ;;  %v6917_v53 = vadd.f32 %v6916_v54, %v15834_v60  ;;  %7330 = vmatprep.mubr.bf16.mxu1 %v7037_v52  ;;  %v11626_v1 = vld [vmem:[%s16827_s5 + $0x8f0] ss:$8 sps:$4 sm:$0xff]   ;;  %v11631_v52 = vld [vmem:[%s16825_s3 + $0x904] ss:$8 sps:$4 sm:$0xff]   ;;  %v11635_v54 = vld [vmem:[%s16825_s3 + $0x920] ss:$8 sps:$4 sm:$0xff]  }
 0xf13   : > { %v16010_v14 = vmax.f32 %v6953_v56, 0.0  ;;  %v6955_v61 = vadd.f32 %v6915_v3, %v15552_v2  ;;  %7331 = vmatmul.mubr.bf16.gmra.mrb[20].mxu1 %v7036_v21  ;;  %v11634_v21 = vld [vmem:[%s16825_s3 + $0x914] ss:$8 sps:$4 sm:$0xff]   ;;  %8047 = vmatprep.subr.bf16.mxu1 %v11631_v52  ;;  %v11632_v56 = vld [vmem:[%s16825_s3 + $0x910] ss:$8 sps:$4 sm:$0xff]  }
 0xf14   : > { %v16013_v17 = vmax.f32 %v6954_v63, 0.0  ;;  %v6956_v13 = vadd.f32 %v6917_v53, %v15556_v43  ;;  %8048 = vmatpush1.bf16.msra.mxu1 %v11629_v31  ;;  %v11637_v3 = vld [vmem:[%s16825_s3 + $0x924] ss:$8 sps:$4 sm:$0xff]   ;;  %v11640_v63 = vld [vmem:[%s16825_s3 + $0x934] ss:$8 sps:$4 sm:$0xff]  }
 0xf15   : > { %10270 = vst [vmem:[%s12146_s20 + $0x8c0] sm:$0xff] %v16010_v14  ;;  %v16018_v51 = vmax.f32 %v6955_v61, 0.0  ;;  %8049 = vmatprep.subr.bf16.mxu1 %v11634_v21  ;;  %v11638_v53 = vld [vmem:[%s16825_s3 + $0x930] ss:$8 sps:$4 sm:$0xff]   ;;  %v11643_v61 = vld [vmem:[%s16825_s3 + $0x944] ss:$8 sps:$4 sm:$0xff]  }
 0xf16   : > { %10271 = vst [vmem:[%s12146_s20 + $0x8c8] sm:$0xff] %v16013_v17  ;;  %v16022_v37 = vmax.f32 %v6956_v13, 0.0  ;;  %v6920_v33 = vpop.f32.mrb[28].mxu0  ;;  %v11641_v13 = vld [vmem:[%s16825_s3 + $0x940] ss:$8 sps:$4 sm:$0xff]  }
 0xf17   : > { %10272 = vst [vmem:[%s12146_s20 + $0x8d0] sm:$0xff] %v16018_v51  ;;  %v6921_v50 = vadd.f32 %v6920_v33, %v15831_v48  ;;  %v6922_v10 = vpop.f32.mrb[29].mxu0  ;;  %v7038_v40 = vpack.c.bf16 %v16018_v51, %v16010_v14  ;;  %v11646_v33 = vld [vmem:[%s16825_s3 + $0x954] ss:$8 sps:$4 sm:$0xff]  }
 0xf18   : > { %10273 = vst [vmem:[%s12146_s20 + $0x8d8] sm:$0xff] %v16022_v37  ;;  %v6923_v2 = vadd.f32 %v6922_v10, %v15834_v60  ;;  %v6924_v43 = vpop.f32.mrb[30].mxu0  ;;  %v7039_v5 = vpack.c.bf16 %v16022_v37, %v16013_v17  ;;  %8050 = vmatpush1.bf16.msra.mxu1 %v11632_v56  ;;  %v11649_v10 = vld [vmem:[%s16825_s3 + $0x964] ss:$8 sps:$4 sm:$0xff]  }
 0xf19   : > { %v6957_v8 = vadd.f32 %v6921_v50, %v15572_v7  ;;  %v6925_v0 = vadd.f32 %v6924_v43, %v15831_v48  ;;  %v6926_v27 = vpop.f32.mrb[31].mxu0  ;;  %8051 = vmatprep.subr.bf16.mxu1 %v11637_v3  ;;  %v11644_v50 = vld [vmem:[%s16825_s3 + $0x950] ss:$8 sps:$4 sm:$0xff]   ;;  %v11652_v43 = vld [vmem:[%s16825_s3 + $0x974] ss:$8 sps:$4 sm:$0xff]  }
 0xf1a   : > { %v6958_v24 = vadd.f32 %v6923_v2, %v15575_v11  ;;  %v6927_v9 = vadd.f32 %v6926_v27, %v15834_v60  ;;  %7340 = vmatprep.mubr.bf16.mxu1 %v7039_v5  ;;  %v11623_v60 = vld [vmem:[%s16827_s5 + $0x8e0] ss:$8 sps:$4 sm:$0xff]   ;;  %v11650_v5 = vld [vmem:[%s16825_s3 + $0x970] ss:$8 sps:$4 sm:$0xff]  }
 0xf1b   : > { %v16038_v57 = vmax.f32 %v6957_v8, 0.0  ;;  %v6959_v19 = vadd.f32 %v6925_v0, %v15580_v15  ;;  %7341 = vmatmul.mubr.bf16.gmra.mrb[24].mxu1 %v7038_v40  ;;  %v11647_v2 = vld [vmem:[%s16825_s3 + $0x960] ss:$8 sps:$4 sm:$0xff]   ;;  %v11655_v40 = vld [vmem:[%s16825_s3 + $0x984] ss:$8 sps:$4 sm:$0xff]  }
 0xf1c   : > { %v16041_v41 = vmax.f32 %v6958_v24, 0.0  ;;  %v6960_v35 = vadd.f32 %v6927_v9, %v15584_v30  ;;  %v11625_v30 = vld [vmem:[%s16827_s5 + $0x8e4] ss:$8 sps:$4 sm:$0xff]   ;;  %8052 = vmatpush1.bf16.msra.mxu1 %v11635_v54  ;;  %v11653_v8 = vld [vmem:[%s16825_s3 + $0x980] ss:$8 sps:$4 sm:$0xff]  }
 0xf1d   : > { %10274 = vst [vmem:[%s12146_s20 + $0x8e0] sm:$0xff] %v16038_v57  ;;  %v16046_v7 = vmax.f32 %v6959_v19, 0.0  ;;  %7643 = vmatprep.subr.bf16.mxu0 %v11625_v30  ;;  %8053 = vmatprep.subr.bf16.mxu1 %v11640_v63  ;;  %v11658_v0 = vld [vmem:[%s16825_s3 + $0x994] ss:$8 sps:$4 sm:$0xff]   ;;  %v11656_v27 = vld [vmem:[%s16825_s3 + $0x990] ss:$8 sps:$4 sm:$0xff]  }
 0xf1e   : > { %10275 = vst [vmem:[%s12146_s20 + $0x8e8] sm:$0xff] %v16041_v41  ;;  %v16050_v48 = vmax.f32 %v6960_v35, 0.0  ;;  %7644 = vmatpush1.bf16.msra.mxu0 %v11623_v60  ;;  %v11661_v24 = vld [vmem:[%s16825_s3 + $0x9a4] ss:$8 sps:$4 sm:$0xff]   ;;  %v11659_v9 = vld [vmem:[%s16825_s3 + $0x9a0] ss:$8 sps:$4 sm:$0xff]  }
 0xf1f   : > { %10276 = vst [vmem:[%s12146_s20 + $0x8f0] sm:$0xff] %v16046_v7  ;;  %v7040_v15 = vpack.c.bf16 %v16046_v7, %v16038_v57  ;;  %7645 = vmatprep.subr.bf16.mxu0 %v11628_v46  ;;  %v11664_v19 = vld [vmem:[%s16825_s3 + $0x9b4] ss:$8 sps:$4 sm:$0xff]   ;;  %v11662_v35 = vld [vmem:[%s16825_s3 + $0x9b0] ss:$8 sps:$4 sm:$0xff]  }
 0xf20   : > { %10277 = vst [vmem:[%s12146_s20 + $0x8f8] sm:$0xff] %v16050_v48  ;;  %v7041_v11 = vpack.c.bf16 %v16050_v48, %v16041_v41  ;;  %8054 = vmatpush1.bf16.msra.mxu1 %v11638_v53  ;;  %v10310_v30 = vld [vmem:[%s16826_s4 + $0x10] sm:$0x3] }
 0xf21   : > { %8055 = vmatprep.subr.bf16.mxu1 %v11643_v61  ;;  %v16154_v60 = vrot.slane %v10310_v30, %v12125_v28  ;;  %v16157_v46 = vrot.slane %v10310_v30, %v12127_v29 }
 0xf22   : > { %7350 = vmatprep.mubr.bf16.mxu1 %v7041_v11  ;;  %7646 = vmatpush1.bf16.msra.mxu0 %v11626_v1  ;;  %v11667_v11 = vld [vmem:[%s16825_s3 + $0x9c4] ss:$8 sps:$4 sm:$0xff]  }
 0xf23   : > { %7351 = vmatmul.mubr.bf16.gmra.mrb[28].mxu1 %v7040_v15  ;;  %v11665_v15 = vld [vmem:[%s16825_s3 + $0x9c0] ss:$8 sps:$4 sm:$0xff]  }
 0xf24   : > { %8056 = vmatpush1.bf16.msra.mxu1 %v11641_v13 }
 0xf25   : > { %8057 = vmatprep.subr.bf16.mxu1 %v11646_v33 }
 0xf28   : > { %8058 = vmatpush1.bf16.msra.mxu1 %v11644_v50 }
 0xf29   : > { %8059 = vmatprep.subr.bf16.mxu1 %v11649_v10 }
 0xf2c   : > { %8060 = vmatpush1.bf16.msra.mxu1 %v11647_v2 }
 0xf2d   : > { %8061 = vmatprep.subr.bf16.mxu1 %v11652_v43 }
 0xf30   : > { %8062 = vmatpush1.bf16.msra.mxu1 %v11650_v5 }
 0xf31   : > { %8063 = vmatprep.subr.bf16.mxu1 %v11655_v40 }
 0xf34   : > { %8064 = vmatpush1.bf16.msra.mxu1 %v11653_v8 }
 0xf35   : > { %8065 = vmatprep.subr.bf16.mxu1 %v11658_v0 }
 0xf38   : > { %8066 = vmatpush1.bf16.msra.mxu1 %v11656_v27 }
 0xf39   : > { %8067 = vmatprep.subr.bf16.mxu1 %v11661_v24 }
 0xf3c   : > { %8068 = vmatpush1.bf16.msra.mxu1 %v11659_v9 }
 0xf3d   : > { %8069 = vmatprep.subr.bf16.mxu1 %v11664_v19 }
 0xf40   : > { %8070 = vmatpush1.bf16.msra.mxu1 %v11662_v35 }
 0xf41   : > { %8071 = vmatprep.subr.bf16.mxu1 %v11667_v11 }
 0xf44   : > { %8072 = vmatpush1.bf16.msra.mxu1 %v11665_v15 }
 0xfbe   : > { %v7282_v1 = vpop.f32.mrb[0].mxu1 }
 0xfbf   : > { %v7283_v31 = vadd.f32 %v7282_v1, %v16154_v60  ;;  %v7284_v52 = vpop.f32.mrb[1].mxu1 }
 0xfc0   : > { %v7285_v21 = vadd.f32 %v7284_v52, %v16157_v46  ;;  %v7286_v56 = vpop.f32.mrb[2].mxu1 }
 0xfc1   : > { %v7287_v3 = vadd.f32 %v7286_v56, %v16154_v60  ;;  %v7288_v54 = vpop.f32.mrb[3].mxu1  ;;  %v7361_v53 = vmax.f32 %v7283_v31, 0.0 }
 0xfc2   : > { %v7289_v63 = vadd.f32 %v7288_v54, %v16157_v46  ;;  %v7362_v13 = vmax.f32 %v7285_v21, 0.0 }
 0xfc3   : > { %v7363_v61 = vmax.f32 %v7287_v3, 0.0 }
 0xfc4   : > { %v7364_v33 = vmax.f32 %v7289_v63, 0.0 }
 0xfc5   : > { %v7393_v50 = vpack.c.bf16 %v7363_v61, %v7361_v53 }
 0xfc6   : > { %v7394_v10 = vpack.c.bf16 %v7364_v33, %v7362_v13  ;;  %v7292_v2 = vpop.f32.mrb[4].mxu1 }
 0xfc7   : > { %v7293_v43 = vadd.f32 %v7292_v2, %v16154_v60  ;;  %v7294_v5 = vpop.f32.mrb[5].mxu1 }
 0xfc8   : > { %v7295_v40 = vadd.f32 %v7294_v5, %v16157_v46  ;;  %v7296_v8 = vpop.f32.mrb[6].mxu1  ;;  %7647 = vmatprep.mubr.bf16.mxu0 %v7394_v10 }
 0xfc9   : > { %v7297_v0 = vadd.f32 %v7296_v8, %v16154_v60  ;;  %v7298_v27 = vpop.f32.mrb[7].mxu1  ;;  %7648 = vmatmul.mubr.bf16.vlgmr.msra.gmra.mrb[32].mxu0 %v7393_v50  ;;  %v7365_v9 = vmax.f32 %v7293_v43, 0.0 }
 0xfca   : > { %v7299_v24 = vadd.f32 %v7298_v27, %v16157_v46  ;;  %v7366_v35 = vmax.f32 %v7295_v40, 0.0 }
 0xfcb   : > { %v7367_v19 = vmax.f32 %v7297_v0, 0.0 }
 0xfcc   : > { %v7368_v11 = vmax.f32 %v7299_v24, 0.0 }
 0xfcd   : > { %v7395_v15 = vpack.c.bf16 %v7367_v19, %v7365_v9 }
 0xfce   : > { %v7396_v30 = vpack.c.bf16 %v7368_v11, %v7366_v35  ;;  %v7302_v1 = vpop.f32.mrb[8].mxu1 }
 0xfcf   : > { %v7303_v31 = vadd.f32 %v7302_v1, %v16154_v60  ;;  %v7304_v52 = vpop.f32.mrb[9].mxu1 }
 0xfd0   : > { %v7305_v21 = vadd.f32 %v7304_v52, %v16157_v46  ;;  %v7306_v56 = vpop.f32.mrb[10].mxu1  ;;  %7657 = vmatprep.mubr.bf16.mxu0 %v7396_v30 }
 0xfd1   : > { %v7307_v3 = vadd.f32 %v7306_v56, %v16154_v60  ;;  %v7308_v54 = vpop.f32.mrb[11].mxu1  ;;  %7658 = vmatmul.mubr.bf16.gmra.mrb[36].mxu0 %v7395_v15  ;;  %v7369_v53 = vmax.f32 %v7303_v31, 0.0 }
 0xfd2   : > { %v7309_v63 = vadd.f32 %v7308_v54, %v16157_v46  ;;  %v7370_v13 = vmax.f32 %v7305_v21, 0.0 }
 0xfd3   : > { %v7371_v61 = vmax.f32 %v7307_v3, 0.0 }
 0xfd4   : > { %v7372_v33 = vmax.f32 %v7309_v63, 0.0 }
 0xfd5   : > { %v7397_v50 = vpack.c.bf16 %v7371_v61, %v7369_v53 }
 0xfd6   : > { %v7398_v10 = vpack.c.bf16 %v7372_v33, %v7370_v13  ;;  %v7312_v2 = vpop.f32.mrb[12].mxu1 }
 0xfd7   : > { %v7313_v43 = vadd.f32 %v7312_v2, %v16154_v60  ;;  %v7314_v5 = vpop.f32.mrb[13].mxu1 }
 0xfd8   : > { %v7315_v40 = vadd.f32 %v7314_v5, %v16157_v46  ;;  %v7316_v8 = vpop.f32.mrb[14].mxu1  ;;  %7667 = vmatprep.mubr.bf16.mxu0 %v7398_v10 }
 0xfd9   : > { %v7317_v0 = vadd.f32 %v7316_v8, %v16154_v60  ;;  %v7318_v27 = vpop.f32.mrb[15].mxu1  ;;  %7668 = vmatmul.mubr.bf16.gmra.mrb[40].mxu0 %v7397_v50  ;;  %v7373_v9 = vmax.f32 %v7313_v43, 0.0 }
 0xfda   : > { %v7319_v24 = vadd.f32 %v7318_v27, %v16157_v46  ;;  %v7374_v35 = vmax.f32 %v7315_v40, 0.0 }
 0xfdb   : > { %v7375_v19 = vmax.f32 %v7317_v0, 0.0 }
 0xfdc   : > { %v7376_v11 = vmax.f32 %v7319_v24, 0.0 }
 0xfdd   : > { %v7399_v15 = vpack.c.bf16 %v7375_v19, %v7373_v9 }
 0xfde   : > { %v7400_v30 = vpack.c.bf16 %v7376_v11, %v7374_v35  ;;  %v7322_v1 = vpop.f32.mrb[16].mxu1 }
 0xfdf   : > { %v7323_v31 = vadd.f32 %v7322_v1, %v16154_v60  ;;  %v7324_v52 = vpop.f32.mrb[17].mxu1 }
 0xfe0   : > { %v7325_v21 = vadd.f32 %v7324_v52, %v16157_v46  ;;  %v7326_v56 = vpop.f32.mrb[18].mxu1  ;;  %7677 = vmatprep.mubr.bf16.mxu0 %v7400_v30 }
 0xfe1   : > { %v7327_v3 = vadd.f32 %v7326_v56, %v16154_v60  ;;  %v7328_v54 = vpop.f32.mrb[19].mxu1  ;;  %7678 = vmatmul.mubr.bf16.gmra.mrb[44].mxu0 %v7399_v15  ;;  %v7377_v53 = vmax.f32 %v7323_v31, 0.0 }
 0xfe2   : > { %v7329_v63 = vadd.f32 %v7328_v54, %v16157_v46  ;;  %v7378_v13 = vmax.f32 %v7325_v21, 0.0 }
 0xfe3   : > { %v7379_v61 = vmax.f32 %v7327_v3, 0.0 }
 0xfe4   : > { %v7380_v33 = vmax.f32 %v7329_v63, 0.0 }
 0xfe5   : > { %v7401_v50 = vpack.c.bf16 %v7379_v61, %v7377_v53 }
 0xfe6   : > { %v7402_v10 = vpack.c.bf16 %v7380_v33, %v7378_v13  ;;  %v7332_v2 = vpop.f32.mrb[20].mxu1 }
 0xfe7   : > { %v7333_v43 = vadd.f32 %v7332_v2, %v16154_v60  ;;  %v7334_v5 = vpop.f32.mrb[21].mxu1 }
 0xfe8   : > { %v7335_v40 = vadd.f32 %v7334_v5, %v16157_v46  ;;  %v7336_v8 = vpop.f32.mrb[22].mxu1  ;;  %7687 = vmatprep.mubr.bf16.mxu0 %v7402_v10 }
 0xfe9   : > { %v7337_v0 = vadd.f32 %v7336_v8, %v16154_v60  ;;  %v7338_v27 = vpop.f32.mrb[23].mxu1  ;;  %7688 = vmatmul.mubr.bf16.gmra.mrb[48].mxu0 %v7401_v50  ;;  %v7381_v9 = vmax.f32 %v7333_v43, 0.0 }
 0xfea   : > { %v7339_v24 = vadd.f32 %v7338_v27, %v16157_v46  ;;  %v7382_v35 = vmax.f32 %v7335_v40, 0.0 }
 0xfeb   : > { %v7383_v19 = vmax.f32 %v7337_v0, 0.0 }
 0xfec   : > { %v7384_v11 = vmax.f32 %v7339_v24, 0.0 }
 0xfed   : > { %v7403_v15 = vpack.c.bf16 %v7383_v19, %v7381_v9 }
 0xfee   : > { %v7404_v30 = vpack.c.bf16 %v7384_v11, %v7382_v35  ;;  %v7342_v1 = vpop.f32.mrb[24].mxu1 }
 0xfef   : > { %v7343_v31 = vadd.f32 %v7342_v1, %v16154_v60  ;;  %v7344_v52 = vpop.f32.mrb[25].mxu1  ;;  %v11670_v1 = vld [vmem:[%s16825_s3 + $0x9d4] ss:$8 sps:$4 sm:$0xff]  }
 0xff0   : > { %v7345_v21 = vadd.f32 %v7344_v52, %v16157_v46  ;;  %v7346_v56 = vpop.f32.mrb[26].mxu1  ;;  %7697 = vmatprep.mubr.bf16.mxu0 %v7404_v30  ;;  %8073 = vmatprep.subr.bf16.mxu1 %v11670_v1  ;;  %v11676_v52 = vld [vmem:[%s16825_s3 + $0x9f4] ss:$8 sps:$4 sm:$0xff]   ;;  %v11715_v1 = vld [vmem:[%s16827_s5 + $0x9c4] ss:$8 sps:$4 sm:$0xff]  }
 0xff1   : > { %v7347_v3 = vadd.f32 %v7346_v56, %v16154_v60  ;;  %v7348_v54 = vpop.f32.mrb[27].mxu1  ;;  %7698 = vmatmul.mubr.bf16.gmra.mrb[52].mxu0 %v7403_v15  ;;  %v7385_v53 = vmax.f32 %v7343_v31, 0.0  ;;  %v11671_v31 = vld [vmem:[%s16825_s3 + $0x9e0] ss:$8 sps:$4 sm:$0xff]  }
 0xff2   : > { %v7349_v63 = vadd.f32 %v7348_v54, %v16157_v46  ;;  %v7386_v13 = vmax.f32 %v7345_v21, 0.0  ;;  %v11674_v21 = vld [vmem:[%s16825_s3 + $0x9f0] ss:$8 sps:$4 sm:$0xff]   ;;  %v11677_v56 = vld [vmem:[%s16827_s5 + $0x900] ss:$8 sps:$4 sm:$0xff]  }
 0xff3   : > { %v7387_v61 = vmax.f32 %v7347_v3, 0.0  ;;  %v11679_v3 = vld [vmem:[%s16827_s5 + $0x904] ss:$8 sps:$4 sm:$0xff]   ;;  %v11682_v54 = vld [vmem:[%s16827_s5 + $0x914] ss:$8 sps:$4 sm:$0xff]  }
 0xff4   : > { %v7388_v33 = vmax.f32 %v7349_v63, 0.0  ;;  %8414 = vmatprep.subr.bf16.mxu0 %v11679_v3  ;;  %v11680_v63 = vld [vmem:[%s16827_s5 + $0x910] ss:$8 sps:$4 sm:$0xff]  }
 0xff5   : > { %v7405_v50 = vpack.c.bf16 %v7387_v61, %v7385_v53  ;;  %8415 = vmatpush1.bf16.msra.mxu0 %v11677_v56  ;;  %v11685_v53 = vld [vmem:[%s16827_s5 + $0x924] ss:$8 sps:$4 sm:$0xff]   ;;  %v11683_v61 = vld [vmem:[%s16827_s5 + $0x920] ss:$8 sps:$4 sm:$0xff]  }
 0xff6   : > { %v7406_v10 = vpack.c.bf16 %v7388_v33, %v7386_v13  ;;  %v7352_v2 = vpop.f32.mrb[28].mxu1  ;;  %8416 = vmatprep.subr.bf16.mxu0 %v11682_v54  ;;  %v11688_v13 = vld [vmem:[%s16827_s5 + $0x934] ss:$8 sps:$4 sm:$0xff]   ;;  %v11686_v33 = vld [vmem:[%s16827_s5 + $0x930] ss:$8 sps:$4 sm:$0xff]  }
 0xff7   : > { %v7353_v43 = vadd.f32 %v7352_v2, %v16154_v60  ;;  %v7354_v5 = vpop.f32.mrb[29].mxu1  ;;  %v11694_v2 = vld [vmem:[%s16827_s5 + $0x954] ss:$8 sps:$4 sm:$0xff]  }
 0xff8   : > { %v7355_v40 = vadd.f32 %v7354_v5, %v16157_v46  ;;  %v7356_v8 = vpop.f32.mrb[30].mxu1  ;;  %7707 = vmatprep.mubr.bf16.mxu0 %v7406_v10  ;;  %v11689_v10 = vld [vmem:[%s16827_s5 + $0x940] ss:$8 sps:$4 sm:$0xff]   ;;  %v11697_v5 = vld [vmem:[%s16827_s5 + $0x964] ss:$8 sps:$4 sm:$0xff]  }
 0xff9   : > { %v7357_v0 = vadd.f32 %v7356_v8, %v16154_v60  ;;  %v7358_v27 = vpop.f32.mrb[31].mxu1  ;;  %7708 = vmatmul.mubr.bf16.gmra.mrb[56].mxu0 %v7405_v50  ;;  %v7389_v9 = vmax.f32 %v7353_v43, 0.0  ;;  %v11668_v60 = vld [vmem:[%s16825_s3 + $0x9d0] ss:$8 sps:$4 sm:$0xff]   ;;  %v11691_v50 = vld [vmem:[%s16827_s5 + $0x944] ss:$8 sps:$4 sm:$0xff]  }
 0xffa   : > { %v7359_v24 = vadd.f32 %v7358_v27, %v16157_v46  ;;  %v7390_v35 = vmax.f32 %v7355_v40, 0.0  ;;  %8074 = vmatpush1.bf16.msra.mxu1 %v11668_v60  ;;  %v11673_v46 = vld [vmem:[%s16825_s3 + $0x9e4] ss:$8 sps:$4 sm:$0xff]   ;;  %8417 = vmatpush1.bf16.msra.mxu0 %v11680_v63  ;;  %v11692_v43 = vld [vmem:[%s16827_s5 + $0x950] ss:$8 sps:$4 sm:$0xff]  }
 0xffb   : > { %v7391_v19 = vmax.f32 %v7357_v0, 0.0  ;;  %8075 = vmatprep.subr.bf16.mxu1 %v11673_v46  ;;  %8418 = vmatprep.subr.bf16.mxu0 %v11685_v53  ;;  %v11695_v40 = vld [vmem:[%s16827_s5 + $0x960] ss:$8 sps:$4 sm:$0xff]   ;;  %v11700_v8 = vld [vmem:[%s16827_s5 + $0x974] ss:$8 sps:$4 sm:$0xff]  }
 0xffc   : > { %v7392_v11 = vmax.f32 %v7359_v24, 0.0  ;;  %v11698_v0 = vld [vmem:[%s16827_s5 + $0x970] ss:$8 sps:$4 sm:$0xff]   ;;  %v11703_v27 = vld [vmem:[%s16827_s5 + $0x984] ss:$8 sps:$4 sm:$0xff]  }
 0xffd   : > { %v7407_v15 = vpack.c.bf16 %v7391_v19, %v7389_v9  ;;  %v11701_v24 = vld [vmem:[%s16827_s5 + $0x980] ss:$8 sps:$4 sm:$0xff]   ;;  %v11706_v9 = vld [vmem:[%s16827_s5 + $0x994] ss:$8 sps:$4 sm:$0xff]   ;;  %v11704_v19 = vld [vmem:[%s16827_s5 + $0x990] ss:$8 sps:$4 sm:$0xff]  }
 0xffe   : > { %v7408_v30 = vpack.c.bf16 %v7392_v11, %v7390_v35  ;;  %8076 = vmatpush1.bf16.msra.mxu1 %v11671_v31  ;;  %8419 = vmatpush1.bf16.msra.mxu0 %v11683_v61  ;;  %v11709_v35 = vld [vmem:[%s16827_s5 + $0x9a4] ss:$8 sps:$4 sm:$0xff]   ;;  %v11707_v11 = vld [vmem:[%s16827_s5 + $0x9a0] ss:$8 sps:$4 sm:$0xff]   ;;  %v11718_v46 = vld [vmem:[%s16827_s5 + $0x9d4] ss:$8 sps:$4 sm:$0xff]  }
 0xfff   : > { %8077 = vmatprep.subr.bf16.mxu1 %v11676_v52  ;;  %8420 = vmatprep.subr.bf16.mxu0 %v11688_v13  ;;  %v11713_v60 = vld [vmem:[%s16827_s5 + $0x9c0] ss:$8 sps:$4 sm:$0xff]   ;;  %v11716_v31 = vld [vmem:[%s16827_s5 + $0x9d0] ss:$8 sps:$4 sm:$0xff]  }
0x1000   : > { %7717 = vmatprep.mubr.bf16.mxu0 %v7408_v30  ;;  %v11710_v30 = vld [vmem:[%s16827_s5 + $0x9b0] ss:$8 sps:$4 sm:$0xff]  }
0x1001   : > { %7718 = vmatmul.mubr.bf16.gmra.mrb[60].mxu0 %v7407_v15  ;;  %v11712_v15 = vld [vmem:[%s16827_s5 + $0x9b4] ss:$8 sps:$4 sm:$0xff]   ;;  %v10375_v52 = vld [vmem:[%s16828_s6 + $0x10] sm:$0x3] }
0x1002   : > { %8078 = vmatpush1.bf16.msra.mxu1 %v11674_v21  ;;  %8421 = vmatpush1.bf16.msra.mxu0 %v11686_v33  ;;  %v16297_v21 = vrot.slane %v10375_v52, %v12125_v28  ;;  %v16300_v56 = vrot.slane %v10375_v52, %v12127_v29 }
0x1003   : > { %8422 = vmatprep.subr.bf16.mxu0 %v11691_v50 }
0x1006   : > { %8423 = vmatpush1.bf16.msra.mxu0 %v11689_v10 }
0x1007   : > { %8424 = vmatprep.subr.bf16.mxu0 %v11694_v2 }
0x100a   : > { %8425 = vmatpush1.bf16.msra.mxu0 %v11692_v43 }
0x100b   : > { %8426 = vmatprep.subr.bf16.mxu0 %v11697_v5 }
0x100e   : > { %8427 = vmatpush1.bf16.msra.mxu0 %v11695_v40 }
0x100f   : > { %8428 = vmatprep.subr.bf16.mxu0 %v11700_v8 }
0x1012   : > { %8429 = vmatpush1.bf16.msra.mxu0 %v11698_v0 }
0x1013   : > { %8430 = vmatprep.subr.bf16.mxu0 %v11703_v27 }
0x1016   : > { %8431 = vmatpush1.bf16.msra.mxu0 %v11701_v24 }
0x1017   : > { %8432 = vmatprep.subr.bf16.mxu0 %v11706_v9 }
0x101a   : > { %8433 = vmatpush1.bf16.msra.mxu0 %v11704_v19 }
0x101b   : > { %8434 = vmatprep.subr.bf16.mxu0 %v11709_v35 }
0x101e   : > { %8435 = vmatpush1.bf16.msra.mxu0 %v11707_v11 }
0x101f   : > { %8436 = vmatprep.subr.bf16.mxu0 %v11712_v15 }
0x1022   : > { %8437 = vmatpush1.bf16.msra.mxu0 %v11710_v30 }
0x1023   : > { %8438 = vmatprep.subr.bf16.mxu0 %v11715_v1 }
0x1026   : > { %8439 = vmatpush1.bf16.msra.mxu0 %v11713_v60 }
0x1027   : > { %8440 = vmatprep.subr.bf16.mxu0 %v11718_v46 }
0x102a   : > { %8441 = vmatpush1.bf16.msra.mxu0 %v11716_v31 }
0x109c   : > { %v7649_v3 = vpop.f32.mrb[32].mxu0 }
0x109d   : > { %v7650_v54 = vadd.f32 %v7649_v3, %v16297_v21  ;;  %v7651_v63 = vpop.f32.mrb[33].mxu0 }
0x109e   : > { %v7652_v53 = vadd.f32 %v7651_v63, %v16300_v56  ;;  %v7653_v61 = vpop.f32.mrb[34].mxu0 }
0x109f   : > { %v7728_v13 = vadd.f32 %v7650_v54, %v15842_v12  ;;  %v7654_v33 = vadd.f32 %v7653_v61, %v16297_v21  ;;  %v7655_v50 = vpop.f32.mrb[35].mxu0 }
0x10a0   : > { %v7729_v10 = vadd.f32 %v7652_v53, %v15845_v6  ;;  %v7656_v2 = vadd.f32 %v7655_v50, %v16300_v56 }
0x10a1   : > { %v16308_v43 = vmax.f32 %v7728_v13, 0.0  ;;  %v7730_v5 = vadd.f32 %v7654_v33, %v15850_v58 }
0x10a2   : > { %v16311_v40 = vmax.f32 %v7729_v10, 0.0  ;;  %v7731_v8 = vadd.f32 %v7656_v2, %v15854_v16 }
0x10a3   : > { %10408 = vst [vmem:[%s12146_s20 + $0x900] sm:$0xff] %v16308_v43  ;;  %v16316_v0 = vmax.f32 %v7730_v5, 0.0 }
0x10a4   : > { %10409 = vst [vmem:[%s12146_s20 + $0x908] sm:$0xff] %v16311_v40  ;;  %v16320_v12 = vmax.f32 %v7731_v8, 0.0  ;;  %v7659_v27 = vpop.f32.mrb[36].mxu0 }
0x10a5   : > { %10410 = vst [vmem:[%s12146_s20 + $0x910] sm:$0xff] %v16316_v0  ;;  %v7660_v6 = vadd.f32 %v7659_v27, %v16297_v21  ;;  %v7661_v24 = vpop.f32.mrb[37].mxu0  ;;  %v7825_v19 = vpack.c.bf16 %v16316_v0, %v16308_v43 }
0x10a6   : > { %10411 = vst [vmem:[%s12146_s20 + $0x918] sm:$0xff] %v16320_v12  ;;  %v7662_v58 = vadd.f32 %v7661_v24, %v16300_v56  ;;  %v7663_v16 = vpop.f32.mrb[38].mxu0  ;;  %v7826_v9 = vpack.c.bf16 %v16320_v12, %v16311_v40 }
0x10a7   : > { %v7732_v35 = vadd.f32 %v7660_v6, %v15870_v49  ;;  %v7664_v11 = vadd.f32 %v7663_v16, %v16297_v21  ;;  %v7665_v15 = vpop.f32.mrb[39].mxu0 }
0x10a8   : > { %v7733_v30 = vadd.f32 %v7662_v58, %v15873_v26  ;;  %v7666_v1 = vadd.f32 %v7665_v15, %v16300_v56  ;;  %8079 = vmatprep.mubr.bf16.mxu1 %v7826_v9 }
0x10a9   : > { %v16336_v60 = vmax.f32 %v7732_v35, 0.0  ;;  %v7734_v46 = vadd.f32 %v7664_v11, %v15878_v32  ;;  %8080 = vmatmul.mubr.bf16.vlgmr.msra.gmra.mrb[32].mxu1 %v7825_v19 }
0x10aa   : > { %v16339_v31 = vmax.f32 %v7733_v30, 0.0  ;;  %v7735_v52 = vadd.f32 %v7666_v1, %v15882_v36 }
0x10ab   : > { %10412 = vst [vmem:[%s12146_s20 + $0x920] sm:$0xff] %v16336_v60  ;;  %v16344_v49 = vmax.f32 %v7734_v46, 0.0 }
0x10ac   : > { %10413 = vst [vmem:[%s12146_s20 + $0x928] sm:$0xff] %v16339_v31  ;;  %v16348_v26 = vmax.f32 %v7735_v52, 0.0  ;;  %v7669_v3 = vpop.f32.mrb[40].mxu0 }
0x10ad   : > { %10414 = vst [vmem:[%s12146_s20 + $0x930] sm:$0xff] %v16344_v49  ;;  %v7670_v54 = vadd.f32 %v7669_v3, %v16297_v21  ;;  %v7671_v63 = vpop.f32.mrb[41].mxu0  ;;  %v7827_v61 = vpack.c.bf16 %v16344_v49, %v16336_v60 }
0x10ae   : > { %10415 = vst [vmem:[%s12146_s20 + $0x938] sm:$0xff] %v16348_v26  ;;  %v7672_v32 = vadd.f32 %v7671_v63, %v16300_v56  ;;  %v7673_v36 = vpop.f32.mrb[42].mxu0  ;;  %v7828_v53 = vpack.c.bf16 %v16348_v26, %v16339_v31 }
0x10af   : > { %v7736_v13 = vadd.f32 %v7670_v54, %v15898_v59  ;;  %v7674_v33 = vadd.f32 %v7673_v36, %v16297_v21  ;;  %v7675_v50 = vpop.f32.mrb[43].mxu0 }
0x10b0   : > { %v7737_v10 = vadd.f32 %v7672_v32, %v15901_v38  ;;  %v7676_v2 = vadd.f32 %v7675_v50, %v16300_v56  ;;  %8089 = vmatprep.mubr.bf16.mxu1 %v7828_v53 }
0x10b1   : > { %v16364_v5 = vmax.f32 %v7736_v13, 0.0  ;;  %v7738_v8 = vadd.f32 %v7674_v33, %v15906_v47  ;;  %8090 = vmatmul.mubr.bf16.gmra.mrb[36].mxu1 %v7827_v61 }
0x10b2   : > { %v16367_v27 = vmax.f32 %v7737_v10, 0.0  ;;  %v7739_v6 = vadd.f32 %v7676_v2, %v15910_v23 }
0x10b3   : > { %10416 = vst [vmem:[%s12146_s20 + $0x940] sm:$0xff] %v16364_v5  ;;  %v16372_v59 = vmax.f32 %v7738_v8, 0.0 }
0x10b4   : > { %10417 = vst [vmem:[%s12146_s20 + $0x948] sm:$0xff] %v16367_v27  ;;  %v16376_v38 = vmax.f32 %v7739_v6, 0.0  ;;  %v7679_v24 = vpop.f32.mrb[44].mxu0 }
0x10b5   : > { %10418 = vst [vmem:[%s12146_s20 + $0x950] sm:$0xff] %v16372_v59  ;;  %v7680_v58 = vadd.f32 %v7679_v24, %v16297_v21  ;;  %v7681_v16 = vpop.f32.mrb[45].mxu0  ;;  %v7829_v19 = vpack.c.bf16 %v16372_v59, %v16364_v5 }
0x10b6   : > { %10419 = vst [vmem:[%s12146_s20 + $0x958] sm:$0xff] %v16376_v38  ;;  %v7682_v47 = vadd.f32 %v7681_v16, %v16300_v56  ;;  %v7683_v23 = vpop.f32.mrb[46].mxu0  ;;  %v7830_v9 = vpack.c.bf16 %v16376_v38, %v16367_v27 }
0x10b7   : > { %v7740_v35 = vadd.f32 %v7680_v58, %v15926_v25  ;;  %v7684_v11 = vadd.f32 %v7683_v23, %v16297_v21  ;;  %v7685_v15 = vpop.f32.mrb[47].mxu0 }
0x10b8   : > { %v7741_v30 = vadd.f32 %v7682_v47, %v15929_v55  ;;  %v7686_v1 = vadd.f32 %v7685_v15, %v16300_v56  ;;  %8099 = vmatprep.mubr.bf16.mxu1 %v7830_v9 }
0x10b9   : > { %v16392_v46 = vmax.f32 %v7740_v35, 0.0  ;;  %v7742_v52 = vadd.f32 %v7684_v11, %v15934_v4  ;;  %8100 = vmatmul.mubr.bf16.gmra.mrb[40].mxu1 %v7829_v19 }
0x10ba   : > { %v16395_v3 = vmax.f32 %v7741_v30, 0.0  ;;  %v7743_v54 = vadd.f32 %v7686_v1, %v15938_v44 }
0x10bb   : > { %10420 = vst [vmem:[%s12146_s20 + $0x960] sm:$0xff] %v16392_v46  ;;  %v16400_v25 = vmax.f32 %v7742_v52, 0.0 }
0x10bc   : > { %10421 = vst [vmem:[%s12146_s20 + $0x968] sm:$0xff] %v16395_v3  ;;  %v16404_v55 = vmax.f32 %v7743_v54, 0.0  ;;  %v7689_v63 = vpop.f32.mrb[48].mxu0 }
0x10bd   : > { %10422 = vst [vmem:[%s12146_s20 + $0x970] sm:$0xff] %v16400_v25  ;;  %v7690_v32 = vadd.f32 %v7689_v63, %v16297_v21  ;;  %v7691_v36 = vpop.f32.mrb[49].mxu0  ;;  %v7831_v61 = vpack.c.bf16 %v16400_v25, %v16392_v46 }
0x10be   : > { %10423 = vst [vmem:[%s12146_s20 + $0x978] sm:$0xff] %v16404_v55  ;;  %v7692_v4 = vadd.f32 %v7691_v36, %v16300_v56  ;;  %v7693_v44 = vpop.f32.mrb[50].mxu0  ;;  %v7832_v53 = vpack.c.bf16 %v16404_v55, %v16395_v3 }
0x10bf   : > { %v7744_v13 = vadd.f32 %v7690_v32, %v15954_v62  ;;  %v7694_v33 = vadd.f32 %v7693_v44, %v16297_v21  ;;  %v7695_v50 = vpop.f32.mrb[51].mxu0 }
0x10c0   : > { %v7745_v10 = vadd.f32 %v7692_v4, %v15957_v42  ;;  %v7696_v2 = vadd.f32 %v7695_v50, %v16300_v56  ;;  %8109 = vmatprep.mubr.bf16.mxu1 %v7832_v53 }
0x10c1   : > { %v16420_v8 = vmax.f32 %v7744_v13, 0.0  ;;  %v7746_v6 = vadd.f32 %v7694_v33, %v15962_v18  ;;  %8110 = vmatmul.mubr.bf16.gmra.mrb[44].mxu1 %v7831_v61 }
0x10c2   : > { %v16423_v24 = vmax.f32 %v7745_v10, 0.0  ;;  %v7747_v58 = vadd.f32 %v7696_v2, %v15966_v39 }
0x10c3   : > { %10424 = vst [vmem:[%s12146_s20 + $0x980] sm:$0xff] %v16420_v8  ;;  %v16428_v62 = vmax.f32 %v7746_v6, 0.0 }
0x10c4   : > { %10425 = vst [vmem:[%s12146_s20 + $0x988] sm:$0xff] %v16423_v24  ;;  %v16432_v42 = vmax.f32 %v7747_v58, 0.0  ;;  %v7699_v16 = vpop.f32.mrb[52].mxu0 }
0x10c5   : > { %10426 = vst [vmem:[%s12146_s20 + $0x990] sm:$0xff] %v16428_v62  ;;  %v7700_v47 = vadd.f32 %v7699_v16, %v16297_v21  ;;  %v7701_v23 = vpop.f32.mrb[53].mxu0  ;;  %v7833_v19 = vpack.c.bf16 %v16428_v62, %v16420_v8 }
0x10c6   : > { %10427 = vst [vmem:[%s12146_s20 + $0x998] sm:$0xff] %v16432_v42  ;;  %v7702_v18 = vadd.f32 %v7701_v23, %v16300_v56  ;;  %v7703_v39 = vpop.f32.mrb[54].mxu0  ;;  %v7834_v9 = vpack.c.bf16 %v16432_v42, %v16423_v24 }
0x10c7   : > { %v7748_v35 = vadd.f32 %v7700_v47, %v15982_v34  ;;  %v7704_v11 = vadd.f32 %v7703_v39, %v16297_v21  ;;  %v7705_v15 = vpop.f32.mrb[55].mxu0 }
0x10c8   : > { %v7749_v30 = vadd.f32 %v7702_v18, %v15985_v20  ;;  %v7706_v1 = vadd.f32 %v7705_v15, %v16300_v56  ;;  %8119 = vmatprep.mubr.bf16.mxu1 %v7834_v9 }
0x10c9   : > { %v16448_v52 = vmax.f32 %v7748_v35, 0.0  ;;  %v7750_v54 = vadd.f32 %v7704_v11, %v15990_v22  ;;  %8120 = vmatmul.mubr.bf16.gmra.mrb[48].mxu1 %v7833_v19 }
0x10ca   : > { %v16451_v63 = vmax.f32 %v7749_v30, 0.0  ;;  %v7751_v32 = vadd.f32 %v7706_v1, %v15994_v45 }
0x10cb   : > { %10428 = vst [vmem:[%s12146_s20 + $0x9a0] sm:$0xff] %v16448_v52  ;;  %v16456_v34 = vmax.f32 %v7750_v54, 0.0 }
0x10cc   : > { %10429 = vst [vmem:[%s12146_s20 + $0x9a8] sm:$0xff] %v16451_v63  ;;  %v16460_v20 = vmax.f32 %v7751_v32, 0.0  ;;  %v7709_v36 = vpop.f32.mrb[56].mxu0 }
0x10cd   : > { %10430 = vst [vmem:[%s12146_s20 + $0x9b0] sm:$0xff] %v16456_v34  ;;  %v7710_v4 = vadd.f32 %v7709_v36, %v16297_v21  ;;  %v7711_v44 = vpop.f32.mrb[57].mxu0  ;;  %v7835_v61 = vpack.c.bf16 %v16456_v34, %v16448_v52 }
0x10ce   : > { %10431 = vst [vmem:[%s12146_s20 + $0x9b8] sm:$0xff] %v16460_v20  ;;  %v7712_v22 = vadd.f32 %v7711_v44, %v16300_v56  ;;  %v7713_v45 = vpop.f32.mrb[58].mxu0  ;;  %v7836_v53 = vpack.c.bf16 %v16460_v20, %v16451_v63  ;;  %v11724_v44 = vld [vmem:[%s16827_s5 + $0x9f4] ss:$8 sps:$4 sm:$0xff]  }
0x10cf   : > { %v7752_v13 = vadd.f32 %v7710_v4, %v16010_v14  ;;  %v7714_v33 = vadd.f32 %v7713_v45, %v16297_v21  ;;  %v7715_v50 = vpop.f32.mrb[59].mxu0  ;;  %v11725_v45 = vld [vmem:[%s16829_s7 + $0x40] sm:$0xff]  }
0x10d0   : > { %v7753_v10 = vadd.f32 %v7712_v22, %v16013_v17  ;;  %v7716_v2 = vadd.f32 %v7715_v50, %v16300_v56  ;;  %8129 = vmatprep.mubr.bf16.mxu1 %v7836_v53  ;;  %v11722_v22 = vld [vmem:[%s16827_s5 + $0x9f0] ss:$8 sps:$4 sm:$0xff]   ;;  %v11726_v53 = vld [vmem:[%s16829_s7] sm:$0xff]   ;;  %10690 = vmatprep.subr.bf16.mxu1 %v11725_v45 }
0x10d1   : > { %v16476_v6 = vmax.f32 %v7752_v13, 0.0  ;;  %v7754_v58 = vadd.f32 %v7714_v33, %v16018_v51  ;;  %8130 = vmatmul.mubr.bf16.gmra.mrb[52].mxu1 %v7835_v61  ;;  %v11727_v61 = vld [vmem:[%s16829_s7 + $0x48] sm:$0xff]   ;;  %v11729_v33 = vld [vmem:[%s16829_s7 + $0x50] sm:$0xff]  }
0x10d2   : > { %v16479_v16 = vmax.f32 %v7753_v10, 0.0  ;;  %v7755_v47 = vadd.f32 %v7716_v2, %v16022_v37  ;;  %10698 = vmatpush3.bf16.msra.mxu1 %v11726_v53  ;;  %v11728_v13 = vld [vmem:[%s16829_s7 + $0x8] sm:$0xff]   ;;  %v11730_v50 = vld [vmem:[%s16829_s7 + $0x10] sm:$0xff]   ;;  %v11731_v10 = vld [vmem:[%s16829_s7 + $0x58] sm:$0xff]  }
0x10d3   : > { %10432 = vst [vmem:[%s12146_s20 + $0x9c0] sm:$0xff] %v16476_v6  ;;  %v16484_v14 = vmax.f32 %v7754_v58, 0.0  ;;  %10691 = vmatprep.subr.bf16.mxu1 %v11727_v61  ;;  %v11732_v2 = vld [vmem:[%s16829_s7 + $0x18] sm:$0xff]   ;;  %v16565_v58 = vld [vmem:[%s16829_s7 + $0x60] sm:$0xff]  }
0x10d4   : > { %10433 = vst [vmem:[%s12146_s20 + $0x9c8] sm:$0xff] %v16479_v16  ;;  %v16488_v17 = vmax.f32 %v7755_v47, 0.0  ;;  %v7719_v23 = vpop.f32.mrb[60].mxu0  ;;  %v16571_v47 = vld [vmem:[%s16829_s7 + $0x20] sm:$0xff]  }
0x10d5   : > { %10434 = vst [vmem:[%s12146_s20 + $0x9d0] sm:$0xff] %v16484_v14  ;;  %v7720_v18 = vadd.f32 %v7719_v23, %v16297_v21  ;;  %v7721_v39 = vpop.f32.mrb[61].mxu0  ;;  %v7837_v19 = vpack.c.bf16 %v16484_v14, %v16476_v6  ;;  %v10472_v23 = vld [vmem:[%s16826_s4 + $0x12] sm:$0x3] }
0x10d6   : > { %10435 = vst [vmem:[%s12146_s20 + $0x9d8] sm:$0xff] %v16488_v17  ;;  %v7722_v51 = vadd.f32 %v7721_v39, %v16300_v56  ;;  %v7723_v37 = vpop.f32.mrb[62].mxu0  ;;  %v7838_v9 = vpack.c.bf16 %v16488_v17, %v16479_v16  ;;  %10699 = vmatpush3.bf16.msra.mxu1 %v11728_v13  ;;  %v16581_v39 = vrot.slane %v10472_v23, %v12127_v29 }
0x10d7   : > { %v7756_v35 = vadd.f32 %v7720_v18, %v16038_v57  ;;  %v7724_v11 = vadd.f32 %v7723_v37, %v16297_v21  ;;  %v7725_v15 = vpop.f32.mrb[63].mxu0  ;;  %10692 = vmatprep.subr.bf16.mxu1 %v11729_v33  ;;  %v16578_v18 = vrot.slane %v10472_v23, %v12125_v28 }
0x10d8   : > { %v7757_v30 = vadd.f32 %v7722_v51, %v16041_v41  ;;  %v7726_v1 = vadd.f32 %v7725_v15, %v16300_v56  ;;  %8139 = vmatprep.mubr.bf16.mxu1 %v7838_v9  ;;  %v11719_v56 = vld [vmem:[%s16827_s5 + $0x9e0] ss:$8 sps:$4 sm:$0xff]  }
0x10d9   : > { %v16504_v54 = vmax.f32 %v7756_v35, 0.0  ;;  %v7758_v32 = vadd.f32 %v7724_v11, %v16046_v7  ;;  %8140 = vmatmul.mubr.bf16.gmra.mrb[56].mxu1 %v7837_v19 }
0x10da   : > { %v16507_v36 = vmax.f32 %v7757_v30, 0.0  ;;  %v7759_v4 = vadd.f32 %v7726_v1, %v16050_v48  ;;  %v11721_v48 = vld [vmem:[%s16827_s5 + $0x9e4] ss:$8 sps:$4 sm:$0xff]   ;;  %10700 = vmatpush3.bf16.msra.mxu1 %v11730_v50 }
0x10db   : > { %10436 = vst [vmem:[%s12146_s20 + $0x9e0] sm:$0xff] %v16504_v54  ;;  %v16512_v57 = vmax.f32 %v7758_v32, 0.0  ;;  %8442 = vmatprep.subr.bf16.mxu0 %v11721_v48  ;;  %10693 = vmatprep.subr.bf16.mxu1 %v11731_v10 }
0x10dc   : > { %10437 = vst [vmem:[%s12146_s20 + $0x9e8] sm:$0xff] %v16507_v36  ;;  %v16516_v21 = vmax.f32 %v7759_v4, 0.0  ;;  %8443 = vmatpush1.bf16.msra.mxu0 %v11719_v56 }
0x10dd   : > { %10438 = vst [vmem:[%s12146_s20 + $0x9f0] sm:$0xff] %v16512_v57  ;;  %v7839_v7 = vpack.c.bf16 %v16512_v57, %v16504_v54  ;;  %8444 = vmatprep.subr.bf16.mxu0 %v11724_v44 }
0x10de   : > { %10439 = vst [vmem:[%s12146_s20 + $0x9f8] sm:$0xff] %v16516_v21  ;;  %v7840_v41 = vpack.c.bf16 %v16516_v21, %v16507_v36  ;;  %10701 = vmatpush3.bf16.msra.mxu1 %v11732_v2 }
0x10df   : > { %10694 = vmatprep.subr.bf16.mxu1 %v16565_v58 }
0x10e0   : > { %8149 = vmatprep.mubr.bf16.mxu1 %v7840_v41  ;;  %8445 = vmatpush1.bf16.msra.mxu0 %v11722_v22 }
0x10e1   : > { %8150 = vmatmul.mubr.bf16.gmra.mrb[60].mxu1 %v7839_v7  ;;  %10626 = vmatprep.subr.bf16.mxu0 %v11725_v45 }
0x10e2   : > { %10702 = vmatpush3.bf16.msra.mxu1 %v16571_v47 }
0x117c   : > { %v8081_v51 = vpop.f32.mrb[32].mxu1 }
0x117d   : > { %v8082_v37 = vadd.f32 %v8081_v51, %v16578_v18  ;;  %v8083_v9 = vpop.f32.mrb[33].mxu1 }
0x117e   : > { %v8084_v19 = vadd.f32 %v8083_v9, %v16581_v39  ;;  %v8085_v35 = vpop.f32.mrb[34].mxu1 }
0x117f   : > { %v8086_v11 = vadd.f32 %v8085_v35, %v16578_v18  ;;  %v8087_v15 = vpop.f32.mrb[35].mxu1  ;;  %v8160_v1 = vmax.f32 %v8082_v37, 0.0 }
0x1180   : > { %v8088_v30 = vadd.f32 %v8087_v15, %v16581_v39  ;;  %v8161_v4 = vmax.f32 %v8084_v19, 0.0 }
0x1181   : > { %v8162_v32 = vmax.f32 %v8086_v11, 0.0 }
0x1182   : > { %v8163_v41 = vmax.f32 %v8088_v30, 0.0 }
0x1183   : > { %v8192_v7 = vpack.c.bf16 %v8162_v32, %v8160_v1 }
0x1184   : > { %v8193_v48 = vpack.c.bf16 %v8163_v41, %v8161_v4  ;;  %v8091_v56 = vpop.f32.mrb[36].mxu1 }
0x1185   : > { %v8092_v44 = vadd.f32 %v8091_v56, %v16578_v18  ;;  %v8093_v22 = vpop.f32.mrb[37].mxu1 }
0x1186   : > { %v8094_v45 = vadd.f32 %v8093_v22, %v16581_v39  ;;  %v8095_v23 = vpop.f32.mrb[38].mxu1  ;;  %8446 = vmatprep.mubr.bf16.mxu0 %v8193_v48 }
0x1187   : > { %v8096_v51 = vadd.f32 %v8095_v23, %v16578_v18  ;;  %v8097_v9 = vpop.f32.mrb[39].mxu1  ;;  %8447 = vmatmul.mubr.bf16.vlgmr.msra.gmra.mrb[64].mxu0 %v8192_v7  ;;  %v8164_v37 = vmax.f32 %v8092_v44, 0.0 }
0x1188   : > { %v8098_v35 = vadd.f32 %v8097_v9, %v16581_v39  ;;  %10627 = vmatpush3.bf16.msra.mxu0 %v11726_v53  ;;  %v8165_v11 = vmax.f32 %v8094_v45, 0.0 }
0x1189   : > { %v8166_v19 = vmax.f32 %v8096_v51, 0.0  ;;  %10628 = vmatprep.subr.bf16.mxu0 %v11727_v61 }
0x118a   : > { %v8167_v15 = vmax.f32 %v8098_v35, 0.0 }
0x118b   : > { %v8194_v30 = vpack.c.bf16 %v8166_v19, %v8164_v37 }
0x118c   : > { %v8195_v1 = vpack.c.bf16 %v8167_v15, %v8165_v11  ;;  %v8101_v32 = vpop.f32.mrb[40].mxu1  ;;  %10629 = vmatpush3.bf16.msra.mxu0 %v11728_v13 }
0x118d   : > { %v8102_v4 = vadd.f32 %v8101_v32, %v16578_v18  ;;  %v8103_v41 = vpop.f32.mrb[41].mxu1  ;;  %10630 = vmatprep.subr.bf16.mxu0 %v11729_v33 }
0x118e   : > { %v8104_v48 = vadd.f32 %v8103_v41, %v16581_v39  ;;  %v8105_v56 = vpop.f32.mrb[42].mxu1  ;;  %8456 = vmatprep.mubr.bf16.mxu0 %v8195_v1 }
0x118f   : > { %v8106_v7 = vadd.f32 %v8105_v56, %v16578_v18  ;;  %v8107_v53 = vpop.f32.mrb[43].mxu1  ;;  %8457 = vmatmul.mubr.bf16.gmra.mrb[68].mxu0 %v8194_v30  ;;  %v8168_v44 = vmax.f32 %v8102_v4, 0.0 }
0x1190   : > { %v8108_v61 = vadd.f32 %v8107_v53, %v16581_v39  ;;  %10631 = vmatpush3.bf16.msra.mxu0 %v11730_v50  ;;  %v8169_v45 = vmax.f32 %v8104_v48, 0.0 }
0x1191   : > { %v8170_v22 = vmax.f32 %v8106_v7, 0.0  ;;  %10632 = vmatprep.subr.bf16.mxu0 %v11731_v10 }
0x1192   : > { %v8171_v13 = vmax.f32 %v8108_v61, 0.0 }
0x1193   : > { %v8196_v23 = vpack.c.bf16 %v8170_v22, %v8168_v44 }
0x1194   : > { %v8197_v51 = vpack.c.bf16 %v8171_v13, %v8169_v45  ;;  %v8111_v9 = vpop.f32.mrb[44].mxu1  ;;  %10633 = vmatpush3.bf16.msra.mxu0 %v11732_v2 }
0x1195   : > { %v8112_v33 = vadd.f32 %v8111_v9, %v16578_v18  ;;  %v8113_v35 = vpop.f32.mrb[45].mxu1  ;;  %10634 = vmatprep.subr.bf16.mxu0 %v16565_v58 }
0x1196   : > { %v8114_v37 = vadd.f32 %v8113_v35, %v16581_v39  ;;  %v8115_v19 = vpop.f32.mrb[46].mxu1  ;;  %8466 = vmatprep.mubr.bf16.mxu0 %v8197_v51 }
0x1197   : > { %v8116_v50 = vadd.f32 %v8115_v19, %v16578_v18  ;;  %v8117_v11 = vpop.f32.mrb[47].mxu1  ;;  %8467 = vmatmul.mubr.bf16.gmra.mrb[72].mxu0 %v8196_v23  ;;  %v8172_v15 = vmax.f32 %v8112_v33, 0.0 }
0x1198   : > { %v8118_v10 = vadd.f32 %v8117_v11, %v16581_v39  ;;  %10635 = vmatpush3.bf16.msra.mxu0 %v16571_v47  ;;  %v8173_v2 = vmax.f32 %v8114_v37, 0.0 }
0x1199   : > { %v8174_v30 = vmax.f32 %v8116_v50, 0.0 }
0x119a   : > { %v8175_v1 = vmax.f32 %v8118_v10, 0.0 }
0x119b   : > { %v8198_v32 = vpack.c.bf16 %v8174_v30, %v8172_v15 }
0x119c   : > { %v8199_v4 = vpack.c.bf16 %v8175_v1, %v8173_v2  ;;  %v8121_v41 = vpop.f32.mrb[48].mxu1 }
0x119d   : > { %v8122_v58 = vadd.f32 %v8121_v41, %v16578_v18  ;;  %v8123_v48 = vpop.f32.mrb[49].mxu1 }
0x119e   : > { %v8124_v56 = vadd.f32 %v8123_v48, %v16581_v39  ;;  %v8125_v7 = vpop.f32.mrb[50].mxu1  ;;  %8476 = vmatprep.mubr.bf16.mxu0 %v8199_v4 }
0x119f   : > { %v8126_v53 = vadd.f32 %v8125_v7, %v16578_v18  ;;  %v8127_v61 = vpop.f32.mrb[51].mxu1  ;;  %8477 = vmatmul.mubr.bf16.gmra.mrb[76].mxu0 %v8198_v32  ;;  %v8176_v44 = vmax.f32 %v8122_v58, 0.0 }
0x11a0   : > { %v8128_v47 = vadd.f32 %v8127_v61, %v16581_v39  ;;  %v8177_v45 = vmax.f32 %v8124_v56, 0.0 }
0x11a1   : > { %v8178_v22 = vmax.f32 %v8126_v53, 0.0 }
0x11a2   : > { %v8179_v13 = vmax.f32 %v8128_v47, 0.0 }
0x11a3   : > { %v8200_v23 = vpack.c.bf16 %v8178_v22, %v8176_v44 }
0x11a4   : > { %v8201_v51 = vpack.c.bf16 %v8179_v13, %v8177_v45  ;;  %v8131_v9 = vpop.f32.mrb[52].mxu1 }
0x11a5   : > { %v8132_v33 = vadd.f32 %v8131_v9, %v16578_v18  ;;  %v8133_v35 = vpop.f32.mrb[53].mxu1 }
0x11a6   : > { %v8134_v37 = vadd.f32 %v8133_v35, %v16581_v39  ;;  %v8135_v19 = vpop.f32.mrb[54].mxu1  ;;  %8486 = vmatprep.mubr.bf16.mxu0 %v8201_v51 }
0x11a7   : > { %v8136_v50 = vadd.f32 %v8135_v19, %v16578_v18  ;;  %v8137_v11 = vpop.f32.mrb[55].mxu1  ;;  %8487 = vmatmul.mubr.bf16.gmra.mrb[80].mxu0 %v8200_v23  ;;  %v8180_v15 = vmax.f32 %v8132_v33, 0.0 }
0x11a8   : > { %v8138_v10 = vadd.f32 %v8137_v11, %v16581_v39  ;;  %v8181_v2 = vmax.f32 %v8134_v37, 0.0 }
0x11a9   : > { %v8182_v30 = vmax.f32 %v8136_v50, 0.0 }
0x11aa   : > { %v8183_v1 = vmax.f32 %v8138_v10, 0.0 }
0x11ab   : > { %v8202_v32 = vpack.c.bf16 %v8182_v30, %v8180_v15 }
0x11ac   : > { %v8203_v4 = vpack.c.bf16 %v8183_v1, %v8181_v2  ;;  %v8141_v41 = vpop.f32.mrb[56].mxu1 }
0x11ad   : > { %v8142_v58 = vadd.f32 %v8141_v41, %v16578_v18  ;;  %v8143_v48 = vpop.f32.mrb[57].mxu1  ;;  %v11735_v41 = vld [vmem:[%s16829_s7 + $0x68] sm:$0xff]  }
0x11ae   : > { %v8144_v56 = vadd.f32 %v8143_v48, %v16581_v39  ;;  %v8145_v7 = vpop.f32.mrb[58].mxu1  ;;  %8496 = vmatprep.mubr.bf16.mxu0 %v8203_v4  ;;  %10636 = vmatprep.subr.bf16.mxu0 %v11735_v41  ;;  %v11739_v48 = vld [vmem:[%s16829_s7 + $0x78] sm:$0xff]  }
0x11af   : > { %v8146_v53 = vadd.f32 %v8145_v7, %v16578_v18  ;;  %v8147_v61 = vpop.f32.mrb[59].mxu1  ;;  %8497 = vmatmul.mubr.bf16.gmra.mrb[84].mxu0 %v8202_v32  ;;  %v8184_v44 = vmax.f32 %v8142_v58, 0.0  ;;  %10695 = vmatprep.subr.bf16.mxu1 %v11735_v41  ;;  %v11738_v58 = vld [vmem:[%s16829_s7 + $0x30] sm:$0xff]  }
0x11b0   : > { %v8148_v47 = vadd.f32 %v8147_v61, %v16581_v39  ;;  %v8185_v45 = vmax.f32 %v8144_v56, 0.0  ;;  %v11740_v56 = vld [vmem:[%s16829_s7 + $0x38] sm:$0xff]   ;;  %v10537_v7 = vld [vmem:[%s16828_s6 + $0x12] sm:$0x3] }
0x11b1   : > { %v8186_v22 = vmax.f32 %v8146_v53, 0.0  ;;  %v16639_v53 = vrot.slane %v10537_v7, %v12125_v28  ;;  %v16642_v61 = vrot.slane %v10537_v7, %v12127_v29 }
0x11b2   : > { %v8187_v13 = vmax.f32 %v8148_v47, 0.0 }
0x11b3   : > { %v8204_v23 = vpack.c.bf16 %v8186_v22, %v8184_v44 }
0x11b4   : > { %v8205_v51 = vpack.c.bf16 %v8187_v13, %v8185_v45  ;;  %v8151_v9 = vpop.f32.mrb[60].mxu1 }
0x11b5   : > { %v8152_v33 = vadd.f32 %v8151_v9, %v16578_v18  ;;  %v8153_v35 = vpop.f32.mrb[61].mxu1 }
0x11b6   : > { %v8154_v37 = vadd.f32 %v8153_v35, %v16581_v39  ;;  %v8155_v19 = vpop.f32.mrb[62].mxu1  ;;  %8506 = vmatprep.mubr.bf16.mxu0 %v8205_v51 }
0x11b7   : > { %v8156_v50 = vadd.f32 %v8155_v19, %v16578_v18  ;;  %v8157_v11 = vpop.f32.mrb[63].mxu1  ;;  %8507 = vmatmul.mubr.bf16.gmra.mrb[88].mxu0 %v8204_v23  ;;  %v8188_v15 = vmax.f32 %v8152_v33, 0.0  ;;  %v11736_v18 = vld [vmem:[%s16829_s7 + $0x28] sm:$0xff]  }
0x11b8   : > { %v8158_v10 = vadd.f32 %v8157_v11, %v16581_v39  ;;  %v8189_v2 = vmax.f32 %v8154_v37, 0.0  ;;  %10637 = vmatpush3.bf16.msra.mxu0 %v11736_v18  ;;  %10703 = vmatpush3.bf16.msra.mxu1 %v11736_v18  ;;  %v11737_v39 = vld [vmem:[%s16829_s7 + $0x70] sm:$0xff]  }
0x11b9   : > { %v8190_v30 = vmax.f32 %v8156_v50, 0.0  ;;  %10638 = vmatprep.subr.bf16.mxu0 %v11737_v39  ;;  %10696 = vmatprep.subr.bf16.mxu1 %v11737_v39 }
0x11ba   : > { %v8191_v1 = vmax.f32 %v8158_v10, 0.0 }
0x11bb   : > { %v8206_v32 = vpack.c.bf16 %v8190_v30, %v8188_v15 }
0x11bc   : > { %v8207_v4 = vpack.c.bf16 %v8191_v1, %v8189_v2  ;;  %10639 = vmatpush3.bf16.msra.mxu0 %v11738_v58  ;;  %10704 = vmatpush3.bf16.msra.mxu1 %v11738_v58 }
0x11bd   : > { %10640 = vmatprep.subr.bf16.mxu0 %v11739_v48  ;;  %10697 = vmatprep.subr.bf16.mxu1 %v11739_v48 }
0x11be   : > { %8516 = vmatprep.mubr.bf16.mxu0 %v8207_v4 }
0x11bf   : > { %8517 = vmatmul.mubr.bf16.gmra.mrb[92].mxu0 %v8206_v32 }
0x11c0   : > { %10641 = vmatpush3.bf16.msra.mxu0 %v11740_v56  ;;  %10705 = vmatpush3.bf16.msra.mxu1 %v11740_v56 }
0x125a   : > { %v8448_v47 = vpop.f32.mrb[64].mxu0 }
0x125b   : > { %v8449_v44 = vadd.f32 %v8448_v47, %v16639_v53  ;;  %v8450_v22 = vpop.f32.mrb[65].mxu0 }
0x125c   : > { %v8451_v45 = vadd.f32 %v8450_v22, %v16642_v61  ;;  %v8452_v13 = vpop.f32.mrb[66].mxu0 }
0x125d   : > { %v8527_v23 = vadd.f32 %v8449_v44, %v16308_v43  ;;  %v8453_v51 = vadd.f32 %v8452_v13, %v16639_v53  ;;  %v8454_v9 = vpop.f32.mrb[67].mxu0 }
0x125e   : > { %v8528_v28 = vadd.f32 %v8451_v45, %v16311_v40  ;;  %v8455_v29 = vadd.f32 %v8454_v9, %v16642_v61 }
0x125f   : > { %v8559_v33 = vmax.f32 %v8527_v23, 0.0  ;;  %v8529_v35 = vadd.f32 %v8453_v51, %v16316_v0 }
0x1260   : > { %v8560_v37 = vmax.f32 %v8528_v28, 0.0  ;;  %v8530_v19 = vadd.f32 %v8455_v29, %v16320_v12 }
0x1261   : > { %10570 = vst [vmem:[%s12146_s20 + $0xa00] sm:$0xff] %v8559_v33  ;;  %v8561_v50 = vmax.f32 %v8529_v35, 0.0 }
0x1262   : > { %10571 = vst [vmem:[%s12146_s20 + $0xa08] sm:$0xff] %v8560_v37  ;;  %v8562_v11 = vmax.f32 %v8530_v19, 0.0  ;;  %v8458_v10 = vpop.f32.mrb[68].mxu0 }
0x1263   : > { %10572 = vst [vmem:[%s12146_s20 + $0xa10] sm:$0xff] %v8561_v50  ;;  %v8624_v43 = vpack.c.bf16 %v8561_v50, %v8559_v33  ;;  %v8459_v15 = vadd.f32 %v8458_v10, %v16639_v53  ;;  %v8460_v30 = vpop.f32.mrb[69].mxu0 }
0x1264   : > { %10573 = vst [vmem:[%s12146_s20 + $0xa18] sm:$0xff] %v8562_v11  ;;  %v8461_v40 = vadd.f32 %v8460_v30, %v16642_v61  ;;  %v8462_v2 = vpop.f32.mrb[70].mxu0  ;;  %v8625_v0 = vpack.c.bf16 %v8562_v11, %v8560_v37 }
0x1265   : > { %v8531_v1 = vadd.f32 %v8459_v15, %v16336_v60  ;;  %v8463_v12 = vadd.f32 %v8462_v2, %v16639_v53  ;;  %v8464_v32 = vpop.f32.mrb[71].mxu0 }
0x1266   : > { %v8532_v4 = vadd.f32 %v8461_v40, %v16339_v31  ;;  %v8465_v41 = vadd.f32 %v8464_v32, %v16642_v61  ;;  %8807 = vmatprep.mubr.bf16.mxu0 %v8625_v0 }
0x1267   : > { %v8563_v18 = vmax.f32 %v8531_v1, 0.0  ;;  %v8533_v39 = vadd.f32 %v8463_v12, %v16344_v49  ;;  %8808 = vmatmul.mubr.bf16.vlgmr.msra.gmra.mrb[96].mxu0 %v8624_v43 }
0x1268   : > { %v8564_v58 = vmax.f32 %v8532_v4, 0.0  ;;  %v8534_v48 = vadd.f32 %v8465_v41, %v16348_v26 }
0x1269   : > { %10574 = vst [vmem:[%s12146_s20 + $0xa20] sm:$0xff] %v8563_v18  ;;  %v8565_v56 = vmax.f32 %v8533_v39, 0.0 }
0x126a   : > { %10575 = vst [vmem:[%s12146_s20 + $0xa28] sm:$0xff] %v8564_v58  ;;  %v8566_v60 = vmax.f32 %v8534_v48, 0.0  ;;  %v8468_v7 = vpop.f32.mrb[72].mxu0 }
0x126b   : > { %10576 = vst [vmem:[%s12146_s20 + $0xa30] sm:$0xff] %v8565_v56  ;;  %v8626_v47 = vpack.c.bf16 %v8565_v56, %v8563_v18  ;;  %v8469_v31 = vadd.f32 %v8468_v7, %v16639_v53  ;;  %v8470_v44 = vpop.f32.mrb[73].mxu0 }
0x126c   : > { %10577 = vst [vmem:[%s12146_s20 + $0xa38] sm:$0xff] %v8566_v60  ;;  %v8471_v22 = vadd.f32 %v8470_v44, %v16642_v61  ;;  %v8472_v49 = vpop.f32.mrb[74].mxu0  ;;  %v8627_v45 = vpack.c.bf16 %v8566_v60, %v8564_v58 }
0x126d   : > { %v8535_v13 = vadd.f32 %v8469_v31, %v16364_v5  ;;  %v8473_v26 = vadd.f32 %v8472_v49, %v16639_v53  ;;  %v8474_v23 = vpop.f32.mrb[75].mxu0 }
0x126e   : > { %v8536_v51 = vadd.f32 %v8471_v22, %v16367_v27  ;;  %v8475_v9 = vadd.f32 %v8474_v23, %v16642_v61  ;;  %8815 = vmatprep.mubr.bf16.mxu0 %v8627_v45 }
0x126f   : > { %v8567_v28 = vmax.f32 %v8535_v13, 0.0  ;;  %v8537_v29 = vadd.f32 %v8473_v26, %v16372_v59  ;;  %8816 = vmatmul.mubr.bf16.gmra.mrb[100].mxu0 %v8626_v47 }
0x1270   : > { %v8568_v33 = vmax.f32 %v8536_v51, 0.0  ;;  %v8538_v35 = vadd.f32 %v8475_v9, %v16376_v38 }
0x1271   : > { %10578 = vst [vmem:[%s12146_s20 + $0xa40] sm:$0xff] %v8567_v28  ;;  %v8569_v37 = vmax.f32 %v8537_v29, 0.0 }
0x1272   : > { %10579 = vst [vmem:[%s12146_s20 + $0xa48] sm:$0xff] %v8568_v33  ;;  %v8570_v5 = vmax.f32 %v8538_v35, 0.0  ;;  %v8478_v19 = vpop.f32.mrb[76].mxu0 }
0x1273   : > { %10580 = vst [vmem:[%s12146_s20 + $0xa50] sm:$0xff] %v8569_v37  ;;  %v8628_v50 = vpack.c.bf16 %v8569_v37, %v8567_v28  ;;  %v8479_v27 = vadd.f32 %v8478_v19, %v16639_v53  ;;  %v8480_v11 = vpop.f32.mrb[77].mxu0 }
0x1274   : > { %10581 = vst [vmem:[%s12146_s20 + $0xa58] sm:$0xff] %v8570_v5  ;;  %v8481_v10 = vadd.f32 %v8480_v11, %v16642_v61  ;;  %v8482_v59 = vpop.f32.mrb[78].mxu0  ;;  %v8629_v43 = vpack.c.bf16 %v8570_v5, %v8568_v33 }
0x1275   : > { %v8539_v15 = vadd.f32 %v8479_v27, %v16392_v46  ;;  %v8483_v38 = vadd.f32 %v8482_v59, %v16639_v53  ;;  %v8484_v30 = vpop.f32.mrb[79].mxu0 }
0x1276   : > { %v8540_v40 = vadd.f32 %v8481_v10, %v16395_v3  ;;  %v8485_v2 = vadd.f32 %v8484_v30, %v16642_v61  ;;  %8823 = vmatprep.mubr.bf16.mxu0 %v8629_v43 }
0x1277   : > { %v8571_v0 = vmax.f32 %v8539_v15, 0.0  ;;  %v8541_v1 = vadd.f32 %v8483_v38, %v16400_v25  ;;  %8824 = vmatmul.mubr.bf16.gmra.mrb[104].mxu0 %v8628_v50 }
0x1278   : > { %v8572_v12 = vmax.f32 %v8540_v40, 0.0  ;;  %v8542_v32 = vadd.f32 %v8485_v2, %v16404_v55 }
0x1279   : > { %10582 = vst [vmem:[%s12146_s20 + $0xa60] sm:$0xff] %v8571_v0  ;;  %v8573_v4 = vmax.f32 %v8541_v1, 0.0 }
0x127a   : > { %10583 = vst [vmem:[%s12146_s20 + $0xa68] sm:$0xff] %v8572_v12  ;;  %v8574_v46 = vmax.f32 %v8542_v32, 0.0  ;;  %v8488_v41 = vpop.f32.mrb[80].mxu0 }
0x127b   : > { %10584 = vst [vmem:[%s12146_s20 + $0xa70] sm:$0xff] %v8573_v4  ;;  %v8630_v18 = vpack.c.bf16 %v8573_v4, %v8571_v0  ;;  %v8489_v3 = vadd.f32 %v8488_v41, %v16639_v53  ;;  %v8490_v39 = vpop.f32.mrb[81].mxu0 }
0x127c   : > { %10585 = vst [vmem:[%s12146_s20 + $0xa78] sm:$0xff] %v8574_v46  ;;  %v8491_v58 = vadd.f32 %v8490_v39, %v16642_v61  ;;  %v8492_v25 = vpop.f32.mrb[82].mxu0  ;;  %v8631_v48 = vpack.c.bf16 %v8574_v46, %v8572_v12 }
0x127d   : > { %v8543_v56 = vadd.f32 %v8489_v3, %v16420_v8  ;;  %v8493_v55 = vadd.f32 %v8492_v25, %v16639_v53  ;;  %v8494_v60 = vpop.f32.mrb[83].mxu0 }
0x127e   : > { %v8544_v7 = vadd.f32 %v8491_v58, %v16423_v24  ;;  %v8495_v47 = vadd.f32 %v8494_v60, %v16642_v61  ;;  %8831 = vmatprep.mubr.bf16.mxu1 %v8631_v48 }
0x127f   : > { %v8575_v31 = vmax.f32 %v8543_v56, 0.0  ;;  %v8545_v44 = vadd.f32 %v8493_v55, %v16428_v62  ;;  %8832 = vmatmul.mubr.bf16.vlgmr.msra.gmra.mrb[64].mxu1 %v8630_v18 }
0x1280   : > { %v8576_v22 = vmax.f32 %v8544_v7, 0.0  ;;  %v8546_v49 = vadd.f32 %v8495_v47, %v16432_v42 }
0x1281   : > { %10586 = vst [vmem:[%s12146_s20 + $0xa80] sm:$0xff] %v8575_v31  ;;  %v8577_v45 = vmax.f32 %v8545_v44, 0.0 }
0x1282   : > { %10587 = vst [vmem:[%s12146_s20 + $0xa88] sm:$0xff] %v8576_v22  ;;  %v8578_v8 = vmax.f32 %v8546_v49, 0.0  ;;  %v8498_v13 = vpop.f32.mrb[84].mxu0 }
0x1283   : > { %10588 = vst [vmem:[%s12146_s20 + $0xa90] sm:$0xff] %v8577_v45  ;;  %v8632_v26 = vpack.c.bf16 %v8577_v45, %v8575_v31  ;;  %v8499_v24 = vadd.f32 %v8498_v13, %v16639_v53  ;;  %v8500_v23 = vpop.f32.mrb[85].mxu0 }
0x1284   : > { %10589 = vst [vmem:[%s12146_s20 + $0xa98] sm:$0xff] %v8578_v8  ;;  %v8501_v51 = vadd.f32 %v8500_v23, %v16642_v61  ;;  %v8502_v62 = vpop.f32.mrb[86].mxu0  ;;  %v8633_v9 = vpack.c.bf16 %v8578_v8, %v8576_v22 }
0x1285   : > { %v8547_v28 = vadd.f32 %v8499_v24, %v16448_v52  ;;  %v8503_v42 = vadd.f32 %v8502_v62, %v16639_v53  ;;  %v8504_v29 = vpop.f32.mrb[87].mxu0 }
0x1286   : > { %v8548_v33 = vadd.f32 %v8501_v51, %v16451_v63  ;;  %v8505_v35 = vadd.f32 %v8504_v29, %v16642_v61  ;;  %8839 = vmatprep.mubr.bf16.mxu1 %v8633_v9 }
0x1287   : > { %v8579_v37 = vmax.f32 %v8547_v28, 0.0  ;;  %v8549_v5 = vadd.f32 %v8503_v42, %v16456_v34  ;;  %8840 = vmatmul.mubr.bf16.gmra.mrb[68].mxu1 %v8632_v26 }
0x1288   : > { %v8580_v19 = vmax.f32 %v8548_v33, 0.0  ;;  %v8550_v50 = vadd.f32 %v8505_v35, %v16460_v20 }
0x1289   : > { %10590 = vst [vmem:[%s12146_s20 + $0xaa0] sm:$0xff] %v8579_v37  ;;  %v8581_v27 = vmax.f32 %v8549_v5, 0.0 }
0x128a   : > { %10591 = vst [vmem:[%s12146_s20 + $0xaa8] sm:$0xff] %v8580_v19  ;;  %v8582_v52 = vmax.f32 %v8550_v50, 0.0  ;;  %v8508_v11 = vpop.f32.mrb[88].mxu0 }
0x128b   : > { %10592 = vst [vmem:[%s12146_s20 + $0xab0] sm:$0xff] %v8581_v27  ;;  %v8634_v10 = vpack.c.bf16 %v8581_v27, %v8579_v37  ;;  %v8509_v63 = vadd.f32 %v8508_v11, %v16639_v53  ;;  %v8510_v59 = vpop.f32.mrb[89].mxu0 }
0x128c   : > { %10593 = vst [vmem:[%s12146_s20 + $0xab8] sm:$0xff] %v8582_v52  ;;  %v8511_v43 = vadd.f32 %v8510_v59, %v16642_v61  ;;  %v8512_v34 = vpop.f32.mrb[90].mxu0  ;;  %v8635_v15 = vpack.c.bf16 %v8582_v52, %v8580_v19 }
0x128d   : > { %v8551_v38 = vadd.f32 %v8509_v63, %v16476_v6  ;;  %v8513_v20 = vadd.f32 %v8512_v34, %v16639_v53  ;;  %v8514_v30 = vpop.f32.mrb[91].mxu0 }
0x128e   : > { %v8552_v40 = vadd.f32 %v8511_v43, %v16479_v16  ;;  %v8515_v2 = vadd.f32 %v8514_v30, %v16642_v61  ;;  %8847 = vmatprep.mubr.bf16.mxu1 %v8635_v15 }
0x128f   : > { %v8583_v0 = vmax.f32 %v8551_v38, 0.0  ;;  %v8553_v1 = vadd.f32 %v8513_v20, %v16484_v14  ;;  %8848 = vmatmul.mubr.bf16.gmra.mrb[72].mxu1 %v8634_v10 }
0x1290   : > { %v8584_v12 = vmax.f32 %v8552_v40, 0.0  ;;  %v8554_v32 = vadd.f32 %v8515_v2, %v16488_v17 }
0x1291   : > { %10594 = vst [vmem:[%s12146_s20 + $0xac0] sm:$0xff] %v8583_v0  ;;  %v8585_v4 = vmax.f32 %v8553_v1, 0.0 }
0x1292   : > { %10595 = vst [vmem:[%s12146_s20 + $0xac8] sm:$0xff] %v8584_v12  ;;  %v8586_v6 = vmax.f32 %v8554_v32, 0.0  ;;  %v8518_v46 = vpop.f32.mrb[92].mxu0 }
0x1293   : > { %10596 = vst [vmem:[%s12146_s20 + $0xad0] sm:$0xff] %v8585_v4  ;;  %v8636_v41 = vpack.c.bf16 %v8585_v4, %v8583_v0  ;;  %v8519_v16 = vadd.f32 %v8518_v46, %v16639_v53  ;;  %v8520_v18 = vpop.f32.mrb[93].mxu0 }
0x1294   : > { %10597 = vst [vmem:[%s12146_s20 + $0xad8] sm:$0xff] %v8586_v6  ;;  %v8521_v3 = vadd.f32 %v8520_v18, %v16642_v61  ;;  %v8522_v14 = vpop.f32.mrb[94].mxu0  ;;  %v8637_v39 = vpack.c.bf16 %v8586_v6, %v8584_v12 }
0x1295   : > { %v8555_v17 = vadd.f32 %v8519_v16, %v16504_v54  ;;  %v8523_v58 = vadd.f32 %v8522_v14, %v16639_v53  ;;  %v8524_v25 = vpop.f32.mrb[95].mxu0 }
0x1296   : > { %v8556_v48 = vadd.f32 %v8521_v3, %v16507_v36  ;;  %v8525_v56 = vadd.f32 %v8524_v25, %v16642_v61  ;;  %8855 = vmatprep.mubr.bf16.mxu1 %v8637_v39 }
0x1297   : > { %v8587_v55 = vmax.f32 %v8555_v17, 0.0  ;;  %v8557_v60 = vadd.f32 %v8523_v58, %v16512_v57  ;;  %8856 = vmatmul.mubr.bf16.gmra.mrb[76].mxu1 %v8636_v41  ;;  %v16743_v57 = vld [vmem:[%s16830_s8] ss:$0 sm:$0xff] }
0x1298   : > { %v8588_v7 = vmax.f32 %v8556_v48, 0.0  ;;  %v8558_v47 = vadd.f32 %v8525_v56, %v16516_v21 }
0x1299   : > { %10598 = vst [vmem:[%s12146_s20 + $0xae0] sm:$0xff] %v8587_v55  ;;  %v8589_v31 = vmax.f32 %v8557_v60, 0.0 }
0x129a   : > { %10599 = vst [vmem:[%s12146_s20 + $0xae8] sm:$0xff] %v8588_v7  ;;  %v8590_v54 = vmax.f32 %v8558_v47, 0.0 }
0x129b   : > { %10600 = vst [vmem:[%s12146_s20 + $0xaf0] sm:$0xff] %v8589_v31  ;;  %v8638_v53 = vpack.c.bf16 %v8589_v31, %v8587_v55 }
0x129c   : > { %10601 = vst [vmem:[%s12146_s20 + $0xaf8] sm:$0xff] %v8590_v54  ;;  %v8639_v44 = vpack.c.bf16 %v8590_v54, %v8588_v7 }
0x129e   : > { %8863 = vmatprep.mubr.bf16.mxu1 %v8639_v44 }
0x129f   : > { %8864 = vmatmul.mubr.bf16.gmra.mrb[80].mxu1 %v8638_v53 }
0x133a   : > { %v10642_v36 = vpop.f32.mrb[96].mxu0 }
0x133b   : > { %v10643_v61 = vpop.f32.mrb[97].mxu0 }
0x133c   : > { %v10644_v22 = vadd.f32 %v10643_v61, %v10642_v36  ;;  %v10645_v21 = vpop.f32.mrb[98].mxu0 }
0x133d   : > { %v10646_v49 = vpop.f32.mrb[99].mxu0 }
0x133e   : > { %v8810_v45 = vadd.f32 %v10644_v22, %v16743_v57  ;;  %v10647_v8 = vadd.f32 %v10646_v49, %v10645_v21 }
0x1340   : > { %8872 = vst [vmem:[%s16750_s12] sm:$0xff] %v8810_v45  ;;  %v8813_v13 = vadd.f32 %v10647_v8, %v16743_v57 }
0x1342   : > { %8873 = vst [vmem:[%s16750_s12 + $0x8] sm:$0xff] %v8813_v13  ;;  %v10648_v26 = vpop.f32.mrb[100].mxu0 }
0x1343   : > { %v10649_v24 = vpop.f32.mrb[101].mxu0 }
0x1344   : > { %v10650_v23 = vadd.f32 %v10649_v24, %v10648_v26  ;;  %v10651_v51 = vpop.f32.mrb[102].mxu0 }
0x1345   : > { %v10652_v62 = vpop.f32.mrb[103].mxu0 }
0x1346   : > { %v8818_v9 = vadd.f32 %v10650_v23, %v16743_v57  ;;  %v10653_v28 = vadd.f32 %v10652_v62, %v10651_v51 }
0x1348   : > { %8874 = vst [vmem:[%s16750_s12 + $0x10] sm:$0xff] %v8818_v9  ;;  %v8821_v42 = vadd.f32 %v10653_v28, %v16743_v57 }
0x134a   : > { %8875 = vst [vmem:[%s16750_s12 + $0x18] sm:$0xff] %v8821_v42  ;;  %v10654_v29 = vpop.f32.mrb[104].mxu0 }
0x134b   : > { %v10655_v33 = vpop.f32.mrb[105].mxu0 }
0x134c   : > { %v10656_v35 = vadd.f32 %v10655_v33, %v10654_v29  ;;  %v10657_v37 = vpop.f32.mrb[106].mxu0 }
0x134d   : > { %v10658_v5 = vpop.f32.mrb[107].mxu0 }
0x134e   : > { %v8826_v19 = vadd.f32 %v10656_v35, %v16743_v57  ;;  %v10659_v50 = vadd.f32 %v10658_v5, %v10657_v37 }
0x1350   : > { %8876 = vst [vmem:[%s16750_s12 + $0x20] sm:$0xff] %v8826_v19  ;;  %v8829_v27 = vadd.f32 %v10659_v50, %v16743_v57 }
0x1352   : > { %8877 = vst [vmem:[%s16750_s12 + $0x28] sm:$0xff] %v8829_v27  ;;  %v10660_v52 = vpop.f32.mrb[64].mxu1 }
0x1353   : > { %v10661_v11 = vpop.f32.mrb[65].mxu1 }
0x1354   : > { %v10662_v10 = vadd.f32 %v10661_v11, %v10660_v52  ;;  %v10663_v63 = vpop.f32.mrb[66].mxu1 }
0x1355   : > { %v10664_v59 = vpop.f32.mrb[67].mxu1 }
0x1356   : > { %v8834_v43 = vadd.f32 %v10662_v10, %v16743_v57  ;;  %v10665_v34 = vadd.f32 %v10664_v59, %v10663_v63 }
0x1358   : > { %8878 = vst [vmem:[%s16750_s12 + $0x30] sm:$0xff] %v8834_v43  ;;  %v8837_v15 = vadd.f32 %v10665_v34, %v16743_v57 }
0x135a   : > { %8879 = vst [vmem:[%s16750_s12 + $0x38] sm:$0xff] %v8837_v15  ;;  %v10666_v38 = vpop.f32.mrb[68].mxu1 }
0x135b   : > { %v10667_v20 = vpop.f32.mrb[69].mxu1 }
0x135c   : > { %v10668_v30 = vadd.f32 %v10667_v20, %v10666_v38  ;;  %v10669_v40 = vpop.f32.mrb[70].mxu1 }
0x135d   : > { %v10670_v2 = vpop.f32.mrb[71].mxu1 }
0x135e   : > { %v8842_v0 = vadd.f32 %v10668_v30, %v16743_v57  ;;  %v10671_v1 = vadd.f32 %v10670_v2, %v10669_v40 }
0x1360   : > { %8880 = vst [vmem:[%s16750_s12 + $0x40] sm:$0xff] %v8842_v0  ;;  %v8845_v12 = vadd.f32 %v10671_v1, %v16743_v57 }
0x1362   : > { %8881 = vst [vmem:[%s16750_s12 + $0x48] sm:$0xff] %v8845_v12  ;;  %v10672_v32 = vpop.f32.mrb[72].mxu1 }
0x1363   : > { %v10673_v4 = vpop.f32.mrb[73].mxu1 }
0x1364   : > { %v10674_v6 = vadd.f32 %v10673_v4, %v10672_v32  ;;  %v10675_v46 = vpop.f32.mrb[74].mxu1 }
0x1365   : > { %v10676_v41 = vpop.f32.mrb[75].mxu1 }
0x1366   : > { %v8850_v16 = vadd.f32 %v10674_v6, %v16743_v57  ;;  %v10677_v18 = vadd.f32 %v10676_v41, %v10675_v46 }
0x1368   : > { %8882 = vst [vmem:[%s16750_s12 + $0x50] sm:$0xff] %v8850_v16  ;;  %v8853_v3 = vadd.f32 %v10677_v18, %v16743_v57 }
0x136a   : > { %8883 = vst [vmem:[%s16750_s12 + $0x58] sm:$0xff] %v8853_v3  ;;  %v10678_v14 = vpop.f32.mrb[76].mxu1 }
0x136b   : > { %v10679_v39 = vpop.f32.mrb[77].mxu1 }
0x136c   : > { %v10680_v17 = vadd.f32 %v10679_v39, %v10678_v14  ;;  %v10681_v58 = vpop.f32.mrb[78].mxu1 }
0x136d   : > { %v10682_v25 = vpop.f32.mrb[79].mxu1 }
0x136e   : > { %v8858_v48 = vadd.f32 %v10680_v17, %v16743_v57  ;;  %v10683_v56 = vadd.f32 %v10682_v25, %v10681_v58 }
0x1370   : > { %8884 = vst [vmem:[%s16750_s12 + $0x60] sm:$0xff] %v8858_v48  ;;  %v8861_v55 = vadd.f32 %v10683_v56, %v16743_v57 }
0x1372   : > { %8885 = vst [vmem:[%s16750_s12 + $0x68] sm:$0xff] %v8861_v55  ;;  %v10684_v60 = vpop.f32.mrb[80].mxu1 }
0x1373   : > { %v10685_v7 = vpop.f32.mrb[81].mxu1 }
0x1374   : > { %v10686_v47 = vadd.f32 %v10685_v7, %v10684_v60  ;;  %v10687_v31 = vpop.f32.mrb[82].mxu1 }
0x1375   : > { %v10688_v54 = vpop.f32.mrb[83].mxu1 }
0x1376   : > { %v8866_v53 = vadd.f32 %v10686_v47, %v16743_v57  ;;  %v10689_v44 = vadd.f32 %v10688_v54, %v10687_v31 }
0x1378   : > { %8886 = vst [vmem:[%s16750_s12 + $0x70] sm:$0xff] %v8866_v53  ;;  %v8869_v36 = vadd.f32 %v10689_v44, %v16743_v57 }
0x137a   : > { %8887 = vst [vmem:[%s16750_s12 + $0x78] sm:$0xff] %v8869_v36 }
0x137b   : > { %s10625_s30 = sshll.u32 %s11860_s17, 12  ;;  %s8928_s21 = sshll.u32 %s12146_s20, 4  ;;  %s8929_s21 = int_to_ptr.vmem [resolvable:$true] %s8928_s21 }
0x137c   : > { %s8911_s28 = scalar_lea.hbm %s16832_s10, %s10625_s30  ;;  %s11778_s29 = smov 4096  }
0x137d   : > { %10707 = sst [smem:[#allocation5]] (%p11877_p5), %s11778_s29  ;;  %s11779_s18 = smov 8192  }
0x137e   : > { %10708 = sst [smem:[#allocation5 + $0x1]] (%p11877_p5), %s11779_s18  ;;  %s11780_s11 = smov 16  }
0x137f   : > { %10709 = sst [smem:[#allocation5 + $0x2]] (%p11877_p5), %s11780_s11  ;;  %s11781_s12 = smov 256  }
0x1380   : > { %10710 = sst [smem:[#allocation5 + $0x3]] (%p11877_p5), %s11781_s12  ;;  %s11782_s17 = smov [#allocation4]  }
0x1381   : > { %10711 = sst [smem:[#allocation5 + $0x4]] (%p11877_p5), %s11781_s12  ;;  %s11783_s20 = smov 0  }
0x1382   : > { %10712 = sst [smem:[#allocation5 + $0x5]] (%p11877_p5), %s11780_s11 }
0x1383   : > { %10713 = dma.general (%p11877_p5), %s8929_s21, 45056, %s8911_s28, %s8894_s0, %s11782_s17, [#allocation5], %s11783_s20, 0  }
0x1384 PF: > { %p10719_p11 = scmp.ge.s32.totalorder %s11775_s16, 2  ;;  %s8964_s27 = sand.u32 1, %s11763_s13  }
0x1385   : > { %s8965_s30 = scalar_lea.sflag [#allocation3], %s8964_s27 }
0x1386   : > { %p10716_p12 = pnand %p10719_p11, %p11881_p6 }
0x1388   : > { %11758 = dma.done.wait (!%p10716_p12), %s8965_s30, 45056  }
0x1389   : > { %11760 = vsyncadd (!%p10716_p12), %s8965_s30, 4294922240  ;;  %p21_p13 = scmp.ge.s32.totalorder %s11864_s19, 4   ;;  %s16841_s13 = smov %s11767_s14 }
0x138a   : > { %s16842_s14 = smov %s11771_s15  ;;  %s16843_s15 = smov %s11875_s22 }
0x138b   : > { %s16844_s16 = smov %s11864_s19  ;;  %23 = sbr.rel (!%p21_p13) target bundleno = 5 (0x5), region = 154 }
0x1392   :  { %8970 = vsyncpa [#allocation3], 1 }
0x1393   :  { %8972 = vsyncpa [#allocation3 + $0x1], 1 }

</bundles_post_ra>
